<compile_context>
chip_gen: v5e
topology: v5e:2x2
jax: 0.10.0
libtpu: 0.0.40
codegen_flags: <defaults>
</compile_context>

<pallas_src>
import jax
import jax.numpy as jnp
import numpy as np
from jax import lax
from jax.experimental import pallas as pl
from jax.experimental.pallas import tpu as pltpu  # noqa: F401  (defaults suffice; kept per template)

BN_EPS = 1e-5              # PyTorch BatchNorm2d default
CONV1_K, CONV1_PAD = 7, 3  # conv1 config from Audio_CNN.__init__ (host-side im2col)


# ----------------------------------------------------------------------------
# Pallas kernel (whole network)
# ----------------------------------------------------------------------------
def _conv_pool_block(a, t_ref, w_ref, s_ref):
    """One conv -> folded-BN -> ReLU -> 2x2 maxpool block, entirely in VMEM.

    a:     (M_in, Cin)  f32   input activations, rows ordered (b, i, j)
    t_ref: (K*K*4*G, M_in) bf16  stacked 0/1 row-selection ("gather") matrices
    w_ref: (K*K*Cin, Cout) bf16  conv weights with BN scale folded in
    s_ref: (1, Cout)    f32   (bias - mean)*scale + beta
    returns (G, Cout) f32 pooled activations (rows ordered (b, i, j))
    """
    cin = a.shape[1]
    kk = w_ref.shape[0] // cin            # K*K conv offsets
    group = t_ref.shape[0] // (4 * kk)    # padded pool-group row count
    rows = 4 * group
    # One MXU matmul gathers all patch rows (exact one-hot gather, zero = padding).
    pv = jnp.dot(t_ref[...], a, preferred_element_type=jnp.float32)  # (kk*rows, cin)
    acc = None
    for k in range(kk):                   # static unroll; aligned row slices
        c = jnp.dot(pv[k * rows:(k + 1) * rows, :],
                    w_ref[k * cin:(k + 1) * cin, :],
                    preferred_element_type=jnp.float32)
        acc = c if acc is None else acc + c
    y = acc + s_ref[...]
    # 2x2 maxpool = max over the 4 pool-offset row groups (sublane-aligned slices).
    pooled = jnp.maximum(jnp.maximum(y[0:group], y[group:2 * group]),
                         jnp.maximum(y[2 * group:3 * group], y[3 * group:4 * group]))
    return jnp.maximum(pooled, 0.0)       # ReLU (order-exchangeable with max)


def audio_cnn_kernel(p1_ref, w1_ref, s1_ref,
                     t2_ref, w2_ref, s2_ref,
                     t3_ref, w3_ref, s3_ref,
                     t4_ref, w4_ref, s4_ref,
                     fw1_ref, fb1_ref, fw2_ref, fb2_ref,
                     o_ref):
    # ---- layer 1: patches were built on the host from the raw input ----------
    g1 = p1_ref.shape[0] // 4
    y1 = jnp.dot(p1_ref[...], w1_ref[...],
                 preferred_element_type=jnp.float32) + s1_ref[...]
    a1 = jnp.maximum(
        jnp.maximum(jnp.maximum(y1[0:g1], y1[g1:2 * g1]),
                    jnp.maximum(y1[2 * g1:3 * g1], y1[3 * g1:4 * g1])), 0.0)

    # ---- layers 2..4: gather-matmul im2col + conv + BN + ReLU + pool in VMEM --
    a2 = _conv_pool_block(a1, t2_ref, w2_ref, s2_ref)   # (B*16, 64)
    a3 = _conv_pool_block(a2, t3_ref, w3_ref, s3_ref)   # (B*4, 128)
    a4 = _conv_pool_block(a3, t4_ref, w4_ref, s4_ref)   # (8, 256), rows >= B garbage

    # ---- classifier head: 1x1 spatial => pooled channels ARE the fc1 input ----
    h = jnp.maximum(jnp.dot(a4, fw1_ref[...],
                            preferred_element_type=jnp.float32) + fb1_ref[...], 0.0)
    logits = jnp.dot(h, fw2_ref[...],
                     preferred_element_type=jnp.float32) + fb2_ref[...]
    o_ref[...] = logits[0:o_ref.shape[0], :]


# ----------------------------------------------------------------------------
# One-time parameter preparation (hoisted out of the forward pass)
# ----------------------------------------------------------------------------
def build_selection(batch, h_in, w_in, ksize, pad):
    """0/1 row-selection matrix mapping prev activations (rows (b,i,j)) to the
    stacked im2col patch rows for all K*K conv offsets x 4 pool offsets."""
    h_out, w_out = h_in // 2, w_in // 2
    m_in = batch * h_in * w_in
    group = batch * h_out * w_out
    group_pad = ((group + 7) // 8) * 8          # keep pooling slices sublane-aligned
    rows = 4 * group_pad
    t = np.zeros((ksize * ksize * rows, m_in), np.float32)
    for ky in range(ksize):
        for kx in range(ksize):
            base = (ky * ksize + kx) * rows
            for g in range(4):
                py, px = divmod(g, 2)
                for b in range(batch):
                    for io in range(h_out):
                        for jo in range(w_out):
                            iy = 2 * io + py + ky - pad
                            ix = 2 * jo + px + kx - pad
                            if 0 <= iy < h_in and 0 <= ix < w_in:
                                r_out = base + g * group_pad + (b * h_out + io) * w_out + jo
                                r_in = (b * h_in + iy) * w_in + ix
                                t[r_out, r_in] = 1.0
    return jnp.asarray(t, jnp.bfloat16), group_pad


def fold_bn(cp, cin):
    """Fold inference BN and conv bias into the weights; bf16 weights, f32 shift."""
    k = cp["k"]
    cout = cp["w"].shape[0]
    scale = cp["gamma"] / jnp.sqrt(cp["var"] + BN_EPS)
    w_mat = jnp.transpose(cp["w"], (2, 3, 1, 0)).reshape(k * k * cin, cout)
    w_fused = (w_mat * scale[None, :]).astype(jnp.bfloat16)
    shift = (cp["b"] - cp["mean"]) * scale + cp["beta"]
    return w_fused, shift[None, :].astype(jnp.float32)


def build_fused_params(conv_params, fc_params, batch, in_hw=16):
    # batch must be even so layer-3's pooled row groups (batch*4) stay 8-aligned.
    assert batch % 2 == 0, "this prebaked tiling assumes an even batch size"
    fused = {}
    fused["w1"], fused["s1"] = fold_bn(conv_params[0], 1)
    h = w = in_hw // 2                      # spatial after block 1
    for idx in (1, 2, 3):                   # conv2..conv4
        cp = conv_params[idx]
        cin = conv_params[idx - 1]["w"].shape[0]
        t, _ = build_selection(batch, h, w, cp["k"], cp["pad"])
        wf, sf = fold_bn(cp, cin)
        fused[f"t{idx + 1}"], fused[f"w{idx + 1}"], fused[f"s{idx + 1}"] = t, wf, sf
        h, w = h // 2, w // 2
    fc1_w, fc1_b, fc2_w, fc2_b = fc_params
    fused.update(fc1_w=fc1_w, fc1_b=fc1_b[None, :],
                 fc2_w=fc2_w, fc2_b=fc2_b[None, :])
    return fused


# ----------------------------------------------------------------------------
# Forward pass (one pallas_call)
# ----------------------------------------------------------------------------
def im2col_pooled(x, k, pad):
    """Host-side im2col for layer 1 only (input preprocessing on the raw image).
    Rows ordered pool-offset-major, then batch, then pooled position; features (ky,kx,c)."""
    b, h, w, c = x.shape
    d = k * k * c
    xp = jnp.pad(x, ((0, 0), (pad, pad), (pad, pad), (0, 0)))
    slices = [xp[:, ky:ky + h, kx:kx + w, :] for ky in range(k) for kx in range(k)]
    patches = jnp.stack(slices, axis=3).reshape(b, h, w, d)
    patches = patches.reshape(b, h // 2, 2, w // 2, 2, d)
    patches = patches.transpose(2, 4, 0, 1, 3, 5)
    return patches.reshape(4 * b * (h // 2) * (w // 2), d)


def audio_cnn_forward_pallas(x_nchw, fused):
    x = jnp.transpose(x_nchw.astype(jnp.float32), (0, 2, 3, 1))   # NCHW -> NHWC
    b = x.shape[0]
    p1 = im2col_pooled(x, CONV1_K, CONV1_PAD)                     # (4*B*64, 49) f32
    num_classes = fused["fc2_w"].shape[1]
    return pl.pallas_call(
        audio_cnn_kernel,
        out_shape=jax.ShapeDtypeStruct((b, num_classes), jnp.float32),
    )(p1, fused["w1"], fused["s1"],
      fused["t2"], fused["w2"], fused["s2"],
      fused["t3"], fused["w3"], fused["s3"],
      fused["t4"], fused["w4"], fused["s4"],
      fused["fc1_w"], fused["fc1_b"], fused["fc2_w"], fused["fc2_b"])


# ----------------------------------------------------------------------------
# Parameters and pure-JAX reference
# ----------------------------------------------------------------------------
def init_params(key, num_classes):
    conv_cfg = [(1, 32, 7, 3), (32, 64, 5, 2), (64, 128, 3, 1), (128, 256, 3, 1)]
    conv_params = []
    for cin, cout, k, pad in conv_cfg:
        key, kw, kb, kg, kbe, km, kv = jax.random.split(key, 7)
        conv_params.append(dict(
            w=jax.random.normal(kw, (cout, cin, k, k), jnp.float32) / jnp.sqrt(cin * k * k),
            b=0.1 * jax.random.normal(kb, (cout,), jnp.float32),
            gamma=1.0 + 0.1 * jax.random.normal(kg, (cout,), jnp.float32),
            beta=0.1 * jax.random.normal(kbe, (cout,), jnp.float32),
            mean=0.1 * jax.random.normal(km, (cout,), jnp.float32),
            var=1.0 + 0.1 * jnp.abs(jax.random.normal(kv, (cout,), jnp.float32)),
            k=k, pad=pad))
    key, k1, k2, k3, k4 = jax.random.split(key, 5)
    # lazy fc1 resolves to 256 inputs for a 16x16 input (256 ch * 1 * 1 after 4 pools)
    fc1_w = jax.random.normal(k1, (256, 256), jnp.float32) / 16.0
    fc1_b = 0.1 * jax.random.normal(k2, (256,), jnp.float32)
    fc2_w = jax.random.normal(k3, (256, num_classes), jnp.float32) / 16.0
    fc2_b = 0.1 * jax.random.normal(k4, (num_classes,), jnp.float32)
    return conv_params, (fc1_w, fc1_b, fc2_w, fc2_b)


def audio_cnn_forward_reference(x_nchw, conv_params, fc_params):
    x = x_nchw.astype(jnp.float32)
    for cp in conv_params:
        pad = cp["pad"]
        y = lax.conv_general_dilated(
            x, cp["w"], (1, 1), [(pad, pad), (pad, pad)],
            dimension_numbers=("NCHW", "OIHW", "NCHW"),
            precision=lax.Precision.HIGHEST)
        y = y + cp["b"][None, :, None, None]
        scale = cp["gamma"] / jnp.sqrt(cp["var"] + BN_EPS)
        shift = cp["beta"] - cp["mean"] * scale
        y = y * scale[None, :, None, None] + shift[None, :, None, None]
        y = jnp.maximum(y, 0.0)
        x = lax.reduce_window(y, -jnp.inf, lax.max, (1, 1, 2, 2), (1, 1, 2, 2), "VALID")
    b = x.shape[0]
    flat = x.reshape(b, -1)
    fc1_w, fc1_b, fc2_w, fc2_b = fc_params
    h = jnp.maximum(flat @ fc1_w + fc1_b, 0.0)
    return h @ fc2_w + fc2_b


if __name__ == "__main__":
    num_classes = 10
    key = jax.random.PRNGKey(0)
    kparam, kx = jax.random.split(key)
    conv_params, fc_params = init_params(kparam, num_classes)

    B = 2
    x = jax.random.normal(kx, (B, 1, 16, 16), jnp.float32)

    # One-time prep: BN fold, weight reshape/cast, selection matrices.
    fused = build_fused_params(conv_params, fc_params, batch=B, in_hw=16)
    fwd = jax.jit(audio_cnn_forward_pallas)

    out = jax.block_until_ready(fwd(x, fused))
    ref = jax.block_until_ready(audio_cnn_forward_reference(x, conv_params, fc_params))

    assert out.shape == (B, num_classes), out.shape
    max_err = float(jnp.max(jnp.abs(out - ref)))
    # Tightened from 1e-1: activations stay f32 end-to-end, only conv weights are
    # bf16, so the expected max error is ~1e-2; 4e-2 leaves deterministic margin.
    assert max_err < 4e-2, f"mismatch vs reference, max abs err = {max_err}"
    print("KERNEL_OK")
</pallas_src>

<mosaic_0001>
module attributes {stable_mosaic.version = 11 : i64} {
  func.func @audio_cnn_kernel(%arg0: memref<512x49xf32, #tpu.memory_space<vmem>>, %arg1: memref<49x32xbf16, #tpu.memory_space<vmem>>, %arg2: memref<1x32xf32, #tpu.memory_space<vmem>>, %arg3: memref<3200x128xbf16, #tpu.memory_space<vmem>>, %arg4: memref<800x64xbf16, #tpu.memory_space<vmem>>, %arg5: memref<1x64xf32, #tpu.memory_space<vmem>>, %arg6: memref<288x32xbf16, #tpu.memory_space<vmem>>, %arg7: memref<576x128xbf16, #tpu.memory_space<vmem>>, %arg8: memref<1x128xf32, #tpu.memory_space<vmem>>, %arg9: memref<288x8xbf16, #tpu.memory_space<vmem>>, %arg10: memref<1152x256xbf16, #tpu.memory_space<vmem>>, %arg11: memref<1x256xf32, #tpu.memory_space<vmem>>, %arg12: memref<256x256xf32, #tpu.memory_space<vmem>>, %arg13: memref<1x256xf32, #tpu.memory_space<vmem>>, %arg14: memref<256x10xf32, #tpu.memory_space<vmem>>, %arg15: memref<1x10xf32, #tpu.memory_space<vmem>>, %arg16: memref<2x10xf32, #tpu.memory_space<vmem>>) attributes {dimension_semantics = [], scalar_prefetch = 0 : i64, scratch_operands = 0 : i64, tpu.core_type = #tpu.core_type<tc>} {
    %c0 = arith.constant 0 : index
    %c0_0 = arith.constant 0 : index
    %0 = vector.load %arg0[%c0, %c0_0] : memref<512x49xf32, #tpu.memory_space<vmem>>, vector<512x49xf32>
    %c0_1 = arith.constant 0 : index
    %c0_2 = arith.constant 0 : index
    %1 = vector.load %arg1[%c0_1, %c0_2] : memref<49x32xbf16, #tpu.memory_space<vmem>>, vector<49x32xbf16>
    %cst = arith.constant dense<0.000000e+00> : vector<512x32xf32>
    %2 = tpu.matmul %0, %1, %cst {dimension_numbers = #tpu.dot_dimension_numbers<[1], [0], [0], [1], [0, 0, 1, 1], [], []>} : vector<512x49xf32>, vector<49x32xbf16>, vector<512x32xf32> -> vector<512x32xf32>
    %c0_3 = arith.constant 0 : index
    %c0_4 = arith.constant 0 : index
    %3 = vector.load %arg2[%c0_3, %c0_4] : memref<1x32xf32, #tpu.memory_space<vmem>>, vector<1x32xf32>
    %4 = vector.broadcast %3 : vector<1x32xf32> to vector<512x32xf32>
    %5 = arith.addf %2, %4 : vector<512x32xf32>
    %6 = vector.extract_strided_slice %5 {offsets = [0, 0], sizes = [128, 32], strides = [1, 1]} : vector<512x32xf32> to vector<128x32xf32>
    %7 = vector.extract_strided_slice %5 {offsets = [128, 0], sizes = [128, 32], strides = [1, 1]} : vector<512x32xf32> to vector<128x32xf32>
    %8 = arith.maximumf %6, %7 : vector<128x32xf32>
    %9 = vector.extract_strided_slice %5 {offsets = [256, 0], sizes = [128, 32], strides = [1, 1]} : vector<512x32xf32> to vector<128x32xf32>
    %10 = vector.extract_strided_slice %5 {offsets = [384, 0], sizes = [128, 32], strides = [1, 1]} : vector<512x32xf32> to vector<128x32xf32>
    %11 = arith.maximumf %9, %10 : vector<128x32xf32>
    %12 = arith.maximumf %8, %11 : vector<128x32xf32>
    %cst_5 = arith.constant 0.000000e+00 : f32
    %13 = vector.broadcast %cst_5 : f32 to vector<128x32xf32>
    %14 = arith.maximumf %12, %13 : vector<128x32xf32>
    %c0_6 = arith.constant 0 : index
    %c0_7 = arith.constant 0 : index
    %15 = vector.load %arg3[%c0_6, %c0_7] : memref<3200x128xbf16, #tpu.memory_space<vmem>>, vector<3200x128xbf16>
    %cst_8 = arith.constant dense<0.000000e+00> : vector<3200x32xf32>
    %16 = tpu.matmul %15, %14, %cst_8 {dimension_numbers = #tpu.dot_dimension_numbers<[1], [0], [0], [1], [0, 0, 1, 1], [], []>} : vector<3200x128xbf16>, vector<128x32xf32>, vector<3200x32xf32> -> vector<3200x32xf32>
    %17 = vector.extract_strided_slice %16 {offsets = [0, 0], sizes = [128, 32], strides = [1, 1]} : vector<3200x32xf32> to vector<128x32xf32>
    %c0_9 = arith.constant 0 : index
    %c0_10 = arith.constant 0 : index
    %18 = vector.load %arg4[%c0_9, %c0_10] : memref<800x64xbf16, #tpu.memory_space<vmem>>, vector<32x64xbf16>
    %cst_11 = arith.constant dense<0.000000e+00> : vector<128x64xf32>
    %19 = tpu.matmul %17, %18, %cst_11 {dimension_numbers = #tpu.dot_dimension_numbers<[1], [0], [0], [1], [0, 0, 1, 1], [], []>} : vector<128x32xf32>, vector<32x64xbf16>, vector<128x64xf32> -> vector<128x64xf32>
    %20 = vector.extract_strided_slice %16 {offsets = [128, 0], sizes = [128, 32], strides = [1, 1]} : vector<3200x32xf32> to vector<128x32xf32>
    %c32 = arith.constant 32 : index
    %c0_12 = arith.constant 0 : index
    %21 = vector.load %arg4[%c32, %c0_12] : memref<800x64xbf16, #tpu.memory_space<vmem>>, vector<32x64xbf16>
    %cst_13 = arith.constant dense<0.000000e+00> : vector<128x64xf32>
    %22 = tpu.matmul %20, %21, %cst_13 {dimension_numbers = #tpu.dot_dimension_numbers<[1], [0], [0], [1], [0, 0, 1, 1], [], []>} : vector<128x32xf32>, vector<32x64xbf16>, vector<128x64xf32> -> vector<128x64xf32>
    %23 = arith.addf %19, %22 : vector<128x64xf32>
    %24 = vector.extract_strided_slice %16 {offsets = [256, 0], sizes = [128, 32], strides = [1, 1]} : vector<3200x32xf32> to vector<128x32xf32>
    %c64 = arith.constant 64 : index
    %c0_14 = arith.constant 0 : index
    %25 = vector.load %arg4[%c64, %c0_14] : memref<800x64xbf16, #tpu.memory_space<vmem>>, vector<32x64xbf16>
    %cst_15 = arith.constant dense<0.000000e+00> : vector<128x64xf32>
    %26 = tpu.matmul %24, %25, %cst_15 {dimension_numbers = #tpu.dot_dimension_numbers<[1], [0], [0], [1], [0, 0, 1, 1], [], []>} : vector<128x32xf32>, vector<32x64xbf16>, vector<128x64xf32> -> vector<128x64xf32>
    %27 = arith.addf %23, %26 : vector<128x64xf32>
    %28 = vector.extract_strided_slice %16 {offsets = [384, 0], sizes = [128, 32], strides = [1, 1]} : vector<3200x32xf32> to vector<128x32xf32>
    %c96 = arith.constant 96 : index
    %c0_16 = arith.constant 0 : index
    %29 = vector.load %arg4[%c96, %c0_16] : memref<800x64xbf16, #tpu.memory_space<vmem>>, vector<32x64xbf16>
    %cst_17 = arith.constant dense<0.000000e+00> : vector<128x64xf32>
    %30 = tpu.matmul %28, %29, %cst_17 {dimension_numbers = #tpu.dot_dimension_numbers<[1], [0], [0], [1], [0, 0, 1, 1], [], []>} : vector<128x32xf32>, vector<32x64xbf16>, vector<128x64xf32> -> vector<128x64xf32>
    %31 = arith.addf %27, %30 : vector<128x64xf32>
    %32 = vector.extract_strided_slice %16 {offsets = [512, 0], sizes = [128, 32], strides = [1, 1]} : vector<3200x32xf32> to vector<128x32xf32>
    %c128 = arith.constant 128 : index
    %c0_18 = arith.constant 0 : index
    %33 = vector.load %arg4[%c128, %c0_18] : memref<800x64xbf16, #tpu.memory_space<vmem>>, vector<32x64xbf16>
    %cst_19 = arith.constant dense<0.000000e+00> : vector<128x64xf32>
    %34 = tpu.matmul %32, %33, %cst_19 {dimension_numbers = #tpu.dot_dimension_numbers<[1], [0], [0], [1], [0, 0, 1, 1], [], []>} : vector<128x32xf32>, vector<32x64xbf16>, vector<128x64xf32> -> vector<128x64xf32>
    %35 = arith.addf %31, %34 : vector<128x64xf32>
    %36 = vector.extract_strided_slice %16 {offsets = [640, 0], sizes = [128, 32], strides = [1, 1]} : vector<3200x32xf32> to vector<128x32xf32>
    %c160 = arith.constant 160 : index
    %c0_20 = arith.constant 0 : index
    %37 = vector.load %arg4[%c160, %c0_20] : memref<800x64xbf16, #tpu.memory_space<vmem>>, vector<32x64xbf16>
    %cst_21 = arith.constant dense<0.000000e+00> : vector<128x64xf32>
    %38 = tpu.matmul %36, %37, %cst_21 {dimension_numbers = #tpu.dot_dimension_numbers<[1], [0], [0], [1], [0, 0, 1, 1], [], []>} : vector<128x32xf32>, vector<32x64xbf16>, vector<128x64xf32> -> vector<128x64xf32>
    %39 = arith.addf %35, %38 : vector<128x64xf32>
    %40 = vector.extract_strided_slice %16 {offsets = [768, 0], sizes = [128, 32], strides = [1, 1]} : vector<3200x32xf32> to vector<128x32xf32>
    %c192 = arith.constant 192 : index
    %c0_22 = arith.constant 0 : index
    %41 = vector.load %arg4[%c192, %c0_22] : memref<800x64xbf16, #tpu.memory_space<vmem>>, vector<32x64xbf16>
    %cst_23 = arith.constant dense<0.000000e+00> : vector<128x64xf32>
    %42 = tpu.matmul %40, %41, %cst_23 {dimension_numbers = #tpu.dot_dimension_numbers<[1], [0], [0], [1], [0, 0, 1, 1], [], []>} : vector<128x32xf32>, vector<32x64xbf16>, vector<128x64xf32> -> vector<128x64xf32>
    %43 = arith.addf %39, %42 : vector<128x64xf32>
    %44 = vector.extract_strided_slice %16 {offsets = [896, 0], sizes = [128, 32], strides = [1, 1]} : vector<3200x32xf32> to vector<128x32xf32>
    %c224 = arith.constant 224 : index
    %c0_24 = arith.constant 0 : index
    %45 = vector.load %arg4[%c224, %c0_24] : memref<800x64xbf16, #tpu.memory_space<vmem>>, vector<32x64xbf16>
    %cst_25 = arith.constant dense<0.000000e+00> : vector<128x64xf32>
    %46 = tpu.matmul %44, %45, %cst_25 {dimension_numbers = #tpu.dot_dimension_numbers<[1], [0], [0], [1], [0, 0, 1, 1], [], []>} : vector<128x32xf32>, vector<32x64xbf16>, vector<128x64xf32> -> vector<128x64xf32>
    %47 = arith.addf %43, %46 : vector<128x64xf32>
    %48 = vector.extract_strided_slice %16 {offsets = [1024, 0], sizes = [128, 32], strides = [1, 1]} : vector<3200x32xf32> to vector<128x32xf32>
    %c256 = arith.constant 256 : index
    %c0_26 = arith.constant 0 : index
    %49 = vector.load %arg4[%c256, %c0_26] : memref<800x64xbf16, #tpu.memory_space<vmem>>, vector<32x64xbf16>
    %cst_27 = arith.constant dense<0.000000e+00> : vector<128x64xf32>
    %50 = tpu.matmul %48, %49, %cst_27 {dimension_numbers = #tpu.dot_dimension_numbers<[1], [0], [0], [1], [0, 0, 1, 1], [], []>} : vector<128x32xf32>, vector<32x64xbf16>, vector<128x64xf32> -> vector<128x64xf32>
    %51 = arith.addf %47, %50 : vector<128x64xf32>
    %52 = vector.extract_strided_slice %16 {offsets = [1152, 0], sizes = [128, 32], strides = [1, 1]} : vector<3200x32xf32> to vector<128x32xf32>
    %c288 = arith.constant 288 : index
    %c0_28 = arith.constant 0 : index
    %53 = vector.load %arg4[%c288, %c0_28] : memref<800x64xbf16, #tpu.memory_space<vmem>>, vector<32x64xbf16>
    %cst_29 = arith.constant dense<0.000000e+00> : vector<128x64xf32>
    %54 = tpu.matmul %52, %53, %cst_29 {dimension_numbers = #tpu.dot_dimension_numbers<[1], [0], [0], [1], [0, 0, 1, 1], [], []>} : vector<128x32xf32>, vector<32x64xbf16>, vector<128x64xf32> -> vector<128x64xf32>
    %55 = arith.addf %51, %54 : vector<128x64xf32>
    %56 = vector.extract_strided_slice %16 {offsets = [1280, 0], sizes = [128, 32], strides = [1, 1]} : vector<3200x32xf32> to vector<128x32xf32>
    %c320 = arith.constant 320 : index
    %c0_30 = arith.constant 0 : index
    %57 = vector.load %arg4[%c320, %c0_30] : memref<800x64xbf16, #tpu.memory_space<vmem>>, vector<32x64xbf16>
    %cst_31 = arith.constant dense<0.000000e+00> : vector<128x64xf32>
    %58 = tpu.matmul %56, %57, %cst_31 {dimension_numbers = #tpu.dot_dimension_numbers<[1], [0], [0], [1], [0, 0, 1, 1], [], []>} : vector<128x32xf32>, vector<32x64xbf16>, vector<128x64xf32> -> vector<128x64xf32>
    %59 = arith.addf %55, %58 : vector<128x64xf32>
    %60 = vector.extract_strided_slice %16 {offsets = [1408, 0], sizes = [128, 32], strides = [1, 1]} : vector<3200x32xf32> to vector<128x32xf32>
    %c352 = arith.constant 352 : index
    %c0_32 = arith.constant 0 : index
    %61 = vector.load %arg4[%c352, %c0_32] : memref<800x64xbf16, #tpu.memory_space<vmem>>, vector<32x64xbf16>
    %cst_33 = arith.constant dense<0.000000e+00> : vector<128x64xf32>
    %62 = tpu.matmul %60, %61, %cst_33 {dimension_numbers = #tpu.dot_dimension_numbers<[1], [0], [0], [1], [0, 0, 1, 1], [], []>} : vector<128x32xf32>, vector<32x64xbf16>, vector<128x64xf32> -> vector<128x64xf32>
    %63 = arith.addf %59, %62 : vector<128x64xf32>
    %64 = vector.extract_strided_slice %16 {offsets = [1536, 0], sizes = [128, 32], strides = [1, 1]} : vector<3200x32xf32> to vector<128x32xf32>
    %c384 = arith.constant 384 : index
    %c0_34 = arith.constant 0 : index
    %65 = vector.load %arg4[%c384, %c0_34] : memref<800x64xbf16, #tpu.memory_space<vmem>>, vector<32x64xbf16>
    %cst_35 = arith.constant dense<0.000000e+00> : vector<128x64xf32>
    %66 = tpu.matmul %64, %65, %cst_35 {dimension_numbers = #tpu.dot_dimension_numbers<[1], [0], [0], [1], [0, 0, 1, 1], [], []>} : vector<128x32xf32>, vector<32x64xbf16>, vector<128x64xf32> -> vector<128x64xf32>
    %67 = arith.addf %63, %66 : vector<128x64xf32>
    %68 = vector.extract_strided_slice %16 {offsets = [1664, 0], sizes = [128, 32], strides = [1, 1]} : vector<3200x32xf32> to vector<128x32xf32>
    %c416 = arith.constant 416 : index
    %c0_36 = arith.constant 0 : index
    %69 = vector.load %arg4[%c416, %c0_36] : memref<800x64xbf16, #tpu.memory_space<vmem>>, vector<32x64xbf16>
    %cst_37 = arith.constant dense<0.000000e+00> : vector<128x64xf32>
    %70 = tpu.matmul %68, %69, %cst_37 {dimension_numbers = #tpu.dot_dimension_numbers<[1], [0], [0], [1], [0, 0, 1, 1], [], []>} : vector<128x32xf32>, vector<32x64xbf16>, vector<128x64xf32> -> vector<128x64xf32>
    %71 = arith.addf %67, %70 : vector<128x64xf32>
    %72 = vector.extract_strided_slice %16 {offsets = [1792, 0], sizes = [128, 32], strides = [1, 1]} : vector<3200x32xf32> to vector<128x32xf32>
    %c448 = arith.constant 448 : index
    %c0_38 = arith.constant 0 : index
    %73 = vector.load %arg4[%c448, %c0_38] : memref<800x64xbf16, #tpu.memory_space<vmem>>, vector<32x64xbf16>
    %cst_39 = arith.constant dense<0.000000e+00> : vector<128x64xf32>
    %74 = tpu.matmul %72, %73, %cst_39 {dimension_numbers = #tpu.dot_dimension_numbers<[1], [0], [0], [1], [0, 0, 1, 1], [], []>} : vector<128x32xf32>, vector<32x64xbf16>, vector<128x64xf32> -> vector<128x64xf32>
    %75 = arith.addf %71, %74 : vector<128x64xf32>
    %76 = vector.extract_strided_slice %16 {offsets = [1920, 0], sizes = [128, 32], strides = [1, 1]} : vector<3200x32xf32> to vector<128x32xf32>
    %c480 = arith.constant 480 : index
    %c0_40 = arith.constant 0 : index
    %77 = vector.load %arg4[%c480, %c0_40] : memref<800x64xbf16, #tpu.memory_space<vmem>>, vector<32x64xbf16>
    %cst_41 = arith.constant dense<0.000000e+00> : vector<128x64xf32>
    %78 = tpu.matmul %76, %77, %cst_41 {dimension_numbers = #tpu.dot_dimension_numbers<[1], [0], [0], [1], [0, 0, 1, 1], [], []>} : vector<128x32xf32>, vector<32x64xbf16>, vector<128x64xf32> -> vector<128x64xf32>
    %79 = arith.addf %75, %78 : vector<128x64xf32>
    %80 = vector.extract_strided_slice %16 {offsets = [2048, 0], sizes = [128, 32], strides = [1, 1]} : vector<3200x32xf32> to vector<128x32xf32>
    %c512 = arith.constant 512 : index
    %c0_42 = arith.constant 0 : index
    %81 = vector.load %arg4[%c512, %c0_42] : memref<800x64xbf16, #tpu.memory_space<vmem>>, vector<32x64xbf16>
    %cst_43 = arith.constant dense<0.000000e+00> : vector<128x64xf32>
    %82 = tpu.matmul %80, %81, %cst_43 {dimension_numbers = #tpu.dot_dimension_numbers<[1], [0], [0], [1], [0, 0, 1, 1], [], []>} : vector<128x32xf32>, vector<32x64xbf16>, vector<128x64xf32> -> vector<128x64xf32>
    %83 = arith.addf %79, %82 : vector<128x64xf32>
    %84 = vector.extract_strided_slice %16 {offsets = [2176, 0], sizes = [128, 32], strides = [1, 1]} : vector<3200x32xf32> to vector<128x32xf32>
    %c544 = arith.constant 544 : index
    %c0_44 = arith.constant 0 : index
    %85 = vector.load %arg4[%c544, %c0_44] : memref<800x64xbf16, #tpu.memory_space<vmem>>, vector<32x64xbf16>
    %cst_45 = arith.constant dense<0.000000e+00> : vector<128x64xf32>
    %86 = tpu.matmul %84, %85, %cst_45 {dimension_numbers = #tpu.dot_dimension_numbers<[1], [0], [0], [1], [0, 0, 1, 1], [], []>} : vector<128x32xf32>, vector<32x64xbf16>, vector<128x64xf32> -> vector<128x64xf32>
    %87 = arith.addf %83, %86 : vector<128x64xf32>
    %88 = vector.extract_strided_slice %16 {offsets = [2304, 0], sizes = [128, 32], strides = [1, 1]} : vector<3200x32xf32> to vector<128x32xf32>
    %c576 = arith.constant 576 : index
    %c0_46 = arith.constant 0 : index
    %89 = vector.load %arg4[%c576, %c0_46] : memref<800x64xbf16, #tpu.memory_space<vmem>>, vector<32x64xbf16>
    %cst_47 = arith.constant dense<0.000000e+00> : vector<128x64xf32>
    %90 = tpu.matmul %88, %89, %cst_47 {dimension_numbers = #tpu.dot_dimension_numbers<[1], [0], [0], [1], [0, 0, 1, 1], [], []>} : vector<128x32xf32>, vector<32x64xbf16>, vector<128x64xf32> -> vector<128x64xf32>
    %91 = arith.addf %87, %90 : vector<128x64xf32>
    %92 = vector.extract_strided_slice %16 {offsets = [2432, 0], sizes = [128, 32], strides = [1, 1]} : vector<3200x32xf32> to vector<128x32xf32>
    %c608 = arith.constant 608 : index
    %c0_48 = arith.constant 0 : index
    %93 = vector.load %arg4[%c608, %c0_48] : memref<800x64xbf16, #tpu.memory_space<vmem>>, vector<32x64xbf16>
    %cst_49 = arith.constant dense<0.000000e+00> : vector<128x64xf32>
    %94 = tpu.matmul %92, %93, %cst_49 {dimension_numbers = #tpu.dot_dimension_numbers<[1], [0], [0], [1], [0, 0, 1, 1], [], []>} : vector<128x32xf32>, vector<32x64xbf16>, vector<128x64xf32> -> vector<128x64xf32>
    %95 = arith.addf %91, %94 : vector<128x64xf32>
    %96 = vector.extract_strided_slice %16 {offsets = [2560, 0], sizes = [128, 32], strides = [1, 1]} : vector<3200x32xf32> to vector<128x32xf32>
    %c640 = arith.constant 640 : index
    %c0_50 = arith.constant 0 : index
    %97 = vector.load %arg4[%c640, %c0_50] : memref<800x64xbf16, #tpu.memory_space<vmem>>, vector<32x64xbf16>
    %cst_51 = arith.constant dense<0.000000e+00> : vector<128x64xf32>
    %98 = tpu.matmul %96, %97, %cst_51 {dimension_numbers = #tpu.dot_dimension_numbers<[1], [0], [0], [1], [0, 0, 1, 1], [], []>} : vector<128x32xf32>, vector<32x64xbf16>, vector<128x64xf32> -> vector<128x64xf32>
    %99 = arith.addf %95, %98 : vector<128x64xf32>
    %100 = vector.extract_strided_slice %16 {offsets = [2688, 0], sizes = [128, 32], strides = [1, 1]} : vector<3200x32xf32> to vector<128x32xf32>
    %c672 = arith.constant 672 : index
    %c0_52 = arith.constant 0 : index
    %101 = vector.load %arg4[%c672, %c0_52] : memref<800x64xbf16, #tpu.memory_space<vmem>>, vector<32x64xbf16>
    %cst_53 = arith.constant dense<0.000000e+00> : vector<128x64xf32>
    %102 = tpu.matmul %100, %101, %cst_53 {dimension_numbers = #tpu.dot_dimension_numbers<[1], [0], [0], [1], [0, 0, 1, 1], [], []>} : vector<128x32xf32>, vector<32x64xbf16>, vector<128x64xf32> -> vector<128x64xf32>
    %103 = arith.addf %99, %102 : vector<128x64xf32>
    %104 = vector.extract_strided_slice %16 {offsets = [2816, 0], sizes = [128, 32], strides = [1, 1]} : vector<3200x32xf32> to vector<128x32xf32>
    %c704 = arith.constant 704 : index
    %c0_54 = arith.constant 0 : index
    %105 = vector.load %arg4[%c704, %c0_54] : memref<800x64xbf16, #tpu.memory_space<vmem>>, vector<32x64xbf16>
    %cst_55 = arith.constant dense<0.000000e+00> : vector<128x64xf32>
    %106 = tpu.matmul %104, %105, %cst_55 {dimension_numbers = #tpu.dot_dimension_numbers<[1], [0], [0], [1], [0, 0, 1, 1], [], []>} : vector<128x32xf32>, vector<32x64xbf16>, vector<128x64xf32> -> vector<128x64xf32>
    %107 = arith.addf %103, %106 : vector<128x64xf32>
    %108 = vector.extract_strided_slice %16 {offsets = [2944, 0], sizes = [128, 32], strides = [1, 1]} : vector<3200x32xf32> to vector<128x32xf32>
    %c736 = arith.constant 736 : index
    %c0_56 = arith.constant 0 : index
    %109 = vector.load %arg4[%c736, %c0_56] : memref<800x64xbf16, #tpu.memory_space<vmem>>, vector<32x64xbf16>
    %cst_57 = arith.constant dense<0.000000e+00> : vector<128x64xf32>
    %110 = tpu.matmul %108, %109, %cst_57 {dimension_numbers = #tpu.dot_dimension_numbers<[1], [0], [0], [1], [0, 0, 1, 1], [], []>} : vector<128x32xf32>, vector<32x64xbf16>, vector<128x64xf32> -> vector<128x64xf32>
    %111 = arith.addf %107, %110 : vector<128x64xf32>
    %112 = vector.extract_strided_slice %16 {offsets = [3072, 0], sizes = [128, 32], strides = [1, 1]} : vector<3200x32xf32> to vector<128x32xf32>
    %c768 = arith.constant 768 : index
    %c0_58 = arith.constant 0 : index
    %113 = vector.load %arg4[%c768, %c0_58] : memref<800x64xbf16, #tpu.memory_space<vmem>>, vector<32x64xbf16>
    %cst_59 = arith.constant dense<0.000000e+00> : vector<128x64xf32>
    %114 = tpu.matmul %112, %113, %cst_59 {dimension_numbers = #tpu.dot_dimension_numbers<[1], [0], [0], [1], [0, 0, 1, 1], [], []>} : vector<128x32xf32>, vector<32x64xbf16>, vector<128x64xf32> -> vector<128x64xf32>
    %115 = arith.addf %111, %114 : vector<128x64xf32>
    %c0_60 = arith.constant 0 : index
    %c0_61 = arith.constant 0 : index
    %116 = vector.load %arg5[%c0_60, %c0_61] : memref<1x64xf32, #tpu.memory_space<vmem>>, vector<1x64xf32>
    %117 = vector.broadcast %116 : vector<1x64xf32> to vector<128x64xf32>
    %118 = arith.addf %115, %117 : vector<128x64xf32>
    %119 = vector.extract_strided_slice %118 {offsets = [0, 0], sizes = [32, 64], strides = [1, 1]} : vector<128x64xf32> to vector<32x64xf32>
    %120 = vector.extract_strided_slice %118 {offsets = [32, 0], sizes = [32, 64], strides = [1, 1]} : vector<128x64xf32> to vector<32x64xf32>
    %121 = arith.maximumf %119, %120 : vector<32x64xf32>
    %122 = vector.extract_strided_slice %118 {offsets = [64, 0], sizes = [32, 64], strides = [1, 1]} : vector<128x64xf32> to vector<32x64xf32>
    %123 = vector.extract_strided_slice %118 {offsets = [96, 0], sizes = [32, 64], strides = [1, 1]} : vector<128x64xf32> to vector<32x64xf32>
    %124 = arith.maximumf %122, %123 : vector<32x64xf32>
    %125 = arith.maximumf %121, %124 : vector<32x64xf32>
    %cst_62 = arith.constant 0.000000e+00 : f32
    %126 = vector.broadcast %cst_62 : f32 to vector<32x64xf32>
    %127 = arith.maximumf %125, %126 : vector<32x64xf32>
    %c0_63 = arith.constant 0 : index
    %c0_64 = arith.constant 0 : index
    %128 = vector.load %arg6[%c0_63, %c0_64] : memref<288x32xbf16, #tpu.memory_space<vmem>>, vector<288x32xbf16>
    %cst_65 = arith.constant dense<0.000000e+00> : vector<288x64xf32>
    %129 = tpu.matmul %128, %127, %cst_65 {dimension_numbers = #tpu.dot_dimension_numbers<[1], [0], [0], [1], [0, 0, 1, 1], [], []>} : vector<288x32xbf16>, vector<32x64xf32>, vector<288x64xf32> -> vector<288x64xf32>
    %130 = vector.extract_strided_slice %129 {offsets = [0, 0], sizes = [32, 64], strides = [1, 1]} : vector<288x64xf32> to vector<32x64xf32>
    %c0_66 = arith.constant 0 : index
    %c0_67 = arith.constant 0 : index
    %131 = vector.load %arg7[%c0_66, %c0_67] : memref<576x128xbf16, #tpu.memory_space<vmem>>, vector<64x128xbf16>
    %cst_68 = arith.constant dense<0.000000e+00> : vector<32x128xf32>
    %132 = tpu.matmul %130, %131, %cst_68 {dimension_numbers = #tpu.dot_dimension_numbers<[1], [0], [0], [1], [0, 0, 1, 1], [], []>} : vector<32x64xf32>, vector<64x128xbf16>, vector<32x128xf32> -> vector<32x128xf32>
    %133 = vector.extract_strided_slice %129 {offsets = [32, 0], sizes = [32, 64], strides = [1, 1]} : vector<288x64xf32> to vector<32x64xf32>
    %c64_69 = arith.constant 64 : index
    %c0_70 = arith.constant 0 : index
    %134 = vector.load %arg7[%c64_69, %c0_70] : memref<576x128xbf16, #tpu.memory_space<vmem>>, vector<64x128xbf16>
    %cst_71 = arith.constant dense<0.000000e+00> : vector<32x128xf32>
    %135 = tpu.matmul %133, %134, %cst_71 {dimension_numbers = #tpu.dot_dimension_numbers<[1], [0], [0], [1], [0, 0, 1, 1], [], []>} : vector<32x64xf32>, vector<64x128xbf16>, vector<32x128xf32> -> vector<32x128xf32>
    %136 = arith.addf %132, %135 : vector<32x128xf32>
    %137 = vector.extract_strided_slice %129 {offsets = [64, 0], sizes = [32, 64], strides = [1, 1]} : vector<288x64xf32> to vector<32x64xf32>
    %c128_72 = arith.constant 128 : index
    %c0_73 = arith.constant 0 : index
    %138 = vector.load %arg7[%c128_72, %c0_73] : memref<576x128xbf16, #tpu.memory_space<vmem>>, vector<64x128xbf16>
    %cst_74 = arith.constant dense<0.000000e+00> : vector<32x128xf32>
    %139 = tpu.matmul %137, %138, %cst_74 {dimension_numbers = #tpu.dot_dimension_numbers<[1], [0], [0], [1], [0, 0, 1, 1], [], []>} : vector<32x64xf32>, vector<64x128xbf16>, vector<32x128xf32> -> vector<32x128xf32>
    %140 = arith.addf %136, %139 : vector<32x128xf32>
    %141 = vector.extract_strided_slice %129 {offsets = [96, 0], sizes = [32, 64], strides = [1, 1]} : vector<288x64xf32> to vector<32x64xf32>
    %c192_75 = arith.constant 192 : index
    %c0_76 = arith.constant 0 : index
    %142 = vector.load %arg7[%c192_75, %c0_76] : memref<576x128xbf16, #tpu.memory_space<vmem>>, vector<64x128xbf16>
    %cst_77 = arith.constant dense<0.000000e+00> : vector<32x128xf32>
    %143 = tpu.matmul %141, %142, %cst_77 {dimension_numbers = #tpu.dot_dimension_numbers<[1], [0], [0], [1], [0, 0, 1, 1], [], []>} : vector<32x64xf32>, vector<64x128xbf16>, vector<32x128xf32> -> vector<32x128xf32>
    %144 = arith.addf %140, %143 : vector<32x128xf32>
    %145 = vector.extract_strided_slice %129 {offsets = [128, 0], sizes = [32, 64], strides = [1, 1]} : vector<288x64xf32> to vector<32x64xf32>
    %c256_78 = arith.constant 256 : index
    %c0_79 = arith.constant 0 : index
    %146 = vector.load %arg7[%c256_78, %c0_79] : memref<576x128xbf16, #tpu.memory_space<vmem>>, vector<64x128xbf16>
    %cst_80 = arith.constant dense<0.000000e+00> : vector<32x128xf32>
    %147 = tpu.matmul %145, %146, %cst_80 {dimension_numbers = #tpu.dot_dimension_numbers<[1], [0], [0], [1], [0, 0, 1, 1], [], []>} : vector<32x64xf32>, vector<64x128xbf16>, vector<32x128xf32> -> vector<32x128xf32>
    %148 = arith.addf %144, %147 : vector<32x128xf32>
    %149 = vector.extract_strided_slice %129 {offsets = [160, 0], sizes = [32, 64], strides = [1, 1]} : vector<288x64xf32> to vector<32x64xf32>
    %c320_81 = arith.constant 320 : index
    %c0_82 = arith.constant 0 : index
    %150 = vector.load %arg7[%c320_81, %c0_82] : memref<576x128xbf16, #tpu.memory_space<vmem>>, vector<64x128xbf16>
    %cst_83 = arith.constant dense<0.000000e+00> : vector<32x128xf32>
    %151 = tpu.matmul %149, %150, %cst_83 {dimension_numbers = #tpu.dot_dimension_numbers<[1], [0], [0], [1], [0, 0, 1, 1], [], []>} : vector<32x64xf32>, vector<64x128xbf16>, vector<32x128xf32> -> vector<32x128xf32>
    %152 = arith.addf %148, %151 : vector<32x128xf32>
    %153 = vector.extract_strided_slice %129 {offsets = [192, 0], sizes = [32, 64], strides = [1, 1]} : vector<288x64xf32> to vector<32x64xf32>
    %c384_84 = arith.constant 384 : index
    %c0_85 = arith.constant 0 : index
    %154 = vector.load %arg7[%c384_84, %c0_85] : memref<576x128xbf16, #tpu.memory_space<vmem>>, vector<64x128xbf16>
    %cst_86 = arith.constant dense<0.000000e+00> : vector<32x128xf32>
    %155 = tpu.matmul %153, %154, %cst_86 {dimension_numbers = #tpu.dot_dimension_numbers<[1], [0], [0], [1], [0, 0, 1, 1], [], []>} : vector<32x64xf32>, vector<64x128xbf16>, vector<32x128xf32> -> vector<32x128xf32>
    %156 = arith.addf %152, %155 : vector<32x128xf32>
    %157 = vector.extract_strided_slice %129 {offsets = [224, 0], sizes = [32, 64], strides = [1, 1]} : vector<288x64xf32> to vector<32x64xf32>
    %c448_87 = arith.constant 448 : index
    %c0_88 = arith.constant 0 : index
    %158 = vector.load %arg7[%c448_87, %c0_88] : memref<576x128xbf16, #tpu.memory_space<vmem>>, vector<64x128xbf16>
    %cst_89 = arith.constant dense<0.000000e+00> : vector<32x128xf32>
    %159 = tpu.matmul %157, %158, %cst_89 {dimension_numbers = #tpu.dot_dimension_numbers<[1], [0], [0], [1], [0, 0, 1, 1], [], []>} : vector<32x64xf32>, vector<64x128xbf16>, vector<32x128xf32> -> vector<32x128xf32>
    %160 = arith.addf %156, %159 : vector<32x128xf32>
    %161 = vector.extract_strided_slice %129 {offsets = [256, 0], sizes = [32, 64], strides = [1, 1]} : vector<288x64xf32> to vector<32x64xf32>
    %c512_90 = arith.constant 512 : index
    %c0_91 = arith.constant 0 : index
    %162 = vector.load %arg7[%c512_90, %c0_91] : memref<576x128xbf16, #tpu.memory_space<vmem>>, vector<64x128xbf16>
    %cst_92 = arith.constant dense<0.000000e+00> : vector<32x128xf32>
    %163 = tpu.matmul %161, %162, %cst_92 {dimension_numbers = #tpu.dot_dimension_numbers<[1], [0], [0], [1], [0, 0, 1, 1], [], []>} : vector<32x64xf32>, vector<64x128xbf16>, vector<32x128xf32> -> vector<32x128xf32>
    %164 = arith.addf %160, %163 : vector<32x128xf32>
    %c0_93 = arith.constant 0 : index
    %c0_94 = arith.constant 0 : index
    %165 = vector.load %arg8[%c0_93, %c0_94] : memref<1x128xf32, #tpu.memory_space<vmem>>, vector<1x128xf32>
    %166 = vector.broadcast %165 : vector<1x128xf32> to vector<32x128xf32>
    %167 = arith.addf %164, %166 : vector<32x128xf32>
    %168 = vector.extract_strided_slice %167 {offsets = [0, 0], sizes = [8, 128], strides = [1, 1]} : vector<32x128xf32> to vector<8x128xf32>
    %169 = vector.extract_strided_slice %167 {offsets = [8, 0], sizes = [8, 128], strides = [1, 1]} : vector<32x128xf32> to vector<8x128xf32>
    %170 = arith.maximumf %168, %169 : vector<8x128xf32>
    %171 = vector.extract_strided_slice %167 {offsets = [16, 0], sizes = [8, 128], strides = [1, 1]} : vector<32x128xf32> to vector<8x128xf32>
    %172 = vector.extract_strided_slice %167 {offsets = [24, 0], sizes = [8, 128], strides = [1, 1]} : vector<32x128xf32> to vector<8x128xf32>
    %173 = arith.maximumf %171, %172 : vector<8x128xf32>
    %174 = arith.maximumf %170, %173 : vector<8x128xf32>
    %cst_95 = arith.constant 0.000000e+00 : f32
    %175 = vector.broadcast %cst_95 : f32 to vector<8x128xf32>
    %176 = arith.maximumf %174, %175 : vector<8x128xf32>
    %c0_96 = arith.constant 0 : index
    %c0_97 = arith.constant 0 : index
    %177 = vector.load %arg9[%c0_96, %c0_97] : memref<288x8xbf16, #tpu.memory_space<vmem>>, vector<288x8xbf16>
    %cst_98 = arith.constant dense<0.000000e+00> : vector<288x128xf32>
    %178 = tpu.matmul %177, %176, %cst_98 {dimension_numbers = #tpu.dot_dimension_numbers<[1], [0], [0], [1], [0, 0, 1, 1], [], []>} : vector<288x8xbf16>, vector<8x128xf32>, vector<288x128xf32> -> vector<288x128xf32>
    %179 = vector.extract_strided_slice %178 {offsets = [0, 0], sizes = [32, 128], strides = [1, 1]} : vector<288x128xf32> to vector<32x128xf32>
    %c0_99 = arith.constant 0 : index
    %c0_100 = arith.constant 0 : index
    %180 = vector.load %arg10[%c0_99, %c0_100] : memref<1152x256xbf16, #tpu.memory_space<vmem>>, vector<128x256xbf16>
    %cst_101 = arith.constant dense<0.000000e+00> : vector<32x256xf32>
    %181 = tpu.matmul %179, %180, %cst_101 {dimension_numbers = #tpu.dot_dimension_numbers<[1], [0], [0], [1], [0, 0, 1, 1], [], []>} : vector<32x128xf32>, vector<128x256xbf16>, vector<32x256xf32> -> vector<32x256xf32>
    %182 = vector.extract_strided_slice %178 {offsets = [32, 0], sizes = [32, 128], strides = [1, 1]} : vector<288x128xf32> to vector<32x128xf32>
    %c128_102 = arith.constant 128 : index
    %c0_103 = arith.constant 0 : index
    %183 = vector.load %arg10[%c128_102, %c0_103] : memref<1152x256xbf16, #tpu.memory_space<vmem>>, vector<128x256xbf16>
    %cst_104 = arith.constant dense<0.000000e+00> : vector<32x256xf32>
    %184 = tpu.matmul %182, %183, %cst_104 {dimension_numbers = #tpu.dot_dimension_numbers<[1], [0], [0], [1], [0, 0, 1, 1], [], []>} : vector<32x128xf32>, vector<128x256xbf16>, vector<32x256xf32> -> vector<32x256xf32>
    %185 = arith.addf %181, %184 : vector<32x256xf32>
    %186 = vector.extract_strided_slice %178 {offsets = [64, 0], sizes = [32, 128], strides = [1, 1]} : vector<288x128xf32> to vector<32x128xf32>
    %c256_105 = arith.constant 256 : index
    %c0_106 = arith.constant 0 : index
    %187 = vector.load %arg10[%c256_105, %c0_106] : memref<1152x256xbf16, #tpu.memory_space<vmem>>, vector<128x256xbf16>
    %cst_107 = arith.constant dense<0.000000e+00> : vector<32x256xf32>
    %188 = tpu.matmul %186, %187, %cst_107 {dimension_numbers = #tpu.dot_dimension_numbers<[1], [0], [0], [1], [0, 0, 1, 1], [], []>} : vector<32x128xf32>, vector<128x256xbf16>, vector<32x256xf32> -> vector<32x256xf32>
    %189 = arith.addf %185, %188 : vector<32x256xf32>
    %190 = vector.extract_strided_slice %178 {offsets = [96, 0], sizes = [32, 128], strides = [1, 1]} : vector<288x128xf32> to vector<32x128xf32>
    %c384_108 = arith.constant 384 : index
    %c0_109 = arith.constant 0 : index
    %191 = vector.load %arg10[%c384_108, %c0_109] : memref<1152x256xbf16, #tpu.memory_space<vmem>>, vector<128x256xbf16>
    %cst_110 = arith.constant dense<0.000000e+00> : vector<32x256xf32>
    %192 = tpu.matmul %190, %191, %cst_110 {dimension_numbers = #tpu.dot_dimension_numbers<[1], [0], [0], [1], [0, 0, 1, 1], [], []>} : vector<32x128xf32>, vector<128x256xbf16>, vector<32x256xf32> -> vector<32x256xf32>
    %193 = arith.addf %189, %192 : vector<32x256xf32>
    %194 = vector.extract_strided_slice %178 {offsets = [128, 0], sizes = [32, 128], strides = [1, 1]} : vector<288x128xf32> to vector<32x128xf32>
    %c512_111 = arith.constant 512 : index
    %c0_112 = arith.constant 0 : index
    %195 = vector.load %arg10[%c512_111, %c0_112] : memref<1152x256xbf16, #tpu.memory_space<vmem>>, vector<128x256xbf16>
    %cst_113 = arith.constant dense<0.000000e+00> : vector<32x256xf32>
    %196 = tpu.matmul %194, %195, %cst_113 {dimension_numbers = #tpu.dot_dimension_numbers<[1], [0], [0], [1], [0, 0, 1, 1], [], []>} : vector<32x128xf32>, vector<128x256xbf16>, vector<32x256xf32> -> vector<32x256xf32>
    %197 = arith.addf %193, %196 : vector<32x256xf32>
    %198 = vector.extract_strided_slice %178 {offsets = [160, 0], sizes = [32, 128], strides = [1, 1]} : vector<288x128xf32> to vector<32x128xf32>
    %c640_114 = arith.constant 640 : index
    %c0_115 = arith.constant 0 : index
    %199 = vector.load %arg10[%c640_114, %c0_115] : memref<1152x256xbf16, #tpu.memory_space<vmem>>, vector<128x256xbf16>
    %cst_116 = arith.constant dense<0.000000e+00> : vector<32x256xf32>
    %200 = tpu.matmul %198, %199, %cst_116 {dimension_numbers = #tpu.dot_dimension_numbers<[1], [0], [0], [1], [0, 0, 1, 1], [], []>} : vector<32x128xf32>, vector<128x256xbf16>, vector<32x256xf32> -> vector<32x256xf32>
    %201 = arith.addf %197, %200 : vector<32x256xf32>
    %202 = vector.extract_strided_slice %178 {offsets = [192, 0], sizes = [32, 128], strides = [1, 1]} : vector<288x128xf32> to vector<32x128xf32>
    %c768_117 = arith.constant 768 : index
    %c0_118 = arith.constant 0 : index
    %203 = vector.load %arg10[%c768_117, %c0_118] : memref<1152x256xbf16, #tpu.memory_space<vmem>>, vector<128x256xbf16>
    %cst_119 = arith.constant dense<0.000000e+00> : vector<32x256xf32>
    %204 = tpu.matmul %202, %203, %cst_119 {dimension_numbers = #tpu.dot_dimension_numbers<[1], [0], [0], [1], [0, 0, 1, 1], [], []>} : vector<32x128xf32>, vector<128x256xbf16>, vector<32x256xf32> -> vector<32x256xf32>
    %205 = arith.addf %201, %204 : vector<32x256xf32>
    %206 = vector.extract_strided_slice %178 {offsets = [224, 0], sizes = [32, 128], strides = [1, 1]} : vector<288x128xf32> to vector<32x128xf32>
    %c896 = arith.constant 896 : index
    %c0_120 = arith.constant 0 : index
    %207 = vector.load %arg10[%c896, %c0_120] : memref<1152x256xbf16, #tpu.memory_space<vmem>>, vector<128x256xbf16>
    %cst_121 = arith.constant dense<0.000000e+00> : vector<32x256xf32>
    %208 = tpu.matmul %206, %207, %cst_121 {dimension_numbers = #tpu.dot_dimension_numbers<[1], [0], [0], [1], [0, 0, 1, 1], [], []>} : vector<32x128xf32>, vector<128x256xbf16>, vector<32x256xf32> -> vector<32x256xf32>
    %209 = arith.addf %205, %208 : vector<32x256xf32>
    %210 = vector.extract_strided_slice %178 {offsets = [256, 0], sizes = [32, 128], strides = [1, 1]} : vector<288x128xf32> to vector<32x128xf32>
    %c1024 = arith.constant 1024 : index
    %c0_122 = arith.constant 0 : index
    %211 = vector.load %arg10[%c1024, %c0_122] : memref<1152x256xbf16, #tpu.memory_space<vmem>>, vector<128x256xbf16>
    %cst_123 = arith.constant dense<0.000000e+00> : vector<32x256xf32>
    %212 = tpu.matmul %210, %211, %cst_123 {dimension_numbers = #tpu.dot_dimension_numbers<[1], [0], [0], [1], [0, 0, 1, 1], [], []>} : vector<32x128xf32>, vector<128x256xbf16>, vector<32x256xf32> -> vector<32x256xf32>
    %213 = arith.addf %209, %212 : vector<32x256xf32>
    %c0_124 = arith.constant 0 : index
    %c0_125 = arith.constant 0 : index
    %214 = vector.load %arg11[%c0_124, %c0_125] : memref<1x256xf32, #tpu.memory_space<vmem>>, vector<1x256xf32>
    %215 = vector.broadcast %214 : vector<1x256xf32> to vector<32x256xf32>
    %216 = arith.addf %213, %215 : vector<32x256xf32>
    %217 = vector.extract_strided_slice %216 {offsets = [0, 0], sizes = [8, 256], strides = [1, 1]} : vector<32x256xf32> to vector<8x256xf32>
    %218 = vector.extract_strided_slice %216 {offsets = [8, 0], sizes = [8, 256], strides = [1, 1]} : vector<32x256xf32> to vector<8x256xf32>
    %219 = arith.maximumf %217, %218 : vector<8x256xf32>
    %220 = vector.extract_strided_slice %216 {offsets = [16, 0], sizes = [8, 256], strides = [1, 1]} : vector<32x256xf32> to vector<8x256xf32>
    %221 = vector.extract_strided_slice %216 {offsets = [24, 0], sizes = [8, 256], strides = [1, 1]} : vector<32x256xf32> to vector<8x256xf32>
    %222 = arith.maximumf %220, %221 : vector<8x256xf32>
    %223 = arith.maximumf %219, %222 : vector<8x256xf32>
    %cst_126 = arith.constant 0.000000e+00 : f32
    %224 = vector.broadcast %cst_126 : f32 to vector<8x256xf32>
    %225 = arith.maximumf %223, %224 : vector<8x256xf32>
    %c0_127 = arith.constant 0 : index
    %c0_128 = arith.constant 0 : index
    %226 = vector.load %arg12[%c0_127, %c0_128] : memref<256x256xf32, #tpu.memory_space<vmem>>, vector<256x256xf32>
    %cst_129 = arith.constant dense<0.000000e+00> : vector<8x256xf32>
    %227 = tpu.matmul %225, %226, %cst_129 {dimension_numbers = #tpu.dot_dimension_numbers<[1], [0], [0], [1], [0, 0, 1, 1], [], []>} : vector<8x256xf32>, vector<256x256xf32>, vector<8x256xf32> -> vector<8x256xf32>
    %c0_130 = arith.constant 0 : index
    %c0_131 = arith.constant 0 : index
    %228 = vector.load %arg13[%c0_130, %c0_131] : memref<1x256xf32, #tpu.memory_space<vmem>>, vector<1x256xf32>
    %229 = vector.broadcast %228 : vector<1x256xf32> to vector<8x256xf32>
    %230 = arith.addf %227, %229 : vector<8x256xf32>
    %cst_132 = arith.constant 0.000000e+00 : f32
    %231 = vector.broadcast %cst_132 : f32 to vector<8x256xf32>
    %232 = arith.maximumf %230, %231 : vector<8x256xf32>
    %c0_133 = arith.constant 0 : index
    %c0_134 = arith.constant 0 : index
    %233 = vector.load %arg14[%c0_133, %c0_134] : memref<256x10xf32, #tpu.memory_space<vmem>>, vector<256x10xf32>
    %cst_135 = arith.constant dense<0.000000e+00> : vector<8x10xf32>
    %234 = tpu.matmul %232, %233, %cst_135 {dimension_numbers = #tpu.dot_dimension_numbers<[1], [0], [0], [1], [0, 0, 1, 1], [], []>} : vector<8x256xf32>, vector<256x10xf32>, vector<8x10xf32> -> vector<8x10xf32>
    %c0_136 = arith.constant 0 : index
    %c0_137 = arith.constant 0 : index
    %235 = vector.load %arg15[%c0_136, %c0_137] : memref<1x10xf32, #tpu.memory_space<vmem>>, vector<1x10xf32>
    %236 = vector.broadcast %235 : vector<1x10xf32> to vector<8x10xf32>
    %237 = arith.addf %234, %236 : vector<8x10xf32>
    %238 = vector.extract_strided_slice %237 {offsets = [0, 0], sizes = [2, 10], strides = [1, 1]} : vector<8x10xf32> to vector<2x10xf32>
    %c0_138 = arith.constant 0 : index
    %c0_139 = arith.constant 0 : index
    %239 = vector.load %arg16[%c0_138, %c0_139] : memref<2x10xf32, #tpu.memory_space<vmem>>, vector<2x10xf32>
    tpu.vector_store %arg16[%c0_138, %c0_139], %238 {strides = array<i32>} : memref<2x10xf32, #tpu.memory_space<vmem>>, vector<2x10xf32>,
    return
  }
}

</mosaic_0001>

<bundles_post_ra>
// kernel: audio_cnn_forward_pallas.1
= control target key start
LH: loop header
LB: loop body
LE: loop exit
PB: predicated region body
PF: predicated region fallthrough
CT: control target
= control target key end

     0   :  { %s17455_s0 = inlined_call_operand.vmem [shape: f32[512,49], index: 0, kind: input, shape index: {}]   ;;  %s17456_s1 = inlined_call_operand.vmem [shape: bf16[49,32], index: 1, kind: input, shape index: {}]   ;;  %s17457_s2 = inlined_call_operand.vmem [shape: f32[1,32], index: 2, kind: input, shape index: {}]   ;;  %s17458_s3 = inlined_call_operand.vmem [shape: bf16[3200,128], index: 3, kind: input, shape index: {}]   ;;  %s17459_s4 = inlined_call_operand.vmem [shape: bf16[800,64], index: 4, kind: input, shape index: {}]   ;;  %s17460_s5 = inlined_call_operand.vmem [shape: f32[1,64], index: 5, kind: input, shape index: {}]   ;;  %s17461_s6 = inlined_call_operand.vmem [shape: bf16[288,32], index: 6, kind: input, shape index: {}]   ;;  %s17462_s7 = inlined_call_operand.vmem [shape: bf16[576,128], index: 7, kind: input, shape index: {}]   ;;  %s17463_s8 = inlined_call_operand.vmem [shape: f32[1,128], index: 8, kind: input, shape index: {}]   ;;  %s17464_s9 = inlined_call_operand.vmem [shape: bf16[288,8], index: 9, kind: input, shape index: {}]   ;;  %s17465_s10 = inlined_call_operand.vmem [shape: bf16[1152,256], index: 10, kind: input, shape index: {}]   ;;  %s17466_s11 = inlined_call_operand.vmem [shape: f32[1,256], index: 11, kind: input, shape index: {}]   ;;  %s17467_s12 = inlined_call_operand.vmem [shape: f32[256,256], index: 12, kind: input, shape index: {}]   ;;  %s17468_s13 = inlined_call_operand.vmem [shape: f32[1,256], index: 13, kind: input, shape index: {}]   ;;  %s17469_s14 = inlined_call_operand.vmem [shape: f32[256,10], index: 14, kind: input, shape index: {}]   ;;  %s17470_s15 = inlined_call_operand.vmem [shape: f32[1,10], index: 15, kind: input, shape index: {}]   ;;  %s17471_s16 = inlined_call_operand.hbm [shape: f32[2,10], index: 16, kind: output, shape index: {}]  }
   0x1   :  { %17475 = sst [smem:[#allocation181_spill]] %s17455_s0 }
   0x2   :  { %v125_v0 = vld [vmem:[%s17456_s1 + $0x18] sm:$0x1]  ;;  %vm344_vm0 = vcmask 1040384   ;;  %v12366_v2 = vmov 0  }
   0x3   :  { %v143_v1 = vunpack.c.l.b16 %v125_v0  ;;  %v346_v3 = vsel %vm344_vm0, 65535, %v12366_v2 }
   0x5   :  { %v147_v4 = vpack.c.b16 %v143_v1, %v143_v1 }
   0x6   :  { %21 = vsyncpa [#allocation3], 0  ;;  %v11843_v6 = vld [vmem:[%s17456_s1 + $0x10] sm:$0xff]  ;;  %v11842_v7 = vld [vmem:[%s17456_s1 + $0x8] sm:$0xff]  ;;  %s17476_s0 = sld [smem:[#allocation181_spill]]  ;;  %vm151_vm1 = vcmask 400384  }
   0x7   :  { %v348_v5 = vand.u32 %v346_v3, %v147_v4  ;;  %v11841_v8 = vld [vmem:[%s17456_s1] sm:$0xff]  ;;  %vm3252_vm2 = vcmask 261120   ;;  %vm6989_vm3 = vcmask 523264   ;;  %vm7701_vm4 = vcmask 64512   ;;  %s9420_s28 = sshll.u32 %s17471_s16, 4  ;;  %s9421_s28 = int_to_ptr.hbm [resolvable:$true] %s9420_s28 }
   0x8   :  { %v12621_v58 = vld [vmem:[%s17457_s2] ss:$0 sm:$0xff]  ;;  %vm9411_vm5 = vcmask 74752  }
   0x9   :  { %354 = vmatpush.bf16.msra.mxu2 %v348_v5  ;;  %12310 = vmatpush.bf16.msra.mxu3 %v348_v5 }
   0xc   :  { %v55_v9 = vld [vmem:[%s17476_s0] sm:$0xff]  ;;  %v56_v10 = vld [vmem:[%s17476_s0 + $0x8] sm:$0xff]  ;;  %v57_v11 = vld [vmem:[%s17476_s0 + $0x10] sm:$0xff] }
   0xd   :  { %355 = vmatpush.bf16.msra.mxu2 %v11843_v6  ;;  %12311 = vmatpush.bf16.msra.mxu3 %v11843_v6  ;;  %v58_v12 = vld [vmem:[%s17476_s0 + $0x18] sm:$0xff]  ;;  %v59_v13 = vld [vmem:[%s17476_s0 + $0x20] sm:$0xff]  ;;  %v60_v14 = vld [vmem:[%s17476_s0 + $0x28] sm:$0xff] }
   0xe   :  { %v61_v15 = vld [vmem:[%s17476_s0 + $0x30] sm:$0xff]  ;;  %v62_v16 = vld [vmem:[%s17476_s0 + $0x38] sm:$0xff]  ;;  %v63_v17 = vld [vmem:[%s17476_s0 + $0x40] sm:$0xff] }
   0xf   :  { %v64_v18 = vld [vmem:[%s17476_s0 + $0x48] sm:$0xff]  ;;  %v65_v19 = vld [vmem:[%s17476_s0 + $0x50] sm:$0xff]  ;;  %v66_v20 = vld [vmem:[%s17476_s0 + $0x58] sm:$0xff] }
  0x10   :  { %v67_v21 = vld [vmem:[%s17476_s0 + $0x60] sm:$0xff]  ;;  %v68_v22 = vld [vmem:[%s17476_s0 + $0x68] sm:$0xff]  ;;  %v69_v23 = vld [vmem:[%s17476_s0 + $0x70] sm:$0xff] }
  0x11   :  { %356 = vmatpush.bf16.msra.mxu2 %v11842_v7  ;;  %12312 = vmatpush.bf16.msra.mxu3 %v11842_v7  ;;  %v70_v24 = vld [vmem:[%s17476_s0 + $0x78] sm:$0xff]  ;;  %v71_v25 = vld [vmem:[%s17476_s0 + $0x80] sm:$0xff]  ;;  %v72_v27 = vld [vmem:[%s17476_s0 + $0x88] sm:$0xff] }
  0x12   :  { %v73_v29 = vld [vmem:[%s17476_s0 + $0x90] sm:$0xff]  ;;  %v74_v31 = vld [vmem:[%s17476_s0 + $0x98] sm:$0xff]  ;;  %v75_v33 = vld [vmem:[%s17476_s0 + $0xa0] sm:$0xff] }
  0x13   :  { %v76_v35 = vld [vmem:[%s17476_s0 + $0xa8] sm:$0xff]  ;;  %v77_v37 = vld [vmem:[%s17476_s0 + $0xb0] sm:$0xff]  ;;  %v78_v39 = vld [vmem:[%s17476_s0 + $0xb8] sm:$0xff] }
  0x14   :  { %v79_v41 = vld [vmem:[%s17476_s0 + $0xc0] sm:$0xff]  ;;  %v80_v43 = vld [vmem:[%s17476_s0 + $0xc8] sm:$0xff]  ;;  %v81_v45 = vld [vmem:[%s17476_s0 + $0xd0] sm:$0xff] }
  0x15   :  { %357 = vmatpush.bf16.msra.mxu2 %v11841_v8  ;;  %12313 = vmatpush.bf16.msra.mxu3 %v11841_v8  ;;  %v82_v47 = vld [vmem:[%s17476_s0 + $0xd8] sm:$0xff]  ;;  %v83_v49 = vld [vmem:[%s17476_s0 + $0xe0] sm:$0xff]  ;;  %v84_v51 = vld [vmem:[%s17476_s0 + $0xe8] sm:$0xff] }
  0x16   :  { %v85_v53 = vld [vmem:[%s17476_s0 + $0xf0] sm:$0xff]  ;;  %v86_v55 = vld [vmem:[%s17476_s0 + $0xf8] sm:$0xff]  ;;  %v87_v57 = vld [vmem:[%s17476_s0 + $0x100] sm:$0xff] }
  0x17   :  { %v88_v62 = vld [vmem:[%s17476_s0 + $0x108] sm:$0xff]  ;;  %v89_v3 = vld [vmem:[%s17476_s0 + $0x110] sm:$0xff]  ;;  %v90_v8 = vld [vmem:[%s17476_s0 + $0x118] sm:$0xff] }
  0x18   :  { %9441 = vmatmul.msk.f32.vlgmr.msra.gmra.mxu2 %vm151_vm1, %v55_v9 }
  0x20   :  { %9442 = vmatmul.msk.f32.gmra.mxu2 %vm151_vm1, %v56_v10 }
  0x28   :  { %9443 = vmatmul.msk.f32.gmra.mxu2 %vm151_vm1, %v57_v11 }
  0x30   :  { %9444 = vmatmul.msk.f32.gmra.mxu2 %vm151_vm1, %v58_v12 }
  0x38   :  { %9445 = vmatmul.msk.f32.gmra.mxu2 %vm151_vm1, %v59_v13  ;;  %v91_v13 = vld [vmem:[%s17476_s0 + $0x120] sm:$0xff] }
  0x40   :  { %9446 = vmatmul.msk.f32.gmra.mxu2 %vm151_vm1, %v60_v14 }
  0x48   :  { %9447 = vmatmul.msk.f32.gmra.mxu2 %vm151_vm1, %v61_v15 }
  0x50   :  { %9448 = vmatmul.msk.f32.gmra.mxu2 %vm151_vm1, %v62_v16 }
  0x58   :  { %9449 = vmatmul.msk.f32.gmra.mxu2 %vm151_vm1, %v63_v17 }
  0x60   :  { %9450 = vmatmul.msk.f32.gmra.mxu2 %vm151_vm1, %v64_v18  ;;  %v92_v18 = vld [vmem:[%s17476_s0 + $0x128] sm:$0xff] }
  0x68   :  { %9451 = vmatmul.msk.f32.gmra.mxu2 %vm151_vm1, %v65_v19 }
  0x70   :  { %9452 = vmatmul.msk.f32.gmra.mxu2 %vm151_vm1, %v66_v20 }
  0x78   :  { %9453 = vmatmul.msk.f32.gmra.mxu2 %vm151_vm1, %v67_v21 }
  0x80   :  { %9454 = vmatmul.msk.f32.gmra.mxu2 %vm151_vm1, %v68_v22 }
  0x88   :  { %9455 = vmatmul.msk.f32.gmra.mxu2 %vm151_vm1, %v69_v23  ;;  %v93_v23 = vld [vmem:[%s17476_s0 + $0x130] sm:$0xff] }
  0x90   :  { %9456 = vmatmul.msk.f32.gmra.mxu2 %vm151_vm1, %v70_v24 }
  0x98   :  { %9457 = vmatmul.msk.f32.gmra.mxu2 %vm151_vm1, %v71_v25 }
  0x9b   :  { %v359_v26 = vpop.f32.mrf.mxu2 }
  0x9c   :  { %v12625_v60 = vadd.f32 %v12621_v58, %v359_v26 }
  0xa0   :  { %9458 = vmatmul.msk.f32.gmra.mxu2 %vm151_vm1, %v72_v27 }
  0xa3   :  { %v362_v28 = vpop.f32.mrf.mxu2 }
  0xa4   :  { %v12637_v1 = vadd.f32 %v12621_v58, %v362_v28  ;;  %v94_v28 = vld [vmem:[%s17476_s0 + $0x138] sm:$0xff] }
  0xa8   :  { %9459 = vmatmul.msk.f32.gmra.mxu2 %vm151_vm1, %v73_v29 }
  0xab   :  { %v365_v30 = vpop.f32.mrf.mxu2 }
  0xac   :  { %v12649_v6 = vadd.f32 %v12621_v58, %v365_v30 }
  0xb0   :  { %9460 = vmatmul.msk.f32.gmra.mxu2 %vm151_vm1, %v74_v31 }
  0xb3   :  { %v368_v32 = vpop.f32.mrf.mxu2 }
  0xb4   :  { %v12661_v11 = vadd.f32 %v12621_v58, %v368_v32 }
  0xb8   :  { %9461 = vmatmul.msk.f32.gmra.mxu2 %vm151_vm1, %v75_v33  ;;  %v95_v33 = vld [vmem:[%s17476_s0 + $0x140] sm:$0xff] }
  0xbb   :  { %v371_v34 = vpop.f32.mrf.mxu2 }
  0xbc   :  { %v12673_v16 = vadd.f32 %v12621_v58, %v371_v34 }
  0xbe   :  { %17477 = vst [vmem:[#allocation5_spill] sm:$0xff] %v12673_v16 }
  0xc0   :  { %9462 = vmatmul.msk.f32.gmra.mxu2 %vm151_vm1, %v76_v35  ;;  %v115_v35 = vld [vmem:[%s17476_s0 + $0x1e0] sm:$0xff] }
  0xc1   :  { %9501 = vmatmul.msk.f32.vlgmr.msra.gmra.mxu3 %vm151_vm1, %v115_v35  ;;  %v102_v35 = vld [vmem:[%s17476_s0 + $0x178] sm:$0xff] }
  0xc3   :  { %v12553_v36 = vpop.f32.mrf.mxu2 }
  0xc4   :  { %v12686_v21 = vadd.f32 %v12621_v58, %v12553_v36 }
  0xc8   :  { %9463 = vmatmul.msk.f32.gmra.mxu2 %vm151_vm1, %v77_v37 }
  0xcb   :  { %v12559_v38 = vpop.f32.mrf.mxu2 }
  0xcc   :  { %v12699_v26 = vadd.f32 %v12621_v58, %v12559_v38 }
  0xd0   :  { %9464 = vmatmul.msk.f32.gmra.mxu2 %vm151_vm1, %v78_v39  ;;  %v96_v39 = vld [vmem:[%s17476_s0 + $0x148] sm:$0xff] }
  0xd3   :  { %v12565_v40 = vpop.f32.mrf.mxu2 }
  0xd4   :  { %v12712_v31 = vadd.f32 %v12621_v58, %v12565_v40 }
  0xd8   :  { %9465 = vmatmul.msk.f32.gmra.mxu2 %vm151_vm1, %v79_v41  ;;  %v116_v41 = vld [vmem:[%s17476_s0 + $0x1e8] sm:$0xff] }
  0xd9   :  { %9502 = vmatmul.msk.f32.gmra.mxu3 %vm151_vm1, %v116_v41 }
  0xdb   :  { %v12571_v42 = vpop.f32.mrf.mxu2 }
  0xdc   :  { %v12729_v37 = vadd.f32 %v12621_v58, %v12571_v42 }
  0xe0   :  { %9466 = vmatmul.msk.f32.gmra.mxu2 %vm151_vm1, %v80_v43 }
  0xe3   :  { %v12577_v44 = vpop.f32.mrf.mxu2 }
  0xe4   :  { %v12746_v43 = vadd.f32 %v12621_v58, %v12577_v44 }
  0xe8   :  { %9467 = vmatmul.msk.f32.gmra.mxu2 %vm151_vm1, %v81_v45 }
  0xeb   :  { %v12583_v46 = vpop.f32.mrf.mxu2 }
  0xf0   :  { %9468 = vmatmul.msk.f32.gmra.mxu2 %vm151_vm1, %v82_v47  ;;  %v97_v47 = vld [vmem:[%s17476_s0 + $0x150] sm:$0xff] }
  0xf3   :  { %v12589_v48 = vpop.f32.mrf.mxu2 }
  0xf8   :  { %9469 = vmatmul.msk.f32.gmra.mxu2 %vm151_vm1, %v83_v49 }
  0xfb   :  { %v12595_v50 = vpop.f32.mrf.mxu2 }
 0x100   :  { %9470 = vmatmul.msk.f32.gmra.mxu2 %vm151_vm1, %v84_v51  ;;  %v117_v51 = vld [vmem:[%s17476_s0 + $0x1f0] sm:$0xff] }
 0x101   :  { %9503 = vmatmul.msk.f32.gmra.mxu3 %vm151_vm1, %v117_v51 }
 0x103   :  { %v12601_v52 = vpop.f32.mrf.mxu2 }
 0x108   :  { %9471 = vmatmul.msk.f32.gmra.mxu2 %vm151_vm1, %v85_v53  ;;  %v12763_v53 = vadd.f32 %v12621_v58, %v12583_v46 }
 0x10b   :  { %v12607_v54 = vpop.f32.mrf.mxu2 }
 0x110   :  { %9472 = vmatmul.msk.f32.gmra.mxu2 %vm151_vm1, %v86_v55 }
 0x113   :  { %v12613_v56 = vpop.f32.mrf.mxu2 }
 0x114   :  { %v405_v41 = vadd.f32 %v12621_v58, %v12613_v56  ;;  %v105_v56 = vld [vmem:[%s17476_s0 + $0x190] sm:$0xff] }
 0x118   :  { %9473 = vmatmul.msk.f32.gmra.mxu2 %vm151_vm1, %v87_v57  ;;  %v98_v57 = vld [vmem:[%s17476_s0 + $0x158] sm:$0xff] }
 0x11b   :  { %v407_v59 = vpop.f32.mrf.mxu2 }
 0x11c   :  { %v12628_v61 = vadd.f32 %v12621_v58, %v407_v59 }
 0x120   :  { %9474 = vmatmul.msk.f32.gmra.mxu2 %vm151_vm1, %v88_v62  ;;  %v118_v62 = vld [vmem:[%s17476_s0 + $0x1f8] sm:$0xff] }
 0x121   :  { %9504 = vmatmul.msk.f32.gmra.mxu3 %vm151_vm1, %v118_v62 }
 0x123   :  { %v410_v0 = vpop.f32.mrf.mxu2 }
 0x124   :  { %v12640_v2 = vadd.f32 %v12621_v58, %v410_v0  ;;  %v12780_v0 = vadd.f32 %v12621_v58, %v12589_v48 }
 0x128   :  { %9475 = vmatmul.msk.f32.gmra.mxu2 %vm151_vm1, %v89_v3 }
 0x12b   :  { %v413_v5 = vpop.f32.mrf.mxu2 }
 0x12c   :  { %v12652_v7 = vadd.f32 %v12621_v58, %v413_v5  ;;  %v99_v5 = vld [vmem:[%s17476_s0 + $0x160] sm:$0xff] }
 0x130   :  { %9476 = vmatmul.msk.f32.gmra.mxu2 %vm151_vm1, %v90_v8 }
 0x133   :  { %v416_v10 = vpop.f32.mrf.mxu2 }
 0x134   :  { %v12664_v12 = vadd.f32 %v12621_v58, %v416_v10 }
 0x138   :  { %9477 = vmatmul.msk.f32.gmra.mxu2 %vm151_vm1, %v91_v13  ;;  %v12793_v13 = vadd.f32 %v12621_v58, %v12595_v50 }
 0x13b   :  { %v419_v15 = vpop.f32.mrf.mxu2 }
 0x13c   :  { %v12676_v17 = vadd.f32 %v12621_v58, %v419_v15  ;;  %v100_v15 = vld [vmem:[%s17476_s0 + $0x168] sm:$0xff] }
 0x13e   :  { %17478 = vst [vmem:[#allocation6_spill] sm:$0xff] %v12676_v17 }
 0x140   :  { %9478 = vmatmul.msk.f32.gmra.mxu2 %vm151_vm1, %v92_v18 }
 0x143   :  { %v422_v20 = vpop.f32.mrf.mxu2 }
 0x144   :  { %v12689_v22 = vadd.f32 %v12621_v58, %v422_v20 }
 0x148   :  { %9479 = vmatmul.msk.f32.gmra.mxu2 %vm151_vm1, %v93_v23  ;;  %v12806_v23 = vadd.f32 %v12621_v58, %v12601_v52 }
 0x14b   :  { %v425_v25 = vpop.f32.mrf.mxu2 }
 0x14c   :  { %v12702_v27 = vadd.f32 %v12621_v58, %v425_v25  ;;  %v101_v25 = vld [vmem:[%s17476_s0 + $0x170] sm:$0xff] }
 0x150   :  { %9480 = vmatmul.msk.f32.gmra.mxu2 %vm151_vm1, %v94_v28 }
 0x153   :  { %v428_v30 = vpop.f32.mrf.mxu2 }
 0x154   :  { %v12715_v32 = vadd.f32 %v12621_v58, %v428_v30 }
 0x158   :  { %9481 = vmatmul.msk.f32.gmra.mxu2 %vm151_vm1, %v95_v33  ;;  %v12819_v33 = vadd.f32 %v12621_v58, %v12607_v54  ;;  %v103_v54 = vld [vmem:[%s17476_s0 + $0x180] sm:$0xff] }
 0x15b   :  { %v431_v36 = vpop.f32.mrf.mxu2 }
 0x15c   :  { %v12732_v38 = vadd.f32 %v12621_v58, %v431_v36 }
 0x160   :  { %9482 = vmatmul.msk.f32.gmra.mxu2 %vm151_vm1, %v96_v39 }
 0x163   :  { %v434_v42 = vpop.f32.mrf.mxu2 }
 0x164   :  { %v12749_v45 = vadd.f32 %v12621_v58, %v434_v42 }
 0x168   :  { %9483 = vmatmul.msk.f32.gmra.mxu2 %vm151_vm1, %v97_v47 }
 0x16b   :  { %v437_v44 = vpop.f32.mrf.mxu2 }
 0x16c   :  { %v12766_v55 = vadd.f32 %v12621_v58, %v437_v44  ;;  %v104_v44 = vld [vmem:[%s17476_s0 + $0x188] sm:$0xff] }
 0x170   :  { %9484 = vmatmul.msk.f32.gmra.mxu2 %vm151_vm1, %v98_v57 }
 0x173   :  { %v440_v46 = vpop.f32.mrf.mxu2 }
 0x174   :  { %v12783_v3 = vadd.f32 %v12621_v58, %v440_v46  ;;  %v106_v46 = vld [vmem:[%s17476_s0 + $0x198] sm:$0xff] }
 0x178   :  { %9485 = vmatmul.msk.f32.gmra.mxu2 %vm151_vm1, %v99_v5 }
 0x17b   :  { %v443_v10 = vpop.f32.mrf.mxu2 }
 0x17c   :  { %v12796_v48 = vadd.f32 %v12621_v58, %v443_v10  ;;  %v107_v10 = vld [vmem:[%s17476_s0 + $0x1a0] sm:$0xff] }
 0x180   :  { %9486 = vmatmul.msk.f32.gmra.mxu2 %vm151_vm1, %v100_v15 }
 0x183   :  { %v446_v20 = vpop.f32.mrf.mxu2 }
 0x184   :  { %v12809_v50 = vadd.f32 %v12621_v58, %v446_v20  ;;  %v108_v20 = vld [vmem:[%s17476_s0 + $0x1a8] sm:$0xff] }
 0x188   :  { %9487 = vmatmul.msk.f32.gmra.mxu2 %vm151_vm1, %v101_v25 }
 0x18b   :  { %v449_v30 = vpop.f32.mrf.mxu2 }
 0x18c   :  { %v12822_v52 = vadd.f32 %v12621_v58, %v449_v30  ;;  %v109_v30 = vld [vmem:[%s17476_s0 + $0x1b0] sm:$0xff] }
 0x190   :  { %9488 = vmatmul.msk.f32.gmra.mxu2 %vm151_vm1, %v102_v35 }
 0x193   :  { %v452_v39 = vpop.f32.mrf.mxu2 }
 0x194   :  { %v453_v42 = vadd.f32 %v12621_v58, %v452_v39  ;;  %v110_v39 = vld [vmem:[%s17476_s0 + $0x1b8] sm:$0xff] }
 0x196   :  { %v566_v47 = vmax.f32 %v405_v41, %v453_v42  ;;  %v111_v42 = vld [vmem:[%s17476_s0 + $0x1c0] sm:$0xff] }
 0x198   :  { %9489 = vmatmul.msk.f32.gmra.mxu2 %vm151_vm1, %v103_v54 }
 0x19b   :  { %v455_v51 = vpop.f32.mrf.mxu2 }
 0x1a0   :  { %9490 = vmatmul.msk.f32.gmra.mxu2 %vm151_vm1, %v104_v44  ;;  %v112_v44 = vld [vmem:[%s17476_s0 + $0x1c8] sm:$0xff] }
 0x1a3   :  { %v12841_v57 = vpop.f32.mrf.mxu2 }
 0x1a8   :  { %9491 = vmatmul.msk.f32.gmra.mxu2 %vm151_vm1, %v105_v56 }
 0x1ab   :  { %v12847_v62 = vpop.f32.mrf.mxu2 }
 0x1b0   :  { %9492 = vmatmul.msk.f32.gmra.mxu2 %vm151_vm1, %v106_v46  ;;  %v113_v46 = vld [vmem:[%s17476_s0 + $0x1d0] sm:$0xff] }
 0x1b3   :  { %v12853_v5 = vpop.f32.mrf.mxu2 }
 0x1b8   :  { %9493 = vmatmul.msk.f32.gmra.mxu2 %vm151_vm1, %v107_v10 }
 0x1bb   :  { %v12859_v15 = vpop.f32.mrf.mxu2 }
 0x1c0   :  { %9494 = vmatmul.msk.f32.gmra.mxu2 %vm151_vm1, %v108_v20  ;;  %v114_v20 = vld [vmem:[%s17476_s0 + $0x1d8] sm:$0xff] }
 0x1c3   :  { %v12865_v25 = vpop.f32.mrf.mxu2 }
 0x1c8   :  { %9495 = vmatmul.msk.f32.gmra.mxu2 %vm151_vm1, %v109_v30  ;;  %v539_v30 = vpop.f32.mrf.mxu3 }
 0x1c9   :  { %v540_v9 = vadd.f32 %v12621_v58, %v539_v30 }
 0x1cb   :  { %v12871_v35 = vpop.f32.mrf.mxu2 }
 0x1d0   :  { %9496 = vmatmul.msk.f32.gmra.mxu2 %vm151_vm1, %v110_v39 }
 0x1d3   :  { %v12877_v41 = vpop.f32.mrf.mxu2 }
 0x1d8   :  { %9497 = vmatmul.msk.f32.gmra.mxu2 %vm151_vm1, %v111_v42 }
 0x1db   :  { %v12883_v54 = vpop.f32.mrf.mxu2 }
 0x1e0   :  { %9498 = vmatmul.msk.f32.gmra.mxu2 %vm151_vm1, %v112_v44  ;;  %v542_v44 = vpop.f32.mrf.mxu3 }
 0x1e1   :  { %v543_v59 = vadd.f32 %v12621_v58, %v542_v44 }
 0x1e3   :  { %v12889_v56 = vpop.f32.mrf.mxu2 }
 0x1e8   :  { %9499 = vmatmul.msk.f32.gmra.mxu2 %vm151_vm1, %v113_v46  ;;  %v545_v24 = vpop.f32.mrf.mxu3 }
 0x1e9   :  { %v546_v46 = vadd.f32 %v12621_v58, %v545_v24  ;;  %v17479_v24 = vmax.f32 %v12819_v33, %v12822_v52  ;;  %v17484_v52 = vmax.f32 %v12649_v6, %v12652_v7 }
 0x1eb   :  { %v12895_v10 = vpop.f32.mrf.mxu2 }
 0x1f0   :  { %9500 = vmatmul.msk.f32.gmra.mxu2 %vm151_vm1, %v114_v20  ;;  %v548_v34 = vpop.f32.mrf.mxu3 }
 0x1f1   :  { %v549_v8 = vadd.f32 %v12621_v58, %v548_v34  ;;  %v17480_v34 = vmax.f32 %v12806_v23, %v12809_v50  ;;  %v17483_v23 = vmax.f32 %v12637_v1, %v12640_v2 }
 0x1f3   :  { %v12901_v39 = vpop.f32.mrf.mxu2 }
 0x1fb   :  { %v491_v42 = vpop.f32.mrf.mxu2 }
 0x1fc   :  { %v492_v14 = vadd.f32 %v12621_v58, %v491_v42  ;;  %v456_v42 = vadd.f32 %v12621_v58, %v455_v51  ;;  %v465_v51 = vadd.f32 %v12621_v58, %v12853_v5  ;;  %v486_v5 = vadd.f32 %v12621_v58, %v12895_v10 }
 0x1fe   :  { %v579_v36 = vmax.f32 %v492_v14, %v540_v9 }
 0x203   :  { %v494_v19 = vpop.f32.mrf.mxu2 }
 0x204   :  { %v495_v49 = vadd.f32 %v12621_v58, %v494_v19 }
 0x206   :  { %v580_v18 = vmax.f32 %v495_v49, %v543_v59 }
 0x208   :  { %v596_v44 = vmax.f32 %v17480_v34, %v580_v18 }
 0x20b   :  { %v497_v29 = vpop.f32.mrf.mxu2 }
 0x20c   :  { %v498_v40 = vadd.f32 %v12621_v58, %v497_v29 }
 0x20e   :  { %v581_v4 = vmax.f32 %v498_v40, %v546_v46 }
 0x210   :  { %v597_v19 = vmax.f32 %v17479_v24, %v581_v4  ;;  %v612_v4 = vmax.f32 %v596_v44, 0.0  ;;  %v483_v44 = vadd.f32 %v12621_v58, %v12889_v56 }
 0x212   :  { %v613_v49 = vmax.f32 %v597_v19, 0.0 }
 0x213   :  { %v500_v20 = vpop.f32.mrf.mxu2 }
 0x214   :  { %v501_v63 = vadd.f32 %v12621_v58, %v500_v20 }
 0x216   :  { %v582_v28 = vmax.f32 %v501_v63, %v549_v8  ;;  %v17481_v63 = vmax.f32 %v12793_v13, %v12796_v48  ;;  %v17482_v8 = vmax.f32 %v12625_v60, %v12628_v61  ;;  %v462_v60 = vadd.f32 %v12621_v58, %v12847_v62 }
 0x218   :  { %v598_v29 = vmax.f32 %v566_v47, %v582_v28  ;;  %v595_v9 = vmax.f32 %v17481_v63, %v579_v36  ;;  %v480_v63 = vadd.f32 %v12621_v58, %v12883_v54  ;;  %v474_v54 = vadd.f32 %v12621_v58, %v12871_v35 }
 0x21a   :  { %v614_v17 = vmax.f32 %v598_v29, 0.0  ;;  %v611_v59 = vmax.f32 %v595_v9, 0.0 }
 0x21b   :  { %v503_v16 = vpop.f32.mrf.mxu2 }
 0x21c   :  { %v504_v40 = vadd.f32 %v12621_v58, %v503_v16  ;;  %2215 = vmatpush.msra.mxu0 %v614_v17  ;;  %12314 = vmatpush.msra.mxu1 %v614_v17  ;;  %v459_v17 = vadd.f32 %v12621_v58, %v12841_v57  ;;  %v17485_v57 = vmax.f32 %v12661_v11, %v12664_v12 }
 0x21d   :  { %v489_v12 = vadd.f32 %v12621_v58, %v12901_v39  ;;  %v17486_v39 = vmax.f32 %v12780_v0, %v12783_v3 }
 0x21e   :  { %v567_v14 = vmax.f32 %v456_v42, %v504_v40  ;;  %2216 = vmatpush.msra.mxu0 %v613_v49  ;;  %12315 = vmatpush.msra.mxu1 %v613_v49 }
 0x220   :  { %2217 = vmatpush.msra.mxu0 %v612_v4  ;;  %12316 = vmatpush.msra.mxu1 %v612_v4  ;;  %v12925_v18 = vmax.f32 %v17482_v8, %v567_v14  ;;  %v477_v4 = vadd.f32 %v12621_v58, %v12877_v41  ;;  %v17488_v41 = vmax.f32 %v12746_v43, %v12749_v45 }
 0x221   :  { %v17490_v45 = vmax.f32 %v12712_v31, %v12715_v32  ;;  %v17493_v31 = vld [vmem:[#allocation5_spill] sm:$0xff]  ;;  %v17494_v32 = vld [vmem:[#allocation6_spill] sm:$0xff] }
 0x222   :  { %2218 = vmatpush.msra.mxu0 %v611_v59  ;;  %12317 = vmatpush.msra.mxu1 %v611_v59 }
 0x223   :  { %v506_v16 = vpop.f32.mrf.mxu2 }
 0x224   :  { %v507_v13 = vadd.f32 %v12621_v58, %v506_v16  ;;  %v17487_v16 = vmax.f32 %v12763_v53, %v12766_v55  ;;  %v17489_v55 = vmax.f32 %v12729_v37, %v12732_v38 }
 0x226   :  { %v568_v48 = vmax.f32 %v459_v17, %v507_v13 }
 0x228   :  { %v12933_v50 = vmax.f32 %v17483_v23, %v568_v48 }
 0x22b   :  { %v509_v28 = vpop.f32.mrf.mxu2 }
 0x22c   :  { %v510_v61 = vadd.f32 %v12621_v58, %v509_v28 }
 0x22e   :  { %v569_v33 = vmax.f32 %v462_v60, %v510_v61  ;;  %v471_v60 = vadd.f32 %v12621_v58, %v12865_v25  ;;  %v468_v61 = vadd.f32 %v12621_v58, %v12859_v15 }
 0x230   :  { %v12941_v36 = vmax.f32 %v17484_v52, %v569_v33 }
 0x233   :  { %v512_v47 = vpop.f32.mrf.mxu2 }
 0x234   :  { %v513_v1 = vadd.f32 %v12621_v58, %v512_v47 }
 0x236   :  { %v570_v2 = vmax.f32 %v465_v51, %v513_v1  ;;  %v17491_v51 = vmax.f32 %v12699_v26, %v12702_v27 }
 0x238   :  { %v12949_v30 = vmax.f32 %v17485_v57, %v570_v2  ;;  %v17495_v2 = vmax.f32 %v17493_v31, %v17494_v32 }
 0x23a   :  { %v602_v27 = vmax.f32 %v12949_v30, 0.0  ;;  %v599_v30 = vmax.f32 %v12925_v18, 0.0  ;;  %v11914_v18 = vld [vmem:[%s17458_s3 + $0x230] sm:$0xff] }
 0x23b   :  { %v515_v62 = vpop.f32.mrf.mxu2 }
 0x23c   :  { %v516_v0 = vadd.f32 %v12621_v58, %v515_v62 }
 0x23e   :  { %v571_v52 = vmax.f32 %v468_v61, %v516_v0  ;;  %v11924_v61 = vld [vmem:[%s17458_s3 + $0x280] sm:$0xff] }
 0x240   :  { %v587_v57 = vmax.f32 %v17495_v2, %v571_v52  ;;  %v11857_v52 = vld [vmem:[%s17458_s3 + $0x68] sm:$0xff] }
 0x242   :  { %v603_v26 = vmax.f32 %v587_v57, 0.0 }
 0x243   :  { %v518_v46 = vpop.f32.mrf.mxu2 }
 0x244   :  { %v519_v13 = vadd.f32 %v12621_v58, %v518_v46  ;;  %v11844_v46 = vld [vmem:[%s17458_s3] sm:$0xff] }
 0x246   :  { %v572_v33 = vmax.f32 %v471_v60, %v519_v13  ;;  %v11923_v60 = vld [vmem:[%s17458_s3 + $0x278] sm:$0xff] }
 0x24b   :  { %v521_v20 = vpop.f32.mrf.mxu2 }
 0x24c   :  { %v522_v56 = vadd.f32 %v12621_v58, %v521_v20  ;;  %v11912_v20 = vld [vmem:[%s17458_s3 + $0x220] sm:$0xff] }
 0x24e   :  { %v573_v3 = vmax.f32 %v474_v54, %v522_v56  ;;  %v11921_v56 = vld [vmem:[%s17458_s3 + $0x268] sm:$0xff]  ;;  %v11922_v54 = vld [vmem:[%s17458_s3 + $0x270] sm:$0xff] }
 0x250   :  { %v589_v37 = vmax.f32 %v17491_v51, %v573_v3 }
 0x252   :  { %v605_v1 = vmax.f32 %v589_v37, 0.0 }
 0x253   :  { %v524_v29 = vpop.f32.mrf.mxu2 }
 0x254   :  { %v525_v9 = vadd.f32 %v12621_v58, %v524_v29  ;;  %v11846_v29 = vld [vmem:[%s17458_s3 + $0x10] sm:$0xff] }
 0x256   :  { %v574_v48 = vmax.f32 %v477_v4, %v525_v9  ;;  %v11853_v4 = vld [vmem:[%s17458_s3 + $0x48] sm:$0xff] }
 0x258   :  { %v590_v25 = vmax.f32 %v17490_v45, %v574_v48 }
 0x25a   :  { %v606_v38 = vmax.f32 %v590_v25, 0.0 }
 0x25b   :  { %v527_v24 = vpop.f32.mrf.mxu2 }
 0x25c   :  { %v528_v42 = vadd.f32 %v12621_v58, %v527_v24  ;;  %v11847_v24 = vld [vmem:[%s17458_s3 + $0x18] sm:$0xff] }
 0x25e   :  { %v575_v59 = vmax.f32 %v480_v63, %v528_v42  ;;  %v11919_v42 = vld [vmem:[%s17458_s3 + $0x258] sm:$0xff] }
 0x260   :  { %v591_v35 = vmax.f32 %v17489_v55, %v575_v59 }
 0x262   :  { %v607_v47 = vmax.f32 %v591_v35, 0.0  ;;  %v11856_v35 = vld [vmem:[%s17458_s3 + $0x60] sm:$0xff] }
 0x263   :  { %v530_v6 = vpop.f32.mrf.mxu2 }
 0x264   :  { %v531_v34 = vadd.f32 %v12621_v58, %v530_v6  ;;  %v11915_v6 = vld [vmem:[%s17458_s3 + $0x238] sm:$0xff] }
 0x266   :  { %v576_v10 = vmax.f32 %v483_v44, %v531_v34  ;;  %v11917_v34 = vld [vmem:[%s17458_s3 + $0x248] sm:$0xff]  ;;  %v11850_v44 = vld [vmem:[%s17458_s3 + $0x30] sm:$0xff] }
 0x268   :  { %v592_v28 = vmax.f32 %v17488_v41, %v576_v10 }
 0x26a   :  { %v608_v43 = vmax.f32 %v592_v28, 0.0  ;;  %v11855_v28 = vld [vmem:[%s17458_s3 + $0x58] sm:$0xff] }
 0x26b   :  { %v533_v7 = vpop.f32.mrf.mxu2 }
 0x26c   :  { %v534_v19 = vadd.f32 %v12621_v58, %v533_v7  ;;  %v11848_v7 = vld [vmem:[%s17458_s3 + $0x20] sm:$0xff] }
 0x26e   :  { %v577_v40 = vmax.f32 %v486_v5, %v534_v19  ;;  %v11916_v19 = vld [vmem:[%s17458_s3 + $0x240] sm:$0xff]  ;;  %v11849_v5 = vld [vmem:[%s17458_s3 + $0x28] sm:$0xff] }
 0x270   :  { %v593_v17 = vmax.f32 %v17487_v16, %v577_v40  ;;  %v11852_v40 = vld [vmem:[%s17458_s3 + $0x40] sm:$0xff] }
 0x272   :  { %v609_v53 = vmax.f32 %v593_v17, 0.0  ;;  %v11854_v17 = vld [vmem:[%s17458_s3 + $0x50] sm:$0xff] }
 0x273   :  { %v536_v11 = vpop.f32.mrf.mxu2 }
 0x274   :  { %v537_v49 = vadd.f32 %v12621_v58, %v536_v11  ;;  %v17492_v58 = vmax.f32 %v12686_v21, %v12689_v22  ;;  %v601_v21 = vmax.f32 %v12941_v36, 0.0  ;;  %v600_v22 = vmax.f32 %v12933_v50, 0.0  ;;  %v11845_v50 = vld [vmem:[%s17458_s3 + $0x8] sm:$0xff]  ;;  %v11918_v11 = vld [vmem:[%s17458_s3 + $0x250] sm:$0xff] }
 0x275   :  { %v11913_v36 = vld [vmem:[%s17458_s3 + $0x228] sm:$0xff] }
 0x276   :  { %v578_v14 = vmax.f32 %v489_v12, %v537_v49  ;;  %v588_v15 = vmax.f32 %v17492_v58, %v572_v33  ;;  %v11851_v12 = vld [vmem:[%s17458_s3 + $0x38] sm:$0xff]  ;;  %v11920_v49 = vld [vmem:[%s17458_s3 + $0x260] sm:$0xff] }
 0x278   :  { %v594_v8 = vmax.f32 %v17486_v39, %v578_v14  ;;  %v604_v62 = vmax.f32 %v588_v15, 0.0  ;;  %v11858_v15 = vld [vmem:[%s17458_s3 + $0x70] sm:$0xff] }
 0x27a   :  { %v610_v23 = vmax.f32 %v594_v8, 0.0 }
 0x27c   :  { %2219 = vmatpush.msra.mxu0 %v610_v23  ;;  %12318 = vmatpush.msra.mxu1 %v610_v23 }
 0x27e   :  { %2220 = vmatpush.msra.mxu0 %v609_v53  ;;  %12319 = vmatpush.msra.mxu1 %v609_v53 }
 0x280   :  { %2221 = vmatpush.msra.mxu0 %v608_v43  ;;  %12320 = vmatpush.msra.mxu1 %v608_v43 }
 0x282   :  { %2222 = vmatpush.msra.mxu0 %v607_v47  ;;  %12321 = vmatpush.msra.mxu1 %v607_v47  ;;  %v11925_v47 = vld [vmem:[%s17458_s3 + $0x288] sm:$0xff] }
 0x284   :  { %2223 = vmatpush.msra.mxu0 %v606_v38  ;;  %12322 = vmatpush.msra.mxu1 %v606_v38 }
 0x286   :  { %2224 = vmatpush.msra.mxu0 %v605_v1  ;;  %12323 = vmatpush.msra.mxu1 %v605_v1  ;;  %v11926_v1 = vld [vmem:[%s17458_s3 + $0x290] sm:$0xff] }
 0x288   :  { %2225 = vmatpush.msra.mxu0 %v604_v62  ;;  %12324 = vmatpush.msra.mxu1 %v604_v62  ;;  %v11859_v62 = vld [vmem:[%s17458_s3 + $0x78] sm:$0xff] }
 0x28a   :  { %2226 = vmatpush.msra.mxu0 %v603_v26  ;;  %12325 = vmatpush.msra.mxu1 %v603_v26  ;;  %v11927_v26 = vld [vmem:[%s17458_s3 + $0x298] sm:$0xff] }
 0x28c   :  { %2227 = vmatpush.msra.mxu0 %v602_v27  ;;  %12326 = vmatpush.msra.mxu1 %v602_v27 }
 0x28e   :  { %2228 = vmatpush.msra.mxu0 %v601_v21  ;;  %12327 = vmatpush.msra.mxu1 %v601_v21 }
 0x290   :  { %2229 = vmatpush.msra.mxu0 %v600_v22  ;;  %12328 = vmatpush.msra.mxu1 %v600_v22 }
 0x292   :  { %2230 = vmatpush.msra.mxu0 %v599_v30  ;;  %12329 = vmatpush.msra.mxu1 %v599_v30  ;;  %v11928_v30 = vld [vmem:[%s17458_s3 + $0x2a0] sm:$0xff] }
 0x293   :  { %2231 = vmatmul.bf16.vlgmr.msra.gmra.mxu0 %v11844_v46  ;;  %2571 = vmatmul.bf16.vlgmr.msra.gmra.mxu1 %v11912_v20  ;;  %v11860_v20 = vld [vmem:[%s17458_s3 + $0x80] sm:$0xff] }
 0x2a3   :  { %2236 = vmatmul.bf16.gmra.mxu0 %v11845_v50  ;;  %2576 = vmatmul.bf16.gmra.mxu1 %v11913_v36 }
 0x2b3   :  { %2241 = vmatmul.bf16.gmra.mxu0 %v11846_v29  ;;  %2581 = vmatmul.bf16.gmra.mxu1 %v11914_v18 }
 0x2c3   :  { %2246 = vmatmul.bf16.gmra.mxu0 %v11847_v24  ;;  %2586 = vmatmul.bf16.gmra.mxu1 %v11915_v6  ;;  %v11861_v24 = vld [vmem:[%s17458_s3 + $0x88] sm:$0xff] }
 0x2c4   :  { %v11929_v6 = vld [vmem:[%s17458_s3 + $0x2a8] sm:$0xff] }
 0x2d3   :  { %2251 = vmatmul.bf16.gmra.mxu0 %v11848_v7  ;;  %2591 = vmatmul.bf16.gmra.mxu1 %v11916_v19 }
 0x2e3   :  { %2256 = vmatmul.bf16.gmra.mxu0 %v11849_v5  ;;  %2596 = vmatmul.bf16.gmra.mxu1 %v11917_v34 }
 0x2f3   :  { %2261 = vmatmul.bf16.gmra.mxu0 %v11850_v44  ;;  %2601 = vmatmul.bf16.gmra.mxu1 %v11918_v11  ;;  %v11862_v44 = vld [vmem:[%s17458_s3 + $0x90] sm:$0xff] }
 0x2f4   :  { %v11930_v11 = vld [vmem:[%s17458_s3 + $0x2b0] sm:$0xff] }
 0x303   :  { %2266 = vmatmul.bf16.gmra.mxu0 %v11851_v12  ;;  %2606 = vmatmul.bf16.gmra.mxu1 %v11919_v42 }
 0x310   :  { %v13057_v63 = vpop.f32.mrf.mxu0  ;;  %v13059_v9 = vpop.f32.mrf.mxu1 }
 0x313   :  { %2271 = vmatmul.bf16.gmra.mxu0 %v11852_v40  ;;  %2611 = vmatmul.bf16.gmra.mxu1 %v11920_v49 }
 0x318   :  { %v13061_v10 = vpop.f32.mrf.mxu0  ;;  %v13063_v14 = vpop.f32.mrf.mxu1 }
 0x320   :  { %v13071_v59 = vpop.f32.mrf.mxu0  ;;  %v13073_v39 = vpop.f32.mrf.mxu1 }
 0x323   :  { %2276 = vmatmul.bf16.gmra.mxu0 %v11853_v4  ;;  %2616 = vmatmul.bf16.gmra.mxu1 %v11921_v56  ;;  %v11863_v4 = vld [vmem:[%s17458_s3 + $0x98] sm:$0xff] }
 0x324   :  { %v11931_v56 = vld [vmem:[%s17458_s3 + $0x2b8] sm:$0xff] }
 0x328   :  { %v13075_v8 = vpop.f32.mrf.mxu0  ;;  %v13077_v16 = vpop.f32.mrf.mxu1 }
 0x330   :  { %v13085_v13 = vpop.f32.mrf.mxu0  ;;  %v13087_v48 = vpop.f32.mrf.mxu1 }
 0x333   :  { %2281 = vmatmul.bf16.gmra.mxu0 %v11854_v17  ;;  %2621 = vmatmul.bf16.gmra.mxu1 %v11922_v54 }
 0x338   :  { %v13089_v23 = vpop.f32.mrf.mxu0  ;;  %v13091_v41 = vpop.f32.mrf.mxu1 }
 0x340   :  { %v13099_v0 = vpop.f32.mrf.mxu0  ;;  %v13101_v3 = vpop.f32.mrf.mxu1 }
 0x341   :  { %17496 = vst [vmem:[#allocation5_spill] sm:$0xff] %v13101_v3 }
 0x343   :  { %2286 = vmatmul.bf16.gmra.mxu0 %v11855_v28  ;;  %2626 = vmatmul.bf16.gmra.mxu1 %v11923_v60 }
 0x348   :  { %v13103_v53 = vpop.f32.mrf.mxu0  ;;  %v13105_v55 = vpop.f32.mrf.mxu1 }
 0x349   :  { %17497 = vst [vmem:[#allocation6_spill] sm:$0xff] %v13105_v55 }
 0x350   :  { %v13113_v33 = vpop.f32.mrf.mxu0  ;;  %v13115_v43 = vpop.f32.mrf.mxu1 }
 0x353   :  { %2291 = vmatmul.bf16.gmra.mxu0 %v11856_v35  ;;  %2631 = vmatmul.bf16.gmra.mxu1 %v11924_v61  ;;  %v12047_v35 = vld [vmem:[%s17459_s4 + $0x18] sm:$0xff]  ;;  %v12046_v61 = vld [vmem:[%s17459_s4 + $0x10] sm:$0xff] }
 0x354   :  { %12331 = vmatpush.bf16.msrb.mxu3 %v12047_v35  ;;  %12330 = vmatpush.bf16.msrb.mxu2 %v12047_v35 }
 0x355   :  { %3307 = vmatpush.bf16.msrb.mxu0 %v12047_v35  ;;  %v11866_v35 = vld [vmem:[%s17458_s3 + $0xb0] sm:$0xff] }
 0x358   :  { %v13117_v45 = vpop.f32.mrf.mxu0  ;;  %v13119_v25 = vpop.f32.mrf.mxu1  ;;  %12333 = vmatpush.bf16.msrb.mxu3 %v12046_v61  ;;  %12332 = vmatpush.bf16.msrb.mxu2 %v12046_v61 }
 0x359   :  { %3308 = vmatpush.bf16.msrb.mxu0 %v12046_v61  ;;  %v11934_v61 = vld [vmem:[%s17458_s3 + $0x2d0] sm:$0xff] }
 0x360   :  { %v13127_v51 = vpop.f32.mrf.mxu0  ;;  %v13129_v37 = vpop.f32.mrf.mxu1 }
 0x363   :  { %2296 = vmatmul.bf16.gmra.mxu0 %v11857_v52  ;;  %2636 = vmatmul.bf16.gmra.mxu1 %v11925_v47  ;;  %v11864_v52 = vld [vmem:[%s17458_s3 + $0xa0] sm:$0xff] }
 0x364   :  { %v11932_v47 = vld [vmem:[%s17458_s3 + $0x2c0] sm:$0xff] }
 0x368   :  { %v13131_v38 = vpop.f32.mrf.mxu0  ;;  %v13133_v58 = vpop.f32.mrf.mxu1 }
 0x370   :  { %v13141_v31 = vpop.f32.mrf.mxu0  ;;  %v13143_v32 = vpop.f32.mrf.mxu1 }
 0x373   :  { %2301 = vmatmul.bf16.gmra.mxu0 %v11858_v15  ;;  %2641 = vmatmul.bf16.gmra.mxu1 %v11926_v1 }
 0x378   :  { %v13145_v2 = vpop.f32.mrf.mxu0  ;;  %v13147_v57 = vpop.f32.mrf.mxu1 }
 0x380   :  { %v13155_v27 = vpop.f32.mrf.mxu0  ;;  %v13157_v21 = vpop.f32.mrf.mxu1 }
 0x383   :  { %2306 = vmatmul.bf16.gmra.mxu0 %v11859_v62  ;;  %2646 = vmatmul.bf16.gmra.mxu1 %v11927_v26 }
 0x388   :  { %v13159_v22 = vpop.f32.mrf.mxu0  ;;  %v13161_v46 = vpop.f32.mrf.mxu1 }
 0x390   :  { %v13169_v50 = vpop.f32.mrf.mxu0  ;;  %v13171_v36 = vpop.f32.mrf.mxu1 }
 0x393   :  { %2311 = vmatmul.bf16.gmra.mxu0 %v11860_v20  ;;  %2651 = vmatmul.bf16.gmra.mxu1 %v11928_v30  ;;  %v11865_v20 = vld [vmem:[%s17458_s3 + $0xa8] sm:$0xff] }
 0x394   :  { %v11933_v30 = vld [vmem:[%s17458_s3 + $0x2c8] sm:$0xff] }
 0x398   :  { %v13173_v29 = vpop.f32.mrf.mxu0  ;;  %v13175_v18 = vpop.f32.mrf.mxu1 }
 0x3a0   :  { %v13183_v7 = vpop.f32.mrf.mxu0  ;;  %v13185_v19 = vpop.f32.mrf.mxu1 }
 0x3a3   :  { %2316 = vmatmul.bf16.gmra.mxu0 %v11861_v24  ;;  %2656 = vmatmul.bf16.gmra.mxu1 %v11929_v6 }
 0x3a8   :  { %v13187_v5 = vpop.f32.mrf.mxu0  ;;  %v13189_v34 = vpop.f32.mrf.mxu1 }
 0x3b0   :  { %v13197_v12 = vpop.f32.mrf.mxu0  ;;  %v13199_v42 = vpop.f32.mrf.mxu1 }
 0x3b3   :  { %2321 = vmatmul.bf16.gmra.mxu0 %v11862_v44  ;;  %2661 = vmatmul.bf16.gmra.mxu1 %v11930_v11 }
 0x3b8   :  { %v13201_v40 = vpop.f32.mrf.mxu0  ;;  %v13203_v49 = vpop.f32.mrf.mxu1 }
 0x3b9   :  { %17498 = vst [vmem:[#allocation7_spill] sm:$0xff] %v13203_v49 }
 0x3c0   :  { %v13211_v17 = vpop.f32.mrf.mxu0  ;;  %v13213_v54 = vpop.f32.mrf.mxu1 }
 0x3c1   :  { %17499 = vst [vmem:[#allocation8_spill] sm:$0xff] %v13213_v54 }
 0x3c3   :  { %2326 = vmatmul.bf16.gmra.mxu0 %v11863_v4  ;;  %2666 = vmatmul.bf16.gmra.mxu1 %v11931_v56  ;;  %v12045_v4 = vld [vmem:[%s17459_s4 + $0x8] sm:$0xff]  ;;  %v12044_v56 = vld [vmem:[%s17459_s4] sm:$0xff] }
 0x3c4   :  { %3424 = vmatpush.bf16.msra.mxu3 %v12045_v4  ;;  %v11935_v4 = vld [vmem:[%s17458_s3 + $0x2d8] sm:$0xff] }
 0x3c8   :  { %v13215_v28 = vpop.f32.mrf.mxu0  ;;  %v13217_v60 = vpop.f32.mrf.mxu1  ;;  %3425 = vmatpush.bf16.msra.mxu3 %v12044_v56 }
 0x3c9   :  { %17500 = vst [vmem:[#allocation9_spill] sm:$0xff] %v13217_v60 }
 0x3d0   :  { %v13231_v15 = vpop.f32.mrf.mxu0  ;;  %v13233_v1 = vpop.f32.mrf.mxu1 }
 0x3d3   :  { %2331 = vmatmul.bf16.gmra.mxu0 %v11864_v52  ;;  %2671 = vmatmul.bf16.gmra.mxu1 %v11932_v47 }
 0x3d8   :  { %v13235_v62 = vpop.f32.mrf.mxu0  ;;  %v13237_v26 = vpop.f32.mrf.mxu1 }
 0x3e0   :  { %v13245_v24 = vpop.f32.mrf.mxu0  ;;  %v13247_v6 = vpop.f32.mrf.mxu1 }
 0x3e3   :  { %2336 = vmatmul.bf16.gmra.mxu0 %v11865_v20  ;;  %2676 = vmatmul.bf16.gmra.mxu1 %v11933_v30 }
 0x3e8   :  { %v2299_v44 = vpop.f32.mrf.mxu0  ;;  %v13249_v11 = vpop.f32.mrf.mxu1 }
 0x3e9   :  { %10324 = vmatmul.msk.f32.vlgmr.msrb.gmra.mxu2 %vm3252_vm2, %v2299_v44  ;;  %v11867_v44 = vld [vmem:[%s17458_s3 + $0xb8] sm:$0xff] }
 0x3f0   :  { %v2302_v52 = vpop.f32.mrf.mxu0  ;;  %v13264_v47 = vpop.f32.mrf.mxu1 }
 0x3f1   :  { %10325 = vmatmul.msk.f32.vlgmr.msrb.gmra.mxu3 %vm3252_vm2, %v2302_v52  ;;  %v11868_v52 = vld [vmem:[%s17458_s3 + $0xc0] sm:$0xff] }
 0x3f3   :  { %2341 = vmatmul.bf16.gmra.mxu0 %v11866_v35  ;;  %2681 = vmatmul.bf16.gmra.mxu1 %v11934_v61 }
 0x3f8   :  { %v2304_v20 = vpop.f32.mrf.mxu0  ;;  %v13267_v30 = vpop.f32.mrf.mxu1 }
 0x3f9   :  { %10326 = vmatmul.msk.f32.gmra.mxu3 %vm3252_vm2, %v2304_v20  ;;  %v11936_v20 = vld [vmem:[%s17458_s3 + $0x2e0] sm:$0xff] }
 0x400   :  { %v2307_v56 = vpop.f32.mrf.mxu0  ;;  %v13276_v60 = vpop.f32.mrf.mxu1 }
 0x401   :  { %10327 = vmatmul.msk.f32.gmra.mxu3 %vm3252_vm2, %v2307_v56  ;;  %v11869_v56 = vld [vmem:[%s17458_s3 + $0xc8] sm:$0xff] }
 0x403   :  { %2346 = vmatmul.bf16.gmra.mxu0 %v11867_v44  ;;  %2686 = vmatmul.bf16.gmra.mxu1 %v11935_v4 }
 0x408   :  { %v2309_v35 = vpop.f32.mrf.mxu0  ;;  %v13279_v61 = vpop.f32.mrf.mxu1 }
 0x409   :  { %10328 = vmatmul.msk.f32.gmra.mxu3 %vm3252_vm2, %v2309_v35  ;;  %v11937_v35 = vld [vmem:[%s17458_s3 + $0x2e8] sm:$0xff] }
 0x410   :  { %v2312_v55 = vpop.f32.mrf.mxu0  ;;  %v13288_v54 = vpop.f32.mrf.mxu1 }
 0x411   :  { %10337 = vmatmul.msk.f32.vlgmr.msra.gmra.mxu3 %vm3252_vm2, %v13057_v63  ;;  %v12049_v63 = vld [vmem:[%s17459_s4 + $0x28] sm:$0xff] }
 0x412   :  { %3545 = vmatpush.bf16.msra.mxu2 %v12049_v63 }
 0x413   :  { %2351 = vmatmul.bf16.gmra.mxu0 %v11868_v52  ;;  %2691 = vmatmul.bf16.gmra.mxu1 %v11936_v20 }
 0x418   :  { %v2314_v44 = vpop.f32.mrf.mxu0  ;;  %v13292_v4 = vpop.f32.mrf.mxu1 }
 0x419   :  { %10338 = vmatmul.msk.f32.gmra.mxu3 %vm3252_vm2, %v13061_v10  ;;  %v12048_v10 = vld [vmem:[%s17459_s4 + $0x20] sm:$0xff] }
 0x41a   :  { %3546 = vmatpush.bf16.msra.mxu2 %v12048_v10  ;;  %v11871_v10 = vld [vmem:[%s17458_s3 + $0xd8] sm:$0xff] }
 0x41d   :  { %10361 = vmatmul.msk.f32.vlgmr.msra.gmra.mxu2 %vm3252_vm2, %v2312_v55 }
 0x420   :  { %v2317_v3 = vpop.f32.mrf.mxu0  ;;  %v13302_v49 = vpop.f32.mrf.mxu1 }
 0x421   :  { %10339 = vmatmul.msk.f32.gmra.mxu3 %vm3252_vm2, %v13071_v59  ;;  %v11870_v59 = vld [vmem:[%s17458_s3 + $0xd0] sm:$0xff] }
 0x423   :  { %2356 = vmatmul.bf16.gmra.mxu0 %v11869_v56  ;;  %2696 = vmatmul.bf16.gmra.mxu1 %v11937_v35  ;;  %v11938_v56 = vld [vmem:[%s17458_s3 + $0x2f0] sm:$0xff] }
 0x425   :  { %10362 = vmatmul.msk.f32.gmra.mxu2 %vm3252_vm2, %v2314_v44 }
 0x428   :  { %v2319_v52 = vpop.f32.mrf.mxu0  ;;  %v13312_v20 = vpop.f32.mrf.mxu1 }
 0x429   :  { %10340 = vmatmul.msk.f32.gmra.mxu3 %vm3252_vm2, %v13075_v8 }
 0x42d   :  { %10363 = vmatmul.msk.f32.gmra.mxu2 %vm3252_vm2, %v2317_v3 }
 0x430   :  { %v2322_v35 = vpop.f32.mrf.mxu0  ;;  %v13323_v63 = vpop.f32.mrf.mxu1 }
 0x431   :  { %17501 = vst [vmem:[#allocation10_spill] sm:$0xff] %v13323_v63  ;;  %10341 = vmatmul.msk.f32.gmra.mxu3 %vm3252_vm2, %v13085_v13  ;;  %v11939_v13 = vld [vmem:[%s17458_s3 + $0x2f8] sm:$0xff] }
 0x433   :  { %2361 = vmatmul.bf16.gmra.mxu0 %v11870_v59  ;;  %2701 = vmatmul.bf16.gmra.mxu1 %v11938_v56  ;;  %v11872_v59 = vld [vmem:[%s17458_s3 + $0xe0] sm:$0xff] }
 0x435   :  { %10364 = vmatmul.msk.f32.gmra.mxu2 %vm3252_vm2, %v2319_v52 }
 0x438   :  { %v2324_v8 = vpop.f32.mrf.mxu0  ;;  %v13328_v55 = vpop.f32.mrf.mxu1 }
 0x439   :  { %17502 = vst [vmem:[#allocation11_spill] sm:$0xff] %v13328_v55  ;;  %10342 = vmatmul.msk.f32.gmra.mxu3 %vm3252_vm2, %v13089_v23 }
 0x43d   :  { %10365 = vmatmul.msk.f32.gmra.mxu2 %vm3252_vm2, %v2322_v35 }
 0x440   :  { %v2327_v63 = vpop.f32.mrf.mxu0  ;;  %v13339_v44 = vpop.f32.mrf.mxu1 }
 0x441   :  { %17503 = vst [vmem:[#allocation12_spill] sm:$0xff] %v13339_v44  ;;  %10343 = vmatmul.msk.f32.gmra.mxu3 %vm3252_vm2, %v13099_v0  ;;  %v11940_v0 = vld [vmem:[%s17458_s3 + $0x300] sm:$0xff] }
 0x443   :  { %2366 = vmatmul.bf16.gmra.mxu0 %v11871_v10  ;;  %2706 = vmatmul.bf16.gmra.mxu1 %v11939_v13  ;;  %v11873_v10 = vld [vmem:[%s17458_s3 + $0xe8] sm:$0xff] }
 0x445   :  { %10366 = vmatmul.msk.f32.gmra.mxu2 %vm3252_vm2, %v2324_v8 }
 0x448   :  { %v2329_v23 = vpop.f32.mrf.mxu0  ;;  %v13344_v3 = vpop.f32.mrf.mxu1 }
 0x449   :  { %17504 = vst [vmem:[#allocation13_spill] sm:$0xff] %v13344_v3  ;;  %10344 = vmatmul.msk.f32.gmra.mxu3 %vm3252_vm2, %v13103_v53  ;;  %v11883_v3 = vld [vmem:[%s17458_s3 + $0x138] sm:$0xff] }
 0x44d   :  { %10367 = vmatmul.msk.f32.gmra.mxu2 %vm3252_vm2, %v2327_v63 }
 0x450   :  { %v2332_v56 = vpop.f32.mrf.mxu0  ;;  %v13355_v52 = vpop.f32.mrf.mxu1 }
 0x451   :  { %10345 = vmatmul.msk.f32.gmra.mxu3 %vm3252_vm2, %v13113_v33  ;;  %v11941_v33 = vld [vmem:[%s17458_s3 + $0x308] sm:$0xff] }
 0x453   :  { %2371 = vmatmul.bf16.gmra.mxu0 %v11872_v59  ;;  %2711 = vmatmul.bf16.gmra.mxu1 %v11940_v0  ;;  %v12051_v59 = vld [vmem:[%s17459_s4 + $0x38] sm:$0xff]  ;;  %v11942_v0 = vld [vmem:[%s17458_s3 + $0x310] sm:$0xff] }
 0x454   :  { %3682 = vmatpush.bf16.msrb.mxu3 %v12051_v59  ;;  %v11875_v59 = vld [vmem:[%s17458_s3 + $0xf8] sm:$0xff] }
 0x455   :  { %10368 = vmatmul.msk.f32.gmra.mxu2 %vm3252_vm2, %v2329_v23  ;;  %v11874_v23 = vld [vmem:[%s17458_s3 + $0xf0] sm:$0xff] }
 0x458   :  { %v2334_v53 = vpop.f32.mrf.mxu0  ;;  %v13360_v35 = vpop.f32.mrf.mxu1 }
 0x459   :  { %17505 = vst [vmem:[#allocation14_spill] sm:$0xff] %v13360_v35  ;;  %10346 = vmatmul.msk.f32.gmra.mxu3 %vm3252_vm2, %v13117_v45  ;;  %v11965_v35 = vld [vmem:[%s17458_s3 + $0x3c8] sm:$0xff] }
 0x45d   :  { %10369 = vmatmul.msk.f32.gmra.mxu2 %vm3252_vm2, %v2332_v56 }
 0x460   :  { %v2337_v13 = vpop.f32.mrf.mxu0  ;;  %v13371_v8 = vpop.f32.mrf.mxu1 }
 0x461   :  { %17506 = vst [vmem:[#allocation15_spill] sm:$0xff] %v13371_v8  ;;  %10347 = vmatmul.msk.f32.gmra.mxu3 %vm3252_vm2, %v13127_v51  ;;  %v12050_v51 = vld [vmem:[%s17459_s4 + $0x30] sm:$0xff]  ;;  %v11957_v8 = vld [vmem:[%s17458_s3 + $0x388] sm:$0xff] }
 0x462   :  { %3683 = vmatpush.bf16.msrb.mxu3 %v12050_v51 }
 0x463   :  { %2376 = vmatmul.bf16.gmra.mxu0 %v11873_v10  ;;  %2716 = vmatmul.bf16.gmra.mxu1 %v11941_v33 }
 0x465   :  { %10370 = vmatmul.msk.f32.gmra.mxu2 %vm3252_vm2, %v2334_v53 }
 0x468   :  { %v2339_v45 = vpop.f32.mrf.mxu0  ;;  %v13376_v63 = vpop.f32.mrf.mxu1 }
 0x469   :  { %17507 = vst [vmem:[#allocation16_spill] sm:$0xff] %v13376_v63  ;;  %10348 = vmatmul.msk.f32.gmra.mxu3 %vm3252_vm2, %v13131_v38 }
 0x46d   :  { %10371 = vmatmul.msk.f32.gmra.mxu2 %vm3252_vm2, %v2337_v13 }
 0x470   :  { %v2342_v10 = vpop.f32.mrf.mxu0  ;;  %v13393_v33 = vpop.f32.mrf.mxu1 }
 0x471   :  { %17508 = vst [vmem:[#allocation17_spill] sm:$0xff] %v13393_v33  ;;  %10349 = vmatmul.msk.f32.gmra.mxu3 %vm3252_vm2, %v13141_v31  ;;  %v11943_v31 = vld [vmem:[%s17458_s3 + $0x318] sm:$0xff]  ;;  %v12052_v33 = vld [vmem:[%s17459_s4 + $0x40] sm:$0xff] }
 0x473   :  { %2381 = vmatmul.bf16.gmra.mxu0 %v11874_v23  ;;  %2721 = vmatmul.bf16.gmra.mxu1 %v11942_v0  ;;  %v11876_v23 = vld [vmem:[%s17458_s3 + $0x100] sm:$0xff] }
 0x475   :  { %10372 = vmatmul.msk.f32.gmra.mxu2 %vm3252_vm2, %v2339_v45 }
 0x478   :  { %v2344_v38 = vpop.f32.mrf.mxu0  ;;  %v13398_v56 = vpop.f32.mrf.mxu1 }
 0x479   :  { %17509 = vst [vmem:[#allocation18_spill] sm:$0xff] %v13398_v56  ;;  %10350 = vmatmul.msk.f32.gmra.mxu3 %vm3252_vm2, %v13145_v2 }
 0x47d   :  { %10373 = vmatmul.msk.f32.gmra.mxu2 %vm3252_vm2, %v2342_v10  ;;  %v13433_v10 = vpop.f32.mrf.mxu3 }
 0x47e   :  { %17514 = vst [vmem:[#allocation23_spill] sm:$0xff] %v13433_v10 }
 0x480   :  { %v2347_v51 = vpop.f32.mrf.mxu0  ;;  %v13409_v53 = vpop.f32.mrf.mxu1 }
 0x481   :  { %17510 = vst [vmem:[#allocation19_spill] sm:$0xff] %v13409_v53  ;;  %10351 = vmatmul.msk.f32.gmra.mxu3 %vm3252_vm2, %v13155_v27  ;;  %v11944_v27 = vld [vmem:[%s17458_s3 + $0x320] sm:$0xff] }
 0x483   :  { %2386 = vmatmul.bf16.gmra.mxu0 %v11875_v59  ;;  %2726 = vmatmul.bf16.gmra.mxu1 %v11943_v31  ;;  %v11877_v31 = vld [vmem:[%s17458_s3 + $0x108] sm:$0xff] }
 0x485   :  { %10374 = vmatmul.msk.f32.gmra.mxu2 %vm3252_vm2, %v2344_v38 }
 0x488   :  { %v2349_v2 = vpop.f32.mrf.mxu0  ;;  %v13414_v13 = vpop.f32.mrf.mxu1 }
 0x489   :  { %17511 = vst [vmem:[#allocation20_spill] sm:$0xff] %v13414_v13  ;;  %10352 = vmatmul.msk.f32.gmra.mxu3 %vm3252_vm2, %v13159_v22 }
 0x48d   :  { %10375 = vmatmul.msk.f32.gmra.mxu2 %vm3252_vm2, %v2347_v51  ;;  %v13445_v51 = vpop.f32.mrf.mxu3 }
 0x48e   :  { %17516 = vst [vmem:[#allocation25_spill] sm:$0xff] %v13445_v51 }
 0x490   :  { %v2352_v0 = vpop.f32.mrf.mxu0  ;;  %v13425_v45 = vpop.f32.mrf.mxu1 }
 0x491   :  { %17512 = vst [vmem:[#allocation21_spill] sm:$0xff] %v13425_v45  ;;  %10385 = vmatmul.msk.f32.vlgmr.msrb.gmra.mxu3 %vm3252_vm2, %v2352_v0  ;;  %v11945_v0 = vld [vmem:[%s17458_s3 + $0x328] sm:$0xff] }
 0x492   :  { %v11949_v45 = vld [vmem:[%s17458_s3 + $0x348] sm:$0xff] }
 0x493   :  { %2391 = vmatmul.bf16.gmra.mxu0 %v11876_v23  ;;  %2731 = vmatmul.bf16.gmra.mxu1 %v11944_v27 }
 0x495   :  { %10376 = vmatmul.msk.f32.gmra.mxu2 %vm3252_vm2, %v2349_v2  ;;  %v13450_v10 = vpop.f32.mrf.mxu3 }
 0x496   :  { %17518 = vst [vmem:[#allocation27_spill] sm:$0xff] %v13450_v10  ;;  %v11879_v10 = vld [vmem:[%s17458_s3 + $0x118] sm:$0xff] }
 0x498   :  { %v2354_v22 = vpop.f32.mrf.mxu0  ;;  %v13429_v59 = vpop.f32.mrf.mxu1 }
 0x499   :  { %17513 = vst [vmem:[#allocation22_spill] sm:$0xff] %v13429_v59  ;;  %10386 = vmatmul.msk.f32.gmra.mxu3 %vm3252_vm2, %v2354_v22  ;;  %v11878_v59 = vld [vmem:[%s17458_s3 + $0x110] sm:$0xff] }
 0x4a0   :  { %v2357_v38 = vpop.f32.mrf.mxu0  ;;  %v13441_v23 = vpop.f32.mrf.mxu1 }
 0x4a1   :  { %17515 = vst [vmem:[#allocation24_spill] sm:$0xff] %v13441_v23  ;;  %10387 = vmatmul.msk.f32.gmra.mxu3 %vm3252_vm2, %v2357_v38  ;;  %v11946_v38 = vld [vmem:[%s17458_s3 + $0x330] sm:$0xff] }
 0x4a3   :  { %2396 = vmatmul.bf16.gmra.mxu0 %v11877_v31  ;;  %2736 = vmatmul.bf16.gmra.mxu1 %v11945_v0 }
 0x4a8   :  { %v2359_v27 = vpop.f32.mrf.mxu0  ;;  %v13447_v22 = vpop.f32.mrf.mxu1 }
 0x4a9   :  { %17517 = vst [vmem:[#allocation26_spill] sm:$0xff] %v13447_v22  ;;  %10388 = vmatmul.msk.f32.gmra.mxu3 %vm3252_vm2, %v2359_v27  ;;  %v13463_v27 = vpop.f32.mrf.mxu3  ;;  %v11947_v22 = vld [vmem:[%s17458_s3 + $0x338] sm:$0xff] }
 0x4aa   :  { %17521 = vst [vmem:[#allocation30_spill] sm:$0xff] %v13463_v27  ;;  %v11880_v27 = vld [vmem:[%s17458_s3 + $0x120] sm:$0xff] }
 0x4b0   :  { %v2362_v2 = vpop.f32.mrf.mxu0  ;;  %v13458_v31 = vpop.f32.mrf.mxu1 }
 0x4b1   :  { %17519 = vst [vmem:[#allocation28_spill] sm:$0xff] %v13458_v31  ;;  %10389 = vmatmul.msk.f32.gmra.mxu3 %vm3252_vm2, %v2362_v2 }
 0x4b3   :  { %2401 = vmatmul.bf16.gmra.mxu0 %v11878_v59  ;;  %2741 = vmatmul.bf16.gmra.mxu1 %v11946_v38  ;;  %v13475_v59 = vpop.f32.mrf.mxu3 }
 0x4b8   :  { %v2364_v0 = vpop.f32.mrf.mxu0  ;;  %v13461_v51 = vpop.f32.mrf.mxu1 }
 0x4b9   :  { %17520 = vst [vmem:[#allocation29_spill] sm:$0xff] %v13461_v51  ;;  %10390 = vmatmul.msk.f32.gmra.mxu3 %vm3252_vm2, %v2364_v0 }
 0x4bb   :  { %v13480_v0 = vpop.f32.mrf.mxu3 }
 0x4c0   :  { %v2367_v31 = vpop.f32.mrf.mxu0  ;;  %v13472_v23 = vpop.f32.mrf.mxu1 }
 0x4c1   :  { %17522 = vst [vmem:[#allocation31_spill] sm:$0xff] %v13472_v23  ;;  %10391 = vmatmul.msk.f32.gmra.mxu3 %vm3252_vm2, %v2367_v31  ;;  %v11948_v23 = vld [vmem:[%s17458_s3 + $0x340] sm:$0xff] }
 0x4c3   :  { %2406 = vmatmul.bf16.gmra.mxu0 %v11879_v10  ;;  %2746 = vmatmul.bf16.gmra.mxu1 %v11947_v22  ;;  %v13491_v10 = vpop.f32.mrf.mxu3 }
 0x4c8   :  { %v2369_v38 = vpop.f32.mrf.mxu0  ;;  %v13477_v2 = vpop.f32.mrf.mxu1 }
 0x4c9   :  { %17523 = vst [vmem:[#allocation32_spill] sm:$0xff] %v13477_v2  ;;  %10392 = vmatmul.msk.f32.gmra.mxu3 %vm3252_vm2, %v2369_v38  ;;  %v11881_v2 = vld [vmem:[%s17458_s3 + $0x128] sm:$0xff] }
 0x4d0   :  { %v2372_v31 = vpop.f32.mrf.mxu0  ;;  %v13488_v51 = vpop.f32.mrf.mxu1 }
 0x4d1   :  { %17524 = vst [vmem:[#allocation33_spill] sm:$0xff] %v13488_v51  ;;  %10393 = vmatmul.msk.f32.gmra.mxu3 %vm3252_vm2, %v2372_v31 }
 0x4d3   :  { %2411 = vmatmul.bf16.gmra.mxu0 %v11880_v27  ;;  %2751 = vmatmul.bf16.gmra.mxu1 %v11948_v23  ;;  %v13504_v27 = vpop.f32.mrf.mxu3 }
 0x4d4   :  { %17527 = vst [vmem:[#allocation36_spill] sm:$0xff] %v13504_v27  ;;  %v11905_v27 = vld [vmem:[%s17458_s3 + $0x1e8] sm:$0xff] }
 0x4d8   :  { %v2374_v22 = vpop.f32.mrf.mxu0  ;;  %v13493_v38 = vpop.f32.mrf.mxu1 }
 0x4d9   :  { %17525 = vst [vmem:[#allocation34_spill] sm:$0xff] %v13493_v38  ;;  %10394 = vmatmul.msk.f32.gmra.mxu3 %vm3252_vm2, %v2374_v22  ;;  %v12053_v22 = vld [vmem:[%s17459_s4 + $0x48] sm:$0xff] }
 0x4da   :  { %3819 = vmatpush.bf16.msrb.mxu2 %v12053_v22 }
 0x4db   :  { %v13513_v56 = vpop.f32.mrf.mxu3 }
 0x4dc   :  { %17529 = vst [vmem:[#allocation38_spill] sm:$0xff] %v13513_v56 }
 0x4de   :  { %3820 = vmatpush.bf16.msrb.mxu2 %v12052_v33 }
 0x4e0   :  { %v2377_v13 = vpop.f32.mrf.mxu0  ;;  %v13502_v53 = vpop.f32.mrf.mxu1 }
 0x4e1   :  { %17526 = vst [vmem:[#allocation35_spill] sm:$0xff] %v13502_v53  ;;  %10395 = vmatmul.msk.f32.gmra.mxu3 %vm3252_vm2, %v2377_v13  ;;  %v11882_v13 = vld [vmem:[%s17458_s3 + $0x130] sm:$0xff] }
 0x4e3   :  { %2416 = vmatmul.bf16.gmra.mxu0 %v11881_v2  ;;  %2756 = vmatmul.bf16.gmra.mxu1 %v11949_v45  ;;  %v11950_v45 = vld [vmem:[%s17458_s3 + $0x350] sm:$0xff] }
 0x4e8   :  { %v2379_v23 = vpop.f32.mrf.mxu0  ;;  %v13507_v31 = vpop.f32.mrf.mxu1 }
 0x4e9   :  { %17528 = vst [vmem:[#allocation37_spill] sm:$0xff] %v13507_v31  ;;  %10396 = vmatmul.msk.f32.gmra.mxu3 %vm3252_vm2, %v2379_v23  ;;  %v13527_v23 = vpop.f32.mrf.mxu3 }
 0x4ea   :  { %17531 = vst [vmem:[#allocation40_spill] sm:$0xff] %v13527_v23  ;;  %v11952_v23 = vld [vmem:[%s17458_s3 + $0x360] sm:$0xff] }
 0x4f0   :  { %v2382_v2 = vpop.f32.mrf.mxu0  ;;  %v13524_v31 = vpop.f32.mrf.mxu1 }
 0x4f1   :  { %17530 = vst [vmem:[#allocation39_spill] sm:$0xff] %v13524_v31  ;;  %10397 = vmatmul.msk.f32.gmra.mxu3 %vm3252_vm2, %v2382_v2  ;;  %v13532_v33 = vpop.f32.mrf.mxu3  ;;  %v11951_v31 = vld [vmem:[%s17458_s3 + $0x358] sm:$0xff] }
 0x4f2   :  { %17533 = vst [vmem:[#allocation42_spill] sm:$0xff] %v13532_v33  ;;  %v11884_v33 = vld [vmem:[%s17458_s3 + $0x140] sm:$0xff] }
 0x4f3   :  { %2421 = vmatmul.bf16.gmra.mxu0 %v11882_v13  ;;  %2761 = vmatmul.bf16.gmra.mxu1 %v11950_v45 }
 0x4f8   :  { %v2384_v22 = vpop.f32.mrf.mxu0  ;;  %v13529_v63 = vpop.f32.mrf.mxu1 }
 0x4f9   :  { %17532 = vst [vmem:[#allocation41_spill] sm:$0xff] %v13529_v63  ;;  %10398 = vmatmul.msk.f32.gmra.mxu3 %vm3252_vm2, %v2384_v22  ;;  %v13545_v22 = vpop.f32.mrf.mxu3 }
 0x4fa   :  { %17536 = vst [vmem:[#allocation45_spill] sm:$0xff] %v13545_v22 }
 0x500   :  { %v2387_v2 = vpop.f32.mrf.mxu0  ;;  %v13540_v13 = vpop.f32.mrf.mxu1 }
 0x501   :  { %17534 = vst [vmem:[#allocation43_spill] sm:$0xff] %v13540_v13  ;;  %10399 = vmatmul.msk.f32.gmra.mxu3 %vm3252_vm2, %v2387_v2  ;;  %v11885_v2 = vld [vmem:[%s17458_s3 + $0x148] sm:$0xff] }
 0x503   :  { %2426 = vmatmul.bf16.gmra.mxu0 %v11883_v3  ;;  %2766 = vmatmul.bf16.gmra.mxu1 %v11951_v31 }
 0x508   :  { %v2389_v45 = vpop.f32.mrf.mxu0  ;;  %v13543_v63 = vpop.f32.mrf.mxu1 }
 0x509   :  { %17535 = vst [vmem:[#allocation44_spill] sm:$0xff] %v13543_v63  ;;  %10400 = vmatmul.msk.f32.gmra.mxu3 %vm3252_vm2, %v2389_v45  ;;  %v11953_v45 = vld [vmem:[%s17458_s3 + $0x368] sm:$0xff] }
 0x510   :  { %v2392_v13 = vpop.f32.mrf.mxu0  ;;  %v13554_v53 = vpop.f32.mrf.mxu1 }
 0x511   :  { %17537 = vst [vmem:[#allocation46_spill] sm:$0xff] %v13554_v53  ;;  %10409 = vmatmul.msk.f32.vlgmr.msrb.gmra.mxu2 %vm3252_vm2, %v2392_v13  ;;  %v11886_v13 = vld [vmem:[%s17458_s3 + $0x150] sm:$0xff] }
 0x513   :  { %2431 = vmatmul.bf16.gmra.mxu0 %v11884_v33  ;;  %2771 = vmatmul.bf16.gmra.mxu1 %v11952_v23 }
 0x518   :  { %v2394_v3 = vpop.f32.mrf.mxu0  ;;  %v13557_v31 = vpop.f32.mrf.mxu1 }
 0x519   :  { %17538 = vst [vmem:[#allocation47_spill] sm:$0xff] %v13557_v31  ;;  %10410 = vmatmul.msk.f32.gmra.mxu2 %vm3252_vm2, %v2394_v3  ;;  %v11954_v3 = vld [vmem:[%s17458_s3 + $0x370] sm:$0xff] }
 0x520   :  { %v2397_v63 = vpop.f32.mrf.mxu0  ;;  %v13566_v22 = vpop.f32.mrf.mxu1 }
 0x521   :  { %17539 = vst [vmem:[#allocation48_spill] sm:$0xff] %v13566_v22  ;;  %10411 = vmatmul.msk.f32.gmra.mxu2 %vm3252_vm2, %v2397_v63 }
 0x523   :  { %2436 = vmatmul.bf16.gmra.mxu0 %v11885_v2  ;;  %2776 = vmatmul.bf16.gmra.mxu1 %v11953_v45  ;;  %v13583_v45 = vpop.f32.mrf.mxu2 }
 0x524   :  { %17543 = vst [vmem:[#allocation52_spill] sm:$0xff] %v13583_v45 }
 0x528   :  { %v2399_v23 = vpop.f32.mrf.mxu0  ;;  %v13569_v33 = vpop.f32.mrf.mxu1 }
 0x529   :  { %17540 = vst [vmem:[#allocation49_spill] sm:$0xff] %v13569_v33  ;;  %10412 = vmatmul.msk.f32.gmra.mxu2 %vm3252_vm2, %v2399_v23  ;;  %v11887_v23 = vld [vmem:[%s17458_s3 + $0x158] sm:$0xff] }
 0x52a   :  { %v11955_v33 = vld [vmem:[%s17458_s3 + $0x378] sm:$0xff] }
 0x530   :  { %v2402_v31 = vpop.f32.mrf.mxu0  ;;  %v13578_v53 = vpop.f32.mrf.mxu1 }
 0x531   :  { %17541 = vst [vmem:[#allocation50_spill] sm:$0xff] %v13578_v53  ;;  %10413 = vmatmul.msk.f32.gmra.mxu2 %vm3252_vm2, %v2402_v31  ;;  %v13595_v31 = vpop.f32.mrf.mxu2 }
 0x533   :  { %2441 = vmatmul.bf16.gmra.mxu0 %v11886_v13  ;;  %2781 = vmatmul.bf16.gmra.mxu1 %v11954_v3 }
 0x538   :  { %v2404_v63 = vpop.f32.mrf.mxu0  ;;  %v13581_v2 = vpop.f32.mrf.mxu1 }
 0x539   :  { %17542 = vst [vmem:[#allocation51_spill] sm:$0xff] %v13581_v2  ;;  %10414 = vmatmul.msk.f32.gmra.mxu2 %vm3252_vm2, %v2404_v63  ;;  %v13600_v63 = vpop.f32.mrf.mxu2  ;;  %v11888_v2 = vld [vmem:[%s17458_s3 + $0x160] sm:$0xff] }
 0x540   :  { %v2407_v53 = vpop.f32.mrf.mxu0  ;;  %v13592_v22 = vpop.f32.mrf.mxu1 }
 0x541   :  { %17544 = vst [vmem:[#allocation53_spill] sm:$0xff] %v13592_v22  ;;  %10415 = vmatmul.msk.f32.gmra.mxu2 %vm3252_vm2, %v2407_v53  ;;  %v11956_v22 = vld [vmem:[%s17458_s3 + $0x380] sm:$0xff] }
 0x543   :  { %2446 = vmatmul.bf16.gmra.mxu0 %v11887_v23  ;;  %2786 = vmatmul.bf16.gmra.mxu1 %v11955_v33  ;;  %v13611_v33 = vpop.f32.mrf.mxu2 }
 0x548   :  { %v2409_v13 = vpop.f32.mrf.mxu0  ;;  %v13597_v3 = vpop.f32.mrf.mxu1 }
 0x549   :  { %17545 = vst [vmem:[#allocation54_spill] sm:$0xff] %v13597_v3  ;;  %10416 = vmatmul.msk.f32.gmra.mxu2 %vm3252_vm2, %v2409_v13  ;;  %v11889_v3 = vld [vmem:[%s17458_s3 + $0x168] sm:$0xff] }
 0x550   :  { %v2412_v53 = vpop.f32.mrf.mxu0  ;;  %v13608_v45 = vpop.f32.mrf.mxu1 }
 0x551   :  { %17546 = vst [vmem:[#allocation55_spill] sm:$0xff] %v13608_v45  ;;  %10417 = vmatmul.msk.f32.gmra.mxu2 %vm3252_vm2, %v2412_v53 }
 0x553   :  { %2451 = vmatmul.bf16.gmra.mxu0 %v11888_v2  ;;  %2791 = vmatmul.bf16.gmra.mxu1 %v11956_v22  ;;  %v13624_v2 = vpop.f32.mrf.mxu2 }
 0x554   :  { %17549 = vst [vmem:[#allocation58_spill] sm:$0xff] %v13624_v2 }
 0x558   :  { %v2414_v23 = vpop.f32.mrf.mxu0  ;;  %v13613_v13 = vpop.f32.mrf.mxu1 }
 0x559   :  { %17547 = vst [vmem:[#allocation56_spill] sm:$0xff] %v13613_v13  ;;  %10418 = vmatmul.msk.f32.gmra.mxu2 %vm3252_vm2, %v2414_v23  ;;  %v12055_v23 = vld [vmem:[%s17459_s4 + $0x58] sm:$0xff] }
 0x55a   :  { %3956 = vmatpush.bf16.msra.mxu3 %v12055_v23 }
 0x55b   :  { %v13633_v13 = vpop.f32.mrf.mxu2 }
 0x55c   :  { %17551 = vst [vmem:[#allocation60_spill] sm:$0xff] %v13633_v13 }
 0x560   :  { %v2417_v45 = vpop.f32.mrf.mxu0  ;;  %v13622_v44 = vpop.f32.mrf.mxu1 }
 0x561   :  { %17548 = vst [vmem:[#allocation57_spill] sm:$0xff] %v13622_v44  ;;  %10419 = vmatmul.msk.f32.gmra.mxu2 %vm3252_vm2, %v2417_v45  ;;  %v12054_v44 = vld [vmem:[%s17459_s4 + $0x50] sm:$0xff] }
 0x562   :  { %3957 = vmatpush.bf16.msra.mxu3 %v12054_v44  ;;  %v11958_v45 = vld [vmem:[%s17458_s3 + $0x390] sm:$0xff] }
 0x563   :  { %2456 = vmatmul.bf16.gmra.mxu0 %v11889_v3  ;;  %2796 = vmatmul.bf16.gmra.mxu1 %v11957_v8  ;;  %v11890_v8 = vld [vmem:[%s17458_s3 + $0x170] sm:$0xff]  ;;  %v13649_v23 = vpop.f32.mrf.mxu2 }
 0x564   :  { %17554 = vst [vmem:[#allocation63_spill] sm:$0xff] %v13649_v23 }
 0x568   :  { %v2419_v22 = vpop.f32.mrf.mxu0  ;;  %v13627_v53 = vpop.f32.mrf.mxu1 }
 0x569   :  { %17550 = vst [vmem:[#allocation59_spill] sm:$0xff] %v13627_v53  ;;  %10420 = vmatmul.msk.f32.gmra.mxu2 %vm3252_vm2, %v2419_v22  ;;  %v13647_v22 = vpop.f32.mrf.mxu3 }
 0x56a   :  { %17553 = vst [vmem:[#allocation62_spill] sm:$0xff] %v13647_v22 }
 0x56b   :  { %v13656_v38 = vpop.f32.mrf.mxu2 }
 0x56c   :  { %17557 = vst [vmem:[#allocation66_spill] sm:$0xff] %v13656_v38  ;;  %v11892_v38 = vld [vmem:[%s17458_s3 + $0x180] sm:$0xff] }
 0x570   :  { %v2422_v3 = vpop.f32.mrf.mxu0  ;;  %v13644_v53 = vpop.f32.mrf.mxu1 }
 0x571   :  { %17552 = vst [vmem:[#allocation61_spill] sm:$0xff] %v13644_v53  ;;  %10421 = vmatmul.msk.f32.gmra.mxu2 %vm3252_vm2, %v2422_v3  ;;  %v13654_v56 = vpop.f32.mrf.mxu3  ;;  %v11891_v53 = vld [vmem:[%s17458_s3 + $0x178] sm:$0xff] }
 0x572   :  { %17556 = vst [vmem:[#allocation65_spill] sm:$0xff] %v13654_v56 }
 0x573   :  { %2461 = vmatmul.bf16.gmra.mxu0 %v11890_v8  ;;  %2801 = vmatmul.bf16.gmra.mxu1 %v11958_v45  ;;  %v11959_v8 = vld [vmem:[%s17458_s3 + $0x398] sm:$0xff]  ;;  %v13671_v22 = vpop.f32.mrf.mxu2 }
 0x574   :  { %17561 = vst [vmem:[#allocation70_spill] sm:$0xff] %v13671_v22  ;;  %v11893_v22 = vld [vmem:[%s17458_s3 + $0x188] sm:$0xff] }
 0x578   :  { %v2424_v44 = vpop.f32.mrf.mxu0  ;;  %v13651_v13 = vpop.f32.mrf.mxu1 }
 0x579   :  { %17555 = vst [vmem:[#allocation64_spill] sm:$0xff] %v13651_v13  ;;  %10422 = vmatmul.msk.f32.gmra.mxu2 %vm3252_vm2, %v2424_v44  ;;  %v13667_v44 = vpop.f32.mrf.mxu3 }
 0x57a   :  { %17559 = vst [vmem:[#allocation68_spill] sm:$0xff] %v13667_v44 }
 0x580   :  { %v2427_v45 = vpop.f32.mrf.mxu0  ;;  %v13664_v3 = vpop.f32.mrf.mxu1 }
 0x581   :  { %17558 = vst [vmem:[#allocation67_spill] sm:$0xff] %v13664_v3  ;;  %10423 = vmatmul.msk.f32.gmra.mxu2 %vm3252_vm2, %v2427_v45  ;;  %v11960_v3 = vld [vmem:[%s17458_s3 + $0x3a0] sm:$0xff] }
 0x583   :  { %2466 = vmatmul.bf16.gmra.mxu0 %v11891_v53  ;;  %2806 = vmatmul.bf16.gmra.mxu1 %v11959_v8  ;;  %v13682_v8 = vpop.f32.mrf.mxu3 }
 0x584   :  { %17563 = vst [vmem:[#allocation72_spill] sm:$0xff] %v13682_v8 }
 0x588   :  { %v2429_v13 = vpop.f32.mrf.mxu0  ;;  %v13669_v56 = vpop.f32.mrf.mxu1 }
 0x589   :  { %17560 = vst [vmem:[#allocation69_spill] sm:$0xff] %v13669_v56  ;;  %10424 = vmatmul.msk.f32.gmra.mxu2 %vm3252_vm2, %v2429_v13 }
 0x58b   :  { %v13688_v13 = vpop.f32.mrf.mxu3 }
 0x58c   :  { %17565 = vst [vmem:[#allocation74_spill] sm:$0xff] %v13688_v13 }
 0x590   :  { %v2432_v45 = vpop.f32.mrf.mxu0  ;;  %v13680_v53 = vpop.f32.mrf.mxu1 }
 0x591   :  { %17562 = vst [vmem:[#allocation71_spill] sm:$0xff] %v13680_v53  ;;  %10433 = vmatmul.msk.f32.vlgmr.msra.gmra.mxu3 %vm3252_vm2, %v2432_v45  ;;  %v11961_v53 = vld [vmem:[%s17458_s3 + $0x3a8] sm:$0xff] }
 0x593   :  { %2471 = vmatmul.bf16.gmra.mxu0 %v11892_v38  ;;  %2811 = vmatmul.bf16.gmra.mxu1 %v11960_v3  ;;  %v13699_v38 = vpop.f32.mrf.mxu3 }
 0x594   :  { %17567 = vst [vmem:[#allocation76_spill] sm:$0xff] %v13699_v38  ;;  %v11963_v38 = vld [vmem:[%s17458_s3 + $0x3b8] sm:$0xff] }
 0x598   :  { %v2434_v56 = vpop.f32.mrf.mxu0  ;;  %v13685_v44 = vpop.f32.mrf.mxu1 }
 0x599   :  { %17564 = vst [vmem:[#allocation73_spill] sm:$0xff] %v13685_v44  ;;  %10434 = vmatmul.msk.f32.gmra.mxu3 %vm3252_vm2, %v2434_v56  ;;  %v11894_v44 = vld [vmem:[%s17458_s3 + $0x190] sm:$0xff] }
 0x59b   :  { %v13704_v45 = vpop.f32.mrf.mxu3 }
 0x59c   :  { %17569 = vst [vmem:[#allocation78_spill] sm:$0xff] %v13704_v45  ;;  %v11895_v45 = vld [vmem:[%s17458_s3 + $0x198] sm:$0xff] }
 0x5a0   :  { %v2437_v8 = vpop.f32.mrf.mxu0  ;;  %v13696_v23 = vpop.f32.mrf.mxu1 }
 0x5a1   :  { %17566 = vst [vmem:[#allocation75_spill] sm:$0xff] %v13696_v23  ;;  %10435 = vmatmul.msk.f32.gmra.mxu3 %vm3252_vm2, %v2437_v8  ;;  %v11962_v23 = vld [vmem:[%s17458_s3 + $0x3b0] sm:$0xff] }
 0x5a3   :  { %2476 = vmatmul.bf16.gmra.mxu0 %v11893_v22  ;;  %2816 = vmatmul.bf16.gmra.mxu1 %v11961_v53 }
 0x5a8   :  { %v2439_v56 = vpop.f32.mrf.mxu0  ;;  %v13701_v3 = vpop.f32.mrf.mxu1 }
 0x5a9   :  { %17568 = vst [vmem:[#allocation77_spill] sm:$0xff] %v13701_v3  ;;  %10436 = vmatmul.msk.f32.gmra.mxu3 %vm3252_vm2, %v2439_v56  ;;  %v13717_v56 = vpop.f32.mrf.mxu3 }
 0x5aa   :  { %17572 = vst [vmem:[#allocation81_spill] sm:$0xff] %v13717_v56 }
 0x5b0   :  { %v2442_v8 = vpop.f32.mrf.mxu0  ;;  %v13712_v22 = vpop.f32.mrf.mxu1 }
 0x5b1   :  { %17570 = vst [vmem:[#allocation79_spill] sm:$0xff] %v13712_v22  ;;  %10437 = vmatmul.msk.f32.gmra.mxu3 %vm3252_vm2, %v2442_v8 }
 0x5b3   :  { %2481 = vmatmul.bf16.gmra.mxu0 %v11894_v44  ;;  %2821 = vmatmul.bf16.gmra.mxu1 %v11962_v23  ;;  %v13729_v23 = vpop.f32.mrf.mxu3 }
 0x5b8   :  { %v2444_v53 = vpop.f32.mrf.mxu0  ;;  %v13715_v3 = vpop.f32.mrf.mxu1 }
 0x5b9   :  { %17571 = vst [vmem:[#allocation80_spill] sm:$0xff] %v13715_v3  ;;  %10438 = vmatmul.msk.f32.gmra.mxu3 %vm3252_vm2, %v2444_v53  ;;  %v11896_v3 = vld [vmem:[%s17458_s3 + $0x1a0] sm:$0xff] }
 0x5bb   :  { %v13734_v53 = vpop.f32.mrf.mxu3 }
 0x5c0   :  { %v2447_v22 = vpop.f32.mrf.mxu0  ;;  %v13726_v13 = vpop.f32.mrf.mxu1 }
 0x5c1   :  { %17573 = vst [vmem:[#allocation82_spill] sm:$0xff] %v13726_v13  ;;  %10439 = vmatmul.msk.f32.gmra.mxu3 %vm3252_vm2, %v2447_v22  ;;  %v11964_v13 = vld [vmem:[%s17458_s3 + $0x3c0] sm:$0xff] }
 0x5c3   :  { %2486 = vmatmul.bf16.gmra.mxu0 %v11895_v45  ;;  %2826 = vmatmul.bf16.gmra.mxu1 %v11963_v38  ;;  %v13745_v38 = vpop.f32.mrf.mxu3 }
 0x5c4   :  { %17576 = vst [vmem:[#allocation85_spill] sm:$0xff] %v13745_v38 }
 0x5c8   :  { %v2449_v44 = vpop.f32.mrf.mxu0  ;;  %v13731_v8 = vpop.f32.mrf.mxu1 }
 0x5c9   :  { %17574 = vst [vmem:[#allocation83_spill] sm:$0xff] %v13731_v8  ;;  %10440 = vmatmul.msk.f32.gmra.mxu3 %vm3252_vm2, %v2449_v44  ;;  %v11897_v8 = vld [vmem:[%s17458_s3 + $0x1a8] sm:$0xff] }
 0x5d0   :  { %v2452_v22 = vpop.f32.mrf.mxu0  ;;  %v13742_v56 = vpop.f32.mrf.mxu1 }
 0x5d1   :  { %17575 = vst [vmem:[#allocation84_spill] sm:$0xff] %v13742_v56  ;;  %10441 = vmatmul.msk.f32.gmra.mxu3 %vm3252_vm2, %v2452_v22 }
 0x5d3   :  { %2491 = vmatmul.bf16.gmra.mxu0 %v11896_v3  ;;  %2831 = vmatmul.bf16.gmra.mxu1 %v11964_v13  ;;  %v13758_v3 = vpop.f32.mrf.mxu3 }
 0x5d4   :  { %17579 = vst [vmem:[#allocation88_spill] sm:$0xff] %v13758_v3 }
 0x5d8   :  { %v2454_v45 = vpop.f32.mrf.mxu0  ;;  %v13747_v44 = vpop.f32.mrf.mxu1 }
 0x5d9   :  { %17577 = vst [vmem:[#allocation86_spill] sm:$0xff] %v13747_v44  ;;  %10442 = vmatmul.msk.f32.gmra.mxu3 %vm3252_vm2, %v2454_v45  ;;  %v12057_v45 = vld [vmem:[%s17459_s4 + $0x68] sm:$0xff] }
 0x5da   :  { %4093 = vmatpush.bf16.msra.mxu2 %v12057_v45 }
 0x5db   :  { %v13767_v44 = vpop.f32.mrf.mxu3 }
 0x5dc   :  { %17581 = vst [vmem:[#allocation90_spill] sm:$0xff] %v13767_v44 }
 0x5e0   :  { %v2457_v56 = vpop.f32.mrf.mxu0  ;;  %v13756_v2 = vpop.f32.mrf.mxu1 }
 0x5e1   :  { %17578 = vst [vmem:[#allocation87_spill] sm:$0xff] %v13756_v2  ;;  %10443 = vmatmul.msk.f32.gmra.mxu3 %vm3252_vm2, %v2457_v56  ;;  %v12056_v2 = vld [vmem:[%s17459_s4 + $0x60] sm:$0xff]  ;;  %v11966_v56 = vld [vmem:[%s17458_s3 + $0x3d0] sm:$0xff] }
 0x5e2   :  { %4094 = vmatpush.bf16.msra.mxu2 %v12056_v2 }
 0x5e3   :  { %2496 = vmatmul.bf16.gmra.mxu0 %v11897_v8  ;;  %2836 = vmatmul.bf16.gmra.mxu1 %v11965_v35  ;;  %v11898_v35 = vld [vmem:[%s17458_s3 + $0x1b0] sm:$0xff]  ;;  %v13783_v45 = vpop.f32.mrf.mxu3 }
 0x5e4   :  { %17584 = vst [vmem:[#allocation93_spill] sm:$0xff] %v13783_v45 }
 0x5e8   :  { %v2459_v13 = vpop.f32.mrf.mxu0  ;;  %v13761_v22 = vpop.f32.mrf.mxu1 }
 0x5e9   :  { %17580 = vst [vmem:[#allocation89_spill] sm:$0xff] %v13761_v22  ;;  %10444 = vmatmul.msk.f32.gmra.mxu3 %vm3252_vm2, %v2459_v13  ;;  %v13781_v13 = vpop.f32.mrf.mxu2 }
 0x5ea   :  { %17583 = vst [vmem:[#allocation92_spill] sm:$0xff] %v13781_v13 }
 0x5eb   :  { %v13790_v55 = vpop.f32.mrf.mxu3 }
 0x5ec   :  { %17587 = vst [vmem:[#allocation96_spill] sm:$0xff] %v13790_v55  ;;  %v11900_v55 = vld [vmem:[%s17458_s3 + $0x1c0] sm:$0xff] }
 0x5f0   :  { %v2462_v8 = vpop.f32.mrf.mxu0  ;;  %v13778_v22 = vpop.f32.mrf.mxu1 }
 0x5f1   :  { %17582 = vst [vmem:[#allocation91_spill] sm:$0xff] %v13778_v22  ;;  %10445 = vmatmul.msk.f32.gmra.mxu3 %vm3252_vm2, %v2462_v8  ;;  %v13788_v3 = vpop.f32.mrf.mxu2  ;;  %v11899_v22 = vld [vmem:[%s17458_s3 + $0x1b8] sm:$0xff] }
 0x5f2   :  { %17586 = vst [vmem:[#allocation95_spill] sm:$0xff] %v13788_v3 }
 0x5f3   :  { %2501 = vmatmul.bf16.gmra.mxu0 %v11898_v35  ;;  %2841 = vmatmul.bf16.gmra.mxu1 %v11966_v56  ;;  %v11967_v35 = vld [vmem:[%s17458_s3 + $0x3d8] sm:$0xff]  ;;  %v13805_v13 = vpop.f32.mrf.mxu3 }
 0x5f4   :  { %17591 = vst [vmem:[#allocation100_spill] sm:$0xff] %v13805_v13  ;;  %v11901_v13 = vld [vmem:[%s17458_s3 + $0x1c8] sm:$0xff] }
 0x5f8   :  { %v2464_v2 = vpop.f32.mrf.mxu0  ;;  %v13785_v44 = vpop.f32.mrf.mxu1 }
 0x5f9   :  { %17585 = vst [vmem:[#allocation94_spill] sm:$0xff] %v13785_v44  ;;  %10446 = vmatmul.msk.f32.gmra.mxu3 %vm3252_vm2, %v2464_v2  ;;  %v13803_v3 = vpop.f32.mrf.mxu2 }
 0x5fa   :  { %17590 = vst [vmem:[#allocation99_spill] sm:$0xff] %v13803_v3 }
 0x600   :  { %v2467_v56 = vpop.f32.mrf.mxu0  ;;  %v13798_v8 = vpop.f32.mrf.mxu1 }
 0x601   :  { %17588 = vst [vmem:[#allocation97_spill] sm:$0xff] %v13798_v8  ;;  %10447 = vmatmul.msk.f32.gmra.mxu3 %vm3252_vm2, %v2467_v56  ;;  %v11968_v8 = vld [vmem:[%s17458_s3 + $0x3e0] sm:$0xff] }
 0x603   :  { %2506 = vmatmul.bf16.gmra.mxu0 %v11899_v22  ;;  %2846 = vmatmul.bf16.gmra.mxu1 %v11967_v35  ;;  %v13817_v35 = vpop.f32.mrf.mxu2 }
 0x604   :  { %17593 = vst [vmem:[#allocation102_spill] sm:$0xff] %v13817_v35 }
 0x608   :  { %v2469_v2 = vpop.f32.mrf.mxu0  ;;  %v13801_v44 = vpop.f32.mrf.mxu1 }
 0x609   :  { %17589 = vst [vmem:[#allocation98_spill] sm:$0xff] %v13801_v44  ;;  %10448 = vmatmul.msk.f32.gmra.mxu3 %vm3252_vm2, %v2469_v2 }
 0x60b   :  { %v13822_v2 = vpop.f32.mrf.mxu2 }
 0x60c   :  { %17595 = vst [vmem:[#allocation104_spill] sm:$0xff] %v13822_v2  ;;  %v11902_v2 = vld [vmem:[%s17458_s3 + $0x1d0] sm:$0xff] }
 0x610   :  { %v2472_v56 = vpop.f32.mrf.mxu0  ;;  %v13814_v22 = vpop.f32.mrf.mxu1 }
 0x611   :  { %17592 = vst [vmem:[#allocation101_spill] sm:$0xff] %v13814_v22  ;;  %10457 = vmatmul.msk.f32.vlgmr.msra.gmra.mxu2 %vm3252_vm2, %v2472_v56  ;;  %v11969_v22 = vld [vmem:[%s17458_s3 + $0x3e8] sm:$0xff] }
 0x613   :  { %2511 = vmatmul.bf16.gmra.mxu0 %v11900_v55  ;;  %2851 = vmatmul.bf16.gmra.mxu1 %v11968_v8  ;;  %v13833_v55 = vpop.f32.mrf.mxu2 }
 0x614   :  { %17597 = vst [vmem:[#allocation106_spill] sm:$0xff] %v13833_v55 }
 0x618   :  { %v2474_v44 = vpop.f32.mrf.mxu0  ;;  %v13819_v3 = vpop.f32.mrf.mxu1 }
 0x619   :  { %17594 = vst [vmem:[#allocation103_spill] sm:$0xff] %v13819_v3  ;;  %10458 = vmatmul.msk.f32.gmra.mxu2 %vm3252_vm2, %v2474_v44  ;;  %v13835_v44 = vpop.f32.mrf.mxu3 }
 0x61a   :  { %17598 = vst [vmem:[#allocation107_spill] sm:$0xff] %v13835_v44 }
 0x620   :  { %v2477_v56 = vpop.f32.mrf.mxu0  ;;  %v13830_v45 = vpop.f32.mrf.mxu1 }
 0x621   :  { %17596 = vst [vmem:[#allocation105_spill] sm:$0xff] %v13830_v45  ;;  %10459 = vmatmul.msk.f32.gmra.mxu2 %vm3252_vm2, %v2477_v56  ;;  %v11970_v45 = vld [vmem:[%s17458_s3 + $0x3f0] sm:$0xff]  ;;  %v13850_v55 = vpop.f32.mrf.mxu3 }
 0x622   :  { %17602 = vst [vmem:[#allocation111_spill] sm:$0xff] %v13850_v55 }
 0x623   :  { %2516 = vmatmul.bf16.gmra.mxu0 %v11901_v13  ;;  %2856 = vmatmul.bf16.gmra.mxu1 %v11969_v22  ;;  %v13848_v22 = vpop.f32.mrf.mxu2 }
 0x624   :  { %17601 = vst [vmem:[#allocation110_spill] sm:$0xff] %v13848_v22  ;;  %v11971_v22 = vld [vmem:[%s17458_s3 + $0x3f8] sm:$0xff] }
 0x628   :  { %v2479_v8 = vpop.f32.mrf.mxu0  ;;  %v13837_v3 = vpop.f32.mrf.mxu1 }
 0x629   :  { %17599 = vst [vmem:[#allocation108_spill] sm:$0xff] %v13837_v3  ;;  %10460 = vmatmul.msk.f32.gmra.mxu2 %vm3252_vm2, %v2479_v8  ;;  %v13858_v44 = vpop.f32.mrf.mxu3 }
 0x62a   :  { %17605 = vst [vmem:[#allocation114_spill] sm:$0xff] %v13858_v44 }
 0x62b   :  { %v13856_v35 = vpop.f32.mrf.mxu2 }
 0x62c   :  { %17604 = vst [vmem:[#allocation113_spill] sm:$0xff] %v13856_v35 }
 0x630   :  { %v2482_v56 = vpop.f32.mrf.mxu0  ;;  %v13846_v13 = vpop.f32.mrf.mxu1 }
 0x631   :  { %17600 = vst [vmem:[#allocation109_spill] sm:$0xff] %v13846_v13  ;;  %10461 = vmatmul.msk.f32.gmra.mxu2 %vm3252_vm2, %v2482_v56  ;;  %v11903_v13 = vld [vmem:[%s17458_s3 + $0x1d8] sm:$0xff] }
 0x633   :  { %2521 = vmatmul.bf16.gmra.mxu0 %v11902_v2  ;;  %2861 = vmatmul.bf16.gmra.mxu1 %v11970_v45  ;;  %v13869_v45 = vpop.f32.mrf.mxu2 }
 0x638   :  { %v2484_v8 = vpop.f32.mrf.mxu0  ;;  %v13853_v3 = vpop.f32.mrf.mxu1 }
 0x639   :  { %17603 = vst [vmem:[#allocation112_spill] sm:$0xff] %v13853_v3  ;;  %10462 = vmatmul.msk.f32.gmra.mxu2 %vm3252_vm2, %v2484_v8  ;;  %v13871_v8 = vpop.f32.mrf.mxu3 }
 0x63a   :  { %17607 = vst [vmem:[#allocation116_spill] sm:$0xff] %v13871_v8 }
 0x63b   :  { %v13876_v44 = vpop.f32.mrf.mxu2 }
 0x640   :  { %v2487_v56 = vpop.f32.mrf.mxu0  ;;  %v13866_v2 = vpop.f32.mrf.mxu1 }
 0x641   :  { %17606 = vst [vmem:[#allocation115_spill] sm:$0xff] %v13866_v2  ;;  %10463 = vmatmul.msk.f32.gmra.mxu2 %vm3252_vm2, %v2487_v56  ;;  %v13878_v55 = vpop.f32.mrf.mxu3  ;;  %v11904_v2 = vld [vmem:[%s17458_s3 + $0x1e0] sm:$0xff] }
 0x642   :  { %17609 = vst [vmem:[#allocation118_spill] sm:$0xff] %v13878_v55 }
 0x643   :  { %2526 = vmatmul.bf16.gmra.mxu0 %v11903_v13  ;;  %2866 = vmatmul.bf16.gmra.mxu1 %v11971_v22  ;;  %v11972_v13 = vld [vmem:[%s17458_s3 + $0x400] sm:$0xff] }
 0x648   :  { %v2489_v3 = vpop.f32.mrf.mxu0  ;;  %v13873_v35 = vpop.f32.mrf.mxu1 }
 0x649   :  { %17608 = vst [vmem:[#allocation117_spill] sm:$0xff] %v13873_v35  ;;  %10464 = vmatmul.msk.f32.gmra.mxu2 %vm3252_vm2, %v2489_v3  ;;  %v13889_v3 = vpop.f32.mrf.mxu2  ;;  %v13893_v55 = vpop.f32.mrf.mxu3 }
 0x64a   :  { %17611 = vst [vmem:[#allocation120_spill] sm:$0xff] %v13889_v3  ;;  %v12059_v3 = vld [vmem:[%s17459_s4 + $0x78] sm:$0xff] }
 0x64b   :  { %17613 = vst [vmem:[#allocation122_spill] sm:$0xff] %v13893_v55  ;;  %4230 = vmatpush.bf16.msrb.mxu3 %v12059_v3 }
 0x650   :  { %v2492_v22 = vpop.f32.mrf.mxu0  ;;  %v13886_v56 = vpop.f32.mrf.mxu1 }
 0x651   :  { %17610 = vst [vmem:[#allocation119_spill] sm:$0xff] %v13886_v56  ;;  %10465 = vmatmul.msk.f32.gmra.mxu2 %vm3252_vm2, %v2492_v22  ;;  %v11973_v56 = vld [vmem:[%s17458_s3 + $0x408] sm:$0xff] }
 0x653   :  { %2531 = vmatmul.bf16.gmra.mxu0 %v11904_v2  ;;  %2871 = vmatmul.bf16.gmra.mxu1 %v11972_v13  ;;  %v13904_v13 = vpop.f32.mrf.mxu2 }
 0x654   :  { %17615 = vst [vmem:[#allocation124_spill] sm:$0xff] %v13904_v13 }
 0x658   :  { %v2494_v35 = vpop.f32.mrf.mxu0  ;;  %v13891_v8 = vpop.f32.mrf.mxu1 }
 0x659   :  { %17612 = vst [vmem:[#allocation121_spill] sm:$0xff] %v13891_v8  ;;  %10466 = vmatmul.msk.f32.gmra.mxu2 %vm3252_vm2, %v2494_v35  ;;  %v13907_v8 = vpop.f32.mrf.mxu3 }
 0x65a   :  { %17616 = vst [vmem:[#allocation125_spill] sm:$0xff] %v13907_v8 }
 0x65b   :  { %v13915_v38 = vpop.f32.mrf.mxu2 }
 0x65c   :  { %17618 = vst [vmem:[#allocation127_spill] sm:$0xff] %v13915_v38 }
 0x660   :  { %v2497_v22 = vpop.f32.mrf.mxu0  ;;  %v13902_v2 = vpop.f32.mrf.mxu1 }
 0x661   :  { %17614 = vst [vmem:[#allocation123_spill] sm:$0xff] %v13902_v2  ;;  %10467 = vmatmul.msk.f32.gmra.mxu2 %vm3252_vm2, %v2497_v22  ;;  %v12058_v22 = vld [vmem:[%s17459_s4 + $0x70] sm:$0xff]  ;;  %v13920_v2 = vpop.f32.mrf.mxu3 }
 0x662   :  { %17619 = vst [vmem:[#allocation128_spill] sm:$0xff] %v13920_v2  ;;  %4231 = vmatpush.bf16.msrb.mxu3 %v12058_v22 }
 0x663   :  { %2536 = vmatmul.bf16.gmra.mxu0 %v11905_v27  ;;  %2876 = vmatmul.bf16.gmra.mxu1 %v11973_v56  ;;  %v11906_v27 = vld [vmem:[%s17458_s3 + $0x1f0] sm:$0xff]  ;;  %v13931_v3 = vpop.f32.mrf.mxu2 }
 0x664   :  { %v11974_v56 = vld [vmem:[%s17458_s3 + $0x410] sm:$0xff]  ;;  %17621 = vst [vmem:[#allocation130_spill] sm:$0xff] %v13931_v3 }
 0x668   :  { %v2499_v35 = vpop.f32.mrf.mxu0  ;;  %v13909_v55 = vpop.f32.mrf.mxu1 }
 0x669   :  { %17617 = vst [vmem:[#allocation126_spill] sm:$0xff] %v13909_v55  ;;  %10468 = vmatmul.msk.f32.gmra.mxu2 %vm3252_vm2, %v2499_v35  ;;  %v13933_v8 = vpop.f32.mrf.mxu3 }
 0x66b   :  { %v13938_v38 = vpop.f32.mrf.mxu2 }
 0x66c   :  { %17623 = vst [vmem:[#allocation132_spill] sm:$0xff] %v13938_v38 }
 0x670   :  { %v2502_v55 = vpop.f32.mrf.mxu0  ;;  %v13928_v35 = vpop.f32.mrf.mxu1 }
 0x671   :  { %17620 = vst [vmem:[#allocation129_spill] sm:$0xff] %v13928_v35  ;;  %10469 = vmatmul.msk.f32.gmra.mxu2 %vm3252_vm2, %v2502_v55  ;;  %v13940_v13 = vpop.f32.mrf.mxu3  ;;  %v11907_v35 = vld [vmem:[%s17458_s3 + $0x1f8] sm:$0xff] }
 0x672   :  { %17624 = vst [vmem:[#allocation133_spill] sm:$0xff] %v13940_v13  ;;  %v11975_v55 = vld [vmem:[%s17458_s3 + $0x418] sm:$0xff]  ;;  %v11908_v13 = vld [vmem:[%s17458_s3 + $0x200] sm:$0xff] }
 0x673   :  { %2541 = vmatmul.bf16.gmra.mxu0 %v11906_v27  ;;  %2881 = vmatmul.bf16.gmra.mxu1 %v11974_v56  ;;  %v13953_v38 = vpop.f32.mrf.mxu2 }
 0x674   :  { %17627 = vst [vmem:[#allocation136_spill] sm:$0xff] %v13953_v38 }
 0x678   :  { %v2504_v22 = vpop.f32.mrf.mxu0  ;;  %v13935_v2 = vpop.f32.mrf.mxu1 }
 0x679   :  { %17622 = vst [vmem:[#allocation131_spill] sm:$0xff] %v13935_v2  ;;  %10470 = vmatmul.msk.f32.gmra.mxu2 %vm3252_vm2, %v2504_v22  ;;  %v13955_v3 = vpop.f32.mrf.mxu3 }
 0x67a   :  { %17628 = vst [vmem:[#allocation137_spill] sm:$0xff] %v13955_v3  ;;  %v11909_v3 = vld [vmem:[%s17458_s3 + $0x208] sm:$0xff] }
 0x680   :  { %v2507_v27 = vpop.f32.mrf.mxu0  ;;  %v13948_v56 = vpop.f32.mrf.mxu1 }
 0x681   :  { %17625 = vst [vmem:[#allocation134_spill] sm:$0xff] %v13948_v56  ;;  %10471 = vmatmul.msk.f32.gmra.mxu2 %vm3252_vm2, %v2507_v27  ;;  %v11976_v56 = vld [vmem:[%s17458_s3 + $0x420] sm:$0xff] }
 0x683   :  { %2546 = vmatmul.bf16.gmra.mxu0 %v11907_v35  ;;  %2886 = vmatmul.bf16.gmra.mxu1 %v11975_v55  ;;  %v13967_v55 = vpop.f32.mrf.mxu3 }
 0x684   :  { %17630 = vst [vmem:[#allocation139_spill] sm:$0xff] %v13967_v55 }
 0x688   :  { %v2509_v22 = vpop.f32.mrf.mxu0  ;;  %v13951_v2 = vpop.f32.mrf.mxu1 }
 0x689   :  { %17626 = vst [vmem:[#allocation135_spill] sm:$0xff] %v13951_v2  ;;  %10472 = vmatmul.msk.f32.gmra.mxu2 %vm3252_vm2, %v2509_v22 }
 0x68b   :  { %v13972_v22 = vpop.f32.mrf.mxu3 }
 0x68c   :  { %17632 = vst [vmem:[#allocation141_spill] sm:$0xff] %v13972_v22  ;;  %v11910_v22 = vld [vmem:[%s17458_s3 + $0x210] sm:$0xff] }
 0x690   :  { %v2512_v27 = vpop.f32.mrf.mxu0  ;;  %v13964_v35 = vpop.f32.mrf.mxu1 }
 0x691   :  { %17629 = vst [vmem:[#allocation138_spill] sm:$0xff] %v13964_v35  ;;  %10481 = vmatmul.msk.f32.vlgmr.msrb.gmra.mxu3 %vm3252_vm2, %v2512_v27  ;;  %v11977_v35 = vld [vmem:[%s17458_s3 + $0x428] sm:$0xff] }
 0x693   :  { %2551 = vmatmul.bf16.gmra.mxu0 %v11908_v13  ;;  %2891 = vmatmul.bf16.gmra.mxu1 %v11976_v56  ;;  %v13983_v13 = vpop.f32.mrf.mxu2 }
 0x694   :  { %17634 = vst [vmem:[#allocation143_spill] sm:$0xff] %v13983_v13 }
 0x698   :  { %v2514_v2 = vpop.f32.mrf.mxu0  ;;  %v13969_v38 = vpop.f32.mrf.mxu1 }
 0x699   :  { %17631 = vst [vmem:[#allocation140_spill] sm:$0xff] %v13969_v38  ;;  %10482 = vmatmul.msk.f32.gmra.mxu3 %vm3252_vm2, %v2514_v2  ;;  %v13985_v2 = vpop.f32.mrf.mxu3 }
 0x69a   :  { %17635 = vst [vmem:[#allocation144_spill] sm:$0xff] %v13985_v2 }
 0x6a0   :  { %v2517_v27 = vpop.f32.mrf.mxu0  ;;  %v13980_v51 = vpop.f32.mrf.mxu1 }
 0x6a1   :  { %17633 = vst [vmem:[#allocation142_spill] sm:$0xff] %v13980_v51  ;;  %10483 = vmatmul.msk.f32.gmra.mxu3 %vm3252_vm2, %v2517_v27  ;;  %v11978_v51 = vld [vmem:[%s17458_s3 + $0x430] sm:$0xff]  ;;  %v14000_v13 = vpop.f32.mrf.mxu3 }
 0x6a2   :  { %17639 = vst [vmem:[#allocation148_spill] sm:$0xff] %v14000_v13 }
 0x6a3   :  { %2556 = vmatmul.bf16.gmra.mxu0 %v11909_v3  ;;  %2896 = vmatmul.bf16.gmra.mxu1 %v11977_v35  ;;  %v13998_v35 = vpop.f32.mrf.mxu2 }
 0x6a4   :  { %17638 = vst [vmem:[#allocation147_spill] sm:$0xff] %v13998_v35  ;;  %v11979_v35 = vld [vmem:[%s17458_s3 + $0x438] sm:$0xff] }
 0x6a8   :  { %v2519_v56 = vpop.f32.mrf.mxu0  ;;  %v13987_v38 = vpop.f32.mrf.mxu1 }
 0x6a9   :  { %17636 = vst [vmem:[#allocation145_spill] sm:$0xff] %v13987_v38  ;;  %10484 = vmatmul.msk.f32.gmra.mxu3 %vm3252_vm2, %v2519_v56  ;;  %v14008_v55 = vpop.f32.mrf.mxu3 }
 0x6aa   :  { %17642 = vst [vmem:[#allocation151_spill] sm:$0xff] %v14008_v55 }
 0x6ab   :  { %v14006_v2 = vpop.f32.mrf.mxu2 }
 0x6ac   :  { %17641 = vst [vmem:[#allocation150_spill] sm:$0xff] %v14006_v2 }
 0x6b0   :  { %v2522_v27 = vpop.f32.mrf.mxu0  ;;  %v13996_v3 = vpop.f32.mrf.mxu1 }
 0x6b1   :  { %17637 = vst [vmem:[#allocation146_spill] sm:$0xff] %v13996_v3  ;;  %10485 = vmatmul.msk.f32.gmra.mxu3 %vm3252_vm2, %v2522_v27  ;;  %v11911_v3 = vld [vmem:[%s17458_s3 + $0x218] sm:$0xff] }
 0x6b3   :  { %2561 = vmatmul.bf16.gmra.mxu0 %v11910_v22  ;;  %2901 = vmatmul.bf16.gmra.mxu1 %v11978_v51  ;;  %v14019_v51 = vpop.f32.mrf.mxu2 }
 0x6b8   :  { %v2524_v56 = vpop.f32.mrf.mxu0  ;;  %v14003_v38 = vpop.f32.mrf.mxu1 }
 0x6b9   :  { %17640 = vst [vmem:[#allocation149_spill] sm:$0xff] %v14003_v38  ;;  %10486 = vmatmul.msk.f32.gmra.mxu3 %vm3252_vm2, %v2524_v56  ;;  %v14021_v56 = vpop.f32.mrf.mxu3 }
 0x6bb   :  { %v14026_v55 = vpop.f32.mrf.mxu2 }
 0x6bc   :  { %17645 = vst [vmem:[#allocation154_spill] sm:$0xff] %v14026_v55 }
 0x6c0   :  { %v2527_v27 = vpop.f32.mrf.mxu0  ;;  %v14016_v22 = vpop.f32.mrf.mxu1 }
 0x6c1   :  { %17643 = vst [vmem:[#allocation152_spill] sm:$0xff] %v14016_v22  ;;  %10487 = vmatmul.msk.f32.gmra.mxu3 %vm3252_vm2, %v2527_v27  ;;  %v14028_v13 = vpop.f32.mrf.mxu3  ;;  %v11980_v22 = vld [vmem:[%s17458_s3 + $0x440] sm:$0xff] }
 0x6c3   :  { %2566 = vmatmul.bf16.gmra.mxu0 %v11911_v3  ;;  %2906 = vmatmul.bf16.gmra.mxu1 %v11979_v35 }
 0x6c8   :  { %v2529_v38 = vpop.f32.mrf.mxu0  ;;  %v14023_v2 = vpop.f32.mrf.mxu1 }
 0x6c9   :  { %17644 = vst [vmem:[#allocation153_spill] sm:$0xff] %v14023_v2  ;;  %10488 = vmatmul.msk.f32.gmra.mxu3 %vm3252_vm2, %v2529_v38  ;;  %v14040_v38 = vpop.f32.mrf.mxu2  ;;  %v14042_v55 = vpop.f32.mrf.mxu3 }
 0x6ca   :  { %17648 = vst [vmem:[#allocation157_spill] sm:$0xff] %v14040_v38 }
 0x6d0   :  { %v2532_v27 = vpop.f32.mrf.mxu0  ;;  %v14033_v3 = vpop.f32.mrf.mxu1 }
 0x6d1   :  { %17646 = vst [vmem:[#allocation155_spill] sm:$0xff] %v14033_v3  ;;  %10489 = vmatmul.msk.f32.gmra.mxu3 %vm3252_vm2, %v2532_v27  ;;  %v11981_v27 = vld [vmem:[%s17458_s3 + $0x448] sm:$0xff] }
 0x6d3   :  { %2911 = vmatmul.bf16.gmra.mxu1 %v11980_v22  ;;  %10313 = vmatmul.msk.f32.vlgmr.msrb.gmra.mxu0 %vm3252_vm2, %v13169_v50  ;;  %v14053_v50 = vpop.f32.mrf.mxu2 }
 0x6d4   :  { %17650 = vst [vmem:[#allocation159_spill] sm:$0xff] %v14053_v50 }
 0x6d8   :  { %v2534_v35 = vpop.f32.mrf.mxu0  ;;  %v14038_v2 = vpop.f32.mrf.mxu1 }
 0x6d9   :  { %17647 = vst [vmem:[#allocation156_spill] sm:$0xff] %v14038_v2  ;;  %10490 = vmatmul.msk.f32.gmra.mxu3 %vm3252_vm2, %v2534_v35  ;;  %v14055_v2 = vpop.f32.mrf.mxu3 }
 0x6db   :  { %10314 = vmatmul.msk.f32.gmra.mxu0 %vm3252_vm2, %v13173_v29  ;;  %v12061_v29 = vld [vmem:[%s17459_s4 + $0x88] sm:$0xff] }
 0x6dc   :  { %4367 = vmatpush.bf16.msrb.mxu2 %v12061_v29 }
 0x6e0   :  { %v2537_v22 = vpop.f32.mrf.mxu0  ;;  %v14050_v3 = vpop.f32.mrf.mxu1 }
 0x6e1   :  { %17649 = vst [vmem:[#allocation158_spill] sm:$0xff] %v14050_v3  ;;  %10491 = vmatmul.msk.f32.gmra.mxu3 %vm3252_vm2, %v2537_v22  ;;  %v12063_v3 = vld [vmem:[%s17459_s4 + $0x98] sm:$0xff]  ;;  %v14076_v22 = vpop.f32.mrf.mxu2 }
 0x6e2   :  { %4504 = vmatpush.bf16.msra.mxu3 %v12063_v3  ;;  %17652 = vst [vmem:[#allocation161_spill] sm:$0xff] %v14076_v22  ;;  %v11982_v3 = vld [vmem:[%s17458_s3 + $0x450] sm:$0xff] }
 0x6e3   :  { %2916 = vmatmul.bf16.gmra.mxu1 %v11981_v27  ;;  %10315 = vmatmul.msk.f32.gmra.mxu0 %vm3252_vm2, %v13183_v7  ;;  %v12060_v7 = vld [vmem:[%s17459_s4 + $0x80] sm:$0xff]  ;;  %v12062_v27 = vld [vmem:[%s17459_s4 + $0x90] sm:$0xff] }
 0x6e4   :  { %4368 = vmatpush.bf16.msrb.mxu2 %v12060_v7 }
 0x6e6   :  { %4505 = vmatpush.bf16.msra.mxu3 %v12062_v27 }
 0x6e8   :  { %v2539_v35 = vpop.f32.mrf.mxu0  ;;  %v14059_v38 = vpop.f32.mrf.mxu1 }
 0x6e9   :  { %17651 = vst [vmem:[#allocation160_spill] sm:$0xff] %v14059_v38  ;;  %10492 = vmatmul.msk.f32.gmra.mxu3 %vm3252_vm2, %v2539_v35  ;;  %v14078_v38 = vpop.f32.mrf.mxu3  ;;  %v14088_v29 = vpop.f32.mrf.mxu2 }
 0x6eb   :  { %10316 = vmatmul.msk.f32.gmra.mxu0 %vm3252_vm2, %v13187_v5 }
 0x6f0   :  { %v2542_v35 = vpop.f32.mrf.mxu0  ;;  %v14083_v5 = vpop.f32.mrf.mxu1 }
 0x6f1   :  { %17653 = vst [vmem:[#allocation162_spill] sm:$0xff] %v14083_v5  ;;  %10493 = vmatmul.msk.f32.gmra.mxu3 %vm3252_vm2, %v2542_v35  ;;  %v14090_v22 = vpop.f32.mrf.mxu3  ;;  %v14097_v27 = vpop.f32.mrf.mxu2 }
 0x6f2   :  { %17654 = vst [vmem:[#allocation163_spill] sm:$0xff] %v14090_v22 }
 0x6f3   :  { %2921 = vmatmul.bf16.gmra.mxu1 %v11982_v3  ;;  %10317 = vmatmul.msk.f32.gmra.mxu0 %vm3252_vm2, %v13197_v12  ;;  %v11983_v3 = vld [vmem:[%s17458_s3 + $0x458] sm:$0xff] }
 0x6f8   :  { %v2544_v50 = vpop.f32.mrf.mxu0  ;;  %v14092_v7 = vpop.f32.mrf.mxu1 }
 0x6f9   :  { %17655 = vst [vmem:[#allocation164_spill] sm:$0xff] %v14092_v7  ;;  %10494 = vmatmul.msk.f32.gmra.mxu3 %vm3252_vm2, %v2544_v50  ;;  %v14105_v5 = vpop.f32.mrf.mxu3  ;;  %v12065_v50 = vld [vmem:[%s17459_s4 + $0xa8] sm:$0xff] }
 0x6fa   :  { %4641 = vmatpush.bf16.msra.mxu0 %v12065_v50 }
 0x6fb   :  { %10318 = vmatmul.msk.f32.gmra.mxu0 %vm3252_vm2, %v13201_v40  ;;  %v12064_v40 = vld [vmem:[%s17459_s4 + $0xa0] sm:$0xff] }
 0x6fe   :  { %4642 = vmatpush.bf16.msra.mxu0 %v12064_v40 }
 0x700   :  { %v2547_v35 = vpop.f32.mrf.mxu0  ;;  %v14102_v12 = vpop.f32.mrf.mxu1 }
 0x701   :  { %17656 = vst [vmem:[#allocation165_spill] sm:$0xff] %v14102_v12  ;;  %10495 = vmatmul.msk.f32.gmra.mxu3 %vm3252_vm2, %v2547_v35  ;;  %v14117_v35 = vpop.f32.mrf.mxu2 }
 0x703   :  { %2926 = vmatmul.bf16.gmra.mxu1 %v11983_v3  ;;  %10319 = vmatmul.msk.f32.gmra.mxu0 %vm3252_vm2, %v13211_v17  ;;  %v14122_v3 = vpop.f32.mrf.mxu3  ;;  %v11984_v17 = vld [vmem:[%s17458_s3 + $0x460] sm:$0xff] }
 0x708   :  { %v2549_v7 = vpop.f32.mrf.mxu0  ;;  %v14115_v22 = vpop.f32.mrf.mxu1 }
 0x709   :  { %17657 = vst [vmem:[#allocation166_spill] sm:$0xff] %v14115_v22  ;;  %10496 = vmatmul.msk.f32.gmra.mxu3 %vm3252_vm2, %v2549_v7  ;;  %v14132_v40 = vpop.f32.mrf.mxu2 }
 0x70b   :  { %10320 = vmatmul.msk.f32.gmra.mxu0 %vm3252_vm2, %v13215_v28 }
 0x710   :  { %v2552_v50 = vpop.f32.mrf.mxu0  ;;  %v14127_v12 = vpop.f32.mrf.mxu1 }
 0x711   :  { %17658 = vst [vmem:[#allocation167_spill] sm:$0xff] %v14127_v12  ;;  %10505 = vmatmul.msk.f32.vlgmr.msrb.gmra.mxu2 %vm3252_vm2, %v2552_v50  ;;  %10529 = vmatmul.msk.f32.vlgmr.msra.gmra.mxu3 %vm3252_vm2, %v13115_v43  ;;  %v14147_v50 = vpop.f32.mrf.mxu2 }
 0x713   :  { %2931 = vmatmul.bf16.gmra.mxu1 %v11984_v17  ;;  %10321 = vmatmul.msk.f32.gmra.mxu0 %vm3252_vm2, %v13231_v15  ;;  %v11985_v15 = vld [vmem:[%s17458_s3 + $0x468] sm:$0xff] }
 0x714   :  { %v14136_v28 = vpop.f32.mrf.mxu3 }
 0x718   :  { %v2554_v7 = vpop.f32.mrf.mxu0  ;;  %v14138_v22 = vpop.f32.mrf.mxu1 }
 0x719   :  { %17659 = vst [vmem:[#allocation168_spill] sm:$0xff] %v14138_v22  ;;  %10506 = vmatmul.msk.f32.gmra.mxu2 %vm3252_vm2, %v2554_v7  ;;  %10530 = vmatmul.msk.f32.gmra.mxu3 %vm3252_vm2, %v13119_v25 }
 0x71b   :  { %10322 = vmatmul.msk.f32.gmra.mxu0 %vm3252_vm2, %v13235_v62  ;;  %v14161_v62 = vpop.f32.mrf.mxu2 }
 0x71c   :  { %v14145_v43 = vpop.f32.mrf.mxu3 }
 0x720   :  { %v2557_v17 = vpop.f32.mrf.mxu0  ;;  %v14152_v12 = vpop.f32.mrf.mxu1 }
 0x721   :  { %17660 = vst [vmem:[#allocation169_spill] sm:$0xff] %v14152_v12  ;;  %10507 = vmatmul.msk.f32.gmra.mxu2 %vm3252_vm2, %v2557_v17  ;;  %10531 = vmatmul.msk.f32.gmra.mxu3 %vm3252_vm2, %v13129_v37 }
 0x723   :  { %2936 = vmatmul.bf16.gmra.mxu1 %v11985_v15  ;;  %10323 = vmatmul.msk.f32.gmra.mxu0 %vm3252_vm2, %v13245_v24  ;;  %v11986_v24 = vld [vmem:[%s17458_s3 + $0x470] sm:$0xff]  ;;  %v14177_v12 = vpop.f32.mrf.mxu2 }
 0x724   :  { %v14159_v25 = vpop.f32.mrf.mxu3 }
 0x728   :  { %v2559_v7 = vpop.f32.mrf.mxu0  ;;  %v14163_v22 = vpop.f32.mrf.mxu1 }
 0x729   :  { %17661 = vst [vmem:[#allocation170_spill] sm:$0xff] %v14163_v22  ;;  %10508 = vmatmul.msk.f32.gmra.mxu2 %vm3252_vm2, %v2559_v7  ;;  %10532 = vmatmul.msk.f32.gmra.mxu3 %vm3252_vm2, %v13133_v58 }
 0x72b   :  { %10553 = vmatmul.msk.f32.vlgmr.msra.gmra.mxu0 %vm3252_vm2, %v13233_v1 }
 0x72c   :  { %v14170_v37 = vpop.f32.mrf.mxu3 }
 0x730   :  { %v2562_v15 = vpop.f32.mrf.mxu0  ;;  %v14175_v17 = vpop.f32.mrf.mxu1 }
 0x731   :  { %17662 = vst [vmem:[#allocation171_spill] sm:$0xff] %v14175_v17  ;;  %10509 = vmatmul.msk.f32.gmra.mxu2 %vm3252_vm2, %v2562_v15  ;;  %10533 = vmatmul.msk.f32.gmra.mxu3 %vm3252_vm2, %v13143_v32  ;;  %v14191_v17 = vpop.f32.mrf.mxu2 }
 0x733   :  { %2941 = vmatmul.bf16.gmra.mxu1 %v11986_v24  ;;  %10554 = vmatmul.msk.f32.gmra.mxu0 %vm3252_vm2, %v13237_v26  ;;  %v11987_v26 = vld [vmem:[%s17458_s3 + $0x478] sm:$0xff] }
 0x734   :  { %v14184_v58 = vpop.f32.mrf.mxu3 }
 0x738   :  { %v2564_v1 = vpop.f32.mrf.mxu0  ;;  %v14186_v7 = vpop.f32.mrf.mxu1 }
 0x739   :  { %17663 = vst [vmem:[#allocation172_spill] sm:$0xff] %v14186_v7  ;;  %10510 = vmatmul.msk.f32.gmra.mxu2 %vm3252_vm2, %v2564_v1  ;;  %10534 = vmatmul.msk.f32.gmra.mxu3 %vm3252_vm2, %v13147_v57 }
 0x73b   :  { %10555 = vmatmul.msk.f32.gmra.mxu0 %vm3252_vm2, %v13247_v6  ;;  %v14209_v6 = vpop.f32.mrf.mxu2 }
 0x73c   :  { %v14195_v32 = vpop.f32.mrf.mxu3 }
 0x740   :  { %v2567_v24 = vpop.f32.mrf.mxu0  ;;  %v14200_v15 = vpop.f32.mrf.mxu1 }
 0x741   :  { %17664 = vst [vmem:[#allocation173_spill] sm:$0xff] %v14200_v15  ;;  %10511 = vmatmul.msk.f32.gmra.mxu2 %vm3252_vm2, %v2567_v24  ;;  %10535 = vmatmul.msk.f32.gmra.mxu3 %vm3252_vm2, %v13157_v21 }
 0x743   :  { %2946 = vmatmul.bf16.gmra.mxu1 %v11987_v26  ;;  %10556 = vmatmul.msk.f32.gmra.mxu0 %vm3252_vm2, %v13249_v11  ;;  %v14220_v26 = vpop.f32.mrf.mxu2  ;;  %v11988_v11 = vld [vmem:[%s17458_s3 + $0x480] sm:$0xff] }
 0x744   :  { %v14207_v57 = vpop.f32.mrf.mxu3 }
 0x748   :  { %v2569_v1 = vpop.f32.mrf.mxu0  ;;  %v14211_v7 = vpop.f32.mrf.mxu1 }
 0x749   :  { %17665 = vst [vmem:[#allocation174_spill] sm:$0xff] %v14211_v7  ;;  %10512 = vmatmul.msk.f32.gmra.mxu2 %vm3252_vm2, %v2569_v1  ;;  %10536 = vmatmul.msk.f32.gmra.mxu3 %vm3252_vm2, %v13161_v46 }
 0x74b   :  { %10557 = vmatmul.msk.f32.gmra.mxu0 %vm3252_vm2, %v13264_v47  ;;  %v14237_v7 = vpop.f32.mrf.mxu2 }
 0x74c   :  { %v14218_v21 = vpop.f32.mrf.mxu3 }
 0x750   :  { %v14225_v24 = vpop.f32.mrf.mxu1  ;;  %v3310_v15 = vpop.f32.mrf.mxu0 }
 0x751   :  { %17666 = vst [vmem:[#allocation175_spill] sm:$0xff] %v14225_v24  ;;  %10513 = vmatmul.msk.f32.gmra.mxu2 %vm3252_vm2, %v13059_v9  ;;  %10537 = vmatmul.msk.f32.gmra.mxu3 %vm3252_vm2, %v13171_v36  ;;  %v11989_v36 = vld [vmem:[%s17458_s3 + $0x488] sm:$0xff] }
 0x753   :  { %2951 = vmatmul.bf16.gmra.mxu1 %v11988_v11  ;;  %10558 = vmatmul.msk.f32.gmra.mxu0 %vm3252_vm2, %v13267_v30 }
 0x754   :  { %v14233_v46 = vpop.f32.mrf.mxu3 }
 0x758   :  { %v14235_v47 = vpop.f32.mrf.mxu1  ;;  %v3313_v1 = vpop.f32.mrf.mxu0 }
 0x759   :  { %17667 = vst [vmem:[#allocation176_spill] sm:$0xff] %v14235_v47  ;;  %10514 = vmatmul.msk.f32.gmra.mxu2 %vm3252_vm2, %v13063_v14  ;;  %10538 = vmatmul.msk.f32.gmra.mxu3 %vm3252_vm2, %v13175_v18  ;;  %v14256_v14 = vpop.f32.mrf.mxu2 }
 0x75b   :  { %10559 = vmatmul.msk.f32.gmra.mxu0 %vm3252_vm2, %v13276_v60 }
 0x75c   :  { %v14245_v9 = vpop.f32.mrf.mxu3 }
 0x760   :  { %v14250_v30 = vpop.f32.mrf.mxu1  ;;  %v3316_v11 = vpop.f32.mrf.mxu0 }
 0x761   :  { %17668 = vst [vmem:[#allocation177_spill] sm:$0xff] %v14250_v30  ;;  %10515 = vmatmul.msk.f32.gmra.mxu2 %vm3252_vm2, %v13073_v39  ;;  %10539 = vmatmul.msk.f32.gmra.mxu3 %vm3252_vm2, %v13185_v19  ;;  %v12067_v30 = vld [vmem:[%s17459_s4 + $0xb8] sm:$0xff]  ;;  %v12069_v39 = vld [vmem:[%s17459_s4 + $0xc8] sm:$0xff] }
 0x762   :  { %4778 = vmatpush.bf16.msra.mxu2 %v12067_v30  ;;  %4915 = vmatpush.bf16.msrb.mxu3 %v12069_v39 }
 0x763   :  { %2956 = vmatmul.bf16.gmra.mxu1 %v11989_v36  ;;  %10560 = vmatmul.msk.f32.gmra.mxu0 %vm3252_vm2, %v13279_v61  ;;  %v12066_v61 = vld [vmem:[%s17459_s4 + $0xb0] sm:$0xff]  ;;  %v12068_v36 = vld [vmem:[%s17459_s4 + $0xc0] sm:$0xff] }
 0x764   :  { %v14260_v18 = vpop.f32.mrf.mxu3 }
 0x766   :  { %4779 = vmatpush.bf16.msra.mxu2 %v12066_v61  ;;  %4916 = vmatpush.bf16.msrb.mxu3 %v12068_v36 }
 0x768   :  { %v14262_v60 = vpop.f32.mrf.mxu1  ;;  %v14264_v47 = vpop.f32.mrf.mxu0 }
 0x769   :  { %17669 = vst [vmem:[#allocation178_spill] sm:$0xff] %v14262_v60  ;;  %10516 = vmatmul.msk.f32.gmra.mxu2 %vm3252_vm2, %v13077_v16  ;;  %10540 = vmatmul.msk.f32.gmra.mxu3 %vm3252_vm2, %v13189_v34  ;;  %v14286_v60 = vpop.f32.mrf.mxu2  ;;  %v11990_v16 = vld [vmem:[%s17458_s3 + $0x490] sm:$0xff] }
 0x76b   :  { %10561 = vmatmul.msk.f32.gmra.mxu0 %vm3252_vm2, %v13288_v54 }
 0x76c   :  { %v14278_v19 = vpop.f32.mrf.mxu3 }
 0x770   :  { %v14291_v34 = vpop.f32.mrf.mxu1  ;;  %v14293_v54 = vpop.f32.mrf.mxu0 }
 0x771   :  { %17670 = vst [vmem:[#allocation179_spill] sm:$0xff] %v14291_v34  ;;  %10517 = vmatmul.msk.f32.gmra.mxu2 %vm3252_vm2, %v13087_v48  ;;  %10541 = vmatmul.msk.f32.gmra.mxu3 %vm3252_vm2, %v13199_v42  ;;  %v14303_v39 = vpop.f32.mrf.mxu2  ;;  %v17672_v34 = vld [vmem:[#allocation7_spill] sm:$0xff]  ;;  %v3428_v48 = vadd.f32 %v13475_v59, %v3310_v15  ;;  %v3431_v15 = vadd.f32 %v13480_v0, %v3313_v1  ;;  %v17677_v0 = vld [vmem:[#allocation6_spill] sm:$0xff] }
 0x772   :  { %v3434_v1 = vadd.f32 %v13491_v10, %v3316_v11 }
 0x773   :  { %2961 = vmatmul.bf16.gmra.mxu1 %v11990_v16  ;;  %10562 = vmatmul.msk.f32.gmra.mxu0 %vm3252_vm2, %v13292_v4  ;;  %v3596_v4 = vadd.f32 %v13595_v31, %v3428_v48  ;;  %v11991_v16 = vld [vmem:[%s17458_s3 + $0x498] sm:$0xff] }
 0x774   :  { %v14301_v30 = vpop.f32.mrf.mxu3 }
 0x775   :  { %v3733_v31 = vadd.f32 %v13729_v23, %v3596_v4 }
 0x778   :  { %v14305_v61 = vpop.f32.mrf.mxu1  ;;  %v14307_v36 = vpop.f32.mrf.mxu0 }
 0x779   :  { %17671 = vst [vmem:[#allocation180_spill] sm:$0xff] %v14305_v61  ;;  %10518 = vmatmul.msk.f32.gmra.mxu2 %vm3252_vm2, %v13091_v41  ;;  %10542 = vmatmul.msk.f32.gmra.mxu3 %vm3252_vm2, %v17672_v34  ;;  %v17674_v41 = vld [vmem:[#allocation5_spill] sm:$0xff]  ;;  %v17675_v34 = vld [vmem:[#allocation8_spill] sm:$0xff]  ;;  %v14330_v59 = vpop.f32.mrf.mxu2 }
 0x77b   :  { %10563 = vmatmul.msk.f32.gmra.mxu0 %vm3252_vm2, %v13302_v49  ;;  %v12071_v49 = vld [vmem:[%s17459_s4 + $0xd8] sm:$0xff] }
 0x77c   :  { %v14316_v42 = vpop.f32.mrf.mxu3  ;;  %5052 = vmatpush.bf16.msrb.mxu0 %v12071_v49 }
 0x780   :  { %v14322_v61 = vpop.f32.mrf.mxu1  ;;  %v14324_v24 = vpop.f32.mrf.mxu0 }
 0x781   :  { %17673 = vst [vmem:[#allocation7_spill] sm:$0xff] %v14322_v61  ;;  %10519 = vmatmul.msk.f32.gmra.mxu2 %vm3252_vm2, %v17674_v41  ;;  %10543 = vmatmul.msk.f32.gmra.mxu3 %vm3252_vm2, %v17675_v34  ;;  %v12070_v41 = vld [vmem:[%s17459_s4 + $0xd0] sm:$0xff]  ;;  %v3870_v34 = vadd.f32 %v13869_v45, %v3733_v31  ;;  %v3597_v61 = vadd.f32 %v13600_v63, %v3431_v15  ;;  %v14359_v45 = vpop.f32.mrf.mxu2 }
 0x782   :  { %5053 = vmatpush.bf16.msrb.mxu0 %v12070_v41  ;;  %v3598_v31 = vadd.f32 %v13611_v33, %v3434_v1  ;;  %v11992_v41 = vld [vmem:[%s17458_s3 + $0x4a0] sm:$0xff] }
 0x783   :  { %2966 = vmatmul.bf16.gmra.mxu1 %v11991_v16  ;;  %10564 = vmatmul.msk.f32.gmra.mxu0 %vm3252_vm2, %v13312_v20  ;;  %v17678_v20 = vld [vmem:[#allocation9_spill] sm:$0xff]  ;;  %v3734_v4 = vadd.f32 %v13734_v53, %v3597_v61  ;;  %v17679_v16 = vld [vmem:[#allocation10_spill] sm:$0xff]  ;;  %v4007_v63 = vadd.f32 %v13933_v8, %v3870_v34 }
 0x784   :  { %v14339_v48 = vpop.f32.mrf.mxu3  ;;  %v17682_v8 = vld [vmem:[#allocation33_spill] sm:$0xff] }
 0x785   :  { %v3871_v15 = vadd.f32 %v13876_v44, %v3734_v4  ;;  %v4144_v10 = vadd.f32 %v14088_v29, %v4007_v63  ;;  %v17683_v61 = vld [vmem:[#allocation85_spill] sm:$0xff]  ;;  %v17684_v44 = vld [vmem:[#allocation36_spill] sm:$0xff] }
 0x786   :  { %v3735_v33 = vadd.f32 %v17683_v61, %v3598_v31  ;;  %v3437_v34 = vadd.f32 %v17684_v44, %v14264_v47  ;;  %v17689_v61 = vld [vmem:[#allocation14_spill] sm:$0xff]  ;;  %v17692_v44 = vld [vmem:[#allocation88_spill] sm:$0xff] }
 0x787   :  { %v4281_v29 = vadd.f32 %v14136_v28, %v4144_v10  ;;  %v17690_v28 = vld [vmem:[#allocation34_spill] sm:$0xff] }
 0x788   :  { %v14346_v22 = vpop.f32.mrf.mxu1  ;;  %v14348_v23 = vpop.f32.mrf.mxu0 }
 0x789   :  { %17676 = vst [vmem:[#allocation5_spill] sm:$0xff] %v14346_v22  ;;  %10520 = vmatmul.msk.f32.gmra.mxu2 %vm3252_vm2, %v17677_v0  ;;  %10544 = vmatmul.msk.f32.gmra.mxu3 %vm3252_vm2, %v17678_v20  ;;  %v17685_v0 = vld [vmem:[#allocation11_spill] sm:$0xff]  ;;  %v17686_v20 = vld [vmem:[#allocation133_spill] sm:$0xff]  ;;  %v17688_v22 = vld [vmem:[#allocation58_spill] sm:$0xff] }
 0x78a   :  { %v4008_v1 = vadd.f32 %v17686_v20, %v3871_v15  ;;  %v17691_v15 = vld [vmem:[#allocation137_spill] sm:$0xff] }
 0x78b   :  { %10565 = vmatmul.msk.f32.gmra.mxu0 %vm3252_vm2, %v17679_v16 }
 0x78c   :  { %v14361_v49 = vpop.f32.mrf.mxu3  ;;  %v4145_v31 = vadd.f32 %v14097_v27, %v4008_v1 }
 0x78d   :  { %17680 = vst [vmem:[#allocation8_spill] sm:$0xff] %v14361_v49 }
 0x78e   :  { %v4282_v27 = vadd.f32 %v14145_v43, %v4145_v31  ;;  %v17697_v43 = vld [vmem:[#allocation15_spill] sm:$0xff] }
 0x78f   :  { %v17698_v31 = vld [vmem:[#allocation35_spill] sm:$0xff] }
 0x790   :  { %v14369_v53 = vpop.f32.mrf.mxu1  ;;  %v14371_v11 = vpop.f32.mrf.mxu0 }
 0x791   :  { %17681 = vst [vmem:[#allocation6_spill] sm:$0xff] %v14369_v53  ;;  %10577 = vmatmul.msk.f32.vlgmr.msra.gmra.mxu2 %vm3252_vm2, %v13355_v52  ;;  %10601 = vmatmul.msk.f32.vlgmr.msrb.gmra.mxu3 %vm3252_vm2, %v17682_v8  ;;  %v17687_v52 = vld [vmem:[#allocation120_spill] sm:$0xff]  ;;  %v3599_v8 = vadd.f32 %v17688_v22, %v3437_v34  ;;  %v17693_v22 = vld [vmem:[#allocation38_spill] sm:$0xff] }
 0x792   :  { %v3872_v53 = vadd.f32 %v17687_v52, %v3735_v33  ;;  %v3440_v34 = vadd.f32 %v17693_v22, %v14293_v54  ;;  %v17696_v52 = vld [vmem:[#allocation60_spill] sm:$0xff]  ;;  %v11993_v54 = vld [vmem:[%s17458_s3 + $0x4a8] sm:$0xff] }
 0x793   :  { %2971 = vmatmul.bf16.gmra.mxu1 %v11992_v41  ;;  %10566 = vmatmul.msk.f32.gmra.mxu0 %vm3252_vm2, %v17685_v0  ;;  %v3736_v33 = vadd.f32 %v17692_v44, %v3599_v8  ;;  %v17694_v0 = vld [vmem:[#allocation12_spill] sm:$0xff]  ;;  %v17701_v22 = vld [vmem:[#allocation13_spill] sm:$0xff] }
 0x794   :  { %v4370_v4 = vpop.f32.mrf.mxu2  ;;  %v4507_v16 = vpop.f32.mrf.mxu3  ;;  %v4009_v10 = vadd.f32 %v17691_v15, %v3872_v53  ;;  %v17699_v15 = vld [vmem:[#allocation90_spill] sm:$0xff]  ;;  %v17700_v44 = vld [vmem:[#allocation40_spill] sm:$0xff] }
 0x795   :  { %v4418_v63 = vadd.f32 %v4370_v4, %v4281_v29 }
 0x796   :  { %v4146_v4 = vadd.f32 %v14117_v35, %v4009_v10 }
 0x797   :  { %v14386_v49 = vadd.f32 %v4507_v16, %v4418_v63  ;;  %v17695_v16 = vld [vmem:[#allocation124_spill] sm:$0xff] }
 0x798   :  { %v14389_v47 = vpop.f32.mrf.mxu1  ;;  %v14391_v41 = vpop.f32.mrf.mxu0  ;;  %v3873_v63 = vadd.f32 %v17695_v16, %v3736_v33  ;;  %v4283_v35 = vadd.f32 %v14159_v25, %v4146_v4  ;;  %v3443_v33 = vadd.f32 %v17700_v44, %v14307_v36  ;;  %v17709_v44 = vld [vmem:[#allocation55_spill] sm:$0xff] }
 0x799   :  { %10578 = vmatmul.msk.f32.gmra.mxu2 %vm3252_vm2, %v17689_v61  ;;  %10602 = vmatmul.msk.f32.gmra.mxu3 %vm3252_vm2, %v17690_v28  ;;  %v3600_v61 = vadd.f32 %v17696_v52, %v3440_v34  ;;  %v17702_v34 = vld [vmem:[#allocation139_spill] sm:$0xff] }
 0x79a   :  { %v17704_v52 = vld [vmem:[#allocation63_spill] sm:$0xff] }
 0x79b   :  { %10567 = vmatmul.msk.f32.gmra.mxu0 %vm3252_vm2, %v17694_v0  ;;  %v3737_v10 = vadd.f32 %v17699_v15, %v3600_v61  ;;  %v4010_v0 = vadd.f32 %v17702_v34, %v3873_v63  ;;  %v17705_v61 = vld [vmem:[#allocation16_spill] sm:$0xff]  ;;  %v17707_v63 = vld [vmem:[#allocation42_spill] sm:$0xff]  ;;  %v17708_v15 = vld [vmem:[#allocation93_spill] sm:$0xff] }
 0x79c   :  { %v4373_v29 = vpop.f32.mrf.mxu2  ;;  %v4510_v20 = vpop.f32.mrf.mxu3 }
 0x79d   :  { %v4419_v1 = vadd.f32 %v4373_v29, %v4282_v27  ;;  %v4147_v25 = vadd.f32 %v14132_v40, %v4010_v0 }
 0x79f   :  { %v14407_v53 = vadd.f32 %v4510_v20, %v4419_v1  ;;  %v17703_v1 = vld [vmem:[#allocation127_spill] sm:$0xff]  ;;  %v4284_v40 = vadd.f32 %v14170_v37, %v4147_v25 }
 0x7a0   :  { %v14412_v8 = vpop.f32.mrf.mxu1  ;;  %v14414_v28 = vpop.f32.mrf.mxu0  ;;  %v3874_v16 = vadd.f32 %v17703_v1, %v3737_v10  ;;  %v17712_v1 = vld [vmem:[#allocation130_spill] sm:$0xff]  ;;  %v17714_v25 = vld [vmem:[#allocation39_spill] sm:$0xff] }
 0x7a1   :  { %10579 = vmatmul.msk.f32.gmra.mxu2 %vm3252_vm2, %v17697_v43  ;;  %10603 = vmatmul.msk.f32.gmra.mxu3 %vm3252_vm2, %v17698_v31  ;;  %v3601_v43 = vadd.f32 %v17704_v52, %v3443_v33  ;;  %v17710_v33 = vld [vmem:[#allocation141_spill] sm:$0xff] }
 0x7a3   :  { %2976 = vmatmul.bf16.gmra.mxu1 %v11993_v54  ;;  %10568 = vmatmul.msk.f32.gmra.mxu0 %vm3252_vm2, %v17701_v22  ;;  %v17706_v54 = vld [vmem:[#allocation37_spill] sm:$0xff]  ;;  %v3738_v10 = vadd.f32 %v17708_v15, %v3601_v43  ;;  %v4011_v22 = vadd.f32 %v17710_v33, %v3874_v16 }
 0x7a4   :  { %v4376_v27 = vpop.f32.mrf.mxu2  ;;  %v4513_v29 = vpop.f32.mrf.mxu3  ;;  %v17713_v16 = vld [vmem:[#allocation17_spill] sm:$0xff] }
 0x7a5   :  { %v4420_v20 = vadd.f32 %v4376_v27, %v4283_v35  ;;  %v3446_v35 = vadd.f32 %v17707_v63, %v14324_v24  ;;  %v3875_v52 = vadd.f32 %v17712_v1, %v3738_v10  ;;  %v11994_v24 = vld [vmem:[%s17458_s3 + $0x4b0] sm:$0xff]  ;;  %v4148_v43 = vadd.f32 %v14147_v50, %v4011_v22  ;;  %v17715_v63 = vld [vmem:[#allocation96_spill] sm:$0xff]  ;;  %v17716_v15 = vld [vmem:[#allocation45_spill] sm:$0xff] }
 0x7a6   :  { %v3449_v10 = vadd.f32 %v17716_v15, %v14348_v23  ;;  %v17720_v1 = vld [vmem:[#allocation70_spill] sm:$0xff]  ;;  %v17724_v15 = vld [vmem:[#allocation100_spill] sm:$0xff] }
 0x7a7   :  { %v14429_v31 = vadd.f32 %v4513_v29, %v4420_v20  ;;  %v17711_v29 = vld [vmem:[#allocation66_spill] sm:$0xff]  ;;  %v4285_v50 = vadd.f32 %v14184_v58, %v4148_v43  ;;  %v17722_v58 = vld [vmem:[#allocation41_spill] sm:$0xff] }
 0x7a8   :  { %v14432_v4 = vpop.f32.mrf.mxu1  ;;  %v14434_v36 = vpop.f32.mrf.mxu0  ;;  %v3602_v20 = vadd.f32 %v17711_v29, %v3446_v35 }
 0x7a9   :  { %10580 = vmatmul.msk.f32.gmra.mxu2 %vm3252_vm2, %v17705_v61  ;;  %10604 = vmatmul.msk.f32.gmra.mxu3 %vm3252_vm2, %v17706_v54 }
 0x7aa   :  { %v3739_v35 = vadd.f32 %v17715_v63, %v3602_v20  ;;  %v17721_v63 = vld [vmem:[#allocation18_spill] sm:$0xff] }
 0x7ab   :  { %10625 = vmatmul.msk.f32.vlgmr.msrb.gmra.mxu0 %vm3252_vm2, %v17709_v44  ;;  %v17717_v44 = vld [vmem:[#allocation56_spill] sm:$0xff] }
 0x7ac   :  { %v4379_v34 = vpop.f32.mrf.mxu2  ;;  %v4516_v0 = vpop.f32.mrf.mxu3 }
 0x7ad   :  { %v4421_v27 = vadd.f32 %v4379_v34, %v4284_v40  ;;  %v17718_v40 = vld [vmem:[#allocation144_spill] sm:$0xff] }
 0x7ae   :  { %v4012_v33 = vadd.f32 %v17718_v40, %v3875_v52  ;;  %v17723_v52 = vld [vmem:[#allocation148_spill] sm:$0xff] }
 0x7af   :  { %v14449_v61 = vadd.f32 %v4516_v0, %v4421_v27  ;;  %v17719_v27 = vld [vmem:[#allocation132_spill] sm:$0xff] }
 0x7b0   :  { %v14455_v54 = vpop.f32.mrf.mxu1  ;;  %v14457_v37 = vpop.f32.mrf.mxu0  ;;  %v3876_v29 = vadd.f32 %v17719_v27, %v3739_v35  ;;  %v4149_v20 = vadd.f32 %v14161_v62, %v4012_v33 }
 0x7b1   :  { %10581 = vmatmul.msk.f32.gmra.mxu2 %vm3252_vm2, %v17713_v16  ;;  %10605 = vmatmul.msk.f32.gmra.mxu3 %vm3252_vm2, %v17714_v25  ;;  %v3603_v16 = vadd.f32 %v17720_v1, %v3449_v10  ;;  %v17725_v10 = vld [vmem:[#allocation62_spill] sm:$0xff]  ;;  %v17728_v1 = vld [vmem:[#allocation92_spill] sm:$0xff] }
 0x7b2   :  { %v4013_v43 = vadd.f32 %v17723_v52, %v3876_v29  ;;  %v4286_v62 = vadd.f32 %v14195_v32, %v4149_v20  ;;  %v17729_v32 = vld [vmem:[#allocation19_spill] sm:$0xff] }
 0x7b3   :  { %2981 = vmatmul.bf16.gmra.mxu1 %v11994_v24  ;;  %10626 = vmatmul.msk.f32.gmra.mxu0 %vm3252_vm2, %v17717_v44  ;;  %v3740_v35 = vadd.f32 %v17724_v15, %v3603_v16  ;;  %v3452_v44 = vadd.f32 %v17725_v10, %v14371_v11  ;;  %v11995_v11 = vld [vmem:[%s17458_s3 + $0x4b8] sm:$0xff]  ;;  %v17732_v15 = vld [vmem:[#allocation65_spill] sm:$0xff] }
 0x7b4   :  { %v4382_v22 = vpop.f32.mrf.mxu2  ;;  %v4519_v34 = vpop.f32.mrf.mxu3  ;;  %v17730_v20 = vld [vmem:[#allocation43_spill] sm:$0xff] }
 0x7b5   :  { %v4422_v0 = vadd.f32 %v4382_v22, %v4285_v50  ;;  %v17726_v50 = vld [vmem:[#allocation57_spill] sm:$0xff]  ;;  %v17731_v52 = vld [vmem:[#allocation107_spill] sm:$0xff] }
 0x7b6   :  { %v17733_v10 = vld [vmem:[#allocation59_spill] sm:$0xff] }
 0x7b7   :  { %v14472_v25 = vadd.f32 %v4519_v34, %v4422_v0  ;;  %v4150_v34 = vadd.f32 %v14177_v12, %v4013_v43  ;;  %v17727_v0 = vld [vmem:[#allocation136_spill] sm:$0xff] }
 0x7b8   :  { %v14475_v23 = vpop.f32.mrf.mxu1  ;;  %v14477_v24 = vpop.f32.mrf.mxu0  ;;  %v3877_v27 = vadd.f32 %v17727_v0, %v3740_v35  ;;  %v3455_v35 = vadd.f32 %v17732_v15, %v14391_v41  ;;  %v17742_v15 = vld [vmem:[#allocation61_spill] sm:$0xff] }
 0x7b9   :  { %10582 = vmatmul.msk.f32.gmra.mxu2 %vm3252_vm2, %v17721_v63  ;;  %10606 = vmatmul.msk.f32.gmra.mxu3 %vm3252_vm2, %v17722_v58  ;;  %v3604_v63 = vadd.f32 %v17728_v1, %v3452_v44  ;;  %v4287_v12 = vadd.f32 %v14207_v57, %v4150_v34  ;;  %v17734_v44 = vld [vmem:[#allocation151_spill] sm:$0xff] }
 0x7ba   :  { %v17736_v1 = vld [vmem:[#allocation95_spill] sm:$0xff] }
 0x7bb   :  { %10627 = vmatmul.msk.f32.gmra.mxu0 %vm3252_vm2, %v17726_v50  ;;  %v3741_v43 = vadd.f32 %v17731_v52, %v3604_v63  ;;  %v4014_v50 = vadd.f32 %v17734_v44, %v3877_v27  ;;  %v17738_v63 = vld [vmem:[#allocation20_spill] sm:$0xff]  ;;  %v17740_v27 = vld [vmem:[#allocation111_spill] sm:$0xff] }
 0x7bc   :  { %v4385_v40 = vpop.f32.mrf.mxu2  ;;  %v4522_v33 = vpop.f32.mrf.mxu3  ;;  %v17741_v52 = vld [vmem:[#allocation68_spill] sm:$0xff] }
 0x7bd   :  { %v4423_v22 = vadd.f32 %v4385_v40, %v4286_v62  ;;  %v4151_v57 = vadd.f32 %v14191_v17, %v4014_v50 }
 0x7bf   :  { %v14493_v29 = vadd.f32 %v4522_v33, %v4423_v22  ;;  %v17735_v22 = vld [vmem:[#allocation143_spill] sm:$0xff]  ;;  %v4288_v17 = vadd.f32 %v14218_v21, %v4151_v57  ;;  %v17747_v57 = vld [vmem:[#allocation114_spill] sm:$0xff] }
 0x7c0   :  { %v14498_v16 = vpop.f32.mrf.mxu1  ;;  %v14500_v58 = vpop.f32.mrf.mxu0  ;;  %v3878_v0 = vadd.f32 %v17735_v22, %v3741_v43  ;;  %v3458_v43 = vadd.f32 %v17741_v52, %v14414_v28  ;;  %v11996_v28 = vld [vmem:[%s17458_s3 + $0x4c0] sm:$0xff] }
 0x7c1   :  { %10583 = vmatmul.msk.f32.gmra.mxu2 %vm3252_vm2, %v17729_v32  ;;  %10607 = vmatmul.msk.f32.gmra.mxu3 %vm3252_vm2, %v17730_v20  ;;  %v3605_v32 = vadd.f32 %v17736_v1, %v3455_v35 }
 0x7c2   :  { %v4015_v35 = vadd.f32 %v14021_v56, %v3878_v0  ;;  %v17745_v56 = vld [vmem:[#allocation21_spill] sm:$0xff]  ;;  %v17746_v0 = vld [vmem:[#allocation46_spill] sm:$0xff] }
 0x7c3   :  { %2986 = vmatmul.bf16.gmra.mxu1 %v11995_v11  ;;  %10628 = vmatmul.msk.f32.gmra.mxu0 %vm3252_vm2, %v17733_v10  ;;  %v17739_v11 = vld [vmem:[#allocation44_spill] sm:$0xff] }
 0x7c4   :  { %v4388_v62 = vpop.f32.mrf.mxu2  ;;  %v4525_v40 = vpop.f32.mrf.mxu3 }
 0x7c5   :  { %v4424_v33 = vadd.f32 %v4388_v62, %v4287_v12  ;;  %v3742_v12 = vadd.f32 %v17740_v27, %v3605_v32  ;;  %v17743_v62 = vld [vmem:[#allocation147_spill] sm:$0xff]  ;;  %v4152_v32 = vadd.f32 %v14209_v6, %v4015_v35  ;;  %v17748_v27 = vld [vmem:[#allocation64_spill] sm:$0xff] }
 0x7c7   :  { %v14515_v20 = vadd.f32 %v4525_v40, %v4424_v33  ;;  %v3879_v40 = vadd.f32 %v17743_v62, %v3742_v12  ;;  %v17744_v33 = vld [vmem:[#allocation99_spill] sm:$0xff]  ;;  %v4289_v12 = vadd.f32 %v14233_v46, %v4152_v32 }
 0x7c8   :  { %v14518_v34 = vpop.f32.mrf.mxu1  ;;  %v14520_v41 = vpop.f32.mrf.mxu0  ;;  %v3606_v22 = vadd.f32 %v17744_v33, %v3458_v43  ;;  %v17750_v33 = vld [vmem:[#allocation22_spill] sm:$0xff] }
 0x7c9   :  { %17737 = vst [vmem:[#allocation9_spill] sm:$0xff] %v14518_v34  ;;  %10584 = vmatmul.msk.f32.gmra.mxu2 %vm3252_vm2, %v17738_v63  ;;  %10608 = vmatmul.msk.f32.gmra.mxu3 %vm3252_vm2, %v17739_v11  ;;  %v4016_v6 = vadd.f32 %v14028_v13, %v3879_v40  ;;  %v17752_v13 = vld [vmem:[#allocation67_spill] sm:$0xff] }
 0x7ca   :  { %v3743_v11 = vadd.f32 %v17747_v57, %v3606_v22  ;;  %v17751_v22 = vld [vmem:[#allocation47_spill] sm:$0xff] }
 0x7cb   :  { %10629 = vmatmul.msk.f32.gmra.mxu0 %vm3252_vm2, %v17742_v15 }
 0x7cc   :  { %v4391_v10 = vpop.f32.mrf.mxu2  ;;  %v4528_v44 = vpop.f32.mrf.mxu3 }
 0x7cd   :  { %v4425_v50 = vadd.f32 %v4391_v10, %v4288_v17  ;;  %v17749_v17 = vld [vmem:[#allocation150_spill] sm:$0xff] }
 0x7ce   :  { %v3880_v35 = vadd.f32 %v17749_v17, %v3743_v11 }
 0x7cf   :  { %v14535_v1 = vadd.f32 %v4528_v44, %v4425_v50  ;;  %v4153_v44 = vadd.f32 %v14220_v26, %v4016_v6  ;;  %v17753_v26 = vld [vmem:[#allocation52_spill] sm:$0xff] }
 0x7d0   :  { %v14541_v63 = vpop.f32.mrf.mxu1  ;;  %v14543_v21 = vpop.f32.mrf.mxu0  ;;  %v4017_v40 = vadd.f32 %v14042_v55, %v3880_v35  ;;  %v17757_v55 = vld [vmem:[#allocation48_spill] sm:$0xff] }
 0x7d1   :  { %10585 = vmatmul.msk.f32.gmra.mxu2 %vm3252_vm2, %v17745_v56  ;;  %10609 = vmatmul.msk.f32.gmra.mxu3 %vm3252_vm2, %v17746_v0  ;;  %v4290_v46 = vadd.f32 %v14245_v9, %v4153_v44  ;;  %v17754_v56 = vld [vmem:[#allocation72_spill] sm:$0xff]  ;;  %v17759_v44 = vld [vmem:[#allocation69_spill] sm:$0xff] }
 0x7d2   :  { %v3461_v0 = vadd.f32 %v17754_v56, %v17753_v26 }
 0x7d3   :  { %2991 = vmatmul.bf16.gmra.mxu1 %v11996_v28  ;;  %10630 = vmatmul.msk.f32.gmra.mxu0 %vm3252_vm2, %v17748_v27  ;;  %v11997_v27 = vld [vmem:[%s17458_s3 + $0x4c8] sm:$0xff] }
 0x7d4   :  { %v4394_v52 = vpop.f32.mrf.mxu2  ;;  %v4531_v43 = vpop.f32.mrf.mxu3 }
 0x7d5   :  { %v4426_v15 = vadd.f32 %v4394_v52, %v4289_v12  ;;  %v4154_v12 = vadd.f32 %v14237_v7, %v4017_v40  ;;  %v17755_v52 = vld [vmem:[#allocation102_spill] sm:$0xff] }
 0x7d6   :  { %v3607_v9 = vadd.f32 %v17755_v52, %v3461_v0 }
 0x7d7   :  { %v14555_v10 = vadd.f32 %v4531_v43, %v4426_v15  ;;  %v17756_v43 = vld [vmem:[#allocation24_spill] sm:$0xff]  ;;  %v4291_v7 = vadd.f32 %v14260_v18, %v4154_v12 }
 0x7d8   :  { %v14558_v50 = vpop.f32.mrf.mxu1  ;;  %v14560_v62 = vpop.f32.mrf.mxu0  ;;  %v17758_v15 = vld [vmem:[#allocation116_spill] sm:$0xff] }
 0x7d9   :  { %10586 = vmatmul.msk.f32.gmra.mxu2 %vm3252_vm2, %v17750_v33  ;;  %10610 = vmatmul.msk.f32.gmra.mxu3 %vm3252_vm2, %v17751_v22  ;;  %v3744_v17 = vadd.f32 %v17758_v15, %v3607_v9  ;;  %v12075_v18 = vld [vmem:[%s17459_s4 + $0xf8] sm:$0xff]  ;;  %v17765_v9 = vld [vmem:[#allocation118_spill] sm:$0xff] }
 0x7da   :  { %5326 = vmatpush.bf16.msra.mxu3 %v12075_v18  ;;  %v17766_v15 = vld [vmem:[#allocation71_spill] sm:$0xff] }
 0x7db   :  { %10631 = vmatmul.msk.f32.gmra.mxu0 %vm3252_vm2, %v17752_v13  ;;  %v17760_v13 = vld [vmem:[#allocation23_spill] sm:$0xff] }
 0x7dc   :  { %v4397_v28 = vpop.f32.mrf.mxu2  ;;  %v4534_v32 = vpop.f32.mrf.mxu3 }
 0x7dd   :  { %v4427_v57 = vadd.f32 %v4397_v28, %v4290_v46  ;;  %v17761_v46 = vld [vmem:[#allocation74_spill] sm:$0xff]  ;;  %v3881_v28 = vadd.f32 %v14019_v51, %v3744_v17 }
 0x7de   :  { %v3464_v40 = vadd.f32 %v17761_v46, %v17760_v13  ;;  %v17763_v51 = vld [vmem:[#allocation26_spill] sm:$0xff] }
 0x7df   :  { %v14572_v11 = vadd.f32 %v4534_v32, %v4427_v57  ;;  %v4018_v26 = vadd.f32 %v14055_v2, %v3881_v28  ;;  %v12073_v57 = vld [vmem:[%s17459_s4 + $0xe8] sm:$0xff] }
 0x7e0   :  { %v14578_v6 = vpop.f32.mrf.mxu1  ;;  %v14586_v35 = vpop.f32.mrf.mxu0  ;;  %v17764_v2 = vld [vmem:[#allocation49_spill] sm:$0xff]  ;;  %5189 = vmatpush.bf16.msrb.mxu2 %v12073_v57  ;;  %v17769_v46 = vld [vmem:[#allocation154_spill] sm:$0xff] }
 0x7e1   :  { %10587 = vmatmul.msk.f32.gmra.mxu2 %vm3252_vm2, %v17756_v43  ;;  %10611 = vmatmul.msk.f32.gmra.mxu3 %vm3252_vm2, %v17757_v55  ;;  %v4155_v52 = vadd.f32 %v14256_v14, %v4018_v26  ;;  %v12072_v14 = vld [vmem:[%s17459_s4 + $0xe0] sm:$0xff]  ;;  %v11998_v57 = vld [vmem:[%s17458_s3 + $0x4d0] sm:$0xff] }
 0x7e3   :  { %2996 = vmatmul.bf16.gmra.mxu1 %v11997_v27  ;;  %10632 = vmatmul.msk.f32.gmra.mxu0 %vm3252_vm2, %v17759_v44  ;;  %v17762_v27 = vld [vmem:[#allocation104_spill] sm:$0xff]  ;;  %v4292_v55 = vadd.f32 %v14278_v19, %v4155_v52 }
 0x7e4   :  { %v4400_v33 = vpop.f32.mrf.mxu2  ;;  %v4537_v22 = vpop.f32.mrf.mxu3  ;;  %v3608_v12 = vadd.f32 %v17762_v27, %v3464_v40  ;;  %5190 = vmatpush.bf16.msrb.mxu2 %v12072_v14  ;;  %v17770_v27 = vld [vmem:[#allocation106_spill] sm:$0xff] }
 0x7e5   :  { %v4428_v32 = vadd.f32 %v4400_v33, %v4291_v7  ;;  %v12074_v7 = vld [vmem:[%s17459_s4 + $0xf0] sm:$0xff]  ;;  %v17767_v33 = vld [vmem:[#allocation25_spill] sm:$0xff] }
 0x7e6   :  { %v3745_v43 = vadd.f32 %v17765_v9, %v3608_v12  ;;  %5327 = vmatpush.bf16.msra.mxu3 %v12074_v7  ;;  %v17773_v9 = vld [vmem:[#allocation122_spill] sm:$0xff] }
 0x7e7   :  { %v14595_v56 = vadd.f32 %v4537_v22, %v4428_v32  ;;  %v17768_v22 = vld [vmem:[#allocation76_spill] sm:$0xff]  ;;  %v17776_v14 = vld [vmem:[#allocation78_spill] sm:$0xff] }
 0x7e8   :  { %v14597_v0 = vpop.f32.mrf.mxu1  ;;  %v3467_v13 = vadd.f32 %v17768_v22, %v17767_v33  ;;  %v3882_v40 = vadd.f32 %v17769_v46, %v3745_v43  ;;  %v14624_v28 = vpop.f32.mrf.mxu0 }
 0x7e9   :  { %10588 = vmatmul.msk.f32.gmra.mxu2 %vm3252_vm2, %v17763_v51  ;;  %10612 = vmatmul.msk.f32.gmra.mxu3 %vm3252_vm2, %v17764_v2  ;;  %v17771_v51 = vld [vmem:[#allocation28_spill] sm:$0xff]  ;;  %v17772_v2 = vld [vmem:[#allocation50_spill] sm:$0xff] }
 0x7ea   :  { %v4019_v32 = vadd.f32 %v14078_v38, %v3882_v40  ;;  %v3609_v12 = vadd.f32 %v17770_v27, %v3467_v13  ;;  %v17778_v13 = vld [vmem:[#allocation163_spill] sm:$0xff] }
 0x7eb   :  { %10633 = vmatmul.msk.f32.gmra.mxu0 %vm3252_vm2, %v17766_v15 }
 0x7ec   :  { %v4403_v17 = vpop.f32.mrf.mxu2  ;;  %v4540_v44 = vpop.f32.mrf.mxu3  ;;  %v4156_v52 = vadd.f32 %v14286_v60, %v4019_v32  ;;  %v3746_v38 = vadd.f32 %v17773_v9, %v3609_v12  ;;  %v17777_v60 = vld [vmem:[#allocation157_spill] sm:$0xff] }
 0x7ed   :  { %v4429_v19 = vadd.f32 %v4403_v17, %v4292_v55  ;;  %v17774_v55 = vld [vmem:[#allocation73_spill] sm:$0xff] }
 0x7ee   :  { %v4293_v43 = vadd.f32 %v14301_v30, %v4156_v52  ;;  %v3883_v33 = vadd.f32 %v17777_v60, %v3746_v38  ;;  %v17779_v30 = vld [vmem:[#allocation110_spill] sm:$0xff]  ;;  %v17780_v12 = vld [vmem:[#allocation29_spill] sm:$0xff]  ;;  %v17781_v52 = vld [vmem:[#allocation51_spill] sm:$0xff] }
 0x7ef   :  { %v14627_v26 = vadd.f32 %v4540_v44, %v4429_v19  ;;  %v17775_v44 = vld [vmem:[#allocation27_spill] sm:$0xff] }
 0x7f0   :  { %v14632_v18 = vpop.f32.mrf.mxu1  ;;  %v3470_v7 = vadd.f32 %v17776_v14, %v17775_v44  ;;  %v4020_v46 = vadd.f32 %v17778_v13, %v3883_v33  ;;  %v14648_v40 = vpop.f32.mrf.mxu0  ;;  %v17783_v38 = vld [vmem:[#allocation75_spill] sm:$0xff]  ;;  %v17787_v13 = vld [vmem:[#allocation113_spill] sm:$0xff] }
 0x7f1   :  { %10589 = vmatmul.msk.f32.gmra.mxu2 %vm3252_vm2, %v17771_v51  ;;  %10613 = vmatmul.msk.f32.gmra.mxu3 %vm3252_vm2, %v17772_v2  ;;  %v17782_v51 = vld [vmem:[#allocation125_spill] sm:$0xff]  ;;  %v17786_v14 = vld [vmem:[#allocation159_spill] sm:$0xff] }
 0x7f2   :  { %v4157_v27 = vadd.f32 %v14303_v39, %v4020_v46 }
 0x7f3   :  { %3001 = vmatmul.bf16.gmra.mxu1 %v11998_v57  ;;  %10634 = vmatmul.msk.f32.gmra.mxu0 %vm3252_vm2, %v17774_v55  ;;  %v3610_v57 = vadd.f32 %v17779_v30, %v3470_v7 }
 0x7f4   :  { %v4406_v15 = vpop.f32.mrf.mxu2  ;;  %v4543_v17 = vpop.f32.mrf.mxu3  ;;  %v4294_v9 = vadd.f32 %v14316_v42, %v4157_v27  ;;  %v17788_v27 = vld [vmem:[#allocation31_spill] sm:$0xff] }
 0x7f5   :  { %v4430_v22 = vadd.f32 %v4406_v15, %v4293_v43  ;;  %v3747_v2 = vadd.f32 %v17782_v51, %v3610_v57  ;;  %v17784_v15 = vld [vmem:[#allocation30_spill] sm:$0xff] }
 0x7f7   :  { %v14650_v19 = vadd.f32 %v4543_v17, %v4430_v22  ;;  %v17785_v17 = vld [vmem:[#allocation81_spill] sm:$0xff]  ;;  %v3884_v39 = vadd.f32 %v17786_v14, %v3747_v2  ;;  %v11999_v22 = vld [vmem:[%s17458_s3 + $0x4d8] sm:$0xff] }
 0x7f8   :  { %v14652_v32 = vpop.f32.mrf.mxu1  ;;  %v3473_v44 = vadd.f32 %v17785_v17, %v17784_v15  ;;  %v14677_v57 = vpop.f32.mrf.mxu0  ;;  %v12076_v17 = vld [vmem:[%s17459_s4 + $0x100] sm:$0xff] }
 0x7f9   :  { %10590 = vmatmul.msk.f32.gmra.mxu2 %vm3252_vm2, %v17780_v12  ;;  %10614 = vmatmul.msk.f32.gmra.mxu3 %vm3252_vm2, %v17781_v52  ;;  %v4021_v60 = vadd.f32 %v14105_v5, %v3884_v39  ;;  %v17789_v12 = vld [vmem:[#allocation53_spill] sm:$0xff]  ;;  %v17790_v52 = vld [vmem:[#allocation128_spill] sm:$0xff] }
 0x7fa   :  { %v3611_v46 = vadd.f32 %v17787_v13, %v3473_v44  ;;  %v12077_v5 = vld [vmem:[%s17459_s4 + $0x108] sm:$0xff] }
 0x7fb   :  { %10635 = vmatmul.msk.f32.gmra.mxu0 %vm3252_vm2, %v17783_v38  ;;  %v4158_v30 = vadd.f32 %v14330_v59, %v4021_v60  ;;  %v17794_v60 = vld [vmem:[#allocation54_spill] sm:$0xff] }
 0x7fc   :  { %v4409_v43 = vpop.f32.mrf.mxu2  ;;  %v4546_v55 = vpop.f32.mrf.mxu3  ;;  %v3748_v51 = vadd.f32 %v17790_v52, %v3611_v46  ;;  %5463 = vmatpush.bf16.msra.mxu0 %v12077_v5 }
 0x7fd   :  { %v4431_v7 = vadd.f32 %v4409_v43, %v4294_v9  ;;  %v4295_v2 = vadd.f32 %v14339_v48, %v4158_v30  ;;  %v17791_v9 = vld [vmem:[#allocation77_spill] sm:$0xff]  ;;  %v17796_v30 = vld [vmem:[#allocation79_spill] sm:$0xff] }
 0x7fe   :  { %v17792_v43 = vld [vmem:[#allocation161_spill] sm:$0xff] }
 0x7ff   :  { %v14668_v33 = vadd.f32 %v4546_v55, %v4431_v7  ;;  %v3885_v55 = vadd.f32 %v17792_v43, %v3748_v51  ;;  %v17793_v7 = vld [vmem:[#allocation32_spill] sm:$0xff] }
 0x800   :  { %v14673_v42 = vpop.f32.mrf.mxu1  ;;  %5464 = vmatpush.bf16.msra.mxu0 %v12076_v17  ;;  %v14705_v46 = vpop.f32.mrf.mxu0  ;;  %v17797_v51 = vld [vmem:[#allocation84_spill] sm:$0xff] }
 0x801   :  { %10591 = vmatmul.msk.f32.gmra.mxu2 %vm3252_vm2, %v17788_v27  ;;  %10615 = vmatmul.msk.f32.gmra.mxu3 %vm3252_vm2, %v17789_v12  ;;  %v4022_v44 = vadd.f32 %v14122_v3, %v3885_v55 }
 0x803   :  { %3006 = vmatmul.bf16.gmra.mxu1 %v11999_v22  ;;  %10636 = vmatmul.msk.f32.gmra.mxu0 %vm3252_vm2, %v17791_v9  ;;  %v4159_v48 = vadd.f32 %v14359_v45, %v4022_v44  ;;  %v17795_v22 = vld [vmem:[#allocation8_spill] sm:$0xff]  ;;  %v4692_v9 = vadd.f32 %v14434_v36, %v14386_v49  ;;  %v4693_v49 = vadd.f32 %v14457_v37, %v14407_v53  ;;  %v17802_v36 = vld [vmem:[#allocation82_spill] sm:$0xff]  ;;  %v17804_v53 = vld [vmem:[#allocation123_spill] sm:$0xff] }
 0x804   :  { %v4412_v59 = vpop.f32.mrf.mxu2  ;;  %v4549_v38 = vpop.f32.mrf.mxu3  ;;  %v12000_v45 = vld [vmem:[%s17458_s3 + $0x4e0] sm:$0xff]  ;;  %v4694_v37 = vadd.f32 %v14477_v24, %v14429_v31  ;;  %v4695_v31 = vadd.f32 %v14500_v58, %v14449_v61  ;;  %v17808_v24 = vld [vmem:[#allocation155_spill] sm:$0xff]  ;;  %v4696_v61 = vadd.f32 %v14520_v41, %v14472_v25  ;;  %v4697_v25 = vadd.f32 %v14543_v21, %v14493_v29  ;;  %v17814_v41 = vld [vmem:[#allocation158_spill] sm:$0xff] }
 0x805   :  { %v4432_v15 = vadd.f32 %v4412_v59, %v4295_v2  ;;  %v4296_v13 = vadd.f32 %v17795_v22, %v4159_v48  ;;  %v17798_v2 = vld [vmem:[#allocation119_spill] sm:$0xff]  ;;  %v17799_v59 = vld [vmem:[#allocation80_spill] sm:$0xff]  ;;  %v17800_v48 = vld [vmem:[#allocation86_spill] sm:$0xff]  ;;  %v4698_v21 = vadd.f32 %v14560_v62, %v14515_v20  ;;  %v4699_v20 = vadd.f32 %v14586_v35, %v14535_v1 }
 0x806   :  { %v17816_v29 = vld [vmem:[#allocation134_spill] sm:$0xff]  ;;  %v4700_v35 = vadd.f32 %v14624_v28, %v14555_v10  ;;  %v4701_v10 = vadd.f32 %v14648_v40, %v14572_v11  ;;  %v4702_v40 = vadd.f32 %v14677_v57, %v14595_v56  ;;  %v17831_v57 = vld [vmem:[#allocation108_spill] sm:$0xff] }
 0x807   :  { %v14695_v14 = vadd.f32 %v4549_v38, %v4432_v15  ;;  %v17821_v62 = vld [vmem:[#allocation162_spill] sm:$0xff] }
 0x808   :  { %v14697_v39 = vpop.f32.mrf.mxu1  ;;  %v14724_v55 = vpop.f32.mrf.mxu0  ;;  %v17823_v1 = vld [vmem:[#allocation138_spill] sm:$0xff] }
 0x809   :  { %10592 = vmatmul.msk.f32.gmra.mxu2 %vm3252_vm2, %v17793_v7  ;;  %10616 = vmatmul.msk.f32.gmra.mxu3 %vm3252_vm2, %v17794_v60  ;;  %v17801_v7 = vld [vmem:[#allocation121_spill] sm:$0xff]  ;;  %v17829_v11 = vld [vmem:[#allocation142_spill] sm:$0xff] }
 0x80a   :  { %v12081_v56 = vld [vmem:[%s17459_s4 + $0x128] sm:$0xff] }
 0x80b   :  { %10637 = vmatmul.msk.f32.gmra.mxu0 %vm3252_vm2, %v17796_v30  ;;  %5737 = vmatpush.bf16.msrb.mxu3 %v12081_v56 }
 0x80c   :  { %v4415_v3 = vpop.f32.mrf.mxu2  ;;  %v4552_v27 = vpop.f32.mrf.mxu3 }
 0x80d   :  { %v4433_v12 = vadd.f32 %v4415_v3, %v4296_v13 }
 0x80f   :  { %v14709_v5 = vadd.f32 %v4552_v27, %v4433_v12  ;;  %v12001_v27 = vld [vmem:[%s17458_s3 + $0x4e8] sm:$0xff] }
 0x810   :  { %v14714_v52 = vpop.f32.mrf.mxu1  ;;  %v14738_v30 = vpop.f32.mrf.mxu0 }
 0x811   :  { %10649 = vmatmul.msk.f32.vlgmr.msrb.gmra.mxu2 %vm3252_vm2, %v17797_v51  ;;  %10673 = vmatmul.msk.f32.vlgmr.msra.gmra.mxu3 %vm3252_vm2, %v17798_v2  ;;  %v17805_v51 = vld [vmem:[#allocation83_spill] sm:$0xff] }
 0x813   :  { %3011 = vmatmul.bf16.gmra.mxu1 %v12000_v45  ;;  %10638 = vmatmul.msk.f32.gmra.mxu0 %vm3252_vm2, %v17799_v59  ;;  %v17803_v45 = vld [vmem:[#allocation87_spill] sm:$0xff] }
 0x814   :  { %v4781_v38 = vpop.f32.mrf.mxu2  ;;  %v4918_v43 = vpop.f32.mrf.mxu3 }
 0x815   :  { %v4829_v15 = vadd.f32 %v4781_v38, %v4692_v9 }
 0x817   :  { %v14726_v17 = vadd.f32 %v4918_v43, %v4829_v15 }
 0x818   :  { %v14728_v44 = vpop.f32.mrf.mxu1  ;;  %v14759_v15 = vpop.f32.mrf.mxu0 }
 0x819   :  { %10650 = vmatmul.msk.f32.gmra.mxu2 %vm3252_vm2, %v17800_v48  ;;  %10674 = vmatmul.msk.f32.gmra.mxu3 %vm3252_vm2, %v17801_v7  ;;  %v17806_v48 = vld [vmem:[#allocation89_spill] sm:$0xff]  ;;  %v17807_v7 = vld [vmem:[#allocation126_spill] sm:$0xff] }
 0x81b   :  { %10639 = vmatmul.msk.f32.gmra.mxu0 %vm3252_vm2, %v17802_v36 }
 0x81c   :  { %v4784_v60 = vpop.f32.mrf.mxu2  ;;  %v4921_v22 = vpop.f32.mrf.mxu3 }
 0x81d   :  { %v4830_v13 = vadd.f32 %v4784_v60, %v4693_v49 }
 0x81f   :  { %v14740_v3 = vadd.f32 %v4921_v22, %v4830_v13  ;;  %v12002_v13 = vld [vmem:[%s17458_s3 + $0x4f0] sm:$0xff] }
 0x820   :  { %v14745_v12 = vpop.f32.mrf.mxu1  ;;  %v14782_v58 = vpop.f32.mrf.mxu0 }
 0x821   :  { %10651 = vmatmul.msk.f32.gmra.mxu2 %vm3252_vm2, %v17803_v45  ;;  %10675 = vmatmul.msk.f32.gmra.mxu3 %vm3252_vm2, %v17804_v53  ;;  %v17809_v45 = vld [vmem:[#allocation91_spill] sm:$0xff]  ;;  %v17810_v53 = vld [vmem:[#allocation129_spill] sm:$0xff] }
 0x823   :  { %3016 = vmatmul.bf16.gmra.mxu1 %v12001_v27  ;;  %10640 = vmatmul.msk.f32.gmra.mxu0 %vm3252_vm2, %v17805_v51 }
 0x824   :  { %v4787_v2 = vpop.f32.mrf.mxu2  ;;  %v4924_v9 = vpop.f32.mrf.mxu3 }
 0x825   :  { %v4831_v59 = vadd.f32 %v4787_v2, %v4694_v37  ;;  %v17811_v37 = vld [vmem:[#allocation156_spill] sm:$0xff] }
 0x827   :  { %v14755_v38 = vadd.f32 %v4924_v9, %v4831_v59 }
 0x828   :  { %v14757_v43 = vpop.f32.mrf.mxu1 }
 0x829   :  { %10652 = vmatmul.msk.f32.gmra.mxu2 %vm3252_vm2, %v17806_v48  ;;  %10676 = vmatmul.msk.f32.gmra.mxu3 %vm3252_vm2, %v17807_v7  ;;  %v17812_v7 = vld [vmem:[#allocation94_spill] sm:$0xff] }
 0x82b   :  { %10697 = vmatmul.msk.f32.vlgmr.msra.gmra.mxu0 %vm3252_vm2, %v17808_v24 }
 0x82c   :  { %v4790_v49 = vpop.f32.mrf.mxu2  ;;  %v4927_v36 = vpop.f32.mrf.mxu3 }
 0x82d   :  { %v4832_v60 = vadd.f32 %v4790_v49, %v4695_v31  ;;  %v17813_v31 = vld [vmem:[#allocation131_spill] sm:$0xff] }
 0x82f   :  { %v14769_v22 = vadd.f32 %v4927_v36, %v4832_v60  ;;  %v14798_v36 = vpop.f32.mrf.mxu0 }
 0x830   :  { %v14774_v27 = vpop.f32.mrf.mxu1 }
 0x831   :  { %10653 = vmatmul.msk.f32.gmra.mxu2 %vm3252_vm2, %v17809_v45  ;;  %10677 = vmatmul.msk.f32.gmra.mxu3 %vm3252_vm2, %v17810_v53  ;;  %v12003_v45 = vld [vmem:[%s17458_s3 + $0x4f8] sm:$0xff] }
 0x833   :  { %3021 = vmatmul.bf16.gmra.mxu1 %v12002_v13  ;;  %10698 = vmatmul.msk.f32.gmra.mxu0 %vm3252_vm2, %v17811_v37  ;;  %v17817_v37 = vld [vmem:[#allocation160_spill] sm:$0xff] }
 0x834   :  { %v4793_v51 = vpop.f32.mrf.mxu2  ;;  %v4930_v2 = vpop.f32.mrf.mxu3 }
 0x835   :  { %v4833_v9 = vadd.f32 %v4793_v51, %v4696_v61  ;;  %v17815_v61 = vld [vmem:[#allocation97_spill] sm:$0xff] }
 0x837   :  { %v14786_v59 = vadd.f32 %v4930_v2, %v4833_v9 }
 0x838   :  { %v14788_v48 = vpop.f32.mrf.mxu1 }
 0x839   :  { %10654 = vmatmul.msk.f32.gmra.mxu2 %vm3252_vm2, %v17812_v7  ;;  %10678 = vmatmul.msk.f32.gmra.mxu3 %vm3252_vm2, %v17813_v31  ;;  %v14815_v7 = vpop.f32.mrf.mxu0 }
 0x83b   :  { %10699 = vmatmul.msk.f32.gmra.mxu0 %vm3252_vm2, %v17814_v41  ;;  %v17819_v41 = vld [vmem:[#allocation98_spill] sm:$0xff] }
 0x83c   :  { %v4796_v24 = vpop.f32.mrf.mxu2  ;;  %v4933_v49 = vpop.f32.mrf.mxu3 }
 0x83d   :  { %v4834_v60 = vadd.f32 %v4796_v24, %v4697_v25  ;;  %v17820_v24 = vld [vmem:[#allocation135_spill] sm:$0xff] }
 0x83f   :  { %v14800_v13 = vadd.f32 %v4933_v49, %v4834_v60 }
 0x840   :  { %v14805_v53 = vpop.f32.mrf.mxu1 }
 0x841   :  { %10655 = vmatmul.msk.f32.gmra.mxu2 %vm3252_vm2, %v17815_v61  ;;  %10679 = vmatmul.msk.f32.gmra.mxu3 %vm3252_vm2, %v17816_v29  ;;  %v12004_v29 = vld [vmem:[%s17458_s3 + $0x500] sm:$0xff] }
 0x843   :  { %3026 = vmatmul.bf16.gmra.mxu1 %v12003_v45  ;;  %10700 = vmatmul.msk.f32.gmra.mxu0 %vm3252_vm2, %v17817_v37  ;;  %v14836_v37 = vpop.f32.mrf.mxu0 }
 0x844   :  { %v4799_v51 = vpop.f32.mrf.mxu2  ;;  %v4936_v2 = vpop.f32.mrf.mxu3 }
 0x845   :  { %v4835_v9 = vadd.f32 %v4799_v51, %v4698_v21  ;;  %v17822_v51 = vld [vmem:[#allocation101_spill] sm:$0xff] }
 0x847   :  { %v14817_v31 = vadd.f32 %v4936_v2, %v4835_v9  ;;  %v17824_v2 = vld [vmem:[#allocation164_spill] sm:$0xff] }
 0x848   :  { %v14819_v25 = vpop.f32.mrf.mxu1 }
 0x849   :  { %17818 = vst [vmem:[#allocation10_spill] sm:$0xff] %v14819_v25  ;;  %10656 = vmatmul.msk.f32.gmra.mxu2 %vm3252_vm2, %v17819_v41  ;;  %10680 = vmatmul.msk.f32.gmra.mxu3 %vm3252_vm2, %v17820_v24 }
 0x84b   :  { %10701 = vmatmul.msk.f32.gmra.mxu0 %vm3252_vm2, %v17821_v62  ;;  %v14856_v28 = vpop.f32.mrf.mxu0 }
 0x84c   :  { %v4802_v49 = vpop.f32.mrf.mxu2  ;;  %v4939_v60 = vpop.f32.mrf.mxu3 }
 0x84d   :  { %v4836_v45 = vadd.f32 %v4802_v49, %v4699_v20  ;;  %v17825_v49 = vld [vmem:[#allocation103_spill] sm:$0xff] }
 0x84f   :  { %v14829_v61 = vadd.f32 %v4939_v60, %v4836_v45  ;;  %v17826_v60 = vld [vmem:[#allocation140_spill] sm:$0xff]  ;;  %v17827_v45 = vld [vmem:[#allocation165_spill] sm:$0xff] }
 0x850   :  { %v14834_v21 = vpop.f32.mrf.mxu1 }
 0x851   :  { %10657 = vmatmul.msk.f32.gmra.mxu2 %vm3252_vm2, %v17822_v51  ;;  %10681 = vmatmul.msk.f32.gmra.mxu3 %vm3252_vm2, %v17823_v1 }
 0x853   :  { %3031 = vmatmul.bf16.gmra.mxu1 %v12004_v29  ;;  %10702 = vmatmul.msk.f32.gmra.mxu0 %vm3252_vm2, %v17824_v2  ;;  %v12005_v2 = vld [vmem:[%s17458_s3 + $0x508] sm:$0xff] }
 0x854   :  { %v4805_v9 = vpop.f32.mrf.mxu2  ;;  %v4942_v41 = vpop.f32.mrf.mxu3 }
 0x855   :  { %v4837_v24 = vadd.f32 %v4805_v9, %v4700_v35 }
 0x857   :  { %v14846_v20 = vadd.f32 %v4942_v41, %v4837_v24  ;;  %v17828_v41 = vld [vmem:[#allocation105_spill] sm:$0xff]  ;;  %v17830_v24 = vld [vmem:[#allocation166_spill] sm:$0xff] }
 0x858   :  { %v14848_v62 = vpop.f32.mrf.mxu1 }
 0x859   :  { %10658 = vmatmul.msk.f32.gmra.mxu2 %vm3252_vm2, %v17825_v49  ;;  %10682 = vmatmul.msk.f32.gmra.mxu3 %vm3252_vm2, %v17826_v60 }
 0x85b   :  { %10703 = vmatmul.msk.f32.gmra.mxu0 %vm3252_vm2, %v17827_v45 }
 0x85c   :  { %v4808_v29 = vpop.f32.mrf.mxu2  ;;  %v4945_v51 = vpop.f32.mrf.mxu3 }
 0x85d   :  { %v4838_v1 = vadd.f32 %v4808_v29, %v4701_v10  ;;  %v14875_v10 = vpop.f32.mrf.mxu0 }
 0x85f   :  { %v14860_v35 = vadd.f32 %v4945_v51, %v4838_v1  ;;  %v12079_v1 = vld [vmem:[%s17459_s4 + $0x118] sm:$0xff] }
 0x860   :  { %v14865_v9 = vpop.f32.mrf.mxu1  ;;  %5600 = vmatpush.bf16.msra.mxu2 %v12079_v1 }
 0x861   :  { %10659 = vmatmul.msk.f32.gmra.mxu2 %vm3252_vm2, %v17828_v41  ;;  %10683 = vmatmul.msk.f32.gmra.mxu3 %vm3252_vm2, %v17829_v11  ;;  %v4703_v41 = vadd.f32 %v14705_v46, %v14627_v26  ;;  %v17833_v11 = vld [vmem:[#allocation167_spill] sm:$0xff] }
 0x862   :  { %v12006_v26 = vld [vmem:[%s17458_s3 + $0x510] sm:$0xff] }
 0x863   :  { %3036 = vmatmul.bf16.gmra.mxu1 %v12005_v2  ;;  %10704 = vmatmul.msk.f32.gmra.mxu0 %vm3252_vm2, %v17830_v24  ;;  %v17832_v2 = vld [vmem:[#allocation145_spill] sm:$0xff] }
 0x864   :  { %v4811_v49 = vpop.f32.mrf.mxu2  ;;  %v4948_v60 = vpop.f32.mrf.mxu3 }
 0x865   :  { %v4839_v45 = vadd.f32 %v4811_v49, %v4702_v40  ;;  %v12078_v49 = vld [vmem:[%s17459_s4 + $0x110] sm:$0xff]  ;;  %v14901_v1 = vpop.f32.mrf.mxu0 }
 0x866   :  { %5601 = vmatpush.bf16.msra.mxu2 %v12078_v49 }
 0x867   :  { %v14877_v29 = vadd.f32 %v4948_v60, %v4839_v45  ;;  %v12080_v60 = vld [vmem:[%s17459_s4 + $0x120] sm:$0xff] }
 0x868   :  { %v14879_v51 = vpop.f32.mrf.mxu1  ;;  %5738 = vmatpush.bf16.msrb.mxu3 %v12080_v60 }
 0x869   :  { %10660 = vmatmul.msk.f32.gmra.mxu2 %vm3252_vm2, %v17831_v57  ;;  %10684 = vmatmul.msk.f32.gmra.mxu3 %vm3252_vm2, %v17832_v2  ;;  %v17834_v57 = vld [vmem:[#allocation109_spill] sm:$0xff]  ;;  %v17835_v2 = vld [vmem:[#allocation146_spill] sm:$0xff] }
 0x86b   :  { %10705 = vmatmul.msk.f32.gmra.mxu0 %vm3252_vm2, %v17833_v11  ;;  %v17836_v11 = vld [vmem:[#allocation168_spill] sm:$0xff] }
 0x86c   :  { %v4814_v40 = vpop.f32.mrf.mxu2  ;;  %v4951_v24 = vpop.f32.mrf.mxu3 }
 0x86d   :  { %v4840_v45 = vadd.f32 %v4814_v40, %v4703_v41  ;;  %v4704_v41 = vadd.f32 %v14724_v55, %v14650_v19  ;;  %v14922_v25 = vpop.f32.mrf.mxu0  ;;  %v4705_v19 = vadd.f32 %v14738_v30, %v14668_v33  ;;  %v17839_v55 = vld [vmem:[#allocation169_spill] sm:$0xff]  ;;  %v12083_v33 = vld [vmem:[%s17459_s4 + $0x138] sm:$0xff]  ;;  %v4706_v30 = vadd.f32 %v14759_v15, %v14695_v14 }
 0x86e   :  { %5874 = vmatpush.bf16.msrb.mxu0 %v12083_v33  ;;  %v17843_v14 = vld [vmem:[#allocation117_spill] sm:$0xff]  ;;  %v17845_v33 = vld [vmem:[#allocation171_spill] sm:$0xff] }
 0x86f   :  { %v14903_v56 = vadd.f32 %v4951_v24, %v4840_v45  ;;  %v17844_v15 = vld [vmem:[#allocation153_spill] sm:$0xff] }
 0x870   :  { %v14908_v46 = vpop.f32.mrf.mxu1 }
 0x871   :  { %10661 = vmatmul.msk.f32.gmra.mxu2 %vm3252_vm2, %v17834_v57  ;;  %10685 = vmatmul.msk.f32.gmra.mxu3 %vm3252_vm2, %v17835_v2  ;;  %v17837_v57 = vld [vmem:[#allocation112_spill] sm:$0xff]  ;;  %v17838_v2 = vld [vmem:[#allocation149_spill] sm:$0xff] }
 0x873   :  { %3041 = vmatmul.bf16.gmra.mxu1 %v12006_v26  ;;  %10706 = vmatmul.msk.f32.gmra.mxu0 %vm3252_vm2, %v17836_v11 }
 0x874   :  { %v4817_v40 = vpop.f32.mrf.mxu2  ;;  %v4954_v24 = vpop.f32.mrf.mxu3 }
 0x875   :  { %v4841_v49 = vadd.f32 %v4817_v40, %v4704_v41 }
 0x877   :  { %v14918_v60 = vadd.f32 %v4954_v24, %v4841_v49  ;;  %v12007_v24 = vld [vmem:[%s17458_s3 + $0x518] sm:$0xff] }
 0x878   :  { %v14920_v45 = vpop.f32.mrf.mxu1 }
 0x879   :  { %10662 = vmatmul.msk.f32.gmra.mxu2 %vm3252_vm2, %v17837_v57  ;;  %10686 = vmatmul.msk.f32.gmra.mxu3 %vm3252_vm2, %v17838_v2  ;;  %v17840_v57 = vld [vmem:[#allocation115_spill] sm:$0xff]  ;;  %v17841_v2 = vld [vmem:[#allocation152_spill] sm:$0xff] }
 0x87b   :  { %10707 = vmatmul.msk.f32.gmra.mxu0 %vm3252_vm2, %v17839_v55  ;;  %v17842_v55 = vld [vmem:[#allocation170_spill] sm:$0xff] }
 0x87c   :  { %v4820_v26 = vpop.f32.mrf.mxu2  ;;  %v4957_v41 = vpop.f32.mrf.mxu3 }
 0x87d   :  { %v4842_v11 = vadd.f32 %v4820_v26, %v4705_v19  ;;  %v14948_v19 = vpop.f32.mrf.mxu0 }
 0x87f   :  { %v14932_v40 = vadd.f32 %v4957_v41, %v4842_v11 }
 0x880   :  { %v14937_v49 = vpop.f32.mrf.mxu1 }
 0x881   :  { %10663 = vmatmul.msk.f32.gmra.mxu2 %vm3252_vm2, %v17840_v57  ;;  %10687 = vmatmul.msk.f32.gmra.mxu3 %vm3252_vm2, %v17841_v2  ;;  %v12082_v57 = vld [vmem:[%s17459_s4 + $0x130] sm:$0xff] }
 0x882   :  { %5875 = vmatpush.bf16.msrb.mxu0 %v12082_v57  ;;  %v12008_v57 = vld [vmem:[%s17458_s3 + $0x520] sm:$0xff] }
 0x883   :  { %3046 = vmatmul.bf16.gmra.mxu1 %v12007_v24  ;;  %10708 = vmatmul.msk.f32.gmra.mxu0 %vm3252_vm2, %v17842_v55  ;;  %v4707_v24 = vadd.f32 %v14782_v58, %v14709_v5  ;;  %v5103_v5 = vadd.f32 %v14798_v36, %v14726_v17  ;;  %v17848_v58 = vld [vmem:[#allocation172_spill] sm:$0xff]  ;;  %v17850_v17 = vld [vmem:[#allocation173_spill] sm:$0xff] }
 0x884   :  { %v4823_v26 = vpop.f32.mrf.mxu2  ;;  %v4960_v41 = vpop.f32.mrf.mxu3 }
 0x885   :  { %v4843_v11 = vadd.f32 %v4823_v26, %v4706_v30  ;;  %v14967_v26 = vpop.f32.mrf.mxu0 }
 0x887   :  { %v14955_v2 = vadd.f32 %v4960_v41, %v4843_v11 }
 0x888   :  { %v14957_v34 = vpop.f32.mrf.mxu1 }
 0x889   :  { %10664 = vmatmul.msk.f32.gmra.mxu2 %vm3252_vm2, %v17843_v14  ;;  %10688 = vmatmul.msk.f32.gmra.mxu3 %vm3252_vm2, %v17844_v15  ;;  %v17847_v15 = vld [vmem:[#allocation175_spill] sm:$0xff] }
 0x88b   :  { %10709 = vmatmul.msk.f32.gmra.mxu0 %vm3252_vm2, %v17845_v33 }
 0x88c   :  { %v4826_v30 = vpop.f32.mrf.mxu2  ;;  %v4963_v55 = vpop.f32.mrf.mxu3 }
 0x88d   :  { %v4844_v41 = vadd.f32 %v4826_v30, %v4707_v24 }
 0x88f   :  { %v14969_v11 = vadd.f32 %v4963_v55, %v4844_v41  ;;  %v14984_v55 = vpop.f32.mrf.mxu0 }
 0x890   :  { %v14974_v14 = vpop.f32.mrf.mxu1 }
 0x891   :  { %17846 = vst [vmem:[#allocation33_spill] sm:$0xff] %v14969_v11  ;;  %10721 = vmatmul.msk.f32.vlgmr.msra.gmra.mxu2 %vm3252_vm2, %v17847_v15  ;;  %10745 = vmatmul.msk.f32.vlgmr.msrb.gmra.mxu3 %vm3252_vm2, %v14541_v63  ;;  %v17849_v15 = vld [vmem:[#allocation176_spill] sm:$0xff]  ;;  %v5104_v63 = vadd.f32 %v14815_v7, %v14740_v3  ;;  %v5105_v3 = vadd.f32 %v14836_v37, %v14755_v38  ;;  %v17852_v7 = vld [vmem:[#allocation174_spill] sm:$0xff] }
 0x893   :  { %3051 = vmatmul.bf16.gmra.mxu1 %v12008_v57  ;;  %10710 = vmatmul.msk.f32.gmra.mxu0 %vm3252_vm2, %v17848_v58 }
 0x894   :  { %v5192_v24 = vpop.f32.mrf.mxu2  ;;  %v5329_v33 = vpop.f32.mrf.mxu3 }
 0x895   :  { %v5240_v30 = vadd.f32 %v5192_v24, %v5103_v5  ;;  %v12009_v24 = vld [vmem:[%s17458_s3 + $0x528] sm:$0xff] }
 0x897   :  { %v14986_v41 = vadd.f32 %v5329_v33, %v5240_v30  ;;  %v15005_v30 = vpop.f32.mrf.mxu0 }
 0x898   :  { %v14988_v11 = vpop.f32.mrf.mxu1 }
 0x899   :  { %10722 = vmatmul.msk.f32.gmra.mxu2 %vm3252_vm2, %v17849_v15  ;;  %10746 = vmatmul.msk.f32.gmra.mxu3 %vm3252_vm2, %v14558_v50  ;;  %v17851_v50 = vld [vmem:[#allocation177_spill] sm:$0xff] }
 0x89b   :  { %10711 = vmatmul.msk.f32.gmra.mxu0 %vm3252_vm2, %v17850_v17 }
 0x89c   :  { %v5195_v36 = vpop.f32.mrf.mxu2  ;;  %v5332_v57 = vpop.f32.mrf.mxu3 }
 0x89d   :  { %v5241_v5 = vadd.f32 %v5195_v36, %v5104_v63 }
 0x89f   :  { %v14998_v58 = vadd.f32 %v5332_v57, %v5241_v5  ;;  %v17853_v5 = vld [vmem:[#allocation178_spill] sm:$0xff]  ;;  %v15025_v38 = vpop.f32.mrf.mxu0 }
 0x8a0   :  { %v15003_v33 = vpop.f32.mrf.mxu1 }
 0x8a1   :  { %10723 = vmatmul.msk.f32.gmra.mxu2 %vm3252_vm2, %v17851_v50  ;;  %10747 = vmatmul.msk.f32.gmra.mxu3 %vm3252_vm2, %v14578_v6  ;;  %v5106_v6 = vadd.f32 %v14856_v28, %v14769_v22  ;;  %v5107_v22 = vadd.f32 %v14875_v10, %v14786_v59 }
 0x8a3   :  { %3056 = vmatmul.bf16.gmra.mxu1 %v12009_v24  ;;  %10712 = vmatmul.msk.f32.gmra.mxu0 %vm3252_vm2, %v17852_v7  ;;  %v12010_v7 = vld [vmem:[%s17458_s3 + $0x530] sm:$0xff] }
 0x8a4   :  { %v5198_v15 = vpop.f32.mrf.mxu2  ;;  %v5335_v63 = vpop.f32.mrf.mxu3 }
 0x8a5   :  { %v5242_v17 = vadd.f32 %v5198_v15, %v5105_v3 }
 0x8a7   :  { %v15015_v36 = vadd.f32 %v5335_v63, %v5242_v17  ;;  %v15044_v63 = vpop.f32.mrf.mxu0 }
 0x8a8   :  { %v15017_v57 = vpop.f32.mrf.mxu1 }
 0x8a9   :  { %10724 = vmatmul.msk.f32.gmra.mxu2 %vm3252_vm2, %v17853_v5  ;;  %10748 = vmatmul.msk.f32.gmra.mxu3 %vm3252_vm2, %v14597_v0  ;;  %v17854_v0 = vld [vmem:[#allocation179_spill] sm:$0xff] }
 0x8ab   :  { %10769 = vmatmul.msk.f32.vlgmr.msrb.gmra.mxu0 %vm3252_vm2, %v14834_v21 }
 0x8ac   :  { %v5201_v37 = vpop.f32.mrf.mxu2  ;;  %v5338_v24 = vpop.f32.mrf.mxu3 }
 0x8ad   :  { %v5243_v50 = vadd.f32 %v5201_v37, %v5106_v6  ;;  %v17855_v37 = vld [vmem:[#allocation180_spill] sm:$0xff] }
 0x8af   :  { %v15029_v3 = vadd.f32 %v5338_v24, %v5243_v50  ;;  %v15058_v24 = vpop.f32.mrf.mxu0 }
 0x8b0   :  { %v15034_v15 = vpop.f32.mrf.mxu1 }
 0x8b1   :  { %10725 = vmatmul.msk.f32.gmra.mxu2 %vm3252_vm2, %v17854_v0  ;;  %10749 = vmatmul.msk.f32.gmra.mxu3 %vm3252_vm2, %v14632_v18  ;;  %v5108_v18 = vadd.f32 %v14901_v1, %v14800_v13  ;;  %v5109_v13 = vadd.f32 %v14922_v25, %v14817_v31 }
 0x8b3   :  { %3061 = vmatmul.bf16.gmra.mxu1 %v12010_v7  ;;  %10770 = vmatmul.msk.f32.gmra.mxu0 %vm3252_vm2, %v14848_v62  ;;  %v12011_v7 = vld [vmem:[%s17458_s3 + $0x538] sm:$0xff] }
 0x8b4   :  { %v5204_v21 = vpop.f32.mrf.mxu2  ;;  %v5341_v28 = vpop.f32.mrf.mxu3 }
 0x8b5   :  { %v5244_v17 = vadd.f32 %v5204_v21, %v5107_v22 }
 0x8b7   :  { %v15046_v5 = vadd.f32 %v5341_v28, %v5244_v17  ;;  %v15079_v17 = vpop.f32.mrf.mxu0 }
 0x8b8   :  { %v15048_v6 = vpop.f32.mrf.mxu1 }
 0x8b9   :  { %10726 = vmatmul.msk.f32.gmra.mxu2 %vm3252_vm2, %v17855_v37  ;;  %10750 = vmatmul.msk.f32.gmra.mxu3 %vm3252_vm2, %v14652_v32  ;;  %v17856_v32 = vld [vmem:[#allocation7_spill] sm:$0xff]  ;;  %v17857_v37 = vld [vmem:[#allocation5_spill] sm:$0xff] }
 0x8bb   :  { %10771 = vmatmul.msk.f32.gmra.mxu0 %vm3252_vm2, %v14865_v9 }
 0x8bc   :  { %v5207_v59 = vpop.f32.mrf.mxu2  ;;  %v5344_v62 = vpop.f32.mrf.mxu3 }
 0x8bd   :  { %v5245_v10 = vadd.f32 %v5207_v59, %v5108_v18  ;;  %v12012_v59 = vld [vmem:[%s17458_s3 + $0x540] sm:$0xff] }
 0x8bf   :  { %v15060_v50 = vadd.f32 %v5344_v62, %v5245_v10  ;;  %v17858_v10 = vld [vmem:[#allocation6_spill] sm:$0xff] }
 0x8c0   :  { %v15065_v0 = vpop.f32.mrf.mxu1 }
 0x8c1   :  { %10727 = vmatmul.msk.f32.gmra.mxu2 %vm3252_vm2, %v17856_v32  ;;  %10751 = vmatmul.msk.f32.gmra.mxu3 %vm3252_vm2, %v14673_v42  ;;  %v5110_v42 = vadd.f32 %v14948_v19, %v14829_v61  ;;  %v15102_v61 = vpop.f32.mrf.mxu0  ;;  %v12013_v32 = vld [vmem:[%s17458_s3 + $0x548] sm:$0xff] }
 0x8c3   :  { %3066 = vmatmul.bf16.gmra.mxu1 %v12011_v7  ;;  %10772 = vmatmul.msk.f32.gmra.mxu0 %vm3252_vm2, %v14879_v51 }
 0x8c4   :  { %v5210_v9 = vpop.f32.mrf.mxu2  ;;  %v5347_v1 = vpop.f32.mrf.mxu3 }
 0x8c5   :  { %v5246_v22 = vadd.f32 %v5210_v9, %v5109_v13 }
 0x8c7   :  { %v15075_v21 = vadd.f32 %v5347_v1, %v5246_v22 }
 0x8c8   :  { %v15077_v28 = vpop.f32.mrf.mxu1 }
 0x8c9   :  { %10728 = vmatmul.msk.f32.gmra.mxu2 %vm3252_vm2, %v17857_v37  ;;  %10752 = vmatmul.msk.f32.gmra.mxu3 %vm3252_vm2, %v14697_v39  ;;  %v5111_v39 = vadd.f32 %v14967_v26, %v14846_v20  ;;  %v15118_v26 = vpop.f32.mrf.mxu0 }
 0x8cb   :  { %10773 = vmatmul.msk.f32.gmra.mxu0 %vm3252_vm2, %v14908_v46 }
 0x8cc   :  { %v5213_v31 = vpop.f32.mrf.mxu2  ;;  %v5350_v51 = vpop.f32.mrf.mxu3 }
 0x8cd   :  { %v5247_v25 = vadd.f32 %v5213_v31, %v5110_v42  ;;  %v12015_v42 = vld [vmem:[%s17458_s3 + $0x558] sm:$0xff] }
 0x8cf   :  { %v15089_v18 = vadd.f32 %v5350_v51, %v5247_v25  ;;  %v17864_v51 = vld [vmem:[#allocation9_spill] sm:$0xff] }
 0x8d0   :  { %v15094_v62 = vpop.f32.mrf.mxu1 }
 0x8d1   :  { %10729 = vmatmul.msk.f32.gmra.mxu2 %vm3252_vm2, %v17858_v10  ;;  %10753 = vmatmul.msk.f32.gmra.mxu3 %vm3252_vm2, %v14714_v52  ;;  %v5112_v52 = vadd.f32 %v14984_v55, %v14860_v35  ;;  %v15139_v55 = vpop.f32.mrf.mxu0 }
 0x8d3   :  { %3071 = vmatmul.bf16.gmra.mxu1 %v12012_v59  ;;  %10774 = vmatmul.msk.f32.gmra.mxu0 %vm3252_vm2, %v14920_v45 }
 0x8d4   :  { %v5216_v46 = vpop.f32.mrf.mxu2 }
 0x8d5   :  { %v15106_v19 = vadd.f32 %v5216_v46, %v5111_v39  ;;  %v12016_v39 = vld [vmem:[%s17458_s3 + $0x560] sm:$0xff] }
 0x8d8   :  { %v15108_v7 = vpop.f32.mrf.mxu1 }
 0x8d9   :  { %10730 = vmatmul.msk.f32.gmra.mxu2 %vm3252_vm2, %v14389_v47  ;;  %10754 = vmatmul.msk.f32.gmra.mxu3 %vm3252_vm2, %v14728_v44  ;;  %v5113_v47 = vadd.f32 %v15005_v30, %v14877_v29  ;;  %v12084_v29 = vld [vmem:[%s17459_s4 + $0x140] sm:$0xff] }
 0x8db   :  { %10775 = vmatmul.msk.f32.gmra.mxu0 %vm3252_vm2, %v14937_v49  ;;  %v15137_v49 = vpop.f32.mrf.mxu3 }
 0x8dc   :  { %v5219_v20 = vpop.f32.mrf.mxu2 }
 0x8dd   :  { %v15120_v45 = vadd.f32 %v5219_v20, %v5112_v52 }
 0x8df   :  { %17859 = vst [vmem:[#allocation85_spill] sm:$0xff] %v15120_v45 }
 0x8e0   :  { %v15125_v13 = vpop.f32.mrf.mxu1 }
 0x8e1   :  { %10731 = vmatmul.msk.f32.gmra.mxu2 %vm3252_vm2, %v14412_v8  ;;  %10755 = vmatmul.msk.f32.gmra.mxu3 %vm3252_vm2, %v14745_v12  ;;  %v12085_v8 = vld [vmem:[%s17459_s4 + $0x148] sm:$0xff] }
 0x8e2   :  { %6011 = vmatpush.bf16.msrb.mxu2 %v12085_v8 }
 0x8e3   :  { %3076 = vmatmul.bf16.gmra.mxu1 %v12013_v32  ;;  %10776 = vmatmul.msk.f32.gmra.mxu0 %vm3252_vm2, %v14957_v34  ;;  %v5114_v34 = vadd.f32 %v15025_v38, %v14903_v56  ;;  %v5472_v56 = vpop.f32.mrf.mxu0 }
 0x8e4   :  { %v5222_v44 = vpop.f32.mrf.mxu2 }
 0x8e5   :  { %v15135_v35 = vadd.f32 %v5222_v44, %v5113_v47 }
 0x8e6   :  { %6012 = vmatpush.bf16.msrb.mxu2 %v12084_v29 }
 0x8e8   :  { %v15141_v9 = vpop.f32.mrf.mxu1 }
 0x8e9   :  { %10732 = vmatmul.msk.f32.gmra.mxu2 %vm3252_vm2, %v14432_v4  ;;  %10756 = vmatmul.msk.f32.gmra.mxu3 %vm3252_vm2, %v14757_v43  ;;  %v12014_v4 = vld [vmem:[%s17458_s3 + $0x550] sm:$0xff]  ;;  %v15162_v43 = vpop.f32.mrf.mxu3 }
 0x8ea   :  { %17861 = vst [vmem:[#allocation11_spill] sm:$0xff] %v15162_v43 }
 0x8eb   :  { %10777 = vmatmul.msk.f32.gmra.mxu0 %vm3252_vm2, %v14974_v14  ;;  %v5115_v14 = vadd.f32 %v15044_v63, %v14918_v60  ;;  %v5475_v60 = vpop.f32.mrf.mxu0 }
 0x8ec   :  { %v5225_v12 = vpop.f32.mrf.mxu2 }
 0x8ed   :  { %v15157_v30 = vadd.f32 %v5225_v12, %v5114_v34  ;;  %v12087_v12 = vld [vmem:[%s17459_s4 + $0x158] sm:$0xff] }
 0x8ee   :  { %6148 = vmatpush.bf16.msra.mxu3 %v12087_v12 }
 0x8ef   :  { %17860 = vst [vmem:[#allocation36_spill] sm:$0xff] %v15157_v30 }
 0x8f0   :  { %v15164_v1 = vpop.f32.mrf.mxu1 }
 0x8f1   :  { %10733 = vmatmul.msk.f32.gmra.mxu2 %vm3252_vm2, %v14455_v54  ;;  %10757 = vmatmul.msk.f32.gmra.mxu3 %vm3252_vm2, %v14774_v27  ;;  %v15182_v54 = vpop.f32.mrf.mxu3  ;;  %v5116_v27 = vadd.f32 %v15058_v24, %v14932_v40 }
 0x8f3   :  { %3081 = vmatmul.bf16.gmra.mxu1 %v12014_v4  ;;  %10778 = vmatmul.msk.f32.gmra.mxu0 %vm3252_vm2, %v14988_v11  ;;  %v5478_v24 = vpop.f32.mrf.mxu0 }
 0x8f4   :  { %v5228_v38 = vpop.f32.mrf.mxu2 }
 0x8f5   :  { %v15174_v22 = vadd.f32 %v5228_v38, %v5115_v14 }
 0x8f8   :  { %v15176_v37 = vpop.f32.mrf.mxu1 }
 0x8f9   :  { %10734 = vmatmul.msk.f32.gmra.mxu2 %vm3252_vm2, %v14475_v23  ;;  %10758 = vmatmul.msk.f32.gmra.mxu3 %vm3252_vm2, %v14788_v48  ;;  %v5117_v48 = vadd.f32 %v15079_v17, %v14955_v2  ;;  %v15203_v40 = vpop.f32.mrf.mxu3 }
 0x8fa   :  { %17863 = vst [vmem:[#allocation120_spill] sm:$0xff] %v15203_v40 }
 0x8fb   :  { %10779 = vmatmul.msk.f32.gmra.mxu0 %vm3252_vm2, %v15003_v33  ;;  %v5481_v10 = vpop.f32.mrf.mxu0 }
 0x8fc   :  { %v5231_v11 = vpop.f32.mrf.mxu2 }
 0x8fd   :  { %v15188_v63 = vadd.f32 %v5231_v11, %v5116_v27  ;;  %v5519_v11 = vadd.f32 %v5481_v10, %v15060_v50 }
 0x8ff   :  { %17862 = vst [vmem:[#allocation133_spill] sm:$0xff] %v15188_v63 }
 0x900   :  { %v15193_v23 = vpop.f32.mrf.mxu1 }
 0x901   :  { %10735 = vmatmul.msk.f32.gmra.mxu2 %vm3252_vm2, %v14498_v16  ;;  %10759 = vmatmul.msk.f32.gmra.mxu3 %vm3252_vm2, %v14805_v53  ;;  %v17865_v16 = vld [vmem:[#allocation10_spill] sm:$0xff]  ;;  %v17866_v53 = vld [vmem:[#allocation33_spill] sm:$0xff]  ;;  %v15219_v59 = vpop.f32.mrf.mxu3 }
 0x902   :  { %v5118_v2 = vadd.f32 %v15102_v61, %v17866_v53  ;;  %v5514_v61 = vadd.f32 %v15118_v26, %v14986_v41 }
 0x903   :  { %3086 = vmatmul.bf16.gmra.mxu1 %v12015_v42  ;;  %10780 = vmatmul.msk.f32.gmra.mxu0 %vm3252_vm2, %v15017_v57  ;;  %v5484_v47 = vpop.f32.mrf.mxu0 }
 0x904   :  { %v5234_v33 = vpop.f32.mrf.mxu2 }
 0x905   :  { %v15205_v31 = vadd.f32 %v5234_v33, %v5117_v48 }
 0x908   :  { %v15207_v25 = vpop.f32.mrf.mxu1 }
 0x909   :  { %10736 = vmatmul.msk.f32.gmra.mxu2 %vm3252_vm2, %v17864_v51  ;;  %10760 = vmatmul.msk.f32.gmra.mxu3 %vm3252_vm2, %v17865_v16  ;;  %v15234_v20 = vpop.f32.mrf.mxu3 }
 0x90a   :  { %17868 = vst [vmem:[#allocation14_spill] sm:$0xff] %v15234_v20 }
 0x90b   :  { %10781 = vmatmul.msk.f32.gmra.mxu0 %vm3252_vm2, %v15034_v15  ;;  %v5487_v34 = vpop.f32.mrf.mxu0 }
 0x90c   :  { %v5237_v57 = vpop.f32.mrf.mxu2  ;;  %v5521_v53 = vadd.f32 %v5487_v34, %v15089_v18 }
 0x90d   :  { %v15217_v17 = vadd.f32 %v5237_v57, %v5118_v2 }
 0x90f   :  { %17867 = vst [vmem:[#allocation58_spill] sm:$0xff] %v15217_v17  ;;  %v12029_v17 = vld [vmem:[%s17458_s3 + $0x5c8] sm:$0xff] }
 0x910   :  { %v15224_v46 = vpop.f32.mrf.mxu1 }
 0x911   :  { %10793 = vmatmul.msk.f32.vlgmr.msrb.gmra.mxu2 %vm3252_vm2, %v15094_v62  ;;  %v5515_v62 = vadd.f32 %v15139_v55, %v14998_v58  ;;  %v15249_v8 = vpop.f32.mrf.mxu3 }
 0x913   :  { %3091 = vmatmul.bf16.gmra.mxu1 %v12016_v39  ;;  %10782 = vmatmul.msk.f32.gmra.mxu0 %vm3252_vm2, %v15048_v6  ;;  %v12017_v6 = vld [vmem:[%s17458_s3 + $0x568] sm:$0xff] }
 0x914   :  { %v5603_v15 = vpop.f32.mrf.mxu2  ;;  %v12021_v39 = vld [vmem:[%s17458_s3 + $0x588] sm:$0xff] }
 0x915   :  { %v15232_v52 = vadd.f32 %v5603_v15, %v5514_v61 }
 0x918   :  { %v3054_v32 = vpop.f32.mrf.mxu1 }
 0x919   :  { %10794 = vmatmul.msk.f32.gmra.mxu2 %vm3252_vm2, %v15108_v7  ;;  %v5516_v7 = vadd.f32 %v5472_v56, %v15015_v36  ;;  %v15262_v36 = vpop.f32.mrf.mxu3  ;;  %v12018_v56 = vld [vmem:[%s17458_s3 + $0x570] sm:$0xff] }
 0x91a   :  { %17869 = vst [vmem:[#allocation34_spill] sm:$0xff] %v15262_v36 }
 0x91b   :  { %10783 = vmatmul.msk.f32.gmra.mxu0 %vm3252_vm2, %v15065_v0 }
 0x91c   :  { %v5606_v41 = vpop.f32.mrf.mxu2 }
 0x91d   :  { %v15242_v26 = vadd.f32 %v5606_v41, %v5515_v62 }
 0x920   :  { %v3057_v44 = vpop.f32.mrf.mxu1 }
 0x921   :  { %10795 = vmatmul.msk.f32.gmra.mxu2 %vm3252_vm2, %v15125_v13  ;;  %v5517_v13 = vadd.f32 %v5475_v60, %v15029_v3  ;;  %v5518_v3 = vadd.f32 %v5478_v24, %v15046_v5  ;;  %v15277_v27 = vpop.f32.mrf.mxu3  ;;  %v5520_v24 = vadd.f32 %v5484_v47, %v15075_v21 }
 0x923   :  { %3096 = vmatmul.bf16.gmra.mxu1 %v12017_v6  ;;  %10784 = vmatmul.msk.f32.gmra.mxu0 %vm3252_vm2, %v15077_v28  ;;  %v12086_v28 = vld [vmem:[%s17459_s4 + $0x150] sm:$0xff] }
 0x924   :  { %v5609_v58 = vpop.f32.mrf.mxu2  ;;  %6149 = vmatpush.bf16.msra.mxu3 %v12086_v28  ;;  %v12022_v6 = vld [vmem:[%s17458_s3 + $0x590] sm:$0xff] }
 0x925   :  { %v15254_v0 = vadd.f32 %v5609_v58, %v5516_v7 }
 0x928   :  { %v3059_v55 = vpop.f32.mrf.mxu1 }
 0x929   :  { %10796 = vmatmul.msk.f32.gmra.mxu2 %vm3252_vm2, %v15141_v9  ;;  %v15287_v5 = vpop.f32.mrf.mxu3 }
 0x92c   :  { %v5612_v29 = vpop.f32.mrf.mxu2 }
 0x92d   :  { %v15267_v4 = vadd.f32 %v5612_v29, %v5517_v13  ;;  %v12023_v13 = vld [vmem:[%s17458_s3 + $0x598] sm:$0xff] }
 0x930   :  { %v3062_v14 = vpop.f32.mrf.mxu1 }
 0x931   :  { %10797 = vmatmul.msk.f32.gmra.mxu2 %vm3252_vm2, %v15164_v1  ;;  %v12019_v1 = vld [vmem:[%s17458_s3 + $0x578] sm:$0xff]  ;;  %v15296_v16 = vpop.f32.mrf.mxu3 }
 0x933   :  { %3101 = vmatmul.bf16.gmra.mxu1 %v12018_v56 }
 0x934   :  { %v5615_v9 = vpop.f32.mrf.mxu2 }
 0x935   :  { %v15275_v38 = vadd.f32 %v5615_v9, %v5518_v3 }
 0x938   :  { %v3064_v60 = vpop.f32.mrf.mxu1 }
 0x939   :  { %10798 = vmatmul.msk.f32.gmra.mxu2 %vm3252_vm2, %v15176_v37  ;;  %v15307_v10 = vpop.f32.mrf.mxu3 }
 0x93c   :  { %v5618_v42 = vpop.f32.mrf.mxu2 }
 0x93d   :  { %v15282_v48 = vadd.f32 %v5618_v42, %v5519_v11  ;;  %v12024_v11 = vld [vmem:[%s17458_s3 + $0x5a0] sm:$0xff] }
 0x940   :  { %v3067_v33 = vpop.f32.mrf.mxu1 }
 0x941   :  { %10799 = vmatmul.msk.f32.gmra.mxu2 %vm3252_vm2, %v15193_v23  ;;  %v12020_v23 = vld [vmem:[%s17458_s3 + $0x580] sm:$0xff]  ;;  %v15311_v18 = vpop.f32.mrf.mxu3 }
 0x943   :  { %3106 = vmatmul.bf16.gmra.mxu1 %v12019_v1 }
 0x944   :  { %v5621_v51 = vpop.f32.mrf.mxu2 }
 0x945   :  { %v15292_v37 = vadd.f32 %v5621_v51, %v5520_v24 }
 0x948   :  { %v3069_v50 = vpop.f32.mrf.mxu1 }
 0x949   :  { %10800 = vmatmul.msk.f32.gmra.mxu2 %vm3252_vm2, %v15207_v25  ;;  %v15322_v47 = vpop.f32.mrf.mxu3 }
 0x94c   :  { %v5624_v2 = vpop.f32.mrf.mxu2 }
 0x94d   :  { %v15299_v57 = vadd.f32 %v5624_v2, %v5521_v53  ;;  %v12025_v2 = vld [vmem:[%s17458_s3 + $0x5a8] sm:$0xff] }
 0x94f   :  { %17870 = vst [vmem:[#allocation137_spill] sm:$0xff] %v15299_v57  ;;  %v12032_v57 = vld [vmem:[%s17458_s3 + $0x5e0] sm:$0xff] }
 0x950   :  { %v3072_v21 = vpop.f32.mrf.mxu1 }
 0x951   :  { %10801 = vmatmul.msk.f32.gmra.mxu2 %vm3252_vm2, %v15224_v46  ;;  %10817 = vmatmul.msk.f32.vlgmr.msra.gmra.mxu3 %vm3252_vm2, %v3072_v21  ;;  %v15318_v46 = vpop.f32.mrf.mxu0  ;;  %v15335_v7 = vpop.f32.mrf.mxu3 }
 0x953   :  { %3111 = vmatmul.bf16.gmra.mxu1 %v12020_v23 }
 0x954   :  { %v15320_v15 = vpop.f32.mrf.mxu2 }
 0x958   :  { %v3074_v25 = vpop.f32.mrf.mxu1 }
 0x959   :  { %10802 = vmatmul.msk.f32.gmra.mxu2 %vm3252_vm2, %v3054_v32  ;;  %10818 = vmatmul.msk.f32.gmra.mxu3 %vm3252_vm2, %v3074_v25  ;;  %v15326_v62 = vpop.f32.mrf.mxu0  ;;  %v15343_v12 = vpop.f32.mrf.mxu3 }
 0x95a   :  { %17871 = vst [vmem:[#allocation88_spill] sm:$0xff] %v15326_v62  ;;  %v12031_v62 = vld [vmem:[%s17458_s3 + $0x5d8] sm:$0xff] }
 0x95b   :  { %17873 = vst [vmem:[#allocation12_spill] sm:$0xff] %v15343_v12 }
 0x95c   :  { %v15328_v41 = vpop.f32.mrf.mxu2 }
 0x95d   :  { %17872 = vst [vmem:[#allocation38_spill] sm:$0xff] %v15328_v41 }
 0x960   :  { %v3077_v61 = vpop.f32.mrf.mxu1 }
 0x961   :  { %10803 = vmatmul.msk.f32.gmra.mxu2 %vm3252_vm2, %v3057_v44  ;;  %10819 = vmatmul.msk.f32.gmra.mxu3 %vm3252_vm2, %v3077_v61  ;;  %v15337_v34 = vpop.f32.mrf.mxu0 }
 0x963   :  { %3116 = vmatmul.bf16.gmra.mxu1 %v12021_v39 }
 0x964   :  { %v15339_v58 = vpop.f32.mrf.mxu2 }
 0x968   :  { %v3079_v32 = vpop.f32.mrf.mxu1 }
 0x969   :  { %10804 = vmatmul.msk.f32.gmra.mxu2 %vm3252_vm2, %v3059_v55  ;;  %10820 = vmatmul.msk.f32.gmra.mxu3 %vm3252_vm2, %v3079_v32  ;;  %v15348_v29 = vpop.f32.mrf.mxu0  ;;  %v12089_v32 = vld [vmem:[%s17459_s4 + $0x168] sm:$0xff] }
 0x96a   :  { %17874 = vst [vmem:[#allocation124_spill] sm:$0xff] %v15348_v29  ;;  %6285 = vmatpush.bf16.msra.mxu0 %v12089_v32 }
 0x96c   :  { %v15352_v56 = vpop.f32.mrf.mxu2 }
 0x96d   :  { %17875 = vst [vmem:[#allocation60_spill] sm:$0xff] %v15352_v56 }
 0x970   :  { %v3082_v44 = vpop.f32.mrf.mxu1 }
 0x971   :  { %10805 = vmatmul.msk.f32.gmra.mxu2 %vm3252_vm2, %v3062_v14  ;;  %10821 = vmatmul.msk.f32.gmra.mxu3 %vm3252_vm2, %v3082_v44  ;;  %v15354_v14 = vpop.f32.mrf.mxu3  ;;  %v15358_v9 = vpop.f32.mrf.mxu0  ;;  %v12088_v44 = vld [vmem:[%s17459_s4 + $0x160] sm:$0xff] }
 0x972   :  { %6286 = vmatpush.bf16.msra.mxu0 %v12088_v44 }
 0x973   :  { %3121 = vmatmul.bf16.gmra.mxu1 %v12022_v6 }
 0x978   :  { %v3084_v55 = vpop.f32.mrf.mxu1 }
 0x979   :  { %10806 = vmatmul.msk.f32.gmra.mxu2 %vm3252_vm2, %v3064_v60  ;;  %10822 = vmatmul.msk.f32.gmra.mxu3 %vm3252_vm2, %v3084_v55  ;;  %v15360_v60 = vpop.f32.mrf.mxu2  ;;  %v15365_v42 = vpop.f32.mrf.mxu3 }
 0x97a   :  { %17876 = vst [vmem:[#allocation15_spill] sm:$0xff] %v15365_v42 }
 0x980   :  { %v3087_v28 = vpop.f32.mrf.mxu1 }
 0x981   :  { %10807 = vmatmul.msk.f32.gmra.mxu2 %vm3252_vm2, %v3067_v33  ;;  %10823 = vmatmul.msk.f32.gmra.mxu3 %vm3252_vm2, %v3087_v28  ;;  %v15368_v33 = vpop.f32.mrf.mxu0  ;;  %v15370_v24 = vpop.f32.mrf.mxu2 }
 0x982   :  { %17877 = vst [vmem:[#allocation35_spill] sm:$0xff] %v15368_v33 }
 0x983   :  { %3126 = vmatmul.bf16.gmra.mxu1 %v12023_v13  ;;  %17878 = vst [vmem:[#allocation90_spill] sm:$0xff] %v15370_v24  ;;  %v12026_v13 = vld [vmem:[%s17458_s3 + $0x5b0] sm:$0xff] }
 0x984   :  { %v12030_v24 = vld [vmem:[%s17458_s3 + $0x5d0] sm:$0xff] }
 0x988   :  { %v3089_v3 = vpop.f32.mrf.mxu1 }
 0x989   :  { %10808 = vmatmul.msk.f32.gmra.mxu2 %vm3252_vm2, %v3069_v50  ;;  %10824 = vmatmul.msk.f32.gmra.mxu3 %vm3252_vm2, %v3089_v3  ;;  %v15373_v50 = vpop.f32.mrf.mxu3  ;;  %v15375_v53 = vpop.f32.mrf.mxu0 }
 0x98a   :  { %v15380_v23 = vpop.f32.mrf.mxu2 }
 0x990   :  { %v3092_v1 = vpop.f32.mrf.mxu1 }
 0x991   :  { %10825 = vmatmul.msk.f32.gmra.mxu3 %vm3252_vm2, %v3092_v1  ;;  %v15383_v25 = vpop.f32.mrf.mxu3  ;;  %v15385_v39 = vpop.f32.mrf.mxu0 }
 0x992   :  { %17879 = vst [vmem:[#allocation40_spill] sm:$0xff] %v15383_v25  ;;  %v15391_v6 = vpop.f32.mrf.mxu2 }
 0x993   :  { %3131 = vmatmul.bf16.gmra.mxu1 %v12024_v11  ;;  %17880 = vst [vmem:[#allocation13_spill] sm:$0xff] %v15385_v39 }
 0x994   :  { %17881 = vst [vmem:[#allocation139_spill] sm:$0xff] %v15391_v6  ;;  %v12028_v6 = vld [vmem:[%s17458_s3 + $0x5c0] sm:$0xff] }
 0x998   :  { %v3094_v51 = vpop.f32.mrf.mxu1 }
 0x999   :  { %10826 = vmatmul.msk.f32.gmra.mxu3 %vm3252_vm2, %v3094_v51  ;;  %v15396_v55 = vpop.f32.mrf.mxu3  ;;  %v15402_v3 = vpop.f32.mrf.mxu0 }
 0x99a   :  { %v15404_v11 = vpop.f32.mrf.mxu2 }
 0x9a0   :  { %v3097_v21 = vpop.f32.mrf.mxu1 }
 0x9a1   :  { %10827 = vmatmul.msk.f32.gmra.mxu3 %vm3252_vm2, %v3097_v21  ;;  %v15406_v1 = vpop.f32.mrf.mxu3 }
 0x9a2   :  { %17882 = vst [vmem:[#allocation127_spill] sm:$0xff] %v15406_v1  ;;  %v15411_v21 = vpop.f32.mrf.mxu2 }
 0x9a3   :  { %3136 = vmatmul.bf16.gmra.mxu1 %v12025_v2  ;;  %v15409_v2 = vpop.f32.mrf.mxu0 }
 0x9a8   :  { %v3099_v61 = vpop.f32.mrf.mxu1 }
 0x9a9   :  { %10828 = vmatmul.msk.f32.gmra.mxu3 %vm3252_vm2, %v3099_v61  ;;  %v12027_v61 = vld [vmem:[%s17458_s3 + $0x5b8] sm:$0xff]  ;;  %v15417_v44 = vpop.f32.mrf.mxu3 }
 0x9b0   :  { %v3102_v28 = vpop.f32.mrf.mxu1 }
 0x9b1   :  { %10829 = vmatmul.msk.f32.gmra.mxu3 %vm3252_vm2, %v3102_v28  ;;  %v15421_v28 = vpop.f32.mrf.mxu2 }
 0x9b3   :  { %3141 = vmatmul.bf16.gmra.mxu1 %v12026_v13  ;;  %v15419_v13 = vpop.f32.mrf.mxu0 }
 0x9b8   :  { %v3104_v51 = vpop.f32.mrf.mxu1 }
 0x9b9   :  { %10830 = vmatmul.msk.f32.gmra.mxu3 %vm3252_vm2, %v3104_v51  ;;  %v15424_v51 = vpop.f32.mrf.mxu3 }
 0x9ba   :  { %17883 = vst [vmem:[#allocation63_spill] sm:$0xff] %v15424_v51 }
 0x9bb   :  { %v15429_v56 = vpop.f32.mrf.mxu0 }
 0x9c0   :  { %v3107_v32 = vpop.f32.mrf.mxu1 }
 0x9c1   :  { %10831 = vmatmul.msk.f32.gmra.mxu3 %vm3252_vm2, %v3107_v32  ;;  %v15432_v32 = vpop.f32.mrf.mxu2 }
 0x9c2   :  { %17884 = vst [vmem:[#allocation16_spill] sm:$0xff] %v15432_v32 }
 0x9c3   :  { %3146 = vmatmul.bf16.gmra.mxu1 %v12027_v61 }
 0x9c8   :  { %v3109_v25 = vpop.f32.mrf.mxu1 }
 0x9c9   :  { %10832 = vmatmul.msk.f32.gmra.mxu3 %vm3252_vm2, %v3109_v25  ;;  %v15437_v25 = vpop.f32.mrf.mxu0  ;;  %v15439_v51 = vpop.f32.mrf.mxu2 }
 0x9d0   :  { %v3112_v39 = vpop.f32.mrf.mxu1 }
 0x9d1   :  { %10841 = vmatmul.msk.f32.vlgmr.msra.gmra.mxu0 %vm3252_vm2, %v3112_v39  ;;  %v15447_v39 = vpop.f32.mrf.mxu0  ;;  %v15451_v30 = vpop.f32.mrf.mxu2 }
 0x9d3   :  { %3151 = vmatmul.bf16.gmra.mxu1 %v12028_v6 }
 0x9d4   :  { %v15434_v61 = vpop.f32.mrf.mxu3 }
 0x9d8   :  { %v3114_v29 = vpop.f32.mrf.mxu1 }
 0x9d9   :  { %10842 = vmatmul.msk.f32.gmra.mxu0 %vm3252_vm2, %v3114_v29  ;;  %v15456_v42 = vpop.f32.mrf.mxu0  ;;  %v15461_v41 = vpop.f32.mrf.mxu2 }
 0x9dc   :  { %v15441_v36 = vpop.f32.mrf.mxu3 }
 0x9e0   :  { %v3117_v40 = vpop.f32.mrf.mxu1 }
 0x9e1   :  { %10843 = vmatmul.msk.f32.gmra.mxu0 %vm3252_vm2, %v3117_v40  ;;  %v15466_v33 = vpop.f32.mrf.mxu0 }
 0x9e2   :  { %17886 = vst [vmem:[#allocation42_spill] sm:$0xff] %v15466_v33 }
 0x9e3   :  { %3156 = vmatmul.bf16.gmra.mxu1 %v12029_v17 }
 0x9e4   :  { %v15449_v6 = vpop.f32.mrf.mxu3 }
 0x9e8   :  { %v3119_v29 = vpop.f32.mrf.mxu1 }
 0x9e9   :  { %10844 = vmatmul.msk.f32.gmra.mxu0 %vm3252_vm2, %v3119_v29  ;;  %v15469_v29 = vpop.f32.mrf.mxu2 }
 0x9ea   :  { %17887 = vst [vmem:[#allocation93_spill] sm:$0xff] %v15469_v29 }
 0x9ec   :  { %v15454_v1 = vpop.f32.mrf.mxu3 }
 0x9ed   :  { %17885 = vst [vmem:[#allocation37_spill] sm:$0xff] %v15454_v1  ;;  %v5385_v1 = vadd.f32 %v15137_v49, %v15106_v19 }
 0x9ef   :  { %v5522_v29 = vadd.f32 %v15318_v46, %v5385_v1 }
 0x9f0   :  { %v3122_v40 = vpop.f32.mrf.mxu1 }
 0x9f1   :  { %10845 = vmatmul.msk.f32.gmra.mxu0 %vm3252_vm2, %v3122_v40  ;;  %v5901_v40 = vpop.f32.mrf.mxu0  ;;  %v5659_v32 = vadd.f32 %v15320_v15, %v5522_v29 }
 0x9f3   :  { %3161 = vmatmul.bf16.gmra.mxu1 %v12030_v24  ;;  %v6038_v24 = vpop.f32.mrf.mxu2 }
 0x9f4   :  { %v15464_v17 = vpop.f32.mrf.mxu3 }
 0x9f8   :  { %v3124_v20 = vpop.f32.mrf.mxu1 }
 0x9f9   :  { %10846 = vmatmul.msk.f32.gmra.mxu0 %vm3252_vm2, %v3124_v20  ;;  %v15484_v33 = vpop.f32.mrf.mxu0 }
 0x9fa   :  { %17888 = vst [vmem:[#allocation55_spill] sm:$0xff] %v15484_v33 }
 0x9fc   :  { %v15471_v63 = vpop.f32.mrf.mxu3 }
 0xa00   :  { %v3127_v43 = vpop.f32.mrf.mxu1 }
 0xa01   :  { %10847 = vmatmul.msk.f32.gmra.mxu0 %vm3252_vm2, %v3127_v43  ;;  %v15488_v43 = vpop.f32.mrf.mxu2  ;;  %v5907_v29 = vpop.f32.mrf.mxu0 }
 0xa02   :  { %17889 = vst [vmem:[#allocation141_spill] sm:$0xff] %v15488_v43 }
 0xa03   :  { %3166 = vmatmul.bf16.gmra.mxu1 %v12031_v62  ;;  %v5796_v62 = vadd.f32 %v15354_v14, %v5659_v32 }
 0xa04   :  { %v15477_v45 = vpop.f32.mrf.mxu3 }
 0xa05   :  { %v5933_v49 = vadd.f32 %v5901_v40, %v5796_v62 }
 0xa07   :  { %v6070_v46 = vadd.f32 %v6038_v24, %v5933_v49 }
 0xa08   :  { %v3129_v20 = vpop.f32.mrf.mxu1 }
 0xa09   :  { %10848 = vmatmul.msk.f32.gmra.mxu0 %vm3252_vm2, %v3129_v20  ;;  %v5387_v20 = vadd.f32 %v15182_v54, %v15135_v35  ;;  %v6044_v43 = vpop.f32.mrf.mxu2  ;;  %v15508_v62 = vpop.f32.mrf.mxu0 }
 0xa0b   :  { %v5524_v14 = vadd.f32 %v15337_v34, %v5387_v20 }
 0xa0c   :  { %v15486_v12 = vpop.f32.mrf.mxu3 }
 0xa0d   :  { %v5661_v32 = vadd.f32 %v15339_v58, %v5524_v14 }
 0xa0f   :  { %v5798_v24 = vadd.f32 %v15373_v50, %v5661_v32  ;;  %v5389_v50 = vadd.f32 %v15219_v59, %v15174_v22  ;;  %v12090_v22 = vld [vmem:[%s17459_s4 + $0x170] sm:$0xff] }
 0xa10   :  { %v3132_v19 = vpop.f32.mrf.mxu1 }
 0xa11   :  { %10849 = vmatmul.msk.f32.gmra.mxu0 %vm3252_vm2, %v3132_v19  ;;  %v5935_v35 = vadd.f32 %v5907_v29, %v5798_v24  ;;  %v15511_v54 = vpop.f32.mrf.mxu2  ;;  %v5913_v29 = vpop.f32.mrf.mxu0 }
 0xa13   :  { %3171 = vmatmul.bf16.gmra.mxu1 %v12032_v57  ;;  %v12033_v57 = vld [vmem:[%s17458_s3 + $0x5e8] sm:$0xff]  ;;  %v6072_v34 = vadd.f32 %v6044_v43, %v5935_v35 }
 0xa14   :  { %v6175_v1 = vpop.f32.mrf.mxu3 }
 0xa15   :  { %v15495_v15 = vadd.f32 %v6175_v1, %v6070_v46  ;;  %v12091_v46 = vld [vmem:[%s17459_s4 + $0x178] sm:$0xff]  ;;  %v5526_v1 = vadd.f32 %v15358_v9, %v5389_v50  ;;  %v12034_v9 = vld [vmem:[%s17458_s3 + $0x5f0] sm:$0xff] }
 0xa16   :  { %6422 = vmatpush.bf16.msra.mxu2 %v12091_v46 }
 0xa17   :  { %v5663_v43 = vadd.f32 %v15360_v60, %v5526_v1 }
 0xa18   :  { %v3134_v33 = vpop.f32.mrf.mxu1 }
 0xa19   :  { %10850 = vmatmul.msk.f32.gmra.mxu0 %vm3252_vm2, %v3134_v33  ;;  %v6050_v20 = vpop.f32.mrf.mxu2  ;;  %v5800_v59 = vadd.f32 %v15396_v55, %v5663_v43  ;;  %v15533_v60 = vpop.f32.mrf.mxu0  ;;  %v5391_v55 = vadd.f32 %v15249_v8, %v15205_v31  ;;  %v12035_v43 = vld [vmem:[%s17458_s3 + $0x5f8] sm:$0xff] }
 0xa1a   :  { %6423 = vmatpush.bf16.msra.mxu2 %v12090_v22 }
 0xa1b   :  { %v5937_v24 = vadd.f32 %v5913_v29, %v5800_v59  ;;  %v5528_v50 = vadd.f32 %v15375_v53, %v5391_v55  ;;  %v12038_v55 = vld [vmem:[%s17458_s3 + $0x610] sm:$0xff] }
 0xa1c   :  { %v15502_v40 = vpop.f32.mrf.mxu3 }
 0xa20   :  { %v3137_v19 = vpop.f32.mrf.mxu1 }
 0xa21   :  { %10851 = vmatmul.msk.f32.gmra.mxu0 %vm3252_vm2, %v3137_v19  ;;  %v5919_v1 = vpop.f32.mrf.mxu0 }
 0xa23   :  { %3176 = vmatmul.bf16.gmra.mxu1 %v12033_v57  ;;  %v6074_v57 = vadd.f32 %v6050_v20, %v5937_v24  ;;  %v12037_v24 = vld [vmem:[%s17458_s3 + $0x608] sm:$0xff] }
 0xa24   :  { %v6181_v33 = vpop.f32.mrf.mxu3 }
 0xa25   :  { %v15513_v58 = vadd.f32 %v6181_v33, %v6072_v34  ;;  %v15537_v34 = vpop.f32.mrf.mxu2 }
 0xa28   :  { %v3139_v49 = vpop.f32.mrf.mxu1 }
 0xa29   :  { %10852 = vmatmul.msk.f32.gmra.mxu0 %vm3252_vm2, %v3139_v49  ;;  %v5665_v49 = vadd.f32 %v15380_v23, %v5528_v50 }
 0xa2b   :  { %v5802_v29 = vadd.f32 %v15417_v44, %v5665_v49  ;;  %v12036_v44 = vld [vmem:[%s17458_s3 + $0x600] sm:$0xff]  ;;  %v12039_v49 = vld [vmem:[%s17458_s3 + $0x618] sm:$0xff] }
 0xa2c   :  { %v15523_v14 = vpop.f32.mrf.mxu3 }
 0xa2d   :  { %17890 = vst [vmem:[#allocation66_spill] sm:$0xff] %v15523_v14  ;;  %v6056_v20 = vpop.f32.mrf.mxu2  ;;  %v5939_v59 = vadd.f32 %v5919_v1, %v5802_v29 }
 0xa2f   :  { %v6076_v31 = vadd.f32 %v6056_v20, %v5939_v59  ;;  %v12041_v59 = vld [vmem:[%s17458_s3 + $0x628] sm:$0xff] }
 0xa30   :  { %v3142_v32 = vpop.f32.mrf.mxu1 }
 0xa31   :  { %10853 = vmatmul.msk.f32.gmra.mxu0 %vm3252_vm2, %v3142_v32 }
 0xa33   :  { %3181 = vmatmul.bf16.gmra.mxu1 %v12034_v9 }
 0xa34   :  { %v6187_v19 = vpop.f32.mrf.mxu3 }
 0xa35   :  { %v15535_v35 = vadd.f32 %v6187_v19, %v6074_v57 }
 0xa38   :  { %v3144_v33 = vpop.f32.mrf.mxu1 }
 0xa39   :  { %10854 = vmatmul.msk.f32.gmra.mxu0 %vm3252_vm2, %v3144_v33 }
 0xa3c   :  { %v15544_v46 = vpop.f32.mrf.mxu3 }
 0xa40   :  { %v3147_v22 = vpop.f32.mrf.mxu1 }
 0xa41   :  { %10855 = vmatmul.msk.f32.gmra.mxu0 %vm3252_vm2, %v3147_v22 }
 0xa43   :  { %3186 = vmatmul.bf16.gmra.mxu1 %v12035_v43  ;;  %v12040_v43 = vld [vmem:[%s17458_s3 + $0x620] sm:$0xff] }
 0xa44   :  { %v6193_v8 = vpop.f32.mrf.mxu3 }
 0xa45   :  { %v15551_v53 = vadd.f32 %v6193_v8, %v6076_v31 }
 0xa48   :  { %v3149_v23 = vpop.f32.mrf.mxu1 }
 0xa49   :  { %10856 = vmatmul.msk.f32.gmra.mxu0 %vm3252_vm2, %v3149_v23  ;;  %v12093_v23 = vld [vmem:[%s17459_s4 + $0x188] sm:$0xff] }
 0xa4a   :  { %6559 = vmatpush.bf16.msrb.mxu3 %v12093_v23  ;;  %v15611_v23 = vpop.f32.mrf.mxu0 }
 0xa50   :  { %v3152_v9 = vpop.f32.mrf.mxu1 }
 0xa51   :  { %10865 = vmatmul.msk.f32.vlgmr.msra.gmra.mxu2 %vm3252_vm2, %v3152_v9  ;;  %v12042_v9 = vld [vmem:[%s17458_s3 + $0x630] sm:$0xff] }
 0xa53   :  { %3191 = vmatmul.bf16.gmra.mxu1 %v12036_v44  ;;  %v12092_v44 = vld [vmem:[%s17459_s4 + $0x180] sm:$0xff] }
 0xa54   :  { %6560 = vmatpush.bf16.msrb.mxu3 %v12092_v44 }
 0xa58   :  { %v3154_v32 = vpop.f32.mrf.mxu1 }
 0xa59   :  { %10866 = vmatmul.msk.f32.gmra.mxu2 %vm3252_vm2, %v3154_v32 }
 0xa60   :  { %v3157_v57 = vpop.f32.mrf.mxu1 }
 0xa61   :  { %10867 = vmatmul.msk.f32.gmra.mxu2 %vm3252_vm2, %v3157_v57  ;;  %v12043_v57 = vld [vmem:[%s17458_s3 + $0x638] sm:$0xff] }
 0xa63   :  { %3196 = vmatmul.bf16.gmra.mxu1 %v12037_v24 }
 0xa68   :  { %v3159_v19 = vpop.f32.mrf.mxu1 }
 0xa69   :  { %10868 = vmatmul.msk.f32.gmra.mxu2 %vm3252_vm2, %v3159_v19 }
 0xa70   :  { %v3162_v33 = vpop.f32.mrf.mxu1 }
 0xa71   :  { %10869 = vmatmul.msk.f32.gmra.mxu2 %vm3252_vm2, %v3162_v33 }
 0xa73   :  { %3201 = vmatmul.bf16.gmra.mxu1 %v12038_v55 }
 0xa78   :  { %v3164_v50 = vpop.f32.mrf.mxu1 }
 0xa79   :  { %10870 = vmatmul.msk.f32.gmra.mxu2 %vm3252_vm2, %v3164_v50 }
 0xa80   :  { %v3167_v1 = vpop.f32.mrf.mxu1 }
 0xa81   :  { %10871 = vmatmul.msk.f32.gmra.mxu2 %vm3252_vm2, %v3167_v1 }
 0xa83   :  { %3206 = vmatmul.bf16.gmra.mxu1 %v12039_v49 }
 0xa88   :  { %v3169_v29 = vpop.f32.mrf.mxu1 }
 0xa89   :  { %10872 = vmatmul.msk.f32.gmra.mxu2 %vm3252_vm2, %v3169_v29 }
 0xa90   :  { %v3172_v20 = vpop.f32.mrf.mxu1 }
 0xa91   :  { %10873 = vmatmul.msk.f32.gmra.mxu2 %vm3252_vm2, %v3172_v20 }
 0xa93   :  { %3211 = vmatmul.bf16.gmra.mxu1 %v12040_v43 }
 0xa98   :  { %v3174_v22 = vpop.f32.mrf.mxu1 }
 0xa99   :  { %10874 = vmatmul.msk.f32.gmra.mxu2 %vm3252_vm2, %v3174_v22 }
 0xaa0   :  { %v3177_v31 = vpop.f32.mrf.mxu1 }
 0xaa1   :  { %10875 = vmatmul.msk.f32.gmra.mxu2 %vm3252_vm2, %v3177_v31 }
 0xaa3   :  { %3216 = vmatmul.bf16.gmra.mxu1 %v12041_v59 }
 0xaa8   :  { %v3179_v8 = vpop.f32.mrf.mxu1 }
 0xaa9   :  { %10876 = vmatmul.msk.f32.gmra.mxu2 %vm3252_vm2, %v3179_v8 }
 0xab0   :  { %v3182_v32 = vpop.f32.mrf.mxu1 }
 0xab1   :  { %10877 = vmatmul.msk.f32.gmra.mxu2 %vm3252_vm2, %v3182_v32  ;;  %v6288_v32 = vpop.f32.mrf.mxu0 }
 0xab3   :  { %3221 = vmatmul.bf16.gmra.mxu1 %v12042_v9  ;;  %v15614_v9 = vpop.f32.mrf.mxu2 }
 0xab4   :  { %17891 = vst [vmem:[#allocation130_spill] sm:$0xff] %v15614_v9 }
 0xab8   :  { %v3184_v24 = vpop.f32.mrf.mxu1 }
 0xab9   :  { %10878 = vmatmul.msk.f32.gmra.mxu2 %vm3252_vm2, %v3184_v24 }
 0xac0   :  { %v3187_v19 = vpop.f32.mrf.mxu1 }
 0xac1   :  { %10879 = vmatmul.msk.f32.gmra.mxu2 %vm3252_vm2, %v3187_v19 }
 0xac3   :  { %3226 = vmatmul.bf16.gmra.mxu1 %v12043_v57 }
 0xac8   :  { %v3189_v55 = vpop.f32.mrf.mxu1 }
 0xac9   :  { %10880 = vmatmul.msk.f32.gmra.mxu2 %vm3252_vm2, %v3189_v55  ;;  %v6291_v55 = vpop.f32.mrf.mxu0 }
 0xad0   :  { %v3192_v33 = vpop.f32.mrf.mxu1 }
 0xad1   :  { %10889 = vmatmul.msk.f32.vlgmr.msrb.gmra.mxu3 %vm3252_vm2, %v3192_v33 }
 0xad4   :  { %v6425_v57 = vpop.f32.mrf.mxu2 }
 0xad8   :  { %v3194_v50 = vpop.f32.mrf.mxu1 }
 0xad9   :  { %10890 = vmatmul.msk.f32.gmra.mxu3 %vm3252_vm2, %v3194_v50 }
 0xadc   :  { %v6428_v33 = vpop.f32.mrf.mxu2 }
 0xae0   :  { %v3197_v49 = vpop.f32.mrf.mxu1 }
 0xae1   :  { %10891 = vmatmul.msk.f32.gmra.mxu3 %vm3252_vm2, %v3197_v49  ;;  %v6294_v49 = vpop.f32.mrf.mxu0 }
 0xae8   :  { %v3199_v1 = vpop.f32.mrf.mxu1 }
 0xae9   :  { %10892 = vmatmul.msk.f32.gmra.mxu3 %vm3252_vm2, %v3199_v1  ;;  %v6431_v1 = vpop.f32.mrf.mxu2 }
 0xaf0   :  { %v3202_v29 = vpop.f32.mrf.mxu1 }
 0xaf1   :  { %10893 = vmatmul.msk.f32.gmra.mxu3 %vm3252_vm2, %v3202_v29 }
 0xaf8   :  { %v3204_v43 = vpop.f32.mrf.mxu1 }
 0xaf9   :  { %10894 = vmatmul.msk.f32.gmra.mxu3 %vm3252_vm2, %v3204_v43  ;;  %v5788_v43 = vadd.f32 %v15277_v27, %v15232_v52  ;;  %v5790_v52 = vadd.f32 %v15296_v16, %v15254_v0 }
 0xb00   :  { %v3207_v20 = vpop.f32.mrf.mxu1 }
 0xb01   :  { %10895 = vmatmul.msk.f32.gmra.mxu3 %vm3252_vm2, %v3207_v20  ;;  %v5925_v20 = vadd.f32 %v15402_v3, %v5788_v43  ;;  %v5927_v3 = vadd.f32 %v15419_v13, %v5790_v52 }
 0xb08   :  { %v3209_v22 = vpop.f32.mrf.mxu1 }
 0xb09   :  { %10896 = vmatmul.msk.f32.gmra.mxu3 %vm3252_vm2, %v3209_v22  ;;  %v15623_v22 = vpop.f32.mrf.mxu3 }
 0xb0a   :  { %17892 = vst [vmem:[#allocation17_spill] sm:$0xff] %v15623_v22 }
 0xb10   :  { %v3212_v59 = vpop.f32.mrf.mxu1 }
 0xb11   :  { %10897 = vmatmul.msk.f32.gmra.mxu3 %vm3252_vm2, %v3212_v59  ;;  %v6062_v59 = vadd.f32 %v15404_v11, %v5925_v20  ;;  %v6064_v11 = vadd.f32 %v15421_v28, %v5927_v3  ;;  %v5789_v28 = vadd.f32 %v15287_v5, %v15242_v26 }
 0xb13   :  { %v6201_v43 = vadd.f32 %v15449_v6, %v6064_v11 }
 0xb15   :  { %v6338_v20 = vadd.f32 %v6294_v49, %v6201_v43  ;;  %v5926_v49 = vadd.f32 %v15409_v2, %v5789_v28 }
 0xb18   :  { %v3214_v31 = vpop.f32.mrf.mxu1 }
 0xb19   :  { %10898 = vmatmul.msk.f32.gmra.mxu3 %vm3252_vm2, %v3214_v31  ;;  %v15626_v31 = vpop.f32.mrf.mxu0 }
 0xb20   :  { %v3217_v8 = vpop.f32.mrf.mxu1 }
 0xb21   :  { %10899 = vmatmul.msk.f32.gmra.mxu3 %vm3252_vm2, %v3217_v8  ;;  %v6199_v8 = vadd.f32 %v15434_v61, %v6062_v59  ;;  %v6300_v9 = vpop.f32.mrf.mxu0  ;;  %v6475_v59 = vadd.f32 %v6431_v1, %v6338_v20  ;;  %v5793_v1 = vadd.f32 %v15322_v47, %v15282_v48 }
 0xb28   :  { %v3219_v44 = vpop.f32.mrf.mxu1 }
 0xb29   :  { %10900 = vmatmul.msk.f32.gmra.mxu3 %vm3252_vm2, %v3219_v44  ;;  %v15629_v44 = vpop.f32.mrf.mxu2  ;;  %v6303_v61 = vpop.f32.mrf.mxu0 }
 0xb30   :  { %v3222_v24 = vpop.f32.mrf.mxu1 }
 0xb31   :  { %10901 = vmatmul.msk.f32.gmra.mxu3 %vm3252_vm2, %v3222_v24  ;;  %v6336_v24 = vadd.f32 %v6288_v32, %v6199_v8  ;;  %v6437_v27 = vpop.f32.mrf.mxu2  ;;  %v5792_v8 = vadd.f32 %v15311_v18, %v15275_v38  ;;  %v6306_v0 = vpop.f32.mrf.mxu0  ;;  %v5930_v38 = vadd.f32 %v15447_v39, %v5793_v1  ;;  %v6063_v18 = vadd.f32 %v15411_v21, %v5926_v49  ;;  %v17897_v49 = vld [vmem:[#allocation93_spill] sm:$0xff] }
 0xb33   :  { %v6067_v26 = vadd.f32 %v15451_v30, %v5930_v38  ;;  %v6200_v5 = vadd.f32 %v15441_v36, %v6063_v18 }
 0xb35   :  { %v6204_v48 = vadd.f32 %v15471_v63, %v6067_v26  ;;  %v6337_v47 = vadd.f32 %v6291_v55, %v6200_v5 }
 0xb37   :  { %v6341_v3 = vadd.f32 %v6303_v61, %v6204_v48  ;;  %v6474_v11 = vadd.f32 %v6428_v33, %v6337_v47 }
 0xb38   :  { %v3224_v19 = vpop.f32.mrf.mxu1 }
 0xb39   :  { %10902 = vmatmul.msk.f32.gmra.mxu3 %vm3252_vm2, %v3224_v19  ;;  %v6473_v19 = vadd.f32 %v6425_v57, %v6336_v24  ;;  %v6440_v22 = vpop.f32.mrf.mxu2  ;;  %v5929_v24 = vadd.f32 %v15437_v25, %v5792_v8 }
 0xb3a   :  { %v6478_v43 = vadd.f32 %v6440_v22, %v6341_v3  ;;  %v17893_v22 = vld [vmem:[#allocation137_spill] sm:$0xff] }
 0xb3b   :  { %v6066_v13 = vadd.f32 %v15439_v51, %v5929_v24  ;;  %v15651_v51 = vld [vmem:[%s17460_s5] ss:$0 sm:$0xff] }
 0xb3d   :  { %v6203_v6 = vadd.f32 %v15464_v17, %v6066_v13  ;;  %v6309_v17 = vpop.f32.mrf.mxu0 }
 0xb40   :  { %v3227_v50 = vpop.f32.mrf.mxu1 }
 0xb41   :  { %10903 = vmatmul.msk.f32.gmra.mxu3 %vm3252_vm2, %v3227_v50 }
 0xb45   :  { %v6312_v33 = vpop.f32.mrf.mxu0 }
 0xb48   :  { %v3229_v29 = vpop.f32.mrf.mxu1 }
 0xb49   :  { %10904 = vmatmul.msk.f32.gmra.mxu3 %vm3252_vm2, %v3229_v29 }
 0xb54   :  { %v6562_v50 = vpop.f32.mrf.mxu3 }
 0xb55   :  { %v6610_v14 = vadd.f32 %v6562_v50, %v6473_v19  ;;  %v6443_v19 = vpop.f32.mrf.mxu2  ;;  %v6340_v50 = vadd.f32 %v6300_v9, %v6203_v6 }
 0xb57   :  { %v6477_v25 = vadd.f32 %v6437_v27, %v6340_v50  ;;  %v15657_v39 = vadd.f32 %v15651_v51, %v6610_v14  ;;  %v5794_v27 = vadd.f32 %v15335_v7, %v15292_v37  ;;  %v17898_v50 = vld [vmem:[#allocation37_spill] sm:$0xff] }
 0xb59   :  { %v5931_v36 = vadd.f32 %v15456_v42, %v5794_v27 }
 0xb5b   :  { %v6068_v14 = vadd.f32 %v15461_v41, %v5931_v36 }
 0xb5c   :  { %v6565_v29 = vpop.f32.mrf.mxu3 }
 0xb5d   :  { %v6446_v9 = vpop.f32.mrf.mxu2  ;;  %v6611_v63 = vadd.f32 %v6565_v29, %v6474_v11  ;;  %v17894_v29 = vld [vmem:[#allocation12_spill] sm:$0xff] }
 0xb5e   :  { %v5795_v61 = vadd.f32 %v17894_v29, %v17893_v22  ;;  %v17902_v22 = vld [vmem:[#allocation133_spill] sm:$0xff]  ;;  %v17903_v29 = vld [vmem:[#allocation14_spill] sm:$0xff] }
 0xb5f   :  { %v15672_v37 = vadd.f32 %v15651_v51, %v6611_v63 }
 0xb64   :  { %v6568_v32 = vpop.f32.mrf.mxu3 }
 0xb65   :  { %v6612_v57 = vadd.f32 %v6568_v32, %v6475_v59  ;;  %v5791_v59 = vadd.f32 %v15307_v10, %v15267_v4  ;;  %v6205_v32 = vadd.f32 %v15477_v45, %v6068_v14  ;;  %v6449_v24 = vpop.f32.mrf.mxu2  ;;  %v17895_v4 = vld [vmem:[#allocation42_spill] sm:$0xff]  ;;  %v17896_v45 = vld [vmem:[#allocation16_spill] sm:$0xff]  ;;  %v17900_v14 = vld [vmem:[#allocation11_spill] sm:$0xff] }
 0xb66   :  { %v5932_v10 = vadd.f32 %v17895_v4, %v5795_v61  ;;  %v5390_v61 = vadd.f32 %v17903_v29, %v17902_v22  ;;  %v17904_v4 = vld [vmem:[#allocation35_spill] sm:$0xff]  ;;  %v17911_v29 = vld [vmem:[#allocation36_spill] sm:$0xff] }
 0xb67   :  { %v5928_v42 = vadd.f32 %v15429_v56, %v5791_v59  ;;  %v6342_v8 = vadd.f32 %v6306_v0, %v6205_v32  ;;  %v15689_v0 = vadd.f32 %v15651_v51, %v6612_v57  ;;  %v17901_v32 = vld [vmem:[#allocation88_spill] sm:$0xff] }
 0xb68   :  { %v6069_v1 = vadd.f32 %v17897_v49, %v5932_v10  ;;  %v5527_v10 = vadd.f32 %v17904_v4, %v5390_v61  ;;  %v17912_v61 = vld [vmem:[#allocation120_spill] sm:$0xff] }
 0xb69   :  { %v6065_v13 = vadd.f32 %v17896_v45, %v5928_v42  ;;  %v6479_v28 = vadd.f32 %v6443_v19, %v6342_v8  ;;  %v17905_v45 = vld [vmem:[#allocation38_spill] sm:$0xff]  ;;  %v5388_v4 = vadd.f32 %v17912_v61, %v17911_v29 }
 0xb6a   :  { %v6206_v56 = vadd.f32 %v15486_v12, %v6069_v1  ;;  %v17907_v1 = vld [vmem:[#allocation15_spill] sm:$0xff]  ;;  %v17921_v29 = vld [vmem:[#allocation130_spill] sm:$0xff] }
 0xb6b   :  { %v6202_v38 = vadd.f32 %v17898_v50, %v6065_v13 }
 0xb6c   :  { %v6571_v16 = vpop.f32.mrf.mxu3  ;;  %v6343_v26 = vadd.f32 %v6309_v17, %v6206_v56 }
 0xb6d   :  { %v6452_v27 = vpop.f32.mrf.mxu2 }
 0xb6e   :  { %v6480_v48 = vadd.f32 %v6446_v9, %v6343_v26 }
 0xb74   :  { %v6574_v52 = vpop.f32.mrf.mxu3 }
 0xb75   :  { %v6614_v2 = vadd.f32 %v6574_v52, %v6477_v25  ;;  %v6339_v25 = vadd.f32 %v15626_v31, %v6202_v38  ;;  %v6455_v36 = vpop.f32.mrf.mxu2  ;;  %v6344_v38 = vadd.f32 %v6312_v33, %v15495_v15 }
 0xb77   :  { %v15660_v21 = vadd.f32 %v15651_v51, %v6614_v2  ;;  %v6476_v5 = vadd.f32 %v15629_v44, %v6339_v25  ;;  %v6315_v2 = vpop.f32.mrf.mxu0  ;;  %v17909_v25 = vld [vmem:[#allocation127_spill] sm:$0xff] }
 0xb79   :  { %v6646_v30 = vmax.f32 %v15657_v39, %v15660_v21  ;;  %v6613_v47 = vadd.f32 %v6571_v16, %v6476_v5 }
 0xb7b   :  { %v15698_v31 = vadd.f32 %v15651_v51, %v6613_v47 }
 0xb7c   :  { %v6577_v55 = vpop.f32.mrf.mxu3 }
 0xb7d   :  { %v6615_v20 = vadd.f32 %v6577_v55, %v6478_v43  ;;  %v15707_v9 = vpop.f32.mrf.mxu2  ;;  %v17899_v55 = vld [vmem:[#allocation85_spill] sm:$0xff] }
 0xb7f   :  { %v15675_v7 = vadd.f32 %v15651_v51, %v6615_v20  ;;  %v6318_v11 = vpop.f32.mrf.mxu0  ;;  %v5386_v20 = vadd.f32 %v17900_v14, %v17899_v55 }
 0xb81   :  { %v6647_v41 = vmax.f32 %v15672_v37, %v15675_v7  ;;  %v5523_v42 = vadd.f32 %v17901_v32, %v5386_v20 }
 0xb83   :  { %v5660_v13 = vadd.f32 %v17905_v45, %v5523_v42  ;;  %v17915_v45 = vld [vmem:[#allocation124_spill] sm:$0xff] }
 0xb84   :  { %v6580_v6 = vpop.f32.mrf.mxu3 }
 0xb85   :  { %v6616_v18 = vadd.f32 %v6580_v6, %v6479_v28  ;;  %v6461_v8 = vpop.f32.mrf.mxu2  ;;  %v17906_v6 = vld [vmem:[#allocation90_spill] sm:$0xff]  ;;  %v5797_v50 = vadd.f32 %v17907_v1, %v5660_v13  ;;  %v5525_v13 = vadd.f32 %v17915_v45, %v5388_v4 }
 0xb86   :  { %v5664_v49 = vadd.f32 %v17906_v6, %v5527_v10  ;;  %v17913_v10 = vld [vmem:[#allocation58_spill] sm:$0xff] }
 0xb87   :  { %v15692_v52 = vadd.f32 %v15651_v51, %v6616_v18  ;;  %v15705_v63 = vpop.f32.mrf.mxu0  ;;  %v17908_v18 = vld [vmem:[#allocation55_spill] sm:$0xff]  ;;  %v17922_v4 = vld [vmem:[#allocation66_spill] sm:$0xff] }
 0xb88   :  { %v5934_v56 = vadd.f32 %v17908_v18, %v5797_v50  ;;  %v5801_v26 = vadd.f32 %v17909_v25, %v5664_v49  ;;  %v17917_v50 = vld [vmem:[#allocation60_spill] sm:$0xff] }
 0xb89   :  { %v6648_v19 = vmax.f32 %v15689_v0, %v15692_v52  ;;  %v12094_v0 = vld [vmem:[%s17461_s6] sm:$0xff] }
 0xb8c   :  { %v6583_v3 = vpop.f32.mrf.mxu3 }
 0xb8d   :  { %v6617_v12 = vadd.f32 %v6583_v3, %v6480_v48  ;;  %v6481_v48 = vadd.f32 %v6449_v24, %v6344_v38  ;;  %v5938_v3 = vadd.f32 %v15533_v60, %v5801_v26  ;;  %v6464_v32 = vpop.f32.mrf.mxu2  ;;  %v5662_v38 = vadd.f32 %v17917_v50, %v5525_v13  ;;  %v12101_v50 = vld [vmem:[%s17461_s6 + $0x38] sm:$0xff] }
 0xb8f   :  { %v15701_v57 = vadd.f32 %v15651_v51, %v6617_v12  ;;  %v6324_v59 = vpop.f32.mrf.mxu0  ;;  %v17910_v12 = vld [vmem:[#allocation141_spill] sm:$0xff]  ;;  %v6075_v22 = vadd.f32 %v15537_v34, %v5938_v3 }
 0xb90   :  { %v6348_v5 = vadd.f32 %v6324_v59, %v15535_v35  ;;  %v6071_v55 = vadd.f32 %v17910_v12, %v5934_v56  ;;  %v17919_v12 = vld [vmem:[#allocation40_spill] sm:$0xff] }
 0xb91   :  { %v6649_v17 = vmax.f32 %v15698_v31, %v15701_v57  ;;  %v6212_v35 = vadd.f32 %v15544_v46, %v6075_v22  ;;  %v12097_v31 = vld [vmem:[%s17461_s6 + $0x18] sm:$0xff]  ;;  %v12098_v57 = vld [vmem:[%s17461_s6 + $0x20] sm:$0xff] }
 0xb92   :  { %v6485_v14 = vadd.f32 %v6461_v8, %v6348_v5  ;;  %v6208_v15 = vadd.f32 %v15502_v40, %v6071_v55  ;;  %v17914_v8 = vld [vmem:[#allocation34_spill] sm:$0xff]  ;;  %v17916_v40 = vld [vmem:[#allocation13_spill] sm:$0xff] }
 0xb94   :  { %v6586_v44 = vpop.f32.mrf.mxu3  ;;  %v6345_v24 = vadd.f32 %v6315_v2, %v6208_v15  ;;  %v17918_v2 = vld [vmem:[#allocation139_spill] sm:$0xff] }
 0xb95   :  { %v6618_v20 = vadd.f32 %v6586_v44, %v6481_v48  ;;  %v5392_v44 = vadd.f32 %v17914_v8, %v17913_v10  ;;  %v6467_v3 = vpop.f32.mrf.mxu2 }
 0xb96   :  { %v6482_v34 = vadd.f32 %v6452_v27, %v6345_v24  ;;  %v6346_v27 = vadd.f32 %v6318_v11, %v15513_v58 }
 0xb97   :  { %v6327_v47 = vpop.f32.mrf.mxu0  ;;  %v6638_v59 = vadd.f32 %v15651_v51, %v6618_v20  ;;  %v5529_v1 = vadd.f32 %v17916_v40, %v5392_v44  ;;  %v17920_v20 = vld [vmem:[#allocation63_spill] sm:$0xff] }
 0xb98   :  { %v6349_v6 = vadd.f32 %v6327_v47, %v6212_v35  ;;  %v5799_v47 = vadd.f32 %v17919_v12, %v5662_v38  ;;  %v6483_v21 = vadd.f32 %v6455_v36, %v6346_v27  ;;  %v12115_v40 = vld [vmem:[%s17462_s7 + $0x18] sm:$0xff]  ;;  %v12122_v12 = vld [vmem:[%s17462_s7 + $0x50] sm:$0xff]  ;;  %v12121_v27 = vld [vmem:[%s17462_s7 + $0x48] sm:$0xff] }
 0xb99   :  { %v5666_v25 = vadd.f32 %v17918_v2, %v5529_v1  ;;  %v12100_v1 = vld [vmem:[%s17461_s6 + $0x30] sm:$0xff]  ;;  %v12119_v38 = vld [vmem:[%s17462_s7 + $0x38] sm:$0xff]  ;;  %v12116_v2 = vld [vmem:[%s17462_s7 + $0x20] sm:$0xff] }
 0xb9a   :  { %v6486_v18 = vadd.f32 %v6464_v32, %v6349_v6  ;;  %v5936_v32 = vadd.f32 %v15508_v62, %v5799_v47  ;;  %7006 = vmatpush.bf16.msrb.mxu2 %v12119_v38 }
 0xb9c   :  { %v6589_v43 = vpop.f32.mrf.mxu3  ;;  %v6073_v22 = vadd.f32 %v15511_v54, %v5936_v32 }
 0xb9d   :  { %v6619_v56 = vadd.f32 %v6589_v43, %v6482_v34  ;;  %v5803_v43 = vadd.f32 %v17920_v20, %v5666_v25 }
 0xb9e   :  { %v6210_v35 = vadd.f32 %v17922_v4, %v6073_v22  ;;  %v12129_v4 = vld [vmem:[%s17462_s7 + $0x88] sm:$0xff] }
 0xb9f   :  { %v6330_v26 = vpop.f32.mrf.mxu0  ;;  %v6639_v55 = vadd.f32 %v15651_v51, %v6619_v56  ;;  %v12117_v56 = vld [vmem:[%s17462_s7 + $0x28] sm:$0xff] }
 0xba0   :  { %v6350_v39 = vadd.f32 %v6330_v26, %v15551_v53  ;;  %v17923_v53 = vld [vmem:[#allocation17_spill] sm:$0xff] }
 0xba2   :  { %v6487_v15 = vadd.f32 %v6467_v3, %v6350_v39  ;;  %v12123_v3 = vld [vmem:[%s17462_s7 + $0x58] sm:$0xff] }
 0xba3   :  { %v12105_v39 = vld [vmem:[%s17461_s6 + $0x58] sm:$0xff] }
 0xba4   :  { %v6592_v16 = vpop.f32.mrf.mxu3 }
 0xba7   :  { %v6333_v24 = vpop.f32.mrf.mxu0 }
 0xbac   :  { %v15716_v28 = vpop.f32.mrf.mxu3 }
 0xbb4   :  { %v6598_v42 = vpop.f32.mrf.mxu3 }
 0xbb5   :  { %v6622_v33 = vadd.f32 %v6598_v42, %v6485_v14  ;;  %v5940_v42 = vadd.f32 %v15611_v23, %v5803_v43  ;;  %v12114_v43 = vld [vmem:[%s17462_s7 + $0x10] sm:$0xff] }
 0xbb7   :  { %v6642_v60 = vadd.f32 %v15651_v51, %v6622_v33  ;;  %v6620_v33 = vadd.f32 %v6592_v16, %v6483_v21  ;;  %v6077_v61 = vadd.f32 %v17921_v29, %v5940_v42  ;;  %v6470_v16 = vpop.f32.mrf.mxu2  ;;  %v12106_v42 = vld [vmem:[%s17461_s6 + $0x60] sm:$0xff]  ;;  %v12130_v29 = vld [vmem:[%s17462_s7 + $0x90] sm:$0xff] }
 0xbb9   :  { %v6650_v49 = vmax.f32 %v6638_v59, %v6642_v60  ;;  %v6214_v36 = vadd.f32 %v17923_v53, %v6077_v61  ;;  %v6347_v59 = vadd.f32 %v15705_v63, %v6210_v35  ;;  %v6640_v23 = vadd.f32 %v15651_v51, %v6620_v33  ;;  %v12107_v33 = vld [vmem:[%s17461_s6 + $0x68] sm:$0xff]  ;;  %v12108_v35 = vld [vmem:[%s17461_s6 + $0x70] sm:$0xff] }
 0xbbb   :  { %v6654_v46 = vmax.f32 %v6646_v30, %v6650_v49  ;;  %v6351_v60 = vadd.f32 %v6333_v24, %v6214_v36  ;;  %v6484_v37 = vadd.f32 %v15707_v9, %v6347_v59  ;;  %v12113_v36 = vld [vmem:[%s17462_s7 + $0x8] sm:$0xff]  ;;  %v12109_v59 = vld [vmem:[%s17461_s6 + $0x78] sm:$0xff] }
 0xbbc   :  { %v6601_v5 = vpop.f32.mrf.mxu3 }
 0xbbd   :  { %v6623_v48 = vadd.f32 %v6601_v5, %v6486_v18  ;;  %v6621_v10 = vadd.f32 %v15716_v28, %v6484_v37  ;;  %v6658_v52 = vmax.f32 %v6654_v46, 0.0  ;;  %v12118_v18 = vld [vmem:[%s17462_s7 + $0x30] sm:$0xff]  ;;  %v12102_v46 = vld [vmem:[%s17461_s6 + $0x40] sm:$0xff]  ;;  %v12103_v5 = vld [vmem:[%s17461_s6 + $0x48] sm:$0xff] }
 0xbbe   :  { %7007 = vmatpush.bf16.msrb.mxu2 %v12118_v18  ;;  %v12142_v18 = vld [vmem:[%s17462_s7 + $0xf0] sm:$0xff] }
 0xbbf   :  { %v6643_v14 = vadd.f32 %v15651_v51, %v6623_v48  ;;  %v6641_v63 = vadd.f32 %v15651_v51, %v6621_v10  ;;  %v12127_v10 = vld [vmem:[%s17462_s7 + $0x78] sm:$0xff] }
 0xbc1   :  { %v6651_v30 = vmax.f32 %v6639_v55, %v6643_v14  ;;  %v12104_v55 = vld [vmem:[%s17461_s6 + $0x50] sm:$0xff]  ;;  %v12120_v14 = vld [vmem:[%s17462_s7 + $0x40] sm:$0xff] }
 0xbc2   :  { %7008 = vmatpush.bf16.msrb.mxu2 %v12117_v56  ;;  %v12147_v56 = vld [vmem:[%s17462_s7 + $0x118] sm:$0xff] }
 0xbc3   :  { %v6655_v58 = vmax.f32 %v6647_v41, %v6651_v30  ;;  %v6488_v41 = vadd.f32 %v6470_v16, %v6351_v60  ;;  %v12112_v16 = vld [vmem:[%s17462_s7] sm:$0xff] }
 0xbc4   :  { %v6604_v11 = vpop.f32.mrf.mxu3  ;;  %v12110_v60 = vld [vmem:[%s17461_s6 + $0x80] sm:$0xff] }
 0xbc5   :  { %v6624_v62 = vadd.f32 %v6604_v11, %v6487_v15  ;;  %v6659_v28 = vmax.f32 %v6655_v58, 0.0  ;;  %v12131_v11 = vld [vmem:[%s17462_s7 + $0x98] sm:$0xff] }
 0xbc6   :  { %7009 = vmatpush.bf16.msrb.mxu2 %v12116_v2  ;;  %v12146_v2 = vld [vmem:[%s17462_s7 + $0x110] sm:$0xff] }
 0xbc7   :  { %v6644_v54 = vadd.f32 %v15651_v51, %v6624_v62  ;;  %v12128_v62 = vld [vmem:[%s17462_s7 + $0x80] sm:$0xff] }
 0xbc9   :  { %v6652_v7 = vmax.f32 %v6640_v23, %v6644_v54 }
 0xbca   :  { %7128 = vmatpush.bf16.msra.mxu2 %v12123_v3 }
 0xbcb   :  { %v6656_v8 = vmax.f32 %v6648_v19, %v6652_v7  ;;  %v12096_v19 = vld [vmem:[%s17461_s6 + $0x10] sm:$0xff] }
 0xbcc   :  { %v6607_v44 = vpop.f32.mrf.mxu3 }
 0xbcd   :  { %v6625_v45 = vadd.f32 %v6607_v44, %v6488_v41  ;;  %v6660_v49 = vmax.f32 %v6656_v8, 0.0  ;;  %v12111_v41 = vld [vmem:[%s17461_s6 + $0x88] sm:$0xff]  ;;  %v12126_v44 = vld [vmem:[%s17462_s7 + $0x70] sm:$0xff] }
 0xbce   :  { %7129 = vmatpush.bf16.msra.mxu2 %v12122_v12 }
 0xbcf   :  { %v6645_v13 = vadd.f32 %v15651_v51, %v6625_v45  ;;  %v12095_v51 = vld [vmem:[%s17461_s6 + $0x8] sm:$0xff]  ;;  %v12139_v45 = vld [vmem:[%s17462_s7 + $0xd8] sm:$0xff] }
 0xbd1   :  { %v6653_v6 = vmax.f32 %v6641_v63, %v6645_v13  ;;  %v12125_v63 = vld [vmem:[%s17462_s7 + $0x68] sm:$0xff]  ;;  %v12138_v13 = vld [vmem:[%s17462_s7 + $0xd0] sm:$0xff] }
 0xbd2   :  { %7130 = vmatpush.bf16.msra.mxu2 %v12121_v27 }
 0xbd3   :  { %v6657_v34 = vmax.f32 %v6649_v17, %v6653_v6  ;;  %v12099_v17 = vld [vmem:[%s17461_s6 + $0x28] sm:$0xff] }
 0xbd5   :  { %v6661_v9 = vmax.f32 %v6657_v34, 0.0  ;;  %v12124_v34 = vld [vmem:[%s17462_s7 + $0x60] sm:$0xff] }
 0xbd6   :  { %7131 = vmatpush.bf16.msra.mxu2 %v12120_v14 }
 0xbd7   :  { %6854 = vmatpush.msra.mxu3 %v6661_v9  ;;  %v12137_v9 = vld [vmem:[%s17462_s7 + $0xc8] sm:$0xff] }
 0xbd9   :  { %6855 = vmatpush.msra.mxu3 %v6660_v49  ;;  %v12136_v49 = vld [vmem:[%s17462_s7 + $0xc0] sm:$0xff] }
 0xbdb   :  { %6856 = vmatpush.msra.mxu3 %v6659_v28 }
 0xbdd   :  { %6857 = vmatpush.msra.mxu3 %v6658_v52  ;;  %v12135_v52 = vld [vmem:[%s17462_s7 + $0xb8] sm:$0xff] }
 0xbde   :  { %10977 = vmatmul.msk.bf16.vlgmr.msra.gmra.mxu3 %vm3252_vm2, %v12094_v0 }
 0xbdf   :  { %7063 = vmatpush.bf16.msrb.mxu3 %v12115_v40 }
 0xbe3   :  { %7064 = vmatpush.bf16.msrb.mxu3 %v12114_v43 }
 0xbe7   :  { %7065 = vmatpush.bf16.msrb.mxu3 %v12113_v36 }
 0xbeb   :  { %7066 = vmatpush.bf16.msrb.mxu3 %v12112_v16 }
 0xbee   :  { %10978 = vmatmul.msk.bf16.gmra.mxu3 %vm3252_vm2, %v12095_v51 }
 0xbef   :  { %7197 = vmatpush.bf16.msra.mxu3 %v12127_v10 }
 0xbf3   :  { %7198 = vmatpush.bf16.msra.mxu3 %v12126_v44 }
 0xbf7   :  { %7199 = vmatpush.bf16.msra.mxu3 %v12125_v63 }
 0xbfb   :  { %7200 = vmatpush.bf16.msra.mxu3 %v12124_v34 }
 0xbfe   :  { %10979 = vmatmul.msk.bf16.gmra.mxu3 %vm3252_vm2, %v12096_v19  ;;  %v12134_v19 = vld [vmem:[%s17462_s7 + $0xb0] sm:$0xff] }
 0xc0e   :  { %10980 = vmatmul.msk.bf16.gmra.mxu3 %vm3252_vm2, %v12097_v31  ;;  %v12133_v31 = vld [vmem:[%s17462_s7 + $0xa8] sm:$0xff] }
 0xc1e   :  { %10981 = vmatmul.msk.bf16.gmra.mxu3 %vm3252_vm2, %v12098_v57 }
 0xc2e   :  { %10982 = vmatmul.msk.bf16.gmra.mxu3 %vm3252_vm2, %v12099_v17  ;;  %v12132_v17 = vld [vmem:[%s17462_s7 + $0xa0] sm:$0xff] }
 0xc3e   :  { %10983 = vmatmul.msk.bf16.gmra.mxu3 %vm3252_vm2, %v12100_v1 }
 0xc4e   :  { %10984 = vmatmul.msk.bf16.gmra.mxu3 %vm3252_vm2, %v12101_v50  ;;  %v12143_v50 = vld [vmem:[%s17462_s7 + $0xf8] sm:$0xff] }
 0xc5e   :  { %10985 = vmatmul.msk.bf16.gmra.mxu3 %vm3252_vm2, %v12102_v46  ;;  %v12141_v46 = vld [vmem:[%s17462_s7 + $0xe8] sm:$0xff] }
 0xc61   :  { %v15821_v25 = vpop.f32.mrf.mxu3 }
 0xc69   :  { %v15823_v26 = vpop.f32.mrf.mxu3 }
 0xc6e   :  { %10986 = vmatmul.msk.bf16.gmra.mxu3 %vm3252_vm2, %v12103_v5  ;;  %v12145_v5 = vld [vmem:[%s17462_s7 + $0x108] sm:$0xff] }
 0xc71   :  { %v15829_v48 = vpop.f32.mrf.mxu3 }
 0xc79   :  { %v15837_v47 = vpop.f32.mrf.mxu3 }
 0xc7e   :  { %10987 = vmatmul.msk.bf16.gmra.mxu3 %vm3252_vm2, %v12104_v55 }
 0xc81   :  { %v6869_v20 = vpop.f32.mrf.mxu3 }
 0xc82   :  { %11011 = vmatmul.msk.f32.vlgmr.msrb.gmra.mxu2 %vm6989_vm3, %v6869_v20 }
 0xc83   :  { %7266 = vmatpush.bf16.msrb.mxu2 %v12131_v11 }
 0xc87   :  { %7267 = vmatpush.bf16.msrb.mxu2 %v12130_v29 }
 0xc89   :  { %v6871_v32 = vpop.f32.mrf.mxu3 }
 0xc8a   :  { %11012 = vmatmul.msk.f32.gmra.mxu2 %vm6989_vm3, %v6871_v32 }
 0xc8b   :  { %7268 = vmatpush.bf16.msrb.mxu2 %v12129_v4 }
 0xc8e   :  { %10988 = vmatmul.msk.bf16.gmra.mxu3 %vm3252_vm2, %v12105_v39 }
 0xc8f   :  { %7269 = vmatpush.bf16.msrb.mxu2 %v12128_v62 }
 0xc91   :  { %v6874_v21 = vpop.f32.mrf.mxu3 }
 0xc92   :  { %11013 = vmatmul.msk.f32.gmra.mxu2 %vm6989_vm3, %v6874_v21 }
 0xc99   :  { %v6876_v30 = vpop.f32.mrf.mxu3 }
 0xc9a   :  { %11014 = vmatmul.msk.f32.gmra.mxu2 %vm6989_vm3, %v6876_v30 }
 0xc9e   :  { %10989 = vmatmul.msk.bf16.gmra.mxu3 %vm3252_vm2, %v12106_v42 }
 0xca1   :  { %v6879_v22 = vpop.f32.mrf.mxu3 }
 0xca2   :  { %11051 = vmatmul.msk.f32.vlgmr.msra.gmra.mxu2 %vm6989_vm3, %v6879_v22 }
 0xca3   :  { %7404 = vmatpush.bf16.msra.mxu2 %v12139_v45 }
 0xca7   :  { %7405 = vmatpush.bf16.msra.mxu2 %v12138_v13 }
 0xca9   :  { %v6881_v15 = vpop.f32.mrf.mxu3 }
 0xcaa   :  { %11052 = vmatmul.msk.f32.gmra.mxu2 %vm6989_vm3, %v6881_v15 }
 0xcab   :  { %7406 = vmatpush.bf16.msra.mxu2 %v12137_v9 }
 0xcae   :  { %10990 = vmatmul.msk.bf16.gmra.mxu3 %vm3252_vm2, %v12107_v33 }
 0xcaf   :  { %7407 = vmatpush.bf16.msra.mxu2 %v12136_v49 }
 0xcb1   :  { %v6884_v58 = vpop.f32.mrf.mxu3 }
 0xcb2   :  { %11053 = vmatmul.msk.f32.gmra.mxu2 %vm6989_vm3, %v6884_v58 }
 0xcb9   :  { %v6886_v61 = vpop.f32.mrf.mxu3 }
 0xcba   :  { %11054 = vmatmul.msk.f32.gmra.mxu2 %vm6989_vm3, %v6886_v61 }
 0xcbe   :  { %10991 = vmatmul.msk.bf16.gmra.mxu3 %vm3252_vm2, %v12108_v35 }
 0xcc1   :  { %v6889_v24 = vpop.f32.mrf.mxu3 }
 0xcc9   :  { %v6891_v53 = vpop.f32.mrf.mxu3 }
 0xcce   :  { %10992 = vmatmul.msk.bf16.gmra.mxu3 %vm3252_vm2, %v12109_v59 }
 0xcd1   :  { %v6894_v23 = vpop.f32.mrf.mxu3 }
 0xcd9   :  { %v15895_v54 = vpop.f32.mrf.mxu3 }
 0xcde   :  { %10993 = vmatmul.msk.bf16.gmra.mxu3 %vm3252_vm2, %v12110_v60 }
 0xce1   :  { %v6899_v37 = vpop.f32.mrf.mxu3 }
 0xce2   :  { %11091 = vmatmul.msk.f32.vlgmr.msrb.gmra.mxu2 %vm6989_vm3, %v6899_v37 }
 0xce3   :  { %7542 = vmatpush.bf16.msrb.mxu2 %v12147_v56 }
 0xce7   :  { %7543 = vmatpush.bf16.msrb.mxu2 %v12146_v2 }
 0xce9   :  { %v6901_v7 = vpop.f32.mrf.mxu3 }
 0xcea   :  { %11092 = vmatmul.msk.f32.gmra.mxu2 %vm6989_vm3, %v6901_v7 }
 0xceb   :  { %7544 = vmatpush.bf16.msrb.mxu2 %v12145_v5 }
 0xcee   :  { %10994 = vmatmul.msk.bf16.gmra.mxu3 %vm3252_vm2, %v12111_v41 }
 0xcf1   :  { %v6904_v8 = vpop.f32.mrf.mxu3 }
 0xcf2   :  { %11093 = vmatmul.msk.f32.gmra.mxu2 %vm6989_vm3, %v6904_v8 }
 0xcf9   :  { %v6906_v6 = vpop.f32.mrf.mxu3 }
 0xcfa   :  { %11094 = vmatmul.msk.f32.gmra.mxu2 %vm6989_vm3, %v6906_v6 }
 0xcfe   :  { %11031 = vmatmul.msk.f32.vlgmr.msrb.gmra.mxu3 %vm6989_vm3, %v15821_v25 }
 0xcff   :  { %7335 = vmatpush.bf16.msrb.mxu3 %v12135_v52 }
 0xd01   :  { %v6909_v28 = vpop.f32.mrf.mxu3 }
 0xd03   :  { %7336 = vmatpush.bf16.msrb.mxu3 %v12134_v19 }
 0xd06   :  { %11032 = vmatmul.msk.f32.gmra.mxu3 %vm6989_vm3, %v15823_v26  ;;  %v12140_v26 = vld [vmem:[%s17462_s7 + $0xe0] sm:$0xff] }
 0xd07   :  { %7337 = vmatpush.bf16.msrb.mxu3 %v12133_v31 }
 0xd09   :  { %v6911_v0 = vpop.f32.mrf.mxu3 }
 0xd0b   :  { %7338 = vmatpush.bf16.msrb.mxu3 %v12132_v17 }
 0xd0e   :  { %11033 = vmatmul.msk.f32.gmra.mxu3 %vm6989_vm3, %v15829_v48  ;;  %v12144_v48 = vld [vmem:[%s17462_s7 + $0x100] sm:$0xff] }
 0xd0f   :  { %7545 = vmatpush.bf16.msrb.mxu2 %v12144_v48 }
 0xd11   :  { %v6914_v51 = vpop.f32.mrf.mxu3 }
 0xd16   :  { %11034 = vmatmul.msk.f32.gmra.mxu3 %vm6989_vm3, %v15837_v47  ;;  %v7011_v47 = vpop.f32.mrf.mxu2 }
 0xd19   :  { %v6916_v57 = vpop.f32.mrf.mxu3 }
 0xd1e   :  { %11071 = vmatmul.msk.f32.vlgmr.msra.gmra.mxu3 %vm6989_vm3, %v6889_v24  ;;  %v7014_v55 = vpop.f32.mrf.mxu2 }
 0xd1f   :  { %7473 = vmatpush.bf16.msra.mxu3 %v12143_v50 }
 0xd21   :  { %v6919_v40 = vpop.f32.mrf.mxu3 }
 0xd22   :  { %11131 = vmatmul.msk.f32.vlgmr.msra.gmra.mxu2 %vm6989_vm3, %v6919_v40 }
 0xd23   :  { %7474 = vmatpush.bf16.msra.mxu3 %v12142_v18 }
 0xd26   :  { %11072 = vmatmul.msk.f32.gmra.mxu3 %vm6989_vm3, %v6891_v53  ;;  %v7017_v20 = vpop.f32.mrf.mxu2 }
 0xd27   :  { %7475 = vmatpush.bf16.msra.mxu3 %v12141_v46 }
 0xd29   :  { %v6921_v1 = vpop.f32.mrf.mxu3 }
 0xd2a   :  { %11132 = vmatmul.msk.f32.gmra.mxu2 %vm6989_vm3, %v6921_v1 }
 0xd2b   :  { %7476 = vmatpush.bf16.msra.mxu3 %v12140_v26 }
 0xd2e   :  { %11073 = vmatmul.msk.f32.gmra.mxu3 %vm6989_vm3, %v6894_v23  ;;  %v7020_v39 = vpop.f32.mrf.mxu2 }
 0xd31   :  { %v6924_v38 = vpop.f32.mrf.mxu3 }
 0xd32   :  { %11133 = vmatmul.msk.f32.gmra.mxu2 %vm6989_vm3, %v6924_v38 }
 0xd36   :  { %11074 = vmatmul.msk.f32.gmra.mxu3 %vm6989_vm3, %v15895_v54  ;;  %v7133_v30 = vpop.f32.mrf.mxu2 }
 0xd39   :  { %v6926_v25 = vpop.f32.mrf.mxu3 }
 0xd3a   :  { %11134 = vmatmul.msk.f32.gmra.mxu2 %vm6989_vm3, %v6926_v25 }
 0xd3e   :  { %11111 = vmatmul.msk.f32.vlgmr.msrb.gmra.mxu3 %vm6989_vm3, %v6909_v28  ;;  %v7136_v22 = vpop.f32.mrf.mxu2 }
 0xd41   :  { %v6929_v3 = vpop.f32.mrf.mxu3 }
 0xd46   :  { %11112 = vmatmul.msk.f32.gmra.mxu3 %vm6989_vm3, %v6911_v0  ;;  %v7139_v33 = vpop.f32.mrf.mxu2 }
 0xd49   :  { %v6931_v12 = vpop.f32.mrf.mxu3 }
 0xd4e   :  { %11113 = vmatmul.msk.f32.gmra.mxu3 %vm6989_vm3, %v6914_v51  ;;  %v7142_v11 = vpop.f32.mrf.mxu2 }
 0xd51   :  { %v6934_v27 = vpop.f32.mrf.mxu3 }
 0xd56   :  { %11114 = vmatmul.msk.f32.gmra.mxu3 %vm6989_vm3, %v6916_v57 }
 0xd59   :  { %v6936_v14 = vpop.f32.mrf.mxu3 }
 0xd5e   :  { %11151 = vmatmul.msk.f32.vlgmr.msra.gmra.mxu3 %vm6989_vm3, %v6929_v3 }
 0xd61   :  { %v6939_v43 = vpop.f32.mrf.mxu3 }
 0xd62   :  { %11171 = vmatmul.msk.f32.vlgmr.msrb.gmra.mxu2 %vm6989_vm3, %v6939_v43 }
 0xd65   :  { %v7271_v4 = vpop.f32.mrf.mxu2 }
 0xd66   :  { %11152 = vmatmul.msk.f32.gmra.mxu3 %vm6989_vm3, %v6931_v12 }
 0xd69   :  { %v6941_v32 = vpop.f32.mrf.mxu3 }
 0xd6a   :  { %11172 = vmatmul.msk.f32.gmra.mxu2 %vm6989_vm3, %v6941_v32  ;;  %v12338_v32 = vld [vmem:[%s17463_s8] ss:$0 sm:$0xff] }
 0xd6d   :  { %v7274_v36 = vpop.f32.mrf.mxu2 }
 0xd6e   :  { %11153 = vmatmul.msk.f32.gmra.mxu3 %vm6989_vm3, %v6934_v27 }
 0xd71   :  { %v6944_v21 = vpop.f32.mrf.mxu3 }
 0xd72   :  { %11173 = vmatmul.msk.f32.gmra.mxu2 %vm6989_vm3, %v6944_v21 }
 0xd75   :  { %v7277_v54 = vpop.f32.mrf.mxu2 }
 0xd76   :  { %11154 = vmatmul.msk.f32.gmra.mxu3 %vm6989_vm3, %v6936_v14 }
 0xd79   :  { %v6946_v42 = vpop.f32.mrf.mxu3 }
 0xd7a   :  { %11174 = vmatmul.msk.f32.gmra.mxu2 %vm6989_vm3, %v6946_v42 }
 0xd7d   :  { %v7280_v7 = vpop.f32.mrf.mxu2 }
 0xd81   :  { %v7068_v15 = vpop.f32.mrf.mxu3 }
 0xd82   :  { %v7069_v35 = vadd.f32 %v7068_v15, %v7011_v47 }
 0xd84   :  { %v7145_v62 = vadd.f32 %v7133_v30, %v7069_v35 }
 0xd89   :  { %v7071_v58 = vpop.f32.mrf.mxu3 }
 0xd8a   :  { %v7072_v28 = vadd.f32 %v7071_v58, %v7014_v55 }
 0xd8c   :  { %v7146_v51 = vadd.f32 %v7136_v22, %v7072_v28  ;;  %v11309_v28 = vld [vmem:[%s17465_s10 + $0xd8] sm:$0xf0] }
 0xd91   :  { %v7074_v29 = vpop.f32.mrf.mxu3 }
 0xd92   :  { %v7075_v23 = vadd.f32 %v7074_v29, %v7017_v20 }
 0xd94   :  { %v7147_v16 = vadd.f32 %v7139_v33, %v7075_v23  ;;  %v12154_v23 = vld [vmem:[%s17464_s9 + $0x30] sm:$0xff] }
 0xd99   :  { %v7077_v61 = vpop.f32.mrf.mxu3 }
 0xd9a   :  { %v7078_v52 = vadd.f32 %v7077_v61, %v7020_v39 }
 0xd9c   :  { %v7148_v57 = vadd.f32 %v7142_v11, %v7078_v52 }
 0xda1   :  { %v7202_v24 = vpop.f32.mrf.mxu3 }
 0xda2   :  { %v7214_v53 = vadd.f32 %v7202_v24, %v7145_v62  ;;  %v12149_v62 = vld [vmem:[%s17464_s9 + $0x8] sm:$0xff]  ;;  %v12150_v24 = vld [vmem:[%s17464_s9 + $0x10] sm:$0xff] }
 0xda4   :  { %v7283_v50 = vadd.f32 %v7271_v4, %v7214_v53  ;;  %v12148_v4 = vld [vmem:[%s17464_s9] sm:$0xff]  ;;  %v12151_v53 = vld [vmem:[%s17464_s9 + $0x18] sm:$0xff] }
 0xda5   :  { %v7409_v10 = vpop.f32.mrf.mxu2 }
 0xda9   :  { %v7205_v59 = vpop.f32.mrf.mxu3 }
 0xdaa   :  { %v7215_v19 = vadd.f32 %v7205_v59, %v7146_v51  ;;  %v12153_v59 = vld [vmem:[%s17464_s9 + $0x28] sm:$0xff]  ;;  %v11299_v51 = vld [vmem:[%s17465_s10 + $0xc0] sm:$0xf] }
 0xdac   :  { %v7284_v17 = vadd.f32 %v7274_v36, %v7215_v19  ;;  %v12152_v36 = vld [vmem:[%s17464_s9 + $0x20] sm:$0xff]  ;;  %v12191_v19 = vld [vmem:[%s17465_s10 + $0xc4] sm:$0xf0] }
 0xdad   :  { %v7412_v45 = vpop.f32.mrf.mxu2 }
 0xdb1   :  { %v7208_v60 = vpop.f32.mrf.mxu3 }
 0xdb2   :  { %v7216_v37 = vadd.f32 %v7208_v60, %v7147_v16  ;;  %v12197_v16 = vld [vmem:[%s17465_s10 + $0xf4] sm:$0xf0]  ;;  %v12196_v60 = vld [vmem:[%s17465_s10 + $0xf4] sm:$0xf] }
 0xdb4   :  { %v7285_v38 = vadd.f32 %v7277_v54, %v7216_v37  ;;  %v11323_v54 = vld [vmem:[%s17465_s10 + $0xf0] sm:$0xf] }
 0xdb5   :  { %v7415_v13 = vpop.f32.mrf.mxu2  ;;  %v11324_v37 = vor.u32 %v12197_v16, %v11323_v54  ;;  %v12177_v54 = vld [vmem:[%s17465_s10 + $0x54] sm:$0xf0]  ;;  %v12176_v16 = vld [vmem:[%s17465_s10 + $0x54] sm:$0xf] }
 0xdb7   :  { %7975 = vmatpush.bf16.msra.mxu2 %v11324_v37 }
 0xdb9   :  { %v7211_v41 = vpop.f32.mrf.mxu3 }
 0xdba   :  { %v7217_v40 = vadd.f32 %v7211_v41, %v7148_v57  ;;  %v11315_v41 = vld [vmem:[%s17465_s10 + $0xe0] sm:$0xf]  ;;  %v11300_v57 = vor.u32 %v12191_v19, %v11299_v51 }
 0xdbb   :  { %v11347_v19 = vld [vmem:[%s17465_s10 + $0x20] sm:$0xf] }
 0xdbc   :  { %v7286_v56 = vadd.f32 %v7280_v7, %v7217_v40  ;;  %v11325_v7 = vld [vmem:[%s17465_s10 + $0xf8] sm:$0xf0] }
 0xdbd   :  { %v7418_v34 = vpop.f32.mrf.mxu2 }
 0xdc1   :  { %v7340_v8 = vpop.f32.mrf.mxu3 }
 0xdc2   :  { %v7352_v46 = vadd.f32 %v7340_v8, %v7283_v50  ;;  %v11328_v8 = vor.u32 %v12196_v60, %v11325_v7  ;;  %v12189_v50 = vld [vmem:[%s17465_s10 + $0xb4] sm:$0xf0]  ;;  %v11373_v7 = vld [vmem:[%s17465_s10 + $0x58] sm:$0xf0] }
 0xdc4   :  { %v7421_v48 = vadd.f32 %v7409_v10, %v7352_v46  ;;  %v12195_v10 = vld [vmem:[%s17465_s10 + $0xe4] sm:$0xf0]  ;;  %7996 = vmatpush.bf16.msrb.mxu0 %v11328_v8  ;;  %v11283_v46 = vld [vmem:[%s17465_s10 + $0xa0] sm:$0xf] }
 0xdc5   :  { %v11363_v8 = vld [vmem:[%s17465_s10 + $0x40] sm:$0xf] }
 0xdc9   :  { %v7343_v44 = vpop.f32.mrf.mxu3 }
 0xdca   :  { %v7353_v18 = vadd.f32 %v7343_v44, %v7284_v17  ;;  %v12194_v44 = vld [vmem:[%s17465_s10 + $0xe4] sm:$0xf]  ;;  %v11301_v17 = vld [vmem:[%s17465_s10 + $0xc8] sm:$0xf0] }
 0xdcc   :  { %v7422_v26 = vadd.f32 %v7412_v45, %v7353_v18  ;;  %v11317_v45 = vld [vmem:[%s17465_s10 + $0xe8] sm:$0xf0] }
 0xdd1   :  { %v7346_v63 = vpop.f32.mrf.mxu3 }
 0xdd2   :  { %v7354_v2 = vadd.f32 %v7346_v63, %v7285_v38  ;;  %v11316_v63 = vor.u32 %v12195_v10, %v11315_v41  ;;  %v12188_v38 = vld [vmem:[%s17465_s10 + $0xb4] sm:$0xf]  ;;  %v12157_v41 = vld [vmem:[%s17464_s9 + $0x48] sm:$0xff]  ;;  %v11376_v10 = vor.u32 %v12176_v16, %v11373_v7 }
 0xdd4   :  { %v7423_v3 = vadd.f32 %v7415_v13, %v7354_v2  ;;  %v11320_v13 = vor.u32 %v12194_v44, %v11317_v45  ;;  %7976 = vmatpush.bf16.msra.mxu2 %v11316_v63  ;;  %v12187_v2 = vld [vmem:[%s17465_s10 + $0xa4] sm:$0xf0]  ;;  %v12174_v45 = vld [vmem:[%s17465_s10 + $0x44] sm:$0xf] }
 0xdd5   :  { %v12175_v44 = vld [vmem:[%s17465_s10 + $0x44] sm:$0xf0] }
 0xdd6   :  { %7997 = vmatpush.bf16.msrb.mxu0 %v11320_v13  ;;  %v11364_v63 = vor.u32 %v12175_v44, %v11363_v8  ;;  %v11365_v13 = vld [vmem:[%s17465_s10 + $0x48] sm:$0xf0]  ;;  %v12204_v8 = vld [vmem:[%s17465_s10 + $0x134] sm:$0xf] }
 0xdd9   :  { %v7349_v6 = vpop.f32.mrf.mxu3 }
 0xdda   :  { %v7355_v5 = vadd.f32 %v7349_v6, %v7286_v56  ;;  %v11307_v6 = vld [vmem:[%s17465_s10 + $0xd0] sm:$0xf]  ;;  %v11293_v56 = vld [vmem:[%s17465_s10 + $0xb8] sm:$0xf0] }
 0xddc   :  { %v7424_v27 = vadd.f32 %v7418_v34, %v7355_v5  ;;  %v12193_v34 = vld [vmem:[%s17465_s10 + $0xd4] sm:$0xf0]  ;;  %v11285_v5 = vld [vmem:[%s17465_s10 + $0xa8] sm:$0xf0] }
 0xde1   :  { %v7478_v9 = vpop.f32.mrf.mxu3 }
 0xde2   :  { %v7490_v55 = vadd.f32 %v7478_v9, %v7421_v48  ;;  %v12192_v9 = vld [vmem:[%s17465_s10 + $0xd4] sm:$0xf]  ;;  %v11284_v48 = vor.u32 %v12187_v2, %v11283_v46  ;;  %v11341_v2 = vld [vmem:[%s17465_s10 + $0x18] sm:$0xf0] }
 0xde3   :  { %v11312_v52 = vor.u32 %v12192_v9, %v11309_v28  ;;  %v12173_v9 = vld [vmem:[%s17465_s10 + $0x34] sm:$0xf0] }
 0xde5   :  { %v7547_v49 = vpop.f32.mrf.mxu2  ;;  %7998 = vmatpush.bf16.msrb.mxu0 %v11312_v52  ;;  %v11357_v52 = vld [vmem:[%s17465_s10 + $0x38] sm:$0xf0] }
 0xde6   :  { %v7559_v43 = vadd.f32 %v7547_v49, %v7490_v55  ;;  %v11308_v49 = vor.u32 %v12193_v34, %v11307_v6  ;;  %v11368_v6 = vor.u32 %v12174_v45, %v11365_v13  ;;  %v11355_v34 = vld [vmem:[%s17465_s10 + $0x30] sm:$0xf] }
 0xde8   :  { %v7567_v15 = vadd.f32 %v12338_v32, %v7559_v43  ;;  %7977 = vmatpush.bf16.msra.mxu2 %v11308_v49  ;;  %v12172_v49 = vld [vmem:[%s17465_s10 + $0x34] sm:$0xf] }
 0xde9   :  { %v7481_v0 = vpop.f32.mrf.mxu3  ;;  %v11360_v51 = vor.u32 %v12172_v49, %v11357_v52 }
 0xdea   :  { %v7491_v12 = vadd.f32 %v7481_v0, %v7422_v26  ;;  %v12155_v0 = vld [vmem:[%s17464_s9 + $0x38] sm:$0xff]  ;;  %v12186_v26 = vld [vmem:[%s17465_s10 + $0xa4] sm:$0xf] }
 0xdec   :  { %7978 = vmatpush.bf16.msra.mxu2 %v11300_v57  ;;  %v12170_v57 = vld [vmem:[%s17465_s10 + $0x24] sm:$0xf] }
 0xded   :  { %v7550_v31 = vpop.f32.mrf.mxu2 }
 0xdee   :  { %v7560_v14 = vadd.f32 %v7550_v31, %v7491_v12  ;;  %v12190_v31 = vld [vmem:[%s17465_s10 + $0xc4] sm:$0xf]  ;;  %v11275_v12 = vld [vmem:[%s17465_s10 + $0x90] sm:$0xf] }
 0xdef   :  { %v11304_v40 = vor.u32 %v12190_v31, %v11301_v17  ;;  %v12171_v31 = vld [vmem:[%s17465_s10 + $0x24] sm:$0xf0] }
 0xdf0   :  { %v7568_v42 = vadd.f32 %v12338_v32, %v7560_v14  ;;  %v11277_v14 = vld [vmem:[%s17465_s10 + $0x98] sm:$0xf0]  ;;  %v11348_v17 = vor.u32 %v12171_v31, %v11347_v19  ;;  %v12201_v19 = vld [vmem:[%s17465_s10 + $0x114] sm:$0xf0]  ;;  %v12200_v31 = vld [vmem:[%s17465_s10 + $0x114] sm:$0xf] }
 0xdf1   :  { %v7484_v1 = vpop.f32.mrf.mxu3  ;;  %7999 = vmatpush.bf16.msrb.mxu0 %v11304_v40  ;;  %v11349_v40 = vld [vmem:[%s17465_s10 + $0x28] sm:$0xf0] }
 0xdf2   :  { %v7492_v20 = vadd.f32 %v7484_v1, %v7423_v3  ;;  %v7571_v11 = vmax.f32 %v7567_v15, %v7568_v42  ;;  %v11291_v1 = vld [vmem:[%s17465_s10 + $0xb0] sm:$0xf]  ;;  %v11288_v3 = vor.u32 %v12186_v26, %v11285_v5  ;;  %v11269_v42 = vld [vmem:[%s17465_s10 + $0x88] sm:$0xf0]  ;;  %v11331_v5 = vld [vmem:[%s17465_s10] sm:$0xf] }
 0xdf3   :  { %v11292_v18 = vor.u32 %v12189_v50, %v11291_v1  ;;  %v11387_v15 = vld [vmem:[%s17465_s10 + $0x70] sm:$0xf]  ;;  %v11352_v1 = vor.u32 %v12170_v57, %v11349_v40  ;;  %v11405_v40 = vld [vmem:[%s17465_s10 + $0x118] sm:$0xf0] }
 0xdf4   :  { %v11339_v50 = vld [vmem:[%s17465_s10 + $0x10] sm:$0xf] }
 0xdf5   :  { %v7553_v25 = vpop.f32.mrf.mxu2  ;;  %7979 = vmatpush.bf16.msra.mxu2 %v11292_v18  ;;  %v12168_v18 = vld [vmem:[%s17465_s10 + $0x14] sm:$0xf] }
 0xdf6   :  { %v7561_v39 = vadd.f32 %v7553_v25, %v7492_v20  ;;  %v11296_v25 = vor.u32 %v12188_v38, %v11293_v56  ;;  %v12156_v20 = vld [vmem:[%s17464_s9 + $0x40] sm:$0xff]  ;;  %v12169_v38 = vld [vmem:[%s17465_s10 + $0x14] sm:$0xf0]  ;;  %v11344_v26 = vor.u32 %v12168_v18, %v11341_v2  ;;  %v12199_v18 = vld [vmem:[%s17465_s10 + $0x104] sm:$0xf0] }
 0xdf7   :  { %v11340_v46 = vor.u32 %v12169_v38, %v11339_v50  ;;  %v11408_v50 = vor.u32 %v12200_v31, %v11405_v40  ;;  %v11395_v38 = vld [vmem:[%s17465_s10 + $0x100] sm:$0xf]  ;;  %v12215_v31 = vld [vmem:[%s17465_s10 + $0x184] sm:$0xf0]  ;;  %v11461_v40 = vld [vmem:[%s17465_s10 + $0x188] sm:$0xf0] }
 0xdf8   :  { %v7569_v33 = vadd.f32 %v12338_v32, %v7561_v39  ;;  %8000 = vmatpush.bf16.msrb.mxu0 %v11296_v25  ;;  %v12183_v39 = vld [vmem:[%s17465_s10 + $0x84] sm:$0xf0]  ;;  %v12158_v25 = vld [vmem:[%s17464_s9 + $0x50] sm:$0xff]  ;;  %v11396_v2 = vor.u32 %v12199_v18, %v11395_v38  ;;  %v12245_v38 = vld [vmem:[%s17465_s10 + $0x274] sm:$0xf0] }
 0xdf9   :  { %v7487_v47 = vpop.f32.mrf.mxu3  ;;  %7980 = vmatpush.bf16.msra.mxu2 %v11284_v48  ;;  %v12167_v48 = vld [vmem:[%s17465_s10 + $0x4] sm:$0xf0]  ;;  %v12244_v18 = vld [vmem:[%s17465_s10 + $0x274] sm:$0xf] }
 0xdfa   :  { %v7493_v21 = vadd.f32 %v7487_v47, %v7424_v27  ;;  %v12185_v47 = vld [vmem:[%s17465_s10 + $0x94] sm:$0xf0]  ;;  %v12184_v27 = vld [vmem:[%s17465_s10 + $0x94] sm:$0xf] }
 0xdfb   :  { %v11276_v55 = vor.u32 %v12185_v47, %v11275_v12  ;;  %v11280_v43 = vor.u32 %v12184_v27, %v11277_v14  ;;  %v11332_v12 = vor.u32 %v12167_v48, %v11331_v5  ;;  %v11333_v47 = vld [vmem:[%s17465_s10 + $0x8] sm:$0xf0]  ;;  %v12213_v14 = vld [vmem:[%s17465_s10 + $0x174] sm:$0xf0]  ;;  %v11515_v5 = vld [vmem:[%s17465_s10 + $0x1f0] sm:$0xf] }
 0xdfc   :  { %8001 = vmatpush.bf16.msrb.mxu0 %v11288_v3  ;;  %v12166_v3 = vld [vmem:[%s17465_s10 + $0x4] sm:$0xf]  ;;  %v12229_v48 = vld [vmem:[%s17465_s10 + $0x1f4] sm:$0xf0] }
 0xdfd   :  { %v7556_v30 = vpop.f32.mrf.mxu2  ;;  %7981 = vmatpush.bf16.msra.mxu2 %v11276_v55  ;;  %v11336_v27 = vor.u32 %v12166_v3, %v11333_v47  ;;  %v11451_v55 = vld [vmem:[%s17465_s10 + $0x170] sm:$0xf]  ;;  %v12228_v3 = vld [vmem:[%s17465_s10 + $0x1f4] sm:$0xf]  ;;  %v11516_v47 = vor.u32 %v12229_v48, %v11515_v5  ;;  %v11571_v5 = vld [vmem:[%s17465_s10 + $0x260] sm:$0xf] }
 0xdfe   :  { %v7562_v22 = vadd.f32 %v7556_v30, %v7493_v21  ;;  %v12182_v21 = vld [vmem:[%s17465_s10 + $0x84] sm:$0xf]  ;;  %v12243_v48 = vld [vmem:[%s17465_s10 + $0x264] sm:$0xf0] }
 0xe00   :  { %v7570_v58 = vadd.f32 %v12338_v32, %v7562_v22  ;;  %8002 = vmatpush.bf16.msrb.mxu0 %v11280_v43  ;;  %v11267_v32 = vld [vmem:[%s17465_s10 + $0x80] sm:$0xf]  ;;  %v11272_v22 = vor.u32 %v12182_v21, %v11269_v42  ;;  %v12211_v42 = vld [vmem:[%s17465_s10 + $0x164] sm:$0xf0] }
 0xe01   :  { %v11268_v30 = vor.u32 %v12183_v39, %v11267_v32  ;;  %v11452_v32 = vor.u32 %v12213_v14, %v11451_v55  ;;  %v11453_v39 = vld [vmem:[%s17465_s10 + $0x178] sm:$0xf0]  ;;  %v11507_v14 = vld [vmem:[%s17465_s10 + $0x1e0] sm:$0xf] }
 0xe02   :  { %v7572_v29 = vmax.f32 %v7569_v33, %v7570_v58  ;;  %v12181_v33 = vld [vmem:[%s17465_s10 + $0x74] sm:$0xf0]  ;;  %v12180_v58 = vld [vmem:[%s17465_s10 + $0x74] sm:$0xf] }
 0xe03   :  { %7982 = vmatpush.bf16.msra.mxu2 %v11268_v30  ;;  %v11443_v30 = vld [vmem:[%s17465_s10 + $0x160] sm:$0xf] }
 0xe04   :  { %v7573_v61 = vmax.f32 %v7571_v11, %v7572_v29  ;;  %8003 = vmatpush.bf16.msrb.mxu0 %v11272_v22  ;;  %v11388_v29 = vor.u32 %v12181_v33, %v11387_v15  ;;  %v12210_v22 = vld [vmem:[%s17465_s10 + $0x164] sm:$0xf]  ;;  %v11444_v15 = vor.u32 %v12211_v42, %v11443_v30  ;;  %v11445_v33 = vld [vmem:[%s17465_s10 + $0x168] sm:$0xf0]  ;;  %v12225_v30 = vld [vmem:[%s17465_s10 + $0x1d4] sm:$0xf0] }
 0xe05   :  { %v12224_v42 = vld [vmem:[%s17465_s10 + $0x1d4] sm:$0xf] }
 0xe06   :  { %v7574_v35 = vmax.f32 %v7573_v61, 0.0  ;;  %v11389_v61 = vld [vmem:[%s17465_s10 + $0x78] sm:$0xf0] }
 0xe07   :  { %8097 = vmatpush.bf16.msrb.mxu2 %v11388_v29  ;;  %v11435_v29 = vld [vmem:[%s17465_s10 + $0x150] sm:$0xf] }
 0xe08   :  { %7771 = vmatpush.msrb.mxu3 %v7574_v35  ;;  %v11379_v35 = vld [vmem:[%s17465_s10 + $0x60] sm:$0xf] }
 0xe09   :  { %11247 = vmatmul.msk.bf16.vlgmr.msrb.gmra.mxu3 %vm7701_vm4, %v12148_v4  ;;  %v11392_v4 = vor.u32 %v12180_v58, %v11389_v61  ;;  %v11448_v58 = vor.u32 %v12210_v22, %v11445_v33  ;;  %v12209_v61 = vld [vmem:[%s17465_s10 + $0x154] sm:$0xf0]  ;;  %v11501_v33 = vld [vmem:[%s17465_s10 + $0x1d8] sm:$0xf0] }
 0xe0b   :  { %8118 = vmatpush.bf16.msra.mxu0 %v11392_v4  ;;  %v12208_v4 = vld [vmem:[%s17465_s10 + $0x154] sm:$0xf] }
 0xe19   :  { %11248 = vmatmul.msk.bf16.gmra.mxu3 %vm7701_vm4, %v12149_v62  ;;  %v12179_v62 = vld [vmem:[%s17465_s10 + $0x64] sm:$0xf0] }
 0xe29   :  { %11249 = vmatmul.msk.bf16.gmra.mxu3 %vm7701_vm4, %v12150_v24  ;;  %v12178_v24 = vld [vmem:[%s17465_s10 + $0x64] sm:$0xf] }
 0xe39   :  { %11250 = vmatmul.msk.bf16.gmra.mxu3 %vm7701_vm4, %v12151_v53  ;;  %v11380_v53 = vor.u32 %v12179_v62, %v11379_v35  ;;  %v11436_v62 = vor.u32 %v12209_v61, %v11435_v29  ;;  %v11504_v29 = vor.u32 %v12224_v42, %v11501_v33  ;;  %v11491_v61 = vld [vmem:[%s17465_s10 + $0x1c0] sm:$0xf]  ;;  %v12239_v42 = vld [vmem:[%s17465_s10 + $0x244] sm:$0xf0]  ;;  %v11557_v33 = vld [vmem:[%s17465_s10 + $0x248] sm:$0xf0] }
 0xe3b   :  { %8098 = vmatpush.bf16.msrb.mxu2 %v11380_v53  ;;  %v12159_v53 = vld [vmem:[%s17464_s9 + $0x58] sm:$0xff] }
 0xe49   :  { %11251 = vmatmul.msk.bf16.gmra.mxu3 %vm7701_vm4, %v12152_v36  ;;  %v11381_v36 = vld [vmem:[%s17465_s10 + $0x68] sm:$0xf0] }
 0xe59   :  { %11252 = vmatmul.msk.bf16.gmra.mxu3 %vm7701_vm4, %v12153_v59  ;;  %v11384_v59 = vor.u32 %v12178_v24, %v11381_v36  ;;  %v11437_v24 = vld [vmem:[%s17465_s10 + $0x158] sm:$0xf0] }
 0xe5a   :  { %v11440_v36 = vor.u32 %v12208_v4, %v11437_v24  ;;  %v12223_v4 = vld [vmem:[%s17465_s10 + $0x1c4] sm:$0xf0] }
 0xe5b   :  { %8119 = vmatpush.bf16.msra.mxu0 %v11384_v59  ;;  %v11427_v59 = vld [vmem:[%s17465_s10 + $0x140] sm:$0xf] }
 0xe5f   :  { %8120 = vmatpush.bf16.msra.mxu0 %v11376_v10  ;;  %v12205_v10 = vld [vmem:[%s17465_s10 + $0x134] sm:$0xf0] }
 0xe63   :  { %8121 = vmatpush.bf16.msra.mxu0 %v11368_v6  ;;  %v11411_v6 = vld [vmem:[%s17465_s10 + $0x120] sm:$0xf] }
 0xe67   :  { %8122 = vmatpush.bf16.msra.mxu0 %v11360_v51  ;;  %v11403_v51 = vld [vmem:[%s17465_s10 + $0x110] sm:$0xf] }
 0xe69   :  { %11253 = vmatmul.msk.bf16.gmra.mxu3 %vm7701_vm4, %v12154_v23  ;;  %v11371_v23 = vld [vmem:[%s17465_s10 + $0x50] sm:$0xf] }
 0xe6a   :  { %v11372_v37 = vor.u32 %v12177_v54, %v11371_v23  ;;  %v12207_v23 = vld [vmem:[%s17465_s10 + $0x144] sm:$0xf0]  ;;  %v12206_v54 = vld [vmem:[%s17465_s10 + $0x144] sm:$0xf] }
 0xe6b   :  { %8123 = vmatpush.bf16.msra.mxu0 %v11352_v1  ;;  %v11428_v16 = vor.u32 %v12207_v23, %v11427_v59  ;;  %v12160_v1 = vld [vmem:[%s17464_s9 + $0x60] sm:$0xff]  ;;  %v12220_v59 = vld [vmem:[%s17465_s10 + $0x1b4] sm:$0xf] }
 0xe6c   :  { %8099 = vmatpush.bf16.msrb.mxu2 %v11372_v37  ;;  %v11429_v37 = vld [vmem:[%s17465_s10 + $0x148] sm:$0xf0] }
 0xe6d   :  { %v11432_v7 = vor.u32 %v12206_v54, %v11429_v37 }
 0xe6f   :  { %8124 = vmatpush.bf16.msra.mxu0 %v11344_v26 }
 0xe70   :  { %8100 = vmatpush.bf16.msrb.mxu2 %v11364_v63  ;;  %v11421_v63 = vld [vmem:[%s17465_s10 + $0x138] sm:$0xf0] }
 0xe71   :  { %v11424_v13 = vor.u32 %v12204_v8, %v11421_v63  ;;  %v12217_v63 = vld [vmem:[%s17465_s10 + $0x194] sm:$0xf0] }
 0xe73   :  { %8125 = vmatpush.bf16.msra.mxu0 %v11336_v27  ;;  %v11517_v27 = vld [vmem:[%s17465_s10 + $0x1f8] sm:$0xf0] }
 0xe74   :  { %v11520_v55 = vor.u32 %v12228_v3, %v11517_v27  ;;  %v12242_v3 = vld [vmem:[%s17465_s10 + $0x264] sm:$0xf]  ;;  %v11573_v27 = vld [vmem:[%s17465_s10 + $0x268] sm:$0xf0] }
 0xe79   :  { %11254 = vmatmul.msk.bf16.gmra.mxu3 %vm7701_vm4, %v12155_v0  ;;  %v11356_v0 = vor.u32 %v12173_v9, %v11355_v34  ;;  %v12203_v34 = vld [vmem:[%s17465_s10 + $0x124] sm:$0xf0]  ;;  %v12202_v9 = vld [vmem:[%s17465_s10 + $0x124] sm:$0xf] }
 0xe7a   :  { %v11412_v49 = vor.u32 %v12203_v34, %v11411_v6 }
 0xe7b   :  { %8101 = vmatpush.bf16.msrb.mxu2 %v11356_v0  ;;  %v11413_v0 = vld [vmem:[%s17465_s10 + $0x128] sm:$0xf0] }
 0xe7c   :  { %v11416_v52 = vor.u32 %v12202_v9, %v11413_v0  ;;  %v11469_v9 = vld [vmem:[%s17465_s10 + $0x198] sm:$0xf0] }
 0xe7f   :  { %8102 = vmatpush.bf16.msrb.mxu2 %v11348_v17  ;;  %v11404_v17 = vor.u32 %v12201_v19, %v11403_v51  ;;  %v11837_v51 = vld [vmem:[%s17465_s10 + $0x478] sm:$0xf0] }
 0xe83   :  { %8103 = vmatpush.bf16.msrb.mxu2 %v11340_v46  ;;  %v12198_v46 = vld [vmem:[%s17465_s10 + $0x104] sm:$0xf] }
 0xe87   :  { %8104 = vmatpush.bf16.msrb.mxu2 %v11332_v12 }
 0xe89   :  { %11255 = vmatmul.msk.bf16.gmra.mxu3 %vm7701_vm4, %v12156_v20  ;;  %v12212_v20 = vld [vmem:[%s17465_s10 + $0x174] sm:$0xf] }
 0xe8a   :  { %v11456_v21 = vor.u32 %v12212_v20, %v11453_v39  ;;  %v12227_v20 = vld [vmem:[%s17465_s10 + $0x1e4] sm:$0xf0]  ;;  %v11509_v39 = vld [vmem:[%s17465_s10 + $0x1e8] sm:$0xf0] }
 0xe8c   :  { %v16145_v11 = vpop.f32.mrf.mxu3 }
 0xe94   :  { %v16171_v60 = vpop.f32.mrf.mxu3 }
 0xe99   :  { %11256 = vmatmul.msk.bf16.gmra.mxu3 %vm7701_vm4, %v12157_v41  ;;  %v11419_v41 = vld [vmem:[%s17465_s10 + $0x130] sm:$0xf] }
 0xe9a   :  { %v11420_v45 = vor.u32 %v12205_v10, %v11419_v41  ;;  %v12219_v41 = vld [vmem:[%s17465_s10 + $0x1a4] sm:$0xf0]  ;;  %v12218_v10 = vld [vmem:[%s17465_s10 + $0x1a4] sm:$0xf] }
 0xe9c   :  { %v16201_v28 = vpop.f32.mrf.mxu3 }
 0xea4   :  { %v16227_v56 = vpop.f32.mrf.mxu3 }
 0xea9   :  { %11257 = vmatmul.msk.bf16.gmra.mxu3 %vm7701_vm4, %v12158_v25  ;;  %v11397_v25 = vld [vmem:[%s17465_s10 + $0x108] sm:$0xf0] }
 0xeaa   :  { %v11400_v26 = vor.u32 %v12198_v46, %v11397_v25  ;;  %v11581_v25 = vld [vmem:[%s17465_s10 + $0x278] sm:$0xf0] }
 0xeac   :  { %v7783_v43 = vpop.f32.mrf.mxu3 }
 0xead   :  { %7983 = vmatmul.f32.vlgmr.msra.gmra.mxu2 %v7783_v43  ;;  %8004 = vmatmul.f32.vlgmr.msrb.gmra.mxu0 %v7783_v43  ;;  %v12226_v43 = vld [vmem:[%s17465_s10 + $0x1e4] sm:$0xf] }
 0xeae   :  { %8235 = vmatpush.bf16.msra.mxu2 %v11452_v32  ;;  %8256 = vmatpush.bf16.msrb.mxu0 %v11456_v21  ;;  %v11508_v32 = vor.u32 %v12227_v20, %v11507_v14  ;;  %v11499_v21 = vld [vmem:[%s17465_s10 + $0x1d0] sm:$0xf]  ;;  %v12241_v14 = vld [vmem:[%s17465_s10 + $0x254] sm:$0xf0]  ;;  %v12240_v20 = vld [vmem:[%s17465_s10 + $0x254] sm:$0xf] }
 0xeb2   :  { %8236 = vmatpush.bf16.msra.mxu2 %v11444_v15  ;;  %8257 = vmatpush.bf16.msrb.mxu0 %v11448_v58  ;;  %v11500_v15 = vor.u32 %v12225_v30, %v11499_v21  ;;  %v12161_v58 = vld [vmem:[%s17464_s9 + $0x68] sm:$0xff]  ;;  %v11555_v30 = vld [vmem:[%s17465_s10 + $0x240] sm:$0xf] }
 0xeb4   :  { %v7785_v35 = vpop.f32.mrf.mxu3 }
 0xeb5   :  { %7986 = vmatmul.f32.gmra.mxu2 %v7785_v35  ;;  %8007 = vmatmul.f32.gmra.mxu0 %v7785_v35  ;;  %v12222_v35 = vld [vmem:[%s17465_s10 + $0x1c4] sm:$0xf] }
 0xeb6   :  { %8237 = vmatpush.bf16.msra.mxu2 %v11436_v62  ;;  %8258 = vmatpush.bf16.msrb.mxu0 %v11440_v36  ;;  %v11493_v62 = vld [vmem:[%s17465_s10 + $0x1c8] sm:$0xf0]  ;;  %v12221_v36 = vld [vmem:[%s17465_s10 + $0x1b4] sm:$0xf0] }
 0xeb7   :  { %v11496_v24 = vor.u32 %v12222_v35, %v11493_v62  ;;  %v11549_v62 = vld [vmem:[%s17465_s10 + $0x238] sm:$0xf0] }
 0xeb9   :  { %11258 = vmatmul.msk.bf16.gmra.mxu3 %vm7701_vm4, %v12159_v53  ;;  %v11483_v53 = vld [vmem:[%s17465_s10 + $0x1b0] sm:$0xf] }
 0xeba   :  { %8238 = vmatpush.bf16.msra.mxu2 %v11428_v16  ;;  %8259 = vmatpush.bf16.msrb.mxu0 %v11432_v7  ;;  %v11484_v54 = vor.u32 %v12221_v36, %v11483_v53  ;;  %v11485_v16 = vld [vmem:[%s17465_s10 + $0x1b8] sm:$0xf0]  ;;  %v11475_v7 = vld [vmem:[%s17465_s10 + $0x1a0] sm:$0xf]  ;;  %v12235_v36 = vld [vmem:[%s17465_s10 + $0x224] sm:$0xf0] }
 0xebb   :  { %v11488_v37 = vor.u32 %v12220_v59, %v11485_v16  ;;  %v11476_v8 = vor.u32 %v12219_v41, %v11475_v7  ;;  %v11539_v53 = vld [vmem:[%s17465_s10 + $0x220] sm:$0xf]  ;;  %v12234_v59 = vld [vmem:[%s17465_s10 + $0x224] sm:$0xf]  ;;  %v11541_v16 = vld [vmem:[%s17465_s10 + $0x228] sm:$0xf0] }
 0xebc   :  { %v7788_v44 = vpop.f32.mrf.mxu3  ;;  %v12233_v7 = vld [vmem:[%s17465_s10 + $0x214] sm:$0xf0]  ;;  %v12232_v41 = vld [vmem:[%s17465_s10 + $0x214] sm:$0xf] }
 0xebd   :  { %7989 = vmatmul.f32.gmra.mxu2 %v7788_v44  ;;  %8010 = vmatmul.f32.gmra.mxu0 %v7788_v44  ;;  %v11477_v44 = vld [vmem:[%s17465_s10 + $0x1a8] sm:$0xf0] }
 0xebe   :  { %8239 = vmatpush.bf16.msra.mxu2 %v11420_v45  ;;  %8260 = vmatpush.bf16.msrb.mxu0 %v11424_v13  ;;  %v11467_v45 = vld [vmem:[%s17465_s10 + $0x190] sm:$0xf]  ;;  %v12216_v13 = vld [vmem:[%s17465_s10 + $0x194] sm:$0xf] }
 0xebf   :  { %v11468_v34 = vor.u32 %v12217_v63, %v11467_v45  ;;  %v11472_v0 = vor.u32 %v12216_v13, %v11469_v9  ;;  %v11523_v63 = vld [vmem:[%s17465_s10 + $0x200] sm:$0xf]  ;;  %v12231_v13 = vld [vmem:[%s17465_s10 + $0x204] sm:$0xf0]  ;;  %v11525_v9 = vld [vmem:[%s17465_s10 + $0x208] sm:$0xf0] }
 0xec2   :  { %8240 = vmatpush.bf16.msra.mxu2 %v11412_v49  ;;  %8261 = vmatpush.bf16.msrb.mxu0 %v11416_v52  ;;  %v12162_v49 = vld [vmem:[%s17464_s9 + $0x70] sm:$0xff] }
 0xec3   :  { %v12308_v52 = vld [vmem:[%s17465_s10 + $0x474] sm:$0xf] }
 0xec4   :  { %v7790_v57 = vpop.f32.mrf.mxu3  ;;  %v11840_v19 = vor.u32 %v12308_v52, %v11837_v51  ;;  %v11829_v52 = vld [vmem:[%s17465_s10 + $0x468] sm:$0xf0] }
 0xec5   :  { %7992 = vmatmul.f32.gmra.mxu2 %v7790_v57  ;;  %8013 = vmatmul.f32.gmra.mxu0 %v7790_v57  ;;  %v12214_v57 = vld [vmem:[%s17465_s10 + $0x184] sm:$0xf] }
 0xec6   :  { %8241 = vmatpush.bf16.msra.mxu2 %v11404_v17  ;;  %8262 = vmatpush.bf16.msrb.mxu0 %v11408_v50  ;;  %v11579_v50 = vld [vmem:[%s17465_s10 + $0x270] sm:$0xf] }
 0xec7   :  { %9132 = vmatpush.bf16.msra.mxu3 %v11840_v19  ;;  %v11643_v19 = vld [vmem:[%s17465_s10 + $0x2f0] sm:$0xf] }
 0xec9   :  { %11259 = vmatmul.msk.bf16.gmra.mxu3 %vm7701_vm4, %v12160_v1  ;;  %v11464_v1 = vor.u32 %v12214_v57, %v11461_v40  ;;  %v11645_v40 = vld [vmem:[%s17465_s10 + $0x2f8] sm:$0xf0] }
 0xeca   :  { %8242 = vmatpush.bf16.msra.mxu2 %v11396_v2  ;;  %8263 = vmatpush.bf16.msrb.mxu0 %v11400_v26  ;;  %v11580_v2 = vor.u32 %v12245_v38, %v11579_v50  ;;  %v11584_v26 = vor.u32 %v12244_v18, %v11581_v25  ;;  %v11635_v50 = vld [vmem:[%s17465_s10 + $0x2e0] sm:$0xf]  ;;  %v12259_v38 = vld [vmem:[%s17465_s10 + $0x2e4] sm:$0xf0]  ;;  %v12258_v18 = vld [vmem:[%s17465_s10 + $0x2e4] sm:$0xf] }
 0xecc   :  { %v16361_v12 = vpop.f32.mrf.mxu3 }
 0xecd   :  { %8105 = vmatmul.f32.vlgmr.msrb.gmra.mxu2 %v16145_v11  ;;  %8126 = vmatmul.f32.vlgmr.msra.gmra.mxu0 %v16145_v11  ;;  %v11512_v11 = vor.u32 %v12226_v43, %v11509_v39  ;;  %v11565_v39 = vld [vmem:[%s17465_s10 + $0x258] sm:$0xf0] }
 0xece   :  { %8381 = vmatpush.bf16.msrb.mxu2 %v11516_v47  ;;  %8402 = vmatpush.bf16.msra.mxu0 %v11520_v55  ;;  %v11572_v47 = vor.u32 %v12243_v48, %v11571_v5  ;;  %v11563_v55 = vld [vmem:[%s17465_s10 + $0x250] sm:$0xf]  ;;  %v11568_v21 = vor.u32 %v12240_v20, %v11565_v39  ;;  %v12257_v5 = vld [vmem:[%s17465_s10 + $0x2d4] sm:$0xf0]  ;;  %v12256_v48 = vld [vmem:[%s17465_s10 + $0x2d4] sm:$0xf] }
 0xecf   :  { %v12255_v20 = vld [vmem:[%s17465_s10 + $0x2c4] sm:$0xf0]  ;;  %v11621_v39 = vld [vmem:[%s17465_s10 + $0x2c8] sm:$0xf0] }
 0xed2   :  { %8382 = vmatpush.bf16.msrb.mxu2 %v11508_v32  ;;  %8403 = vmatpush.bf16.msra.mxu0 %v11512_v11  ;;  %v11564_v32 = vor.u32 %v12241_v14, %v11563_v55  ;;  %v12163_v11 = vld [vmem:[%s17464_s9 + $0x78] sm:$0xff]  ;;  %v11619_v14 = vld [vmem:[%s17465_s10 + $0x2c0] sm:$0xf] }
 0xed4   :  { %v16389_v22 = vpop.f32.mrf.mxu3 }
 0xed5   :  { %8108 = vmatmul.f32.gmra.mxu2 %v16171_v60  ;;  %8129 = vmatmul.f32.gmra.mxu0 %v16171_v60  ;;  %v11492_v60 = vor.u32 %v12223_v4, %v11491_v61  ;;  %v12237_v61 = vld [vmem:[%s17465_s10 + $0x234] sm:$0xf0]  ;;  %v12236_v4 = vld [vmem:[%s17465_s10 + $0x234] sm:$0xf] }
 0xed6   :  { %8383 = vmatpush.bf16.msrb.mxu2 %v11500_v15  ;;  %8404 = vmatpush.bf16.msra.mxu0 %v11504_v29  ;;  %v12238_v15 = vld [vmem:[%s17465_s10 + $0x244] sm:$0xf]  ;;  %v11547_v29 = vld [vmem:[%s17465_s10 + $0x230] sm:$0xf] }
 0xed9   :  { %11260 = vmatmul.msk.bf16.gmra.mxu3 %vm7701_vm4, %v12161_v58  ;;  %v11560_v58 = vor.u32 %v12238_v15, %v11557_v33  ;;  %v11613_v33 = vld [vmem:[%s17465_s10 + $0x2b8] sm:$0xf0] }
 0xeda   :  { %8384 = vmatpush.bf16.msrb.mxu2 %v11492_v60  ;;  %8405 = vmatpush.bf16.msra.mxu0 %v11496_v24  ;;  %v11548_v60 = vor.u32 %v12237_v61, %v11547_v29  ;;  %v11552_v24 = vor.u32 %v12236_v4, %v11549_v62  ;;  %v11603_v29 = vld [vmem:[%s17465_s10 + $0x2a0] sm:$0xf]  ;;  %v12251_v61 = vld [vmem:[%s17465_s10 + $0x2a4] sm:$0xf0]  ;;  %v12250_v4 = vld [vmem:[%s17465_s10 + $0x2a4] sm:$0xf] }
 0xedc   :  { %v16421_v23 = vpop.f32.mrf.mxu3 }
 0xedd   :  { %8111 = vmatmul.f32.gmra.mxu2 %v16201_v28  ;;  %8132 = vmatmul.f32.gmra.mxu0 %v16201_v28  ;;  %v11480_v28 = vor.u32 %v12218_v10, %v11477_v44  ;;  %v11533_v44 = vld [vmem:[%s17465_s10 + $0x218] sm:$0xf0] }
 0xede   :  { %8385 = vmatpush.bf16.msrb.mxu2 %v11484_v54  ;;  %8406 = vmatpush.bf16.msra.mxu0 %v11488_v37  ;;  %v11540_v54 = vor.u32 %v12235_v36, %v11539_v53  ;;  %v11531_v37 = vld [vmem:[%s17465_s10 + $0x210] sm:$0xf]  ;;  %v11536_v45 = vor.u32 %v12232_v41, %v11533_v44  ;;  %v12249_v53 = vld [vmem:[%s17465_s10 + $0x294] sm:$0xf0]  ;;  %v12248_v36 = vld [vmem:[%s17465_s10 + $0x294] sm:$0xf] }
 0xedf   :  { %v12246_v41 = vld [vmem:[%s17465_s10 + $0x284] sm:$0xf] }
 0xee2   :  { %8386 = vmatpush.bf16.msrb.mxu2 %v11476_v8  ;;  %8407 = vmatpush.bf16.msra.mxu0 %v11480_v28  ;;  %v11532_v8 = vor.u32 %v12233_v7, %v11531_v37  ;;  %v12164_v28 = vld [vmem:[%s17464_s9 + $0x80] sm:$0xff]  ;;  %v12247_v7 = vld [vmem:[%s17465_s10 + $0x284] sm:$0xf0] }
 0xee3   :  { %v11587_v37 = vld [vmem:[%s17465_s10 + $0x280] sm:$0xf] }
 0xee4   :  { %v16449_v6 = vpop.f32.mrf.mxu3 }
 0xee5   :  { %8114 = vmatmul.f32.gmra.mxu2 %v16227_v56  ;;  %8135 = vmatmul.f32.gmra.mxu0 %v16227_v56  ;;  %v11459_v56 = vld [vmem:[%s17465_s10 + $0x180] sm:$0xf] }
 0xee6   :  { %8387 = vmatpush.bf16.msrb.mxu2 %v11468_v34  ;;  %8408 = vmatpush.bf16.msra.mxu0 %v11472_v0  ;;  %v11460_v17 = vor.u32 %v12215_v31, %v11459_v56  ;;  %v12230_v34 = vld [vmem:[%s17465_s10 + $0x204] sm:$0xf]  ;;  %v12261_v56 = vld [vmem:[%s17465_s10 + $0x2f4] sm:$0xf0]  ;;  %v12260_v31 = vld [vmem:[%s17465_s10 + $0x2f4] sm:$0xf] }
 0xee7   :  { %v12306_v0 = vld [vmem:[%s17465_s10 + $0x464] sm:$0xf] }
 0xee8   :  { %v11832_v51 = vor.u32 %v12306_v0, %v11829_v52  ;;  %v12304_v0 = vld [vmem:[%s17465_s10 + $0x454] sm:$0xf]  ;;  %v11821_v52 = vld [vmem:[%s17465_s10 + $0x458] sm:$0xf0] }
 0xee9   :  { %11261 = vmatmul.msk.bf16.gmra.mxu3 %vm7701_vm4, %v12162_v49  ;;  %v11528_v49 = vor.u32 %v12230_v34, %v11525_v9  ;;  %v11709_v9 = vld [vmem:[%s17465_s10 + $0x378] sm:$0xf0] }
 0xeea   :  { %8388 = vmatpush.bf16.msrb.mxu2 %v11460_v17  ;;  %8409 = vmatpush.bf16.msra.mxu0 %v11464_v1  ;;  %v11644_v17 = vor.u32 %v12261_v56, %v11643_v19  ;;  %v11648_v1 = vor.u32 %v12260_v31, %v11645_v40  ;;  %v11699_v19 = vld [vmem:[%s17465_s10 + $0x360] sm:$0xf]  ;;  %v12275_v56 = vld [vmem:[%s17465_s10 + $0x364] sm:$0xf0]  ;;  %v12274_v31 = vld [vmem:[%s17465_s10 + $0x364] sm:$0xf] }
 0xeeb   :  { %9133 = vmatpush.bf16.msra.mxu3 %v11832_v51  ;;  %v11824_v51 = vor.u32 %v12304_v0, %v11821_v52  ;;  %v11701_v40 = vld [vmem:[%s17465_s10 + $0x368] sm:$0xf0]  ;;  %v11763_v52 = vld [vmem:[%s17465_s10 + $0x3e0] sm:$0xf] }
 0xeec   :  { %v16487_v46 = vpop.f32.mrf.mxu3 }
 0xeed   :  { %8243 = vmatmul.f32.vlgmr.msra.gmra.mxu2 %v16361_v12  ;;  %8264 = vmatmul.f32.vlgmr.msrb.gmra.mxu0 %v16361_v12  ;;  %v11576_v12 = vor.u32 %v12242_v3, %v11573_v27  ;;  %v11629_v27 = vld [vmem:[%s17465_s10 + $0x2d8] sm:$0xf0] }
 0xeee   :  { %8527 = vmatpush.bf16.msra.mxu2 %v11580_v2  ;;  %8548 = vmatpush.bf16.msrb.mxu0 %v11584_v26  ;;  %v11636_v2 = vor.u32 %v12259_v38, %v11635_v50  ;;  %v11627_v26 = vld [vmem:[%s17465_s10 + $0x2d0] sm:$0xf]  ;;  %v11632_v55 = vor.u32 %v12256_v48, %v11629_v27  ;;  %v11683_v48 = vld [vmem:[%s17465_s10 + $0x340] sm:$0xf]  ;;  %v12270_v27 = vld [vmem:[%s17465_s10 + $0x344] sm:$0xf] }
 0xeef   :  { %9134 = vmatpush.bf16.msra.mxu3 %v11824_v51  ;;  %v11691_v38 = vld [vmem:[%s17465_s10 + $0x350] sm:$0xf]  ;;  %v12291_v51 = vld [vmem:[%s17465_s10 + $0x3e4] sm:$0xf0] }
 0xef2   :  { %8528 = vmatpush.bf16.msra.mxu2 %v11572_v47  ;;  %8549 = vmatpush.bf16.msrb.mxu0 %v11576_v12  ;;  %v11628_v47 = vor.u32 %v12257_v5, %v11627_v26  ;;  %v12165_v12 = vld [vmem:[%s17464_s9 + $0x88] sm:$0xff]  ;;  %v11693_v26 = vld [vmem:[%s17465_s10 + $0x358] sm:$0xf0] }
 0xef4   :  { %v16515_v43 = vpop.f32.mrf.mxu3 }
 0xef5   :  { %8246 = vmatmul.f32.gmra.mxu2 %v16389_v22  ;;  %8267 = vmatmul.f32.gmra.mxu0 %v16389_v22  ;;  %v11556_v22 = vor.u32 %v12239_v42, %v11555_v30  ;;  %v12253_v30 = vld [vmem:[%s17465_s10 + $0x2b4] sm:$0xf0]  ;;  %v12252_v42 = vld [vmem:[%s17465_s10 + $0x2b4] sm:$0xf] }
 0xef6   :  { %8529 = vmatpush.bf16.msra.mxu2 %v11564_v32  ;;  %8550 = vmatpush.bf16.msrb.mxu0 %v11568_v21  ;;  %v12254_v32 = vld [vmem:[%s17465_s10 + $0x2c4] sm:$0xf]  ;;  %v11611_v21 = vld [vmem:[%s17465_s10 + $0x2b0] sm:$0xf] }
 0xef9   :  { %11262 = vmatmul.msk.bf16.gmra.mxu3 %vm7701_vm4, %v12163_v11  ;;  %v11624_v11 = vor.u32 %v12254_v32, %v11621_v39  ;;  %v11675_v32 = vld [vmem:[%s17465_s10 + $0x330] sm:$0xf]  ;;  %v12268_v39 = vld [vmem:[%s17465_s10 + $0x334] sm:$0xf] }
 0xefa   :  { %8530 = vmatpush.bf16.msra.mxu2 %v11556_v22  ;;  %8551 = vmatpush.bf16.msrb.mxu0 %v11560_v58  ;;  %v11612_v22 = vor.u32 %v12253_v30, %v11611_v21  ;;  %v11616_v58 = vor.u32 %v12252_v42, %v11613_v33  ;;  %v11677_v30 = vld [vmem:[%s17465_s10 + $0x338] sm:$0xf0]  ;;  %v12267_v33 = vld [vmem:[%s17465_s10 + $0x324] sm:$0xf0] }
 0xefb   :  { %v11680_v42 = vor.u32 %v12268_v39, %v11677_v30 }
 0xefc   :  { %v16547_v35 = vpop.f32.mrf.mxu3 }
 0xefd   :  { %8249 = vmatmul.f32.gmra.mxu2 %v16421_v23  ;;  %8270 = vmatmul.f32.gmra.mxu0 %v16421_v23  ;;  %v11544_v23 = vor.u32 %v12234_v59, %v11541_v16  ;;  %v11597_v16 = vld [vmem:[%s17465_s10 + $0x298] sm:$0xf0] }
 0xefe   :  { %8531 = vmatpush.bf16.msra.mxu2 %v11548_v60  ;;  %8552 = vmatpush.bf16.msrb.mxu0 %v11552_v24  ;;  %v11604_v60 = vor.u32 %v12251_v61, %v11603_v29  ;;  %v11595_v24 = vld [vmem:[%s17465_s10 + $0x290] sm:$0xf] }
 0xf02   :  { %8532 = vmatpush.bf16.msra.mxu2 %v11540_v54  ;;  %8553 = vmatpush.bf16.msrb.mxu0 %v11544_v23  ;;  %v11596_v54 = vor.u32 %v12249_v53, %v11595_v24  ;;  %v11600_v23 = vor.u32 %v12248_v36, %v11597_v16  ;;  %v12264_v24 = vld [vmem:[%s17465_s10 + $0x314] sm:$0xf] }
 0xf04   :  { %v16575_v10 = vpop.f32.mrf.mxu3 }
 0xf05   :  { %8252 = vmatmul.f32.gmra.mxu2 %v16449_v6  ;;  %8273 = vmatmul.f32.gmra.mxu0 %v16449_v6  ;;  %v11524_v6 = vor.u32 %v12231_v13, %v11523_v63  ;;  %v12277_v63 = vld [vmem:[%s17465_s10 + $0x374] sm:$0xf0]  ;;  %v12276_v13 = vld [vmem:[%s17465_s10 + $0x374] sm:$0xf] }
 0xf06   :  { %8533 = vmatpush.bf16.msra.mxu2 %v11532_v8  ;;  %8554 = vmatpush.bf16.msrb.mxu0 %v11536_v45  ;;  %v11588_v8 = vor.u32 %v12247_v7, %v11587_v37  ;;  %v11707_v45 = vld [vmem:[%s17465_s10 + $0x370] sm:$0xf]  ;;  %v12263_v37 = vld [vmem:[%s17465_s10 + $0x304] sm:$0xf0]  ;;  %v12262_v7 = vld [vmem:[%s17465_s10 + $0x304] sm:$0xf] }
 0xf09   :  { %11263 = vmatmul.msk.bf16.gmra.mxu3 %vm7701_vm4, %v12164_v28 }
 0xf0a   :  { %8534 = vmatpush.bf16.msra.mxu2 %v11524_v6  ;;  %8555 = vmatpush.bf16.msrb.mxu0 %v11528_v49  ;;  %v11708_v6 = vor.u32 %v12277_v63, %v11707_v45  ;;  %v11712_v49 = vor.u32 %v12276_v13, %v11709_v9  ;;  %v11771_v45 = vld [vmem:[%s17465_s10 + $0x3f0] sm:$0xf]  ;;  %v12293_v63 = vld [vmem:[%s17465_s10 + $0x3f4] sm:$0xf0]  ;;  %v12292_v13 = vld [vmem:[%s17465_s10 + $0x3f4] sm:$0xf] }
 0xf0b   :  { %v11772_v9 = vor.u32 %v12293_v63, %v11771_v45  ;;  %v11723_v63 = vld [vmem:[%s17465_s10 + $0x390] sm:$0xf] }
 0xf0c   :  { %v16613_v57 = vpop.f32.mrf.mxu3 }
 0xf0d   :  { %8389 = vmatmul.f32.vlgmr.msrb.gmra.mxu2 %v16487_v46  ;;  %8410 = vmatmul.f32.vlgmr.msra.gmra.mxu0 %v16487_v46  ;;  %v11637_v46 = vld [vmem:[%s17465_s10 + $0x2e8] sm:$0xf0] }
 0xf0e   :  { %8673 = vmatpush.bf16.msrb.mxu2 %v11644_v17  ;;  %8694 = vmatpush.bf16.msra.mxu0 %v11648_v1  ;;  %v11640_v25 = vor.u32 %v12258_v18, %v11637_v46  ;;  %v11700_v17 = vor.u32 %v12275_v56, %v11699_v19  ;;  %v11704_v1 = vor.u32 %v12274_v31, %v11701_v40  ;;  %v12273_v18 = vld [vmem:[%s17465_s10 + $0x354] sm:$0xf0]  ;;  %v12290_v19 = vld [vmem:[%s17465_s10 + $0x3e4] sm:$0xf] }
 0xf0f   :  { %v11764_v31 = vor.u32 %v12291_v51, %v11763_v52  ;;  %v12296_v52 = vld [vmem:[%s17465_s10 + $0x414] sm:$0xf]  ;;  %v11789_v51 = vld [vmem:[%s17465_s10 + $0x418] sm:$0xf0] }
 0xf12   :  { %8674 = vmatpush.bf16.msrb.mxu2 %v11636_v2  ;;  %8695 = vmatpush.bf16.msra.mxu0 %v11640_v25  ;;  %v12272_v2 = vld [vmem:[%s17465_s10 + $0x354] sm:$0xf]  ;;  %v11692_v25 = vor.u32 %v12273_v18, %v11691_v38  ;;  %v12302_v38 = vld [vmem:[%s17465_s10 + $0x444] sm:$0xf]  ;;  %v11813_v18 = vld [vmem:[%s17465_s10 + $0x448] sm:$0xf0] }
 0xf13   :  { %v11696_v5 = vor.u32 %v12272_v2, %v11693_v26  ;;  %v11755_v2 = vld [vmem:[%s17465_s10 + $0x3d0] sm:$0xf]  ;;  %v12289_v26 = vld [vmem:[%s17465_s10 + $0x3d4] sm:$0xf0] }
 0xf14   :  { %v16641_v3 = vpop.f32.mrf.mxu3 }
 0xf15   :  { %8392 = vmatmul.f32.gmra.mxu2 %v16515_v43  ;;  %8413 = vmatmul.f32.gmra.mxu0 %v16515_v43  ;;  %v11620_v43 = vor.u32 %v12255_v20, %v11619_v14 }
 0xf16   :  { %8675 = vmatpush.bf16.msrb.mxu2 %v11628_v47  ;;  %8696 = vmatpush.bf16.msra.mxu0 %v11632_v55  ;;  %v12271_v47 = vld [vmem:[%s17465_s10 + $0x344] sm:$0xf0] }
 0xf17   :  { %v11684_v55 = vor.u32 %v12271_v47, %v11683_v48  ;;  %v11757_v48 = vld [vmem:[%s17465_s10 + $0x3d8] sm:$0xf0]  ;;  %v11756_v47 = vor.u32 %v12289_v26, %v11755_v2  ;;  %v12294_v2 = vld [vmem:[%s17465_s10 + $0x404] sm:$0xf] }
 0xf19   :  { %11264 = vmatmul.msk.bf16.gmra.mxu3 %vm7701_vm4, %v12165_v12 }
 0xf1a   :  { %8676 = vmatpush.bf16.msrb.mxu2 %v11620_v43  ;;  %8697 = vmatpush.bf16.msra.mxu0 %v11624_v11  ;;  %v12269_v43 = vld [vmem:[%s17465_s10 + $0x334] sm:$0xf0] }
 0xf1b   :  { %v11676_v21 = vor.u32 %v12269_v43, %v11675_v32 }
 0xf1c   :  { %v16673_v15 = vpop.f32.mrf.mxu3 }
 0xf1d   :  { %8395 = vmatmul.f32.gmra.mxu2 %v16547_v35  ;;  %8416 = vmatmul.f32.gmra.mxu0 %v16547_v35  ;;  %v11605_v35 = vld [vmem:[%s17465_s10 + $0x2a8] sm:$0xf0] }
 0xf1e   :  { %8677 = vmatpush.bf16.msrb.mxu2 %v11612_v22  ;;  %8698 = vmatpush.bf16.msra.mxu0 %v11616_v58  ;;  %v11608_v62 = vor.u32 %v12250_v4, %v11605_v35  ;;  %v11667_v22 = vld [vmem:[%s17465_s10 + $0x320] sm:$0xf]  ;;  %v12266_v58 = vld [vmem:[%s17465_s10 + $0x324] sm:$0xf]  ;;  %v11659_v35 = vld [vmem:[%s17465_s10 + $0x310] sm:$0xf] }
 0xf1f   :  { %v11668_v61 = vor.u32 %v12267_v33, %v11667_v22  ;;  %v12285_v22 = vld [vmem:[%s17465_s10 + $0x3b4] sm:$0xf0]  ;;  %v12284_v33 = vld [vmem:[%s17465_s10 + $0x3b4] sm:$0xf] }
 0xf22   :  { %8678 = vmatpush.bf16.msrb.mxu2 %v11604_v60  ;;  %8699 = vmatpush.bf16.msra.mxu0 %v11608_v62  ;;  %v12265_v62 = vld [vmem:[%s17465_s10 + $0x314] sm:$0xf0] }
 0xf23   :  { %v11660_v36 = vor.u32 %v12265_v62, %v11659_v35 }
 0xf24   :  { %v16701_v59 = vpop.f32.mrf.mxu3 }
 0xf25   :  { %8398 = vmatmul.f32.gmra.mxu2 %v16575_v10  ;;  %8419 = vmatmul.f32.gmra.mxu0 %v16575_v10  ;;  %v11589_v10 = vld [vmem:[%s17465_s10 + $0x288] sm:$0xf0] }
 0xf26   :  { %8679 = vmatpush.bf16.msrb.mxu2 %v11596_v54  ;;  %8700 = vmatpush.bf16.msra.mxu0 %v11600_v23  ;;  %v11592_v44 = vor.u32 %v12246_v41, %v11589_v10  ;;  %v11661_v54 = vld [vmem:[%s17465_s10 + $0x318] sm:$0xf0]  ;;  %v11651_v23 = vld [vmem:[%s17465_s10 + $0x300] sm:$0xf] }
 0xf27   :  { %v11664_v16 = vor.u32 %v12264_v24, %v11661_v54  ;;  %v11731_v24 = vld [vmem:[%s17465_s10 + $0x3a0] sm:$0xf]  ;;  %v12282_v54 = vld [vmem:[%s17465_s10 + $0x3a4] sm:$0xf] }
 0xf2a   :  { %v16720_v28 = vpop.f32.mrf.mxu0  ;;  %8680 = vmatpush.bf16.msrb.mxu2 %v11588_v8  ;;  %8701 = vmatpush.bf16.msra.mxu0 %v11592_v44  ;;  %v11652_v8 = vor.u32 %v12263_v37, %v11651_v23  ;;  %v12298_v37 = vld [vmem:[%s17465_s10 + $0x424] sm:$0xf] }
 0xf2c   :  { %v16731_v34 = vpop.f32.mrf.mxu3 }
 0xf2d   :  { %8535 = vmatmul.f32.vlgmr.msra.gmra.mxu2 %v16613_v57  ;;  %8556 = vmatmul.f32.vlgmr.msrb.gmra.mxu0 %v16613_v57 }
 0xf2e   :  { %8819 = vmatpush.bf16.msra.mxu2 %v11708_v6  ;;  %8840 = vmatpush.bf16.msrb.mxu0 %v11712_v49  ;;  %v11773_v49 = vld [vmem:[%s17465_s10 + $0x3f8] sm:$0xf0] }
 0xf2f   :  { %v11776_v0 = vor.u32 %v12292_v13, %v11773_v49  ;;  %v12281_v13 = vld [vmem:[%s17465_s10 + $0x394] sm:$0xf0] }
 0xf30   :  { %v16753_v57 = vpop.f32.mrf.mxu2  ;;  %v11724_v49 = vor.u32 %v12281_v13, %v11723_v63  ;;  %v11787_v63 = vld [vmem:[%s17465_s10 + $0x410] sm:$0xf]  ;;  %v12297_v13 = vld [vmem:[%s17465_s10 + $0x414] sm:$0xf0] }
 0xf32   :  { %v16758_v50 = vpop.f32.mrf.mxu0  ;;  %8820 = vmatpush.bf16.msra.mxu2 %v11700_v17  ;;  %8841 = vmatpush.bf16.msrb.mxu0 %v11704_v1 }
 0xf34   :  { %v16769_v46 = vpop.f32.mrf.mxu3 }
 0xf35   :  { %8538 = vmatmul.f32.gmra.mxu2 %v16641_v3  ;;  %8559 = vmatmul.f32.gmra.mxu0 %v16641_v3  ;;  %v11685_v3 = vld [vmem:[%s17465_s10 + $0x348] sm:$0xf0] }
 0xf36   :  { %8821 = vmatpush.bf16.msra.mxu2 %v11692_v25  ;;  %8842 = vmatpush.bf16.msrb.mxu0 %v11696_v5  ;;  %v11688_v14 = vor.u32 %v12270_v27, %v11685_v3  ;;  %v12288_v5 = vld [vmem:[%s17465_s10 + $0x3d4] sm:$0xf]  ;;  %v12287_v3 = vld [vmem:[%s17465_s10 + $0x3c4] sm:$0xf0] }
 0xf37   :  { %v11760_v27 = vor.u32 %v12288_v5, %v11757_v48 }
 0xf38   :  { %v16785_v12 = vpop.f32.mrf.mxu2 }
 0xf3a   :  { %v16790_v20 = vpop.f32.mrf.mxu0  ;;  %8822 = vmatpush.bf16.msra.mxu2 %v11684_v55  ;;  %8843 = vmatpush.bf16.msrb.mxu0 %v11688_v14  ;;  %v11747_v55 = vld [vmem:[%s17465_s10 + $0x3c0] sm:$0xf]  ;;  %v12286_v14 = vld [vmem:[%s17465_s10 + $0x3c4] sm:$0xf] }
 0xf3b   :  { %v11748_v43 = vor.u32 %v12287_v3, %v11747_v55  ;;  %v11835_v55 = vld [vmem:[%s17465_s10 + $0x470] sm:$0xf]  ;;  %v12309_v3 = vld [vmem:[%s17465_s10 + $0x474] sm:$0xf0] }
 0xf3c   :  { %v16801_v11 = vpop.f32.mrf.mxu3 }
 0xf3d   :  { %8541 = vmatmul.f32.gmra.mxu2 %v16673_v15  ;;  %8562 = vmatmul.f32.gmra.mxu0 %v16673_v15  ;;  %v11669_v15 = vld [vmem:[%s17465_s10 + $0x328] sm:$0xf0] }
 0xf3e   :  { %8823 = vmatpush.bf16.msra.mxu2 %v11676_v21  ;;  %8844 = vmatpush.bf16.msrb.mxu0 %v11680_v42  ;;  %v11672_v4 = vor.u32 %v12266_v58, %v11669_v15  ;;  %v11739_v42 = vld [vmem:[%s17465_s10 + $0x3b0] sm:$0xf]  ;;  %v12300_v15 = vld [vmem:[%s17465_s10 + $0x434] sm:$0xf] }
 0xf40   :  { %v16817_v29 = vpop.f32.mrf.mxu2 }
 0xf42   :  { %v16822_v60 = vpop.f32.mrf.mxu0  ;;  %8824 = vmatpush.bf16.msra.mxu2 %v11668_v61  ;;  %8845 = vmatpush.bf16.msrb.mxu0 %v11672_v4  ;;  %v11741_v61 = vld [vmem:[%s17465_s10 + $0x3b8] sm:$0xf0] }
 0xf43   :  { %v11805_v4 = vld [vmem:[%s17465_s10 + $0x438] sm:$0xf0]  ;;  %v11744_v35 = vor.u32 %v12284_v33, %v11741_v61  ;;  %v12305_v33 = vld [vmem:[%s17465_s10 + $0x454] sm:$0xf0]  ;;  %v11811_v61 = vld [vmem:[%s17465_s10 + $0x440] sm:$0xf] }
 0xf44   :  { %v16833_v53 = vpop.f32.mrf.mxu3  ;;  %v11808_v62 = vor.u32 %v12300_v15, %v11805_v4  ;;  %v12303_v15 = vld [vmem:[%s17465_s10 + $0x444] sm:$0xf0] }
 0xf45   :  { %8544 = vmatmul.f32.gmra.mxu2 %v16701_v59  ;;  %8565 = vmatmul.f32.gmra.mxu0 %v16701_v59  ;;  %v11653_v59 = vld [vmem:[%s17465_s10 + $0x308] sm:$0xf0] }
 0xf46   :  { %8825 = vmatpush.bf16.msra.mxu2 %v11660_v36  ;;  %8846 = vmatpush.bf16.msrb.mxu0 %v11664_v16  ;;  %v11656_v10 = vor.u32 %v12262_v7, %v11653_v59  ;;  %v12283_v36 = vld [vmem:[%s17465_s10 + $0x3a4] sm:$0xf0]  ;;  %v11797_v7 = vld [vmem:[%s17465_s10 + $0x428] sm:$0xf0] }
 0xf47   :  { %v11732_v23 = vor.u32 %v12283_v36, %v11731_v24 }
 0xf48   :  { %v16849_v41 = vpop.f32.mrf.mxu2 }
 0xf4a   :  { %v16854_v44 = vpop.f32.mrf.mxu0  ;;  %8826 = vmatpush.bf16.msra.mxu2 %v11652_v8  ;;  %8847 = vmatpush.bf16.msrb.mxu0 %v11656_v10  ;;  %v11800_v10 = vor.u32 %v12298_v37, %v11797_v7 }
 0xf4c   :  { %v16865_v6 = vpop.f32.mrf.mxu3 }
 0xf4d   :  { %8681 = vmatmul.f32.vlgmr.msrb.gmra.mxu2 %v16731_v34  ;;  %8702 = vmatmul.f32.vlgmr.msra.gmra.mxu0 %v16731_v34  ;;  %v11765_v34 = vld [vmem:[%s17465_s10 + $0x3e8] sm:$0xf0] }
 0xf4e   :  { %8965 = vmatpush.bf16.msrb.mxu2 %v11772_v9  ;;  %8986 = vmatpush.bf16.msra.mxu0 %v11776_v0  ;;  %v11768_v40 = vor.u32 %v12290_v19, %v11765_v34  ;;  %v12280_v9 = vld [vmem:[%s17465_s10 + $0x394] sm:$0xf]  ;;  %v11725_v0 = vld [vmem:[%s17465_s10 + $0x398] sm:$0xf0]  ;;  %v12279_v34 = vld [vmem:[%s17465_s10 + $0x384] sm:$0xf0] }
 0xf4f   :  { %v11728_v19 = vor.u32 %v12280_v9, %v11725_v0  ;;  %v11779_v9 = vld [vmem:[%s17465_s10 + $0x400] sm:$0xf] }
 0xf50   :  { %v8106_v56 = vpop.f32.mrf.mxu2 }
 0xf51   :  { %v16885_v17 = vadd.f32 %v8106_v56, %v16753_v57  ;;  %v11816_v57 = vor.u32 %v12302_v38, %v11813_v18  ;;  %v11792_v56 = vor.u32 %v12296_v52, %v11789_v51 }
 0xf52   :  { %v16887_v1 = vpop.f32.mrf.mxu0  ;;  %8966 = vmatpush.bf16.msrb.mxu2 %v11764_v31  ;;  %8987 = vmatpush.bf16.msra.mxu0 %v11768_v40  ;;  %v11715_v31 = vld [vmem:[%s17465_s10 + $0x380] sm:$0xf]  ;;  %v12278_v40 = vld [vmem:[%s17465_s10 + $0x384] sm:$0xf] }
 0xf53   :  { %9135 = vmatpush.bf16.msra.mxu3 %v11816_v57  ;;  %v11716_v18 = vor.u32 %v12279_v34, %v11715_v31  ;;  %v11781_v57 = vld [vmem:[%s17465_s10 + $0x408] sm:$0xf0] }
 0xf54   :  { %v16898_v25 = vpop.f32.mrf.mxu3  ;;  %v11784_v48 = vor.u32 %v12294_v2, %v11781_v57 }
 0xf55   :  { %8684 = vmatmul.f32.gmra.mxu2 %v16769_v46  ;;  %8705 = vmatmul.f32.gmra.mxu0 %v16769_v46  ;;  %v11749_v46 = vld [vmem:[%s17465_s10 + $0x3c8] sm:$0xf0] }
 0xf56   :  { %8967 = vmatpush.bf16.msrb.mxu2 %v11756_v47  ;;  %8988 = vmatpush.bf16.msra.mxu0 %v11760_v27  ;;  %v11752_v21 = vor.u32 %v12286_v14, %v11749_v46 }
 0xf57   :  { %9136 = vmatpush.bf16.msra.mxu3 %v11808_v62  ;;  %v11812_v62 = vor.u32 %v12303_v15, %v11811_v61 }
 0xf58   :  { %v8109_v32 = vpop.f32.mrf.mxu2 }
 0xf59   :  { %v16924_v39 = vadd.f32 %v8109_v32, %v16785_v12  ;;  %v11740_v12 = vor.u32 %v12285_v22, %v11739_v42  ;;  %v11827_v32 = vld [vmem:[%s17465_s10 + $0x460] sm:$0xf] }
 0xf5a   :  { %v16926_v30 = vpop.f32.mrf.mxu0  ;;  %8968 = vmatpush.bf16.msrb.mxu2 %v11748_v43  ;;  %8989 = vmatpush.bf16.msra.mxu0 %v11752_v21  ;;  %v12307_v43 = vld [vmem:[%s17465_s10 + $0x464] sm:$0xf0] }
 0xf5b   :  { %9137 = vmatpush.bf16.msra.mxu3 %v11800_v10  ;;  %v11828_v21 = vor.u32 %v12307_v43, %v11827_v32  ;;  %v8134_v4 = vadd.f32 %v16926_v30, %v16790_v20  ;;  %v11795_v30 = vld [vmem:[%s17465_s10 + $0x420] sm:$0xf] }
 0xf5c   :  { %v16937_v58 = vpop.f32.mrf.mxu3 }
 0xf5d   :  { %8687 = vmatmul.f32.gmra.mxu2 %v16801_v11  ;;  %8708 = vmatmul.f32.gmra.mxu0 %v16801_v11  ;;  %v11733_v11 = vld [vmem:[%s17465_s10 + $0x3a8] sm:$0xf0] }
 0xf5e   :  { %8969 = vmatpush.bf16.msrb.mxu2 %v11740_v12  ;;  %8990 = vmatpush.bf16.msra.mxu0 %v11744_v35  ;;  %v11736_v59 = vor.u32 %v12282_v54, %v11733_v11  ;;  %v11803_v54 = vld [vmem:[%s17465_s10 + $0x430] sm:$0xf] }
 0xf5f   :  { %9138 = vmatpush.bf16.msra.mxu3 %v11792_v56 }
 0xf60   :  { %v8112_v16 = vpop.f32.mrf.mxu2 }
 0xf61   :  { %v16969_v8 = vadd.f32 %v8112_v16, %v16817_v29  ;;  %v12301_v16 = vld [vmem:[%s17465_s10 + $0x434] sm:$0xf0] }
 0xf62   :  { %v16971_v45 = vpop.f32.mrf.mxu0  ;;  %8970 = vmatpush.bf16.msrb.mxu2 %v11732_v23  ;;  %8991 = vmatpush.bf16.msra.mxu0 %v11736_v59  ;;  %v11804_v20 = vor.u32 %v12301_v16, %v11803_v54  ;;  %v12299_v23 = vld [vmem:[%s17465_s10 + $0x424] sm:$0xf0] }
 0xf63   :  { %9139 = vmatpush.bf16.msra.mxu3 %v11784_v48  ;;  %v8137_v11 = vadd.f32 %v16971_v45, %v16822_v60  ;;  %v11796_v7 = vor.u32 %v12299_v23, %v11795_v30  ;;  %v11788_v60 = vor.u32 %v12297_v13, %v11787_v63 }
 0xf64   :  { %v16982_v29 = vpop.f32.mrf.mxu3 }
 0xf65   :  { %8690 = vmatmul.f32.gmra.mxu2 %v16833_v53  ;;  %8711 = vmatmul.f32.gmra.mxu0 %v16833_v53  ;;  %v11717_v53 = vld [vmem:[%s17465_s10 + $0x388] sm:$0xf0] }
 0xf66   :  { %8971 = vmatpush.bf16.msrb.mxu2 %v11724_v49  ;;  %8992 = vmatpush.bf16.msra.mxu0 %v11728_v19  ;;  %v11720_v5 = vor.u32 %v12278_v40, %v11717_v53  ;;  %v12295_v49 = vld [vmem:[%s17465_s10 + $0x404] sm:$0xf0] }
 0xf67   :  { %v11780_v51 = vor.u32 %v12295_v49, %v11779_v9  ;;  %v9241_v49 = vld [vmem:[%s17467_s12 + $0x1d0] sm:$0xff] }
 0xf68   :  { %v8115_v38 = vpop.f32.mrf.mxu2 }
 0xf69   :  { %v17014_v26 = vadd.f32 %v8115_v38, %v16849_v41  ;;  %v11836_v41 = vor.u32 %v12309_v3, %v11835_v55 }
 0xf6a   :  { %v8265_v47 = vpop.f32.mrf.mxu0  ;;  %8972 = vmatpush.bf16.msrb.mxu2 %v11716_v18  ;;  %8993 = vmatpush.bf16.msra.mxu0 %v11720_v5 }
 0xf6c   :  { %v17016_v27 = vpop.f32.mrf.mxu3 }
 0xf6d   :  { %8827 = vmatmul.f32.vlgmr.msra.gmra.mxu2 %v16865_v6  ;;  %8848 = vmatmul.f32.vlgmr.msrb.gmra.mxu0 %v16865_v6  ;;  %v11819_v6 = vld [vmem:[%s17465_s10 + $0x450] sm:$0xf] }
 0xf6e   :  { %9111 = vmatpush.bf16.msra.mxu2 %v11836_v41  ;;  %v11820_v12 = vor.u32 %v12305_v33, %v11819_v6 }
 0xf70   :  { %v8244_v14 = vpop.f32.mrf.mxu2 }
 0xf71   :  { %v17033_v46 = vadd.f32 %v8244_v14, %v16885_v17 }
 0xf72   :  { %v8268_v42 = vpop.f32.mrf.mxu0  ;;  %9112 = vmatpush.bf16.msra.mxu2 %v11828_v21 }
 0xf74   :  { %v7845_v22 = vpop.f32.mrf.mxu3 }
 0xf75   :  { %8830 = vmatmul.f32.gmra.mxu2 %v16898_v25  ;;  %8851 = vmatmul.f32.gmra.mxu0 %v16898_v25 }
 0xf76   :  { %9113 = vmatpush.bf16.msra.mxu2 %v11820_v12 }
 0xf78   :  { %v8247_v17 = vpop.f32.mrf.mxu2 }
 0xf79   :  { %v17052_v35 = vadd.f32 %v8247_v17, %v16924_v39 }
 0xf7a   :  { %v8271_v24 = vpop.f32.mrf.mxu0  ;;  %9114 = vmatpush.bf16.msra.mxu2 %v11812_v62 }
 0xf7b   :  { %v8282_v25 = vadd.f32 %v8271_v24, %v8134_v4 }
 0xf7c   :  { %v7848_v36 = vpop.f32.mrf.mxu3 }
 0xf7d   :  { %8833 = vmatmul.f32.gmra.mxu2 %v16937_v58  ;;  %8854 = vmatmul.f32.gmra.mxu0 %v16937_v58 }
 0xf7e   :  { %9115 = vmatpush.bf16.msra.mxu2 %v11804_v20 }
 0xf80   :  { %v8250_v39 = vpop.f32.mrf.mxu2 }
 0xf81   :  { %v8281_v37 = vadd.f32 %v8250_v39, %v16969_v8  ;;  %v8128_v8 = vadd.f32 %v16854_v44, %v16720_v28  ;;  %v8131_v28 = vadd.f32 %v16887_v1, %v16758_v50 }
 0xf82   :  { %v8274_v59 = vpop.f32.mrf.mxu0  ;;  %9116 = vmatpush.bf16.msra.mxu2 %v11796_v7 }
 0xf83   :  { %v8284_v10 = vadd.f32 %v8274_v59, %v8137_v11  ;;  %v8278_v0 = vadd.f32 %v8265_v47, %v8128_v8  ;;  %v8280_v31 = vadd.f32 %v8268_v42, %v8131_v28  ;;  %v9245_v8 = vld [vmem:[%s17467_s12 + $0x1f0] sm:$0xff]  ;;  %v9211_v28 = vld [vmem:[%s17467_s12 + $0xe0] sm:$0xff] }
 0xf84   :  { %v7850_v58 = vpop.f32.mrf.mxu3 }
 0xf85   :  { %8836 = vmatmul.f32.gmra.mxu2 %v16982_v29  ;;  %8857 = vmatmul.f32.gmra.mxu0 %v16982_v29 }
 0xf86   :  { %9117 = vmatpush.bf16.msra.mxu2 %v11788_v60 }
 0xf88   :  { %v8253_v45 = vpop.f32.mrf.mxu2 }
 0xf89   :  { %v8283_v52 = vadd.f32 %v8253_v45, %v17014_v26  ;;  %v9243_v45 = vld [vmem:[%s17467_s12 + $0x1e0] sm:$0xff] }
 0xf8a   :  { %v8411_v19 = vpop.f32.mrf.mxu0  ;;  %9118 = vmatpush.bf16.msra.mxu2 %v11780_v51  ;;  %v9239_v51 = vld [vmem:[%s17467_s12 + $0x1c0] sm:$0xff] }
 0xf8b   :  { %v8424_v29 = vadd.f32 %v8411_v19, %v8278_v0  ;;  %v9237_v19 = vld [vmem:[%s17467_s12 + $0x1b0] sm:$0xff] }
 0xf8c   :  { %v7853_v56 = vpop.f32.mrf.mxu3 }
 0xf8d   :  { %8973 = vmatmul.f32.vlgmr.msrb.gmra.mxu2 %v17016_v27  ;;  %8994 = vmatmul.f32.vlgmr.msra.gmra.mxu0 %v17016_v27 }
 0xf8e   :  { %9140 = vmatmul.f32.vlgmr.msra.gmra.mxu3 %v7853_v56  ;;  %9273 = vmatpush.msrb.mxu2 %v9245_v8 }
 0xf90   :  { %v8390_v44 = vpop.f32.mrf.mxu2  ;;  %9274 = vmatpush.msrb.mxu2 %v9243_v45  ;;  %v9206_v45 = vld [vmem:[%s17467_s12 + $0xb8] sm:$0xff] }
 0xf91   :  { %v8423_v41 = vadd.f32 %v8390_v44, %v17033_v46 }
 0xf92   :  { %v8414_v34 = vpop.f32.mrf.mxu0  ;;  %9275 = vmatpush.msrb.mxu2 %v9241_v49  ;;  %v9204_v49 = vld [vmem:[%s17467_s12 + $0xa8] sm:$0xff] }
 0xf93   :  { %v8426_v40 = vadd.f32 %v8414_v34, %v8280_v31  ;;  %v9233_v31 = vld [vmem:[%s17467_s12 + $0x190] sm:$0xff] }
 0xf94   :  { %v7855_v38 = vpop.f32.mrf.mxu3  ;;  %9276 = vmatpush.msrb.mxu2 %v9239_v51  ;;  %v9244_v51 = vld [vmem:[%s17467_s12 + $0x1e8] sm:$0xff] }
 0xf95   :  { %8976 = vmatmul.f32.gmra.mxu2 %v7845_v22  ;;  %8997 = vmatmul.f32.gmra.mxu0 %v7845_v22 }
 0xf96   :  { %9143 = vmatmul.f32.gmra.mxu3 %v7855_v38  ;;  %9277 = vmatpush.msrb.mxu2 %v9237_v19 }
 0xf98   :  { %v8393_v18 = vpop.f32.mrf.mxu2 }
 0xf99   :  { %v8425_v42 = vadd.f32 %v8393_v18, %v17052_v35  ;;  %v9231_v18 = vld [vmem:[%s17467_s12 + $0x180] sm:$0xff] }
 0xf9a   :  { %v8417_v53 = vpop.f32.mrf.mxu0 }
 0xf9b   :  { %v8428_v2 = vadd.f32 %v8417_v53, %v8282_v25  ;;  %v9207_v53 = vld [vmem:[%s17467_s12 + $0xc0] sm:$0xff] }
 0xf9c   :  { %v7858_v57 = vpop.f32.mrf.mxu3 }
 0xf9d   :  { %8979 = vmatmul.f32.gmra.mxu2 %v7848_v36  ;;  %9000 = vmatmul.f32.gmra.mxu0 %v7848_v36 }
 0xf9e   :  { %9146 = vmatmul.f32.gmra.mxu3 %v7858_v57 }
 0xfa0   :  { %v8396_v26 = vpop.f32.mrf.mxu2 }
 0xfa1   :  { %v8427_v5 = vadd.f32 %v8396_v26, %v8281_v37  ;;  %v9227_v26 = vld [vmem:[%s17467_s12 + $0x160] sm:$0xff] }
 0xfa2   :  { %v8420_v48 = vpop.f32.mrf.mxu0 }
 0xfa3   :  { %v8430_v47 = vadd.f32 %v8420_v48, %v8284_v10 }
 0xfa4   :  { %v7860_v50 = vpop.f32.mrf.mxu3 }
 0xfa5   :  { %8982 = vmatmul.f32.gmra.mxu2 %v7850_v58  ;;  %9003 = vmatmul.f32.gmra.mxu0 %v7850_v58 }
 0xfa6   :  { %9149 = vmatmul.f32.gmra.mxu3 %v7860_v50 }
 0xfa8   :  { %v8399_v1 = vpop.f32.mrf.mxu2 }
 0xfa9   :  { %v8429_v27 = vadd.f32 %v8399_v1, %v8283_v52 }
 0xfaa   :  { %v8557_v55 = vpop.f32.mrf.mxu0 }
 0xfab   :  { %v8570_v3 = vadd.f32 %v8557_v55, %v8424_v29  ;;  %v9213_v29 = vld [vmem:[%s17467_s12 + $0xf0] sm:$0xff]  ;;  %v9199_v55 = vld [vmem:[%s17467_s12 + $0x80] sm:$0xff] }
 0xfac   :  { %9253 = vmatpush.msrb.mxu0 %v9213_v29 }
 0xfad   :  { %9119 = vmatmul.f32.vlgmr.msra.gmra.mxu2 %v7853_v56  ;;  %v9235_v56 = vld [vmem:[%s17467_s12 + $0x1a0] sm:$0xff] }
 0xfae   :  { %9278 = vmatpush.msrb.mxu2 %v9235_v56  ;;  %9254 = vmatpush.msrb.mxu0 %v9211_v28  ;;  %v9202_v56 = vld [vmem:[%s17467_s12 + $0x98] sm:$0xff] }
 0xfaf   :  { %v9242_v28 = vld [vmem:[%s17467_s12 + $0x1d8] sm:$0xff] }
 0xfb0   :  { %v8536_v14 = vpop.f32.mrf.mxu2  ;;  %9279 = vmatpush.msrb.mxu2 %v9233_v31  ;;  %v9200_v31 = vld [vmem:[%s17467_s12 + $0x88] sm:$0xff] }
 0xfb1   :  { %v8569_v32 = vadd.f32 %v8536_v14, %v8423_v41  ;;  %v9197_v41 = vld [vmem:[%s17467_s12 + $0x70] sm:$0xff]  ;;  %v9219_v14 = vld [vmem:[%s17467_s12 + $0x120] sm:$0xff] }
 0xfb2   :  { %v8560_v43 = vpop.f32.mrf.mxu0  ;;  %9280 = vmatpush.msrb.mxu2 %v9231_v18  ;;  %v9198_v18 = vld [vmem:[%s17467_s12 + $0x78] sm:$0xff] }
 0xfb3   :  { %v8572_v21 = vadd.f32 %v8560_v43, %v8426_v40  ;;  %v9209_v40 = vld [vmem:[%s17467_s12 + $0xd0] sm:$0xff] }
 0xfb4   :  { %9255 = vmatpush.msrb.mxu0 %v9209_v40  ;;  %v9240_v40 = vld [vmem:[%s17467_s12 + $0x1c8] sm:$0xff] }
 0xfb5   :  { %9122 = vmatmul.f32.gmra.mxu2 %v7855_v38 }
 0xfb6   :  { %9256 = vmatpush.msrb.mxu0 %v9207_v53  ;;  %v9238_v53 = vld [vmem:[%s17467_s12 + $0x1b8] sm:$0xff] }
 0xfb8   :  { %v8539_v22 = vpop.f32.mrf.mxu2 }
 0xfb9   :  { %v8571_v6 = vadd.f32 %v8539_v22, %v8425_v42  ;;  %v9193_v22 = vld [vmem:[%s17467_s12 + $0x50] sm:$0xff] }
 0xfba   :  { %v8563_v33 = vpop.f32.mrf.mxu0 }
 0xfbb   :  { %v8574_v12 = vadd.f32 %v8563_v33, %v8428_v2  ;;  %v9229_v2 = vld [vmem:[%s17467_s12 + $0x170] sm:$0xff]  ;;  %v9215_v33 = vld [vmem:[%s17467_s12 + $0x100] sm:$0xff] }
 0xfbc   :  { %9281 = vmatpush.msrb.mxu2 %v9229_v2 }
 0xfbd   :  { %9125 = vmatmul.f32.gmra.mxu2 %v7858_v57  ;;  %v9205_v57 = vld [vmem:[%s17467_s12 + $0xb0] sm:$0xff] }
 0xfbe   :  { %9257 = vmatpush.msrb.mxu0 %v9205_v57  ;;  %9282 = vmatpush.msrb.mxu2 %v9227_v26  ;;  %v9196_v26 = vld [vmem:[%s17467_s12 + $0x68] sm:$0xff] }
 0xfc0   :  { %v8542_v17 = vpop.f32.mrf.mxu2 }
 0xfc1   :  { %v8573_v61 = vadd.f32 %v8542_v17, %v8427_v5  ;;  %v9203_v5 = vld [vmem:[%s17467_s12 + $0xa0] sm:$0xff] }
 0xfc2   :  { %v8566_v15 = vpop.f32.mrf.mxu0  ;;  %9258 = vmatpush.msrb.mxu0 %v9203_v5  ;;  %v9236_v5 = vld [vmem:[%s17467_s12 + $0x1a8] sm:$0xff] }
 0xfc3   :  { %v17094_v4 = vadd.f32 %v8566_v15, %v8430_v47  ;;  %v9225_v47 = vld [vmem:[%s17467_s12 + $0x150] sm:$0xff] }
 0xfc4   :  { %9283 = vmatpush.msrb.mxu2 %v9225_v47  ;;  %v9189_v15 = vld [vmem:[%s17467_s12 + $0x30] sm:$0xff] }
 0xfc5   :  { %9128 = vmatmul.f32.gmra.mxu2 %v7860_v50  ;;  %v9201_v50 = vld [vmem:[%s17467_s12 + $0x90] sm:$0xff] }
 0xfc6   :  { %9259 = vmatpush.msrb.mxu0 %v9201_v50 }
 0xfc8   :  { %v8545_v62 = vpop.f32.mrf.mxu2  ;;  %9260 = vmatpush.msrb.mxu0 %v9199_v55 }
 0xfc9   :  { %v8575_v46 = vadd.f32 %v8545_v62, %v8429_v27  ;;  %v9223_v27 = vld [vmem:[%s17467_s12 + $0x140] sm:$0xff]  ;;  %v9212_v62 = vld [vmem:[%s17467_s12 + $0xe8] sm:$0xff] }
 0xfca   :  { %v8703_v24 = vpop.f32.mrf.mxu0  ;;  %9284 = vmatpush.msrb.mxu2 %v9223_v27  ;;  %9261 = vmatpush.msrb.mxu0 %v9197_v41  ;;  %v9232_v41 = vld [vmem:[%s17467_s12 + $0x188] sm:$0xff] }
 0xfcb   :  { %v17096_v25 = vadd.f32 %v8703_v24, %v8570_v3  ;;  %v9221_v3 = vld [vmem:[%s17467_s12 + $0x130] sm:$0xff]  ;;  %v9187_v24 = vld [vmem:[%s17467_s12 + $0x20] sm:$0xff] }
 0xfcc   :  { %9285 = vmatpush.msrb.mxu2 %v9221_v3 }
 0xfce   :  { %9286 = vmatpush.msrb.mxu2 %v9219_v14 }
 0xfd0   :  { %v8682_v36 = vpop.f32.mrf.mxu2 }
 0xfd1   :  { %v8715_v54 = vadd.f32 %v8682_v36, %v8569_v32  ;;  %v9195_v32 = vld [vmem:[%s17467_s12 + $0x60] sm:$0xff] }
 0xfd2   :  { %v8706_v16 = vpop.f32.mrf.mxu0  ;;  %9262 = vmatpush.msrb.mxu0 %v9195_v32 }
 0xfd3   :  { %v17098_v35 = vadd.f32 %v8706_v16, %v8572_v21  ;;  %v9217_v21 = vld [vmem:[%s17467_s12 + $0x110] sm:$0xff] }
 0xfd4   :  { %9287 = vmatpush.msrb.mxu2 %v9217_v21  ;;  %9263 = vmatpush.msrb.mxu0 %v9193_v22  ;;  %v9190_v21 = vld [vmem:[%s17467_s12 + $0x38] sm:$0xff] }
 0xfd6   :  { %9288 = vmatpush.msrb.mxu2 %v9215_v33  ;;  %v9228_v33 = vld [vmem:[%s17467_s12 + $0x168] sm:$0xff] }
 0xfd8   :  { %v8685_v20 = vpop.f32.mrf.mxu2 }
 0xfd9   :  { %v8717_v39 = vadd.f32 %v8685_v20, %v8571_v6 }
 0xfda   :  { %v8709_v30 = vpop.f32.mrf.mxu0 }
 0xfdb   :  { %v17100_v23 = vadd.f32 %v8709_v30, %v8574_v12  ;;  %v9191_v12 = vld [vmem:[%s17467_s12 + $0x40] sm:$0xff]  ;;  %v9210_v30 = vld [vmem:[%s17467_s12 + $0xd8] sm:$0xff] }
 0xfdc   :  { %9264 = vmatpush.msrb.mxu0 %v9191_v12 }
 0xfde   :  { %9265 = vmatpush.msrb.mxu0 %v9189_v15  ;;  %v9226_v15 = vld [vmem:[%s17467_s12 + $0x158] sm:$0xff] }
 0xfe0   :  { %v8688_v11 = vpop.f32.mrf.mxu2  ;;  %9266 = vmatpush.msrb.mxu0 %v9187_v24  ;;  %v9224_v24 = vld [vmem:[%s17467_s12 + $0x148] sm:$0xff] }
 0xfe1   :  { %v8719_v37 = vadd.f32 %v8688_v11, %v8573_v61  ;;  %v9214_v61 = vld [vmem:[%s17467_s12 + $0xf8] sm:$0xff] }
 0xfe2   :  { %v17102_v7 = vpop.f32.mrf.mxu0  ;;  %9293 = vmatpush.msrb.mxu3 %v9214_v61  ;;  %v9186_v61 = vld [vmem:[%s17467_s12 + $0x18] sm:$0xff] }
 0xfe3   :  { %v8722_v2 = vadd.f32 %v17102_v7, %v17094_v4 }
 0xfe4   :  { %9294 = vmatpush.msrb.mxu3 %v9212_v62  ;;  %v9184_v62 = vld [vmem:[%s17467_s12 + $0x8] sm:$0xff] }
 0xfe6   :  { %9295 = vmatpush.msrb.mxu3 %v9210_v30 }
 0xfe8   :  { %v8691_v59 = vpop.f32.mrf.mxu2 }
 0xfe9   :  { %v17104_v10 = vadd.f32 %v8691_v59, %v8575_v46  ;;  %v17222_v46 = vld [vmem:[%s17466_s11] sm:$0x3]  ;;  %v9208_v59 = vld [vmem:[%s17467_s12 + $0xc8] sm:$0xff] }
 0xfea   :  { %v17106_v58 = vpop.f32.mrf.mxu0  ;;  %v17230_v16 = vperm.slane %v17222_v46, 1  ;;  %9296 = vmatpush.msrb.mxu3 %v9208_v59  ;;  %v9216_v59 = vld [vmem:[%s17467_s12 + $0x108] sm:$0xff] }
 0xfeb   :  { %v8862_v17 = vadd.f32 %v17106_v58, %v17096_v25 }
 0xfec   :  { %9297 = vmatpush.msrb.mxu3 %v9206_v45 }
 0xfee   :  { %9298 = vmatpush.msrb.mxu3 %v9204_v49 }
 0xff0   :  { %v8828_v63 = vpop.f32.mrf.mxu2  ;;  %9299 = vmatpush.msrb.mxu3 %v9202_v56 }
 0xff1   :  { %v17108_v13 = vadd.f32 %v8828_v63, %v8715_v54  ;;  %v9183_v63 = vld [vmem:[%s17467_s12] sm:$0xff] }
 0xff2   :  { %v17110_v60 = vpop.f32.mrf.mxu0  ;;  %9300 = vmatpush.msrb.mxu3 %v9200_v31  ;;  %v9364_v31 = vld [vmem:[%s17469_s14 + $0xe8] sm:$0xff] }
 0xff3   :  { %v8864_v25 = vadd.f32 %v17110_v60, %v17098_v35  ;;  %v9185_v35 = vld [vmem:[%s17467_s12 + $0x10] sm:$0xff] }
 0xff4   :  { %9267 = vmatpush.msrb.mxu0 %v9185_v35  ;;  %9301 = vmatpush.msrb.mxu3 %v9198_v18  ;;  %v9163_v35 = vperm.slane %v17222_v46, 0  ;;  %v9363_v18 = vld [vmem:[%s17469_s14 + $0xe0] sm:$0xff] }
 0xff6   :  { %9268 = vmatpush.msrb.mxu0 %v9183_v63  ;;  %9302 = vmatpush.msrb.mxu3 %v9196_v26  ;;  %v9361_v26 = vld [vmem:[%s17469_s14 + $0xd0] sm:$0xff] }
 0xff8   :  { %v8831_v9 = vpop.f32.mrf.mxu2 }
 0xff9   :  { %v17121_v0 = vadd.f32 %v8831_v9, %v8717_v39  ;;  %v9246_v9 = vld [vmem:[%s17467_s12 + $0x1f8] sm:$0xff] }
 0xffa   :  { %v17123_v52 = vpop.f32.mrf.mxu0  ;;  %9313 = vmatpush.msra.mxu0 %v9246_v9 }
 0xffb   :  { %v8866_v57 = vadd.f32 %v17123_v52, %v17100_v23  ;;  %v9194_v23 = vld [vmem:[%s17467_s12 + $0x58] sm:$0xff] }
 0xffc   :  { %9314 = vmatpush.msra.mxu0 %v9244_v51  ;;  %v9234_v52 = vld [vmem:[%s17467_s12 + $0x198] sm:$0xff]  ;;  %9303 = vmatpush.msrb.mxu3 %v9194_v23  ;;  %v9340_v23 = vld [vmem:[%s17469_s14 + $0x28] sm:$0xff] }
 0xffe   :  { %9315 = vmatpush.msra.mxu0 %v9242_v28 }
0x1000   :  { %v8834_v44 = vpop.f32.mrf.mxu2  ;;  %9316 = vmatpush.msra.mxu0 %v9240_v40  ;;  %v9347_v40 = vld [vmem:[%s17469_s14 + $0x60] sm:$0xff] }
0x1001   :  { %v17143_v34 = vadd.f32 %v8834_v44, %v8719_v37 }
0x1002   :  { %v17148_v38 = vpop.f32.mrf.mxu0  ;;  %9317 = vmatpush.msra.mxu0 %v9238_v53  ;;  %v9346_v53 = vld [vmem:[%s17469_s14 + $0x58] sm:$0xff] }
0x1003   :  { %v8868_v50 = vadd.f32 %v17148_v38, %v8722_v2  ;;  %v9192_v38 = vld [vmem:[%s17467_s12 + $0x48] sm:$0xff]  ;;  %v9362_v2 = vld [vmem:[%s17469_s14 + $0xd8] sm:$0xff] }
0x1004   :  { %9318 = vmatpush.msra.mxu0 %v9236_v5  ;;  %9304 = vmatpush.msrb.mxu3 %v9192_v38  ;;  %v9344_v5 = vld [vmem:[%s17469_s14 + $0x48] sm:$0xff]  ;;  %v9337_v38 = vld [vmem:[%s17469_s14 + $0x10] sm:$0xff] }
0x1006   :  { %9319 = vmatpush.msra.mxu0 %v9234_v52  ;;  %9305 = vmatpush.msrb.mxu3 %v9190_v21  ;;  %v9339_v52 = vld [vmem:[%s17469_s14 + $0x20] sm:$0xff] }
0x1007   :  { %v9335_v21 = vld [vmem:[%s17469_s14] sm:$0xff] }
0x1008   :  { %v17168_v48 = vpop.f32.mrf.mxu2  ;;  %9320 = vmatpush.msra.mxu0 %v9232_v41  ;;  %v9356_v41 = vld [vmem:[%s17469_s14 + $0xa8] sm:$0xff] }
0x100a   :  { %v8995_v1 = vpop.f32.mrf.mxu0 }
0x100b   :  { %v9008_v36 = vadd.f32 %v8995_v1, %v8862_v17 }
0x1010   :  { %v17194_v43 = vpop.f32.mrf.mxu2 }
0x1011   :  { %v9141_v42 = vpop.f32.mrf.mxu3 }
0x1012   :  { %v8998_v6 = vpop.f32.mrf.mxu0  ;;  %v9154_v54 = vadd.f32 %v9141_v42, %v9008_v36  ;;  %v9230_v42 = vld [vmem:[%s17467_s12 + $0x178] sm:$0xff] }
0x1013   :  { %v9010_v20 = vadd.f32 %v8998_v6, %v8864_v25  ;;  %9321 = vmatpush.msra.mxu0 %v9230_v42  ;;  %v9188_v6 = vld [vmem:[%s17467_s12 + $0x28] sm:$0xff]  ;;  %v9222_v36 = vld [vmem:[%s17467_s12 + $0x138] sm:$0xff] }
0x1014   :  { %v9168_v60 = vadd.f32 %v17230_v16, %v9154_v54  ;;  %9306 = vmatpush.msrb.mxu3 %v9188_v6  ;;  %v9220_v54 = vld [vmem:[%s17467_s12 + $0x128] sm:$0xff]  ;;  %v9354_v42 = vld [vmem:[%s17469_s14 + $0x98] sm:$0xff] }
0x1015   :  { %9322 = vmatpush.msra.mxu0 %v9228_v33  ;;  %v9352_v6 = vld [vmem:[%s17469_s14 + $0x88] sm:$0xff]  ;;  %v9351_v33 = vld [vmem:[%s17469_s14 + $0x80] sm:$0xff] }
0x1016   :  { %9307 = vmatpush.msrb.mxu3 %v9186_v61 }
0x1017   :  { %9323 = vmatpush.msra.mxu0 %v9226_v15 }
0x1018   :  { %v17232_v39 = vpop.f32.mrf.mxu2  ;;  %9308 = vmatpush.msrb.mxu3 %v9184_v62 }
0x1019   :  { %v9144_v11 = vpop.f32.mrf.mxu3  ;;  %9324 = vmatpush.msra.mxu0 %v9224_v24  ;;  %v9009_v30 = vadd.f32 %v17232_v39, %v17121_v0 }
0x101a   :  { %v9156_v37 = vadd.f32 %v9144_v11, %v9010_v20  ;;  %v9001_v58 = vpop.f32.mrf.mxu0  ;;  %v9218_v20 = vld [vmem:[%s17467_s12 + $0x118] sm:$0xff] }
0x101b   :  { %v9012_v1 = vadd.f32 %v9001_v58, %v8866_v57  ;;  %9325 = vmatpush.msra.mxu0 %v9222_v36  ;;  %v9345_v57 = vld [vmem:[%s17469_s14 + $0x50] sm:$0xff] }
0x101c   :  { %v9170_v8 = vadd.f32 %v17230_v16, %v9156_v37 }
0x101d   :  { %9326 = vmatpush.msra.mxu0 %v9220_v54 }
0x101e   :  { %v9176_v19 = vmax.f32 %v9168_v60, %v9170_v8  ;;  %v8867_v8 = vadd.f32 %v17168_v48, %v17104_v10  ;;  %v9349_v10 = vld [vmem:[%s17469_s14 + $0x70] sm:$0xff]  ;;  %v9348_v48 = vld [vmem:[%s17469_s14 + $0x68] sm:$0xff] }
0x101f   :  { %9327 = vmatpush.msra.mxu0 %v9218_v20 }
0x1020   :  { %v17260_v29 = vpop.f32.mrf.mxu2 }
0x1021   :  { %v9147_v44 = vpop.f32.mrf.mxu3  ;;  %9328 = vmatpush.msra.mxu0 %v9216_v59  ;;  %v9011_v0 = vadd.f32 %v17260_v29, %v17143_v34  ;;  %v9366_v34 = vld [vmem:[%s17469_s14 + $0xf8] sm:$0xff]  ;;  %v9365_v29 = vld [vmem:[%s17469_s14 + $0xf0] sm:$0xff] }
0x1022   :  { %v9004_v47 = vpop.f32.mrf.mxu0  ;;  %v9158_v4 = vadd.f32 %v9147_v44, %v9012_v1  ;;  %v9350_v44 = vld [vmem:[%s17469_s14 + $0x78] sm:$0xff]  ;;  %9391 = vmatpush.msra.mxu3 %v9366_v34  ;;  %v9359_v1 = vld [vmem:[%s17469_s14 + $0xc0] sm:$0xff] }
0x1023   :  { %v9014_v7 = vadd.f32 %v9004_v47, %v8868_v50  ;;  %9371 = vmatpush.msra.mxu2 %v9350_v44  ;;  %v9360_v47 = vld [vmem:[%s17469_s14 + $0xc8] sm:$0xff]  ;;  %v9343_v50 = vld [vmem:[%s17469_s14 + $0x40] sm:$0xff] }
0x1024   :  { %v9172_v14 = vadd.f32 %v17230_v16, %v9158_v4  ;;  %9392 = vmatpush.msra.mxu3 %v9365_v29  ;;  %v9342_v4 = vld [vmem:[%s17469_s14 + $0x38] sm:$0xff] }
0x1025   :  { %9372 = vmatpush.msra.mxu2 %v9349_v10 }
0x1026   :  { %9393 = vmatpush.msra.mxu3 %v9364_v31 }
0x1027   :  { %9373 = vmatpush.msra.mxu2 %v9348_v48 }
0x1028   :  { %v8983_v27 = vpop.f32.mrf.mxu2  ;;  %9394 = vmatpush.msra.mxu3 %v9363_v18 }
0x1029   :  { %v9150_v55 = vpop.f32.mrf.mxu3  ;;  %v9013_v46 = vadd.f32 %v8983_v27, %v8867_v8  ;;  %9374 = vmatpush.msra.mxu2 %v9347_v40  ;;  %v9341_v27 = vld [vmem:[%s17469_s14 + $0x30] sm:$0xff] }
0x102a   :  { %v9160_v3 = vadd.f32 %v9150_v55, %v9014_v7  ;;  %9395 = vmatpush.msra.mxu3 %v9362_v2  ;;  %v9358_v7 = vld [vmem:[%s17469_s14 + $0xb8] sm:$0xff] }
0x102b   :  { %9375 = vmatpush.msra.mxu2 %v9346_v53  ;;  %v9338_v55 = vld [vmem:[%s17469_s14 + $0x18] sm:$0xff] }
0x102c   :  { %v9174_v32 = vadd.f32 %v17230_v16, %v9160_v3  ;;  %v9007_v16 = vadd.f32 %v17194_v43, %v17108_v13  ;;  %9396 = vmatpush.msra.mxu3 %v9361_v26  ;;  %v9357_v3 = vld [vmem:[%s17469_s14 + $0xb0] sm:$0xff] }
0x102d   :  { %9376 = vmatpush.msra.mxu2 %v9345_v57 }
0x102e   :  { %v9178_v22 = vmax.f32 %v9172_v14, %v9174_v32  ;;  %9397 = vmatpush.msra.mxu3 %v9360_v47  ;;  %v9336_v14 = vld [vmem:[%s17469_s14 + $0x8] sm:$0xff]  ;;  %v9355_v32 = vld [vmem:[%s17469_s14 + $0xa0] sm:$0xff] }
0x102f   :  { %9377 = vmatpush.msra.mxu2 %v9344_v5 }
0x1030   :  { %v9180_v12 = vmax.f32 %v9176_v19, %v9178_v22  ;;  %v9120_v17 = vpop.f32.mrf.mxu2  ;;  %9398 = vmatpush.msra.mxu3 %v9359_v1  ;;  %v9353_v22 = vld [vmem:[%s17469_s14 + $0x90] sm:$0xff] }
0x1031   :  { %v9153_v11 = vadd.f32 %v9120_v17, %v9007_v16  ;;  %9378 = vmatpush.msra.mxu2 %v9343_v50 }
0x1032   :  { %v9182_v25 = vmax.f32 %v9180_v12, 0.0  ;;  %9399 = vmatpush.msra.mxu3 %v9358_v7  ;;  %v9247_v12 = vld [vmem:[%s17468_s13] sm:$0x3]  ;;  %s12367_s13 = smov [#allocation2]  }
0x1033   :  { %v9167_v13 = vadd.f32 %v9163_v35, %v9153_v11  ;;  %9379 = vmatpush.msra.mxu2 %v9342_v4  ;;  %v9249_v17 = vperm.slane %v9247_v12, 0  ;;  %s9418_s26 = sshll.u32 %s12367_s13, 4  ;;  %s9419_s26 = int_to_ptr.vmem [resolvable:$true] %s9418_s26 }
0x1034   :  { %9289 = vmatmul.f32.vlgmr.msrb.gmra.mxu2 %v9182_v25  ;;  %9400 = vmatpush.msra.mxu3 %v9357_v3 }
0x1035   :  { %9380 = vmatpush.msra.mxu2 %v9341_v27 }
0x1036   :  { %9401 = vmatpush.msra.mxu3 %v9356_v41 }
0x1037   :  { %9381 = vmatpush.msra.mxu2 %v9340_v23 }
0x1038   :  { %v9123_v37 = vpop.f32.mrf.mxu2  ;;  %9402 = vmatpush.msra.mxu3 %v9355_v32 }
0x1039   :  { %v9155_v58 = vadd.f32 %v9123_v37, %v9009_v30  ;;  %9382 = vmatpush.msra.mxu2 %v9339_v52 }
0x103a   :  { %9403 = vmatpush.msra.mxu3 %v9354_v42 }
0x103b   :  { %v9169_v43 = vadd.f32 %v9163_v35, %v9155_v58  ;;  %9383 = vmatpush.msra.mxu2 %v9338_v55 }
0x103c   :  { %9404 = vmatpush.msra.mxu3 %v9353_v22 }
0x103d   :  { %v9175_v63 = vmax.f32 %v9167_v13, %v9169_v43  ;;  %9384 = vmatpush.msra.mxu2 %v9337_v38 }
0x103e   :  { %9405 = vmatpush.msra.mxu3 %v9352_v6 }
0x103f   :  { %9385 = vmatpush.msra.mxu2 %v9336_v14 }
0x1040   :  { %v9126_v60 = vpop.f32.mrf.mxu2  ;;  %9406 = vmatpush.msra.mxu3 %v9351_v33 }
0x1041   :  { %v9157_v39 = vadd.f32 %v9126_v60, %v9011_v0  ;;  %9386 = vmatpush.msra.mxu2 %v9335_v21 }
0x1043   :  { %v9171_v49 = vadd.f32 %v9163_v35, %v9157_v39 }
0x1048   :  { %v9129_v45 = vpop.f32.mrf.mxu2 }
0x1049   :  { %v9159_v9 = vadd.f32 %v9129_v45, %v9013_v46 }
0x104b   :  { %v9173_v51 = vadd.f32 %v9163_v35, %v9159_v9  ;;  %v12339_v35 = vld [vmem:[%s17470_s15] ss:$0 sm:$0xff] }
0x104d   :  { %v9177_v19 = vmax.f32 %v9171_v49, %v9173_v51 }
0x104f   :  { %v9179_v56 = vmax.f32 %v9175_v63, %v9177_v19 }
0x1051   :  { %v9181_v28 = vmax.f32 %v9179_v56, 0.0 }
0x1053   :  { %9269 = vmatmul.f32.vlgmr.msrb.gmra.mxu0 %v9181_v28  ;;  %9309 = vmatmul.f32.vlgmr.msrb.gmra.mxu3 %v9181_v28 }
0x105b   :  { %9329 = vmatmul.f32.vlgmr.msra.gmra.mxu0 %v9182_v25  ;;  %v9250_v25 = vperm.slane %v9247_v12, 1 }
0x10b7   :  { %v9290_v62 = vpop.f32.mrf.mxu2 }
0x10d0   :  { %v9270_v61 = vpop.f32.mrf.mxu0 }
0x10d1   :  { %v9271_v15 = vadd.f32 %v9270_v61, %v9249_v17 }
0x10d3   :  { %v9291_v24 = vadd.f32 %v9290_v62, %v9271_v15 }
0x10d5   :  { %v9333_v36 = vmax.f32 %v9291_v24, 0.0 }
0x10d6   :  { %v9310_v54 = vpop.f32.mrf.mxu3 }
0x10d7   :  { %v9311_v16 = vadd.f32 %v9310_v54, %v9250_v25  ;;  %9387 = vmatmul.f32.vlgmr.msra.gmra.mxu2 %v9333_v36 }
0x10d8   :  { %v9330_v20 = vpop.f32.mrf.mxu0 }
0x10d9   :  { %v9331_v30 = vadd.f32 %v9330_v20, %v9311_v16 }
0x10db   :  { %v9334_v11 = vmax.f32 %v9331_v30, 0.0 }
0x10dd   :  { %9407 = vmatmul.f32.vlgmr.msra.gmra.mxu3 %v9334_v11 }
0x115a   :  { %v9388_v37 = vpop.f32.mrf.mxu2 }
0x115b   :  { %v9389_v59 = vadd.f32 %v12339_v35, %v9388_v37 }
0x1160   :  { %v9408_v58 = vpop.f32.mrf.mxu3 }
0x1161   :  { %v9409_v13 = vadd.f32 %v9408_v58, %v9389_v59 }
0x1163   :  { %9412 = vst.msk [vmem:[#allocation2] sm:$0x3] %vm9411_vm5, %v9409_v13 }
0x1164   :  { %9423 = dma.vmem_to_hbm [thread:$0]  %s9419_s26, 32, %s9421_s28, [#allocation3]  }
0x1165   :  { %12364 = dma.done.wait [#allocation3], 32  }
0x1166   :  { %12365 = vsyncadd [#allocation3], 4294967264 }
0x1167   :  { %9428 = vsyncpa [#allocation3], 1 }

</bundles_post_ra>
